<compile_context>
chip_gen: v7x
topology: tpu7x:2x2x1
jax: 0.10.0
libtpu: 0.0.40
codegen_flags: <defaults>
</compile_context>

<pallas_src>
import jax
import jax.numpy as jnp
from jax.experimental import pallas as pl
from jax.experimental.pallas import tpu as pltpu

VMEM_LIMIT_BYTES = 32 * 1024 * 1024  # explicit scoped-VMEM budget (safe on v5e/v6e/v7x)


# ------------------------------------------------------------------ tiling helpers

def _round_up(x, m):
    return ((x + m - 1) // m) * m


def _choose_m_tiling(M):
    """Row tile: always a bounded multiple of 8; never one giant block."""
    if M >= 2048:
        tm = 512
    elif M >= 256:
        tm = 256
    else:
        tm = _round_up(max(M, 1), 8)
    return tm, _round_up(M, tm)


def _choose_k_tiling(K):
    """Contraction tile: single full-K step for small K, 256/512 tiles otherwise."""
    if K <= 1024:
        return K, K                      # one K step, no zero padding
    K_pad = _round_up(K, 256)
    tk = 512 if K_pad % 512 == 0 else 256
    return tk, K_pad


# ------------------------------------------------------------------ kernels

def _make_matmul_bn_kernel(has_residual: bool, relu: bool):
    """bf16 matmul with f32 VMEM accumulator; BN scale/shift (+residual) (+relu) on last K step."""
    if has_residual:
        def kernel(x_ref, w_ref, scale_ref, shift_ref, res_ref, o_ref, acc_ref):
            @pl.when(pl.program_id(2) == 0)
            def _init():
                acc_ref[...] = jnp.zeros_like(acc_ref)

            acc_ref[...] += jnp.dot(x_ref[...], w_ref[...],
                                    preferred_element_type=jnp.float32)

            @pl.when(pl.program_id(2) == pl.num_programs(2) - 1)
            def _finalize():
                y = acc_ref[...] * scale_ref[...] + shift_ref[...]
                y = y + res_ref[...]
                if relu:
                    y = jnp.maximum(y, 0.0)
                o_ref[...] = y.astype(o_ref.dtype)
    else:
        def kernel(x_ref, w_ref, scale_ref, shift_ref, o_ref, acc_ref):
            @pl.when(pl.program_id(2) == 0)
            def _init():
                acc_ref[...] = jnp.zeros_like(acc_ref)

            acc_ref[...] += jnp.dot(x_ref[...], w_ref[...],
                                    preferred_element_type=jnp.float32)

            @pl.when(pl.program_id(2) == pl.num_programs(2) - 1)
            def _finalize():
                y = acc_ref[...] * scale_ref[...] + shift_ref[...]
                if relu:
                    y = jnp.maximum(y, 0.0)
                o_ref[...] = y.astype(o_ref.dtype)
    return kernel


def _maxpool_kernel(ee_ref, eo_ref, oe_ref, oo_ref, o_ref):
    # Parity-decomposed 3x3 stride-2 max.  For output (i, j) the window rows are
    # {2i, 2i+1, 2i+2} and cols {2j, 2j+1, 2j+2}; every term is a contiguous
    # slice of one of the four parity views.
    ee = ee_ref[...]   # (1, Ho+1, Wo+1, C)  even rows / even cols
    eo = eo_ref[...]   # (1, Ho+1, Wo,   C)  even rows / odd  cols
    oe = oe_ref[...]   # (1, Ho,   Wo+1, C)  odd  rows / even cols
    oo = oo_ref[...]   # (1, Ho,   Wo,   C)  odd  rows / odd  cols
    m = oo
    m = jnp.maximum(m, eo[:, :-1, :, :])
    m = jnp.maximum(m, eo[:, 1:, :, :])
    m = jnp.maximum(m, oe[:, :, :-1, :])
    m = jnp.maximum(m, oe[:, :, 1:, :])
    m = jnp.maximum(m, ee[:, :-1, :-1, :])
    m = jnp.maximum(m, ee[:, :-1, 1:, :])
    m = jnp.maximum(m, ee[:, 1:, :-1, :])
    m = jnp.maximum(m, ee[:, 1:, 1:, :])
    o_ref[...] = m


def _avgpool_kernel(x_ref, o_ref):
    # x_ref: (N, H*W, C) -> mean over spatial positions
    o_ref[...] = jnp.mean(x_ref[...], axis=1)


# ------------------------------------------------------------------ wrappers

def matmul_bn(x2d, w2d, scale, shift, residual=None, relu=False):
    """(M,K) @ (K,N) * scale + shift [+ residual] [relu] with a tiled (M,N,K) Pallas grid."""
    M, K = x2d.shape
    _, N = w2d.shape

    tm, M_pad = _choose_m_tiling(M)
    tk, K_pad = _choose_k_tiling(K)
    tn = N                                   # N in {64,128,256,512}: single lane-tile
    grid = (M_pad // tm, 1, K_pad // tk)     # reduction axis (K) innermost

    xb = x2d.astype(jnp.bfloat16)
    wb = w2d.astype(jnp.bfloat16)
    if M_pad != M or K_pad != K:
        xb = jnp.pad(xb, ((0, M_pad - M), (0, K_pad - K)))
    if K_pad != K:
        wb = jnp.pad(wb, ((0, K_pad - K), (0, 0)))
    scale2 = scale.reshape(1, N).astype(jnp.float32)
    shift2 = shift.reshape(1, N).astype(jnp.float32)

    in_specs = [
        pl.BlockSpec((tm, tk), lambda i, j, k: (i, k)),
        pl.BlockSpec((tk, tn), lambda i, j, k: (k, j)),
        pl.BlockSpec((1, tn), lambda i, j, k: (0, j)),
        pl.BlockSpec((1, tn), lambda i, j, k: (0, j)),
    ]
    args = [xb, wb, scale2, shift2]

    if residual is not None:
        resb = residual.astype(jnp.float32)
        if M_pad != M:
            resb = jnp.pad(resb, ((0, M_pad - M), (0, 0)))
        in_specs.append(pl.BlockSpec((tm, tn), lambda i, j, k: (i, j)))
        args.append(resb)

    bytes_accessed = (M_pad * K_pad + K_pad * N) * 2 + M_pad * N * 4
    if residual is not None:
        bytes_accessed += M_pad * N * 4
    cost = pl.CostEstimate(flops=2 * M_pad * N * K_pad,
                           transcendentals=0,
                           bytes_accessed=bytes_accessed)

    kernel = _make_matmul_bn_kernel(residual is not None, relu)
    out = pl.pallas_call(
        kernel,
        out_shape=jax.ShapeDtypeStruct((M_pad, N), jnp.float32),
        grid=grid,
        in_specs=in_specs,
        out_specs=pl.BlockSpec((tm, tn), lambda i, j, k: (i, j)),
        scratch_shapes=[pltpu.VMEM((tm, tn), jnp.float32)],
        compiler_params=pltpu.CompilerParams(
            dimension_semantics=("parallel", "parallel", "arbitrary"),
            vmem_limit_bytes=VMEM_LIMIT_BYTES),
        cost_estimate=cost,
    )(*args)
    return out[:M] if M_pad != M else out


def conv_bn(x, w, scale, shift, stride, padding, relu=True, residual=None):
    """x: (N,H,W,Cin) NHWC; w: (KH,KW,Cin,Cout). Conv via im2col + fused Pallas matmul."""
    N, H, W, Cin = x.shape
    KH, KW, _, Cout = w.shape
    Ho = (H + 2 * padding - KH) // stride + 1
    Wo = (W + 2 * padding - KW) // stride + 1

    xb = x.astype(jnp.bfloat16)              # halve the im2col footprint up front
    xp = jnp.pad(xb, ((0, 0), (padding, padding), (padding, padding), (0, 0)))
    cols = []
    for kh in range(KH):
        for kw in range(KW):
            cols.append(xp[:, kh:kh + (Ho - 1) * stride + 1:stride,
                            kw:kw + (Wo - 1) * stride + 1:stride, :])
    patches = jnp.concatenate(cols, axis=-1)          # (N,Ho,Wo, KH*KW*Cin)
    x2d = patches.reshape(N * Ho * Wo, KH * KW * Cin)
    w2d = w.reshape(KH * KW * Cin, Cout)

    res2d = None
    if residual is not None:
        res2d = residual.reshape(N * Ho * Wo, Cout)

    out2d = matmul_bn(x2d, w2d, scale, shift, residual=res2d, relu=relu)
    return out2d.reshape(N, Ho, Wo, Cout)


def maxpool_3x3_s2(x):
    """MaxPool2d(kernel=3, stride=2, padding=1) on NHWC input (parity-decomposed Pallas kernel)."""
    N, H, W, C = x.shape
    k, s, p = 3, 2, 1
    Ho = (H + 2 * p - k) // s + 1
    Wo = (W + 2 * p - k) // s + 1
    neg = jnp.float32(-1e30)
    xp = jnp.pad(x, ((0, 0), (p, p), (p, p), (0, 0)), constant_values=neg)

    # Split once into 4 row/col-parity views (1x HBM traffic instead of 9x stacked windows).
    ee = xp[:, 0:2 * Ho + 1:2, 0:2 * Wo + 1:2, :]   # (N, Ho+1, Wo+1, C)
    eo = xp[:, 0:2 * Ho + 1:2, 1:2 * Wo:2, :]       # (N, Ho+1, Wo,   C)
    oe = xp[:, 1:2 * Ho:2, 0:2 * Wo + 1:2, :]       # (N, Ho,   Wo+1, C)
    oo = xp[:, 1:2 * Ho:2, 1:2 * Wo:2, :]           # (N, Ho,   Wo,   C)

    out = pl.pallas_call(
        _maxpool_kernel,
        out_shape=jax.ShapeDtypeStruct((N, Ho, Wo, C), jnp.float32),
        grid=(N,),
        in_specs=[
            pl.BlockSpec((1, Ho + 1, Wo + 1, C), lambda n: (n, 0, 0, 0)),
            pl.BlockSpec((1, Ho + 1, Wo, C), lambda n: (n, 0, 0, 0)),
            pl.BlockSpec((1, Ho, Wo + 1, C), lambda n: (n, 0, 0, 0)),
            pl.BlockSpec((1, Ho, Wo, C), lambda n: (n, 0, 0, 0)),
        ],
        out_specs=pl.BlockSpec((1, Ho, Wo, C), lambda n: (n, 0, 0, 0)),
        compiler_params=pltpu.CompilerParams(
            dimension_semantics=("parallel",),
            vmem_limit_bytes=VMEM_LIMIT_BYTES),
    )(ee, eo, oe, oo)
    return out


def global_avg_pool(x):
    """AdaptiveAvgPool2d(1) + flatten on NHWC input (Pallas mean reduction)."""
    N, H, W, C = x.shape
    x3 = x.reshape(N, H * W, C)
    out = pl.pallas_call(
        _avgpool_kernel,
        out_shape=jax.ShapeDtypeStruct((N, C), jnp.float32),
        grid=(1,),
        in_specs=[pl.BlockSpec((N, H * W, C), lambda i: (0, 0, 0))],
        out_specs=pl.BlockSpec((N, C), lambda i: (0, 0)),
    )(x3)
    return out


# ------------------------------------------------------------------ resnet18

STAGE_SPECS = [(64, 1), (128, 2), (256, 2), (512, 2)]  # (channels, first-block stride)


def init_params(key):
    keys = iter(jax.random.split(key, 256))

    def conv_w(kh, kw, cin, cout):
        std = (2.0 / (kh * kw * cin)) ** 0.5
        return jax.random.normal(next(keys), (kh, kw, cin, cout), jnp.float32) * std

    def bn(c):
        k1, k2, k3, k4 = jax.random.split(next(keys), 4)
        gamma = jax.random.uniform(k1, (c,), jnp.float32, 0.8, 1.2)
        beta = jax.random.normal(k2, (c,), jnp.float32) * 0.05
        mean = jax.random.normal(k3, (c,), jnp.float32) * 0.05
        var = jax.random.uniform(k4, (c,), jnp.float32, 0.8, 1.2)
        eps = 1e-5
        scale = gamma / jnp.sqrt(var + eps)       # BN folded (eval mode)
        shift = beta - mean * scale
        return scale, shift

    params = {}
    params["conv1_w"] = conv_w(7, 7, 3, 64)
    params["bn1_scale"], params["bn1_shift"] = bn(64)

    layers = []
    in_ch = 64
    for out_ch, stride in STAGE_SPECS:
        stage = []
        for b in range(2):
            s = stride if b == 0 else 1
            blk = {}
            blk["conv1_w"] = conv_w(3, 3, in_ch if b == 0 else out_ch, out_ch)
            blk["bn1_scale"], blk["bn1_shift"] = bn(out_ch)
            blk["conv2_w"] = conv_w(3, 3, out_ch, out_ch)
            blk["bn2_scale"], blk["bn2_shift"] = bn(out_ch)
            if b == 0 and (s != 1 or in_ch != out_ch):
                blk["down_w"] = conv_w(1, 1, in_ch, out_ch)
                blk["down_scale"], blk["down_shift"] = bn(out_ch)
            stage.append(blk)
        layers.append(stage)
        in_ch = out_ch
    params["layers"] = layers
    return params


def resnet18_forward(params, x_nchw):
    x = jnp.transpose(x_nchw.astype(jnp.float32), (0, 2, 3, 1))  # NCHW -> NHWC

    # stem
    x = conv_bn(x, params["conv1_w"], params["bn1_scale"], params["bn1_shift"],
                stride=2, padding=3, relu=True)
    x = maxpool_3x3_s2(x)

    # residual stages
    for stage_idx, (out_ch, first_stride) in enumerate(STAGE_SPECS):
        for b, blk in enumerate(params["layers"][stage_idx]):
            s = first_stride if b == 0 else 1
            identity = x
            out = conv_bn(x, blk["conv1_w"], blk["bn1_scale"], blk["bn1_shift"],
                          stride=s, padding=1, relu=True)
            if "down_w" in blk:
                identity = conv_bn(x, blk["down_w"], blk["down_scale"],
                                   blk["down_shift"], stride=s, padding=0,
                                   relu=False)
            # second conv fuses residual add + final relu inside the Pallas kernel
            x = conv_bn(out, blk["conv2_w"], blk["bn2_scale"], blk["bn2_shift"],
                        stride=1, padding=1, relu=True, residual=identity)

    # avgpool + flatten; fc is Identity -> output (N, 512)
    x = global_avg_pool(x)
    return x


# ------------------------------------------------------------------ main

if __name__ == "__main__":
    key = jax.random.PRNGKey(0)
    pkey, xkey = jax.random.split(key)
    params = init_params(pkey)

    # Small deterministic input: batch=2, 3 channels (resnet18 stem requires 3), 32x32 spatial.
    x = jax.random.normal(xkey, (2, 3, 32, 32), jnp.float32)

    fwd = jax.jit(resnet18_forward)          # fuse the im2col / pad / cast glue around the kernels
    out = jax.block_until_ready(fwd(params, x))

    assert out.shape == (2, 512), out.shape
    assert out.dtype == jnp.float32
    assert bool(jnp.all(jnp.isfinite(out)))
    print("KERNEL_OK")
</pallas_src>

<mosaic_0001>
module attributes {stable_mosaic.version = 11 : i64} {
  func.func @_maxpool_kernel(%arg0: i32, %arg1: memref<1x9x9x64xf32, #tpu.memory_space<vmem>>, %arg2: memref<1x9x8x64xf32, #tpu.memory_space<vmem>>, %arg3: memref<1x8x9x64xf32, #tpu.memory_space<vmem>>, %arg4: memref<1x8x8x64xf32, #tpu.memory_space<vmem>>, %arg5: memref<1x8x8x64xf32, #tpu.memory_space<vmem>>) attributes {dimension_semantics = [#tpu.dimension_semantics<parallel>], iteration_bounds = array<i64: 2>, scalar_prefetch = 0 : i64, scratch_operands = 0 : i64, tpu.core_type = #tpu.core_type<tc>, window_params = [{transform_indices = @transform_0, window_bounds = array<i64: 1, 9, 9, 64>}, {transform_indices = @transform_1, window_bounds = array<i64: 1, 9, 8, 64>}, {transform_indices = @transform_2, window_bounds = array<i64: 1, 8, 9, 64>}, {transform_indices = @transform_3, window_bounds = array<i64: 1, 8, 8, 64>}, {transform_indices = @transform_4, window_bounds = array<i64: 1, 8, 8, 64>}]} {
    %c0 = arith.constant 0 : index
    %c0_0 = arith.constant 0 : index
    %c0_1 = arith.constant 0 : index
    %c0_2 = arith.constant 0 : index
    %0 = vector.load %arg1[%c0, %c0_0, %c0_1, %c0_2] : memref<1x9x9x64xf32, #tpu.memory_space<vmem>>, vector<1x9x9x64xf32>
    %c0_3 = arith.constant 0 : index
    %c0_4 = arith.constant 0 : index
    %c0_5 = arith.constant 0 : index
    %c0_6 = arith.constant 0 : index
    %1 = vector.load %arg2[%c0_3, %c0_4, %c0_5, %c0_6] : memref<1x9x8x64xf32, #tpu.memory_space<vmem>>, vector<1x9x8x64xf32>
    %c0_7 = arith.constant 0 : index
    %c0_8 = arith.constant 0 : index
    %c0_9 = arith.constant 0 : index
    %c0_10 = arith.constant 0 : index
    %2 = vector.load %arg3[%c0_7, %c0_8, %c0_9, %c0_10] : memref<1x8x9x64xf32, #tpu.memory_space<vmem>>, vector<1x8x9x64xf32>
    %c0_11 = arith.constant 0 : index
    %c0_12 = arith.constant 0 : index
    %c0_13 = arith.constant 0 : index
    %c0_14 = arith.constant 0 : index
    %3 = vector.load %arg4[%c0_11, %c0_12, %c0_13, %c0_14] : memref<1x8x8x64xf32, #tpu.memory_space<vmem>>, vector<1x8x8x64xf32>
    %4 = vector.extract_strided_slice %1 {offsets = [0, 0, 0, 0], sizes = [1, 8, 8, 64], strides = [1, 1, 1, 1]} : vector<1x9x8x64xf32> to vector<1x8x8x64xf32>
    %5 = arith.maximumf %3, %4 : vector<1x8x8x64xf32>
    %6 = vector.extract_strided_slice %1 {offsets = [0, 1, 0, 0], sizes = [1, 8, 8, 64], strides = [1, 1, 1, 1]} : vector<1x9x8x64xf32> to vector<1x8x8x64xf32>
    %7 = arith.maximumf %5, %6 : vector<1x8x8x64xf32>
    %8 = vector.extract_strided_slice %2 {offsets = [0, 0, 0, 0], sizes = [1, 8, 8, 64], strides = [1, 1, 1, 1]} : vector<1x8x9x64xf32> to vector<1x8x8x64xf32>
    %9 = arith.maximumf %7, %8 : vector<1x8x8x64xf32>
    %10 = vector.extract_strided_slice %2 {offsets = [0, 0, 1, 0], sizes = [1, 8, 8, 64], strides = [1, 1, 1, 1]} : vector<1x8x9x64xf32> to vector<1x8x8x64xf32>
    %11 = arith.maximumf %9, %10 : vector<1x8x8x64xf32>
    %12 = vector.extract_strided_slice %0 {offsets = [0, 0, 0, 0], sizes = [1, 8, 8, 64], strides = [1, 1, 1, 1]} : vector<1x9x9x64xf32> to vector<1x8x8x64xf32>
    %13 = arith.maximumf %11, %12 : vector<1x8x8x64xf32>
    %14 = vector.extract_strided_slice %0 {offsets = [0, 0, 1, 0], sizes = [1, 8, 8, 64], strides = [1, 1, 1, 1]} : vector<1x9x9x64xf32> to vector<1x8x8x64xf32>
    %15 = arith.maximumf %13, %14 : vector<1x8x8x64xf32>
    %16 = vector.extract_strided_slice %0 {offsets = [0, 1, 0, 0], sizes = [1, 8, 8, 64], strides = [1, 1, 1, 1]} : vector<1x9x9x64xf32> to vector<1x8x8x64xf32>
    %17 = arith.maximumf %15, %16 : vector<1x8x8x64xf32>
    %18 = vector.extract_strided_slice %0 {offsets = [0, 1, 1, 0], sizes = [1, 8, 8, 64], strides = [1, 1, 1, 1]} : vector<1x9x9x64xf32> to vector<1x8x8x64xf32>
    %19 = arith.maximumf %17, %18 : vector<1x8x8x64xf32>
    %c0_15 = arith.constant 0 : index
    %c0_16 = arith.constant 0 : index
    %c0_17 = arith.constant 0 : index
    %c0_18 = arith.constant 0 : index
    %20 = vector.load %arg5[%c0_15, %c0_16, %c0_17, %c0_18] : memref<1x8x8x64xf32, #tpu.memory_space<vmem>>, vector<1x8x8x64xf32>
    tpu.vector_store %arg5[%c0_15, %c0_16, %c0_17, %c0_18], %19 {strides = array<i32>} : memref<1x8x8x64xf32, #tpu.memory_space<vmem>>, vector<1x8x8x64xf32>,
    return
  }
  func.func @transform_0(%arg0: i32) -> (i32, i32, i32, i32) {
    %c0_i32 = arith.constant 0 : i32
    %c0_i32_0 = arith.constant 0 : i32
    %c0_i32_1 = arith.constant 0 : i32
    %c0_i32_2 = arith.constant 0 : i32
    return %arg0, %c0_i32, %c0_i32_0, %c0_i32_1 : i32, i32, i32, i32
  }
  func.func @transform_1(%arg0: i32) -> (i32, i32, i32, i32) {
    %c0_i32 = arith.constant 0 : i32
    %c0_i32_0 = arith.constant 0 : i32
    %c0_i32_1 = arith.constant 0 : i32
    %c0_i32_2 = arith.constant 0 : i32
    return %arg0, %c0_i32, %c0_i32_0, %c0_i32_1 : i32, i32, i32, i32
  }
  func.func @transform_2(%arg0: i32) -> (i32, i32, i32, i32) {
    %c0_i32 = arith.constant 0 : i32
    %c0_i32_0 = arith.constant 0 : i32
    %c0_i32_1 = arith.constant 0 : i32
    %c0_i32_2 = arith.constant 0 : i32
    return %arg0, %c0_i32, %c0_i32_0, %c0_i32_1 : i32, i32, i32, i32
  }
  func.func @transform_3(%arg0: i32) -> (i32, i32, i32, i32) {
    %c0_i32 = arith.constant 0 : i32
    %c0_i32_0 = arith.constant 0 : i32
    %c0_i32_1 = arith.constant 0 : i32
    %c0_i32_2 = arith.constant 0 : i32
    return %arg0, %c0_i32, %c0_i32_0, %c0_i32_1 : i32, i32, i32, i32
  }
  func.func @transform_4(%arg0: i32) -> (i32, i32, i32, i32) {
    %c0_i32 = arith.constant 0 : i32
    %c0_i32_0 = arith.constant 0 : i32
    %c0_i32_1 = arith.constant 0 : i32
    %c0_i32_2 = arith.constant 0 : i32
    return %arg0, %c0_i32, %c0_i32_0, %c0_i32_1 : i32, i32, i32, i32
  }
}

module attributes {stable_mosaic.version = 11 : i64} {
  func.func @kernel(%arg0: i32, %arg1: i32, %arg2: i32, %arg3: memref<256x147xbf16, #tpu.memory_space<vmem>>, %arg4: memref<147x64xbf16, #tpu.memory_space<vmem>>, %arg5: memref<1x64xf32, #tpu.memory_space<vmem>>, %arg6: memref<1x64xf32, #tpu.memory_space<vmem>>, %arg7: memref<256x64xf32, #tpu.memory_space<vmem>>, %arg8: memref<256x64xf32, #tpu.memory_space<vmem>>) attributes {dimension_semantics = [#tpu.dimension_semantics<parallel>, #tpu.dimension_semantics<parallel>, #tpu.dimension_semantics<arbitrary>], iteration_bounds = array<i64: 2, 1, 1>, scalar_prefetch = 0 : i64, scratch_operands = 1 : i64, tpu.core_type = #tpu.core_type<tc>, window_params = [{transform_indices = @transform_0, window_bounds = array<i64: 256, 147>}, {transform_indices = @transform_1, window_bounds = array<i64: 147, 64>}, {transform_indices = @transform_2, window_bounds = array<i64: 1, 64>}, {transform_indices = @transform_3, window_bounds = array<i64: 1, 64>}, {transform_indices = @transform_4, window_bounds = array<i64: 256, 64>}]} {
    %c0_i32 = arith.constant 0 : i32
    %0 = arith.cmpi eq, %arg2, %c0_i32 : i32
    %1 = arith.extui %0 : i1 to i32
    %c0_i32_0 = arith.constant 0 : i32
    %2 = arith.cmpi ne, %1, %c0_i32_0 : i32
    scf.if %2 {
      %cst_10 = arith.constant 0.000000e+00 : f32
      %12 = vector.broadcast %cst_10 : f32 to vector<256x64xf32>
      %c0_11 = arith.constant 0 : index
      %c0_12 = arith.constant 0 : index
      %13 = vector.load %arg8[%c0_11, %c0_12] : memref<256x64xf32, #tpu.memory_space<vmem>>, vector<256x64xf32>
      tpu.vector_store %arg8[%c0_11, %c0_12], %12 {strides = array<i32>} : memref<256x64xf32, #tpu.memory_space<vmem>>, vector<256x64xf32>,
    } else {
    }
    %c0 = arith.constant 0 : index
    %c0_1 = arith.constant 0 : index
    %3 = vector.load %arg8[%c0, %c0_1] : memref<256x64xf32, #tpu.memory_space<vmem>>, vector<256x64xf32>
    %c0_2 = arith.constant 0 : index
    %c0_3 = arith.constant 0 : index
    %4 = vector.load %arg3[%c0_2, %c0_3] : memref<256x147xbf16, #tpu.memory_space<vmem>>, vector<256x147xbf16>
    %c0_4 = arith.constant 0 : index
    %c0_5 = arith.constant 0 : index
    %5 = vector.load %arg4[%c0_4, %c0_5] : memref<147x64xbf16, #tpu.memory_space<vmem>>, vector<147x64xbf16>
    %cst = arith.constant dense<0.000000e+00> : vector<256x64xf32>
    %6 = tpu.matmul %4, %5, %cst {dimension_numbers = #tpu.dot_dimension_numbers<[1], [0], [0], [1], [0, 0, 1, 1], [], []>} : vector<256x147xbf16>, vector<147x64xbf16>, vector<256x64xf32> -> vector<256x64xf32>
    %7 = arith.addf %3, %6 : vector<256x64xf32>
    %c0_6 = arith.constant 0 : index
    %c0_7 = arith.constant 0 : index
    %8 = vector.load %arg8[%c0_6, %c0_7] : memref<256x64xf32, #tpu.memory_space<vmem>>, vector<256x64xf32>
    tpu.vector_store %arg8[%c0_6, %c0_7], %7 {strides = array<i32>} : memref<256x64xf32, #tpu.memory_space<vmem>>, vector<256x64xf32>,
    %c0_i32_8 = arith.constant 0 : i32
    %9 = arith.cmpi eq, %arg2, %c0_i32_8 : i32
    %10 = arith.extui %9 : i1 to i32
    %c0_i32_9 = arith.constant 0 : i32
    %11 = arith.cmpi ne, %10, %c0_i32_9 : i32
    scf.if %11 {
      %c0_10 = arith.constant 0 : index
      %c0_11 = arith.constant 0 : index
      %12 = vector.load %arg8[%c0_10, %c0_11] : memref<256x64xf32, #tpu.memory_space<vmem>>, vector<256x64xf32>
      %c0_12 = arith.constant 0 : index
      %c0_13 = arith.constant 0 : index
      %13 = vector.load %arg5[%c0_12, %c0_13] : memref<1x64xf32, #tpu.memory_space<vmem>>, vector<1x64xf32>
      %14 = vector.broadcast %13 : vector<1x64xf32> to vector<256x64xf32>
      %15 = arith.mulf %12, %14 : vector<256x64xf32>
      %c0_14 = arith.constant 0 : index
      %c0_15 = arith.constant 0 : index
      %16 = vector.load %arg6[%c0_14, %c0_15] : memref<1x64xf32, #tpu.memory_space<vmem>>, vector<1x64xf32>
      %17 = vector.broadcast %16 : vector<1x64xf32> to vector<256x64xf32>
      %18 = arith.addf %15, %17 : vector<256x64xf32>
      %cst_16 = arith.constant 0.000000e+00 : f32
      %19 = vector.broadcast %cst_16 : f32 to vector<256x64xf32>
      %20 = arith.maximumf %18, %19 : vector<256x64xf32>
      %c0_17 = arith.constant 0 : index
      %c0_18 = arith.constant 0 : index
      %21 = vector.load %arg7[%c0_17, %c0_18] : memref<256x64xf32, #tpu.memory_space<vmem>>, vector<256x64xf32>
      tpu.vector_store %arg7[%c0_17, %c0_18], %20 {strides = array<i32>} : memref<256x64xf32, #tpu.memory_space<vmem>>, vector<256x64xf32>,
    } else {
    }
    return
  }
  func.func @transform_0(%arg0: i32, %arg1: i32, %arg2: i32) -> (i32, i32) {
    %c0_i32 = arith.constant 0 : i32
    return %arg0, %arg2 : i32, i32
  }
  func.func @transform_1(%arg0: i32, %arg1: i32, %arg2: i32) -> (i32, i32) {
    %c0_i32 = arith.constant 0 : i32
    return %arg2, %arg1 : i32, i32
  }
  func.func @transform_2(%arg0: i32, %arg1: i32, %arg2: i32) -> (i32, i32) {
    %c0_i32 = arith.constant 0 : i32
    %c0_i32_0 = arith.constant 0 : i32
    return %c0_i32, %arg1 : i32, i32
  }
  func.func @transform_3(%arg0: i32, %arg1: i32, %arg2: i32) -> (i32, i32) {
    %c0_i32 = arith.constant 0 : i32
    %c0_i32_0 = arith.constant 0 : i32
    return %c0_i32, %arg1 : i32, i32
  }
  func.func @transform_4(%arg0: i32, %arg1: i32, %arg2: i32) -> (i32, i32) {
    %c0_i32 = arith.constant 0 : i32
    return %arg0, %arg1 : i32, i32
  }
}

module attributes {stable_mosaic.version = 11 : i64} {
  func.func @kernel(%arg0: i32, %arg1: i32, %arg2: i32, %arg3: memref<128x576xbf16, #tpu.memory_space<vmem>>, %arg4: memref<576x64xbf16, #tpu.memory_space<vmem>>, %arg5: memref<1x64xf32, #tpu.memory_space<vmem>>, %arg6: memref<1x64xf32, #tpu.memory_space<vmem>>, %arg7: memref<128x64xf32, #tpu.memory_space<vmem>>, %arg8: memref<128x64xf32, #tpu.memory_space<vmem>>) attributes {dimension_semantics = [#tpu.dimension_semantics<parallel>, #tpu.dimension_semantics<parallel>, #tpu.dimension_semantics<arbitrary>], iteration_bounds = array<i64: 1, 1, 1>, scalar_prefetch = 0 : i64, scratch_operands = 1 : i64, tpu.core_type = #tpu.core_type<tc>, window_params = [{transform_indices = @transform_0, window_bounds = array<i64: 128, 576>}, {transform_indices = @transform_1, window_bounds = array<i64: 576, 64>}, {transform_indices = @transform_2, window_bounds = array<i64: 1, 64>}, {transform_indices = @transform_3, window_bounds = array<i64: 1, 64>}, {transform_indices = @transform_4, window_bounds = array<i64: 128, 64>}]} {
    %c0_i32 = arith.constant 0 : i32
    %0 = arith.cmpi eq, %arg2, %c0_i32 : i32
    %1 = arith.extui %0 : i1 to i32
    %c0_i32_0 = arith.constant 0 : i32
    %2 = arith.cmpi ne, %1, %c0_i32_0 : i32
    scf.if %2 {
      %cst_10 = arith.constant 0.000000e+00 : f32
      %12 = vector.broadcast %cst_10 : f32 to vector<128x64xf32>
      %c0_11 = arith.constant 0 : index
      %c0_12 = arith.constant 0 : index
      %13 = vector.load %arg8[%c0_11, %c0_12] : memref<128x64xf32, #tpu.memory_space<vmem>>, vector<128x64xf32>
      tpu.vector_store %arg8[%c0_11, %c0_12], %12 {strides = array<i32>} : memref<128x64xf32, #tpu.memory_space<vmem>>, vector<128x64xf32>,
    } else {
    }
    %c0 = arith.constant 0 : index
    %c0_1 = arith.constant 0 : index
    %3 = vector.load %arg8[%c0, %c0_1] : memref<128x64xf32, #tpu.memory_space<vmem>>, vector<128x64xf32>
    %c0_2 = arith.constant 0 : index
    %c0_3 = arith.constant 0 : index
    %4 = vector.load %arg3[%c0_2, %c0_3] : memref<128x576xbf16, #tpu.memory_space<vmem>>, vector<128x576xbf16>
    %c0_4 = arith.constant 0 : index
    %c0_5 = arith.constant 0 : index
    %5 = vector.load %arg4[%c0_4, %c0_5] : memref<576x64xbf16, #tpu.memory_space<vmem>>, vector<576x64xbf16>
    %cst = arith.constant dense<0.000000e+00> : vector<128x64xf32>
    %6 = tpu.matmul %4, %5, %cst {dimension_numbers = #tpu.dot_dimension_numbers<[1], [0], [0], [1], [0, 0, 1, 1], [], []>} : vector<128x576xbf16>, vector<576x64xbf16>, vector<128x64xf32> -> vector<128x64xf32>
    %7 = arith.addf %3, %6 : vector<128x64xf32>
    %c0_6 = arith.constant 0 : index
    %c0_7 = arith.constant 0 : index
    %8 = vector.load %arg8[%c0_6, %c0_7] : memref<128x64xf32, #tpu.memory_space<vmem>>, vector<128x64xf32>
    tpu.vector_store %arg8[%c0_6, %c0_7], %7 {strides = array<i32>} : memref<128x64xf32, #tpu.memory_space<vmem>>, vector<128x64xf32>,
    %c0_i32_8 = arith.constant 0 : i32
    %9 = arith.cmpi eq, %arg2, %c0_i32_8 : i32
    %10 = arith.extui %9 : i1 to i32
    %c0_i32_9 = arith.constant 0 : i32
    %11 = arith.cmpi ne, %10, %c0_i32_9 : i32
    scf.if %11 {
      %c0_10 = arith.constant 0 : index
      %c0_11 = arith.constant 0 : index
      %12 = vector.load %arg8[%c0_10, %c0_11] : memref<128x64xf32, #tpu.memory_space<vmem>>, vector<128x64xf32>
      %c0_12 = arith.constant 0 : index
      %c0_13 = arith.constant 0 : index
      %13 = vector.load %arg5[%c0_12, %c0_13] : memref<1x64xf32, #tpu.memory_space<vmem>>, vector<1x64xf32>
      %14 = vector.broadcast %13 : vector<1x64xf32> to vector<128x64xf32>
      %15 = arith.mulf %12, %14 : vector<128x64xf32>
      %c0_14 = arith.constant 0 : index
      %c0_15 = arith.constant 0 : index
      %16 = vector.load %arg6[%c0_14, %c0_15] : memref<1x64xf32, #tpu.memory_space<vmem>>, vector<1x64xf32>
      %17 = vector.broadcast %16 : vector<1x64xf32> to vector<128x64xf32>
      %18 = arith.addf %15, %17 : vector<128x64xf32>
      %cst_16 = arith.constant 0.000000e+00 : f32
      %19 = vector.broadcast %cst_16 : f32 to vector<128x64xf32>
      %20 = arith.maximumf %18, %19 : vector<128x64xf32>
      %c0_17 = arith.constant 0 : index
      %c0_18 = arith.constant 0 : index
      %21 = vector.load %arg7[%c0_17, %c0_18] : memref<128x64xf32, #tpu.memory_space<vmem>>, vector<128x64xf32>
      tpu.vector_store %arg7[%c0_17, %c0_18], %20 {strides = array<i32>} : memref<128x64xf32, #tpu.memory_space<vmem>>, vector<128x64xf32>,
    } else {
    }
    return
  }
  func.func @transform_0(%arg0: i32, %arg1: i32, %arg2: i32) -> (i32, i32) {
    %c0_i32 = arith.constant 0 : i32
    return %arg0, %arg2 : i32, i32
  }
  func.func @transform_1(%arg0: i32, %arg1: i32, %arg2: i32) -> (i32, i32) {
    %c0_i32 = arith.constant 0 : i32
    return %arg2, %arg1 : i32, i32
  }
  func.func @transform_2(%arg0: i32, %arg1: i32, %arg2: i32) -> (i32, i32) {
    %c0_i32 = arith.constant 0 : i32
    %c0_i32_0 = arith.constant 0 : i32
    return %c0_i32, %arg1 : i32, i32
  }
  func.func @transform_3(%arg0: i32, %arg1: i32, %arg2: i32) -> (i32, i32) {
    %c0_i32 = arith.constant 0 : i32
    %c0_i32_0 = arith.constant 0 : i32
    return %c0_i32, %arg1 : i32, i32
  }
  func.func @transform_4(%arg0: i32, %arg1: i32, %arg2: i32) -> (i32, i32) {
    %c0_i32 = arith.constant 0 : i32
    return %arg0, %arg1 : i32, i32
  }
}

module attributes {stable_mosaic.version = 11 : i64} {
  func.func @kernel(%arg0: i32, %arg1: i32, %arg2: i32, %arg3: memref<128x576xbf16, #tpu.memory_space<vmem>>, %arg4: memref<576x64xbf16, #tpu.memory_space<vmem>>, %arg5: memref<1x64xf32, #tpu.memory_space<vmem>>, %arg6: memref<1x64xf32, #tpu.memory_space<vmem>>, %arg7: memref<128x64xf32, #tpu.memory_space<vmem>>, %arg8: memref<128x64xf32, #tpu.memory_space<vmem>>, %arg9: memref<128x64xf32, #tpu.memory_space<vmem>>) attributes {dimension_semantics = [#tpu.dimension_semantics<parallel>, #tpu.dimension_semantics<parallel>, #tpu.dimension_semantics<arbitrary>], iteration_bounds = array<i64: 1, 1, 1>, scalar_prefetch = 0 : i64, scratch_operands = 1 : i64, tpu.core_type = #tpu.core_type<tc>, window_params = [{transform_indices = @transform_0, window_bounds = array<i64: 128, 576>}, {transform_indices = @transform_1, window_bounds = array<i64: 576, 64>}, {transform_indices = @transform_2, window_bounds = array<i64: 1, 64>}, {transform_indices = @transform_3, window_bounds = array<i64: 1, 64>}, {transform_indices = @transform_4, window_bounds = array<i64: 128, 64>}, {transform_indices = @transform_5, window_bounds = array<i64: 128, 64>}]} {
    %c0_i32 = arith.constant 0 : i32
    %0 = arith.cmpi eq, %arg2, %c0_i32 : i32
    %1 = arith.extui %0 : i1 to i32
    %c0_i32_0 = arith.constant 0 : i32
    %2 = arith.cmpi ne, %1, %c0_i32_0 : i32
    scf.if %2 {
      %cst_10 = arith.constant 0.000000e+00 : f32
      %12 = vector.broadcast %cst_10 : f32 to vector<128x64xf32>
      %c0_11 = arith.constant 0 : index
      %c0_12 = arith.constant 0 : index
      %13 = vector.load %arg9[%c0_11, %c0_12] : memref<128x64xf32, #tpu.memory_space<vmem>>, vector<128x64xf32>
      tpu.vector_store %arg9[%c0_11, %c0_12], %12 {strides = array<i32>} : memref<128x64xf32, #tpu.memory_space<vmem>>, vector<128x64xf32>,
    } else {
    }
    %c0 = arith.constant 0 : index
    %c0_1 = arith.constant 0 : index
    %3 = vector.load %arg9[%c0, %c0_1] : memref<128x64xf32, #tpu.memory_space<vmem>>, vector<128x64xf32>
    %c0_2 = arith.constant 0 : index
    %c0_3 = arith.constant 0 : index
    %4 = vector.load %arg3[%c0_2, %c0_3] : memref<128x576xbf16, #tpu.memory_space<vmem>>, vector<128x576xbf16>
    %c0_4 = arith.constant 0 : index
    %c0_5 = arith.constant 0 : index
    %5 = vector.load %arg4[%c0_4, %c0_5] : memref<576x64xbf16, #tpu.memory_space<vmem>>, vector<576x64xbf16>
    %cst = arith.constant dense<0.000000e+00> : vector<128x64xf32>
    %6 = tpu.matmul %4, %5, %cst {dimension_numbers = #tpu.dot_dimension_numbers<[1], [0], [0], [1], [0, 0, 1, 1], [], []>} : vector<128x576xbf16>, vector<576x64xbf16>, vector<128x64xf32> -> vector<128x64xf32>
    %7 = arith.addf %3, %6 : vector<128x64xf32>
    %c0_6 = arith.constant 0 : index
    %c0_7 = arith.constant 0 : index
    %8 = vector.load %arg9[%c0_6, %c0_7] : memref<128x64xf32, #tpu.memory_space<vmem>>, vector<128x64xf32>
    tpu.vector_store %arg9[%c0_6, %c0_7], %7 {strides = array<i32>} : memref<128x64xf32, #tpu.memory_space<vmem>>, vector<128x64xf32>,
    %c0_i32_8 = arith.constant 0 : i32
    %9 = arith.cmpi eq, %arg2, %c0_i32_8 : i32
    %10 = arith.extui %9 : i1 to i32
    %c0_i32_9 = arith.constant 0 : i32
    %11 = arith.cmpi ne, %10, %c0_i32_9 : i32
    scf.if %11 {
      %c0_10 = arith.constant 0 : index
      %c0_11 = arith.constant 0 : index
      %12 = vector.load %arg9[%c0_10, %c0_11] : memref<128x64xf32, #tpu.memory_space<vmem>>, vector<128x64xf32>
      %c0_12 = arith.constant 0 : index
      %c0_13 = arith.constant 0 : index
      %13 = vector.load %arg5[%c0_12, %c0_13] : memref<1x64xf32, #tpu.memory_space<vmem>>, vector<1x64xf32>
      %14 = vector.broadcast %13 : vector<1x64xf32> to vector<128x64xf32>
      %15 = arith.mulf %12, %14 : vector<128x64xf32>
      %c0_14 = arith.constant 0 : index
      %c0_15 = arith.constant 0 : index
      %16 = vector.load %arg6[%c0_14, %c0_15] : memref<1x64xf32, #tpu.memory_space<vmem>>, vector<1x64xf32>
      %17 = vector.broadcast %16 : vector<1x64xf32> to vector<128x64xf32>
      %18 = arith.addf %15, %17 : vector<128x64xf32>
      %c0_16 = arith.constant 0 : index
      %c0_17 = arith.constant 0 : index
      %19 = vector.load %arg7[%c0_16, %c0_17] : memref<128x64xf32, #tpu.memory_space<vmem>>, vector<128x64xf32>
      %20 = arith.addf %18, %19 : vector<128x64xf32>
      %cst_18 = arith.constant 0.000000e+00 : f32
      %21 = vector.broadcast %cst_18 : f32 to vector<128x64xf32>
      %22 = arith.maximumf %20, %21 : vector<128x64xf32>
      %c0_19 = arith.constant 0 : index
      %c0_20 = arith.constant 0 : index
      %23 = vector.load %arg8[%c0_19, %c0_20] : memref<128x64xf32, #tpu.memory_space<vmem>>, vector<128x64xf32>
      tpu.vector_store %arg8[%c0_19, %c0_20], %22 {strides = array<i32>} : memref<128x64xf32, #tpu.memory_space<vmem>>, vector<128x64xf32>,
    } else {
    }
    return
  }
  func.func @transform_0(%arg0: i32, %arg1: i32, %arg2: i32) -> (i32, i32) {
    %c0_i32 = arith.constant 0 : i32
    return %arg0, %arg2 : i32, i32
  }
  func.func @transform_1(%arg0: i32, %arg1: i32, %arg2: i32) -> (i32, i32) {
    %c0_i32 = arith.constant 0 : i32
    return %arg2, %arg1 : i32, i32
  }
  func.func @transform_2(%arg0: i32, %arg1: i32, %arg2: i32) -> (i32, i32) {
    %c0_i32 = arith.constant 0 : i32
    %c0_i32_0 = arith.constant 0 : i32
    return %c0_i32, %arg1 : i32, i32
  }
  func.func @transform_3(%arg0: i32, %arg1: i32, %arg2: i32) -> (i32, i32) {
    %c0_i32 = arith.constant 0 : i32
    %c0_i32_0 = arith.constant 0 : i32
    return %c0_i32, %arg1 : i32, i32
  }
  func.func @transform_4(%arg0: i32, %arg1: i32, %arg2: i32) -> (i32, i32) {
    %c0_i32 = arith.constant 0 : i32
    return %arg0, %arg1 : i32, i32
  }
  func.func @transform_5(%arg0: i32, %arg1: i32, %arg2: i32) -> (i32, i32) {
    %c0_i32 = arith.constant 0 : i32
    return %arg0, %arg1 : i32, i32
  }
}

module attributes {stable_mosaic.version = 11 : i64} {
  func.func @kernel(%arg0: i32, %arg1: i32, %arg2: i32, %arg3: memref<32x576xbf16, #tpu.memory_space<vmem>>, %arg4: memref<576x128xbf16, #tpu.memory_space<vmem>>, %arg5: memref<1x128xf32, #tpu.memory_space<vmem>>, %arg6: memref<1x128xf32, #tpu.memory_space<vmem>>, %arg7: memref<32x128xf32, #tpu.memory_space<vmem>>, %arg8: memref<32x128xf32, #tpu.memory_space<vmem>>) attributes {dimension_semantics = [#tpu.dimension_semantics<parallel>, #tpu.dimension_semantics<parallel>, #tpu.dimension_semantics<arbitrary>], iteration_bounds = array<i64: 1, 1, 1>, scalar_prefetch = 0 : i64, scratch_operands = 1 : i64, tpu.core_type = #tpu.core_type<tc>, window_params = [{transform_indices = @transform_0, window_bounds = array<i64: 32, 576>}, {transform_indices = @transform_1, window_bounds = array<i64: 576, 128>}, {transform_indices = @transform_2, window_bounds = array<i64: 1, 128>}, {transform_indices = @transform_3, window_bounds = array<i64: 1, 128>}, {transform_indices = @transform_4, window_bounds = array<i64: 32, 128>}]} {
    %c0_i32 = arith.constant 0 : i32
    %0 = arith.cmpi eq, %arg2, %c0_i32 : i32
    %1 = arith.extui %0 : i1 to i32
    %c0_i32_0 = arith.constant 0 : i32
    %2 = arith.cmpi ne, %1, %c0_i32_0 : i32
    scf.if %2 {
      %cst_10 = arith.constant 0.000000e+00 : f32
      %12 = vector.broadcast %cst_10 : f32 to vector<32x128xf32>
      %c0_11 = arith.constant 0 : index
      %c0_12 = arith.constant 0 : index
      %13 = vector.load %arg8[%c0_11, %c0_12] : memref<32x128xf32, #tpu.memory_space<vmem>>, vector<32x128xf32>
      tpu.vector_store %arg8[%c0_11, %c0_12], %12 {strides = array<i32>} : memref<32x128xf32, #tpu.memory_space<vmem>>, vector<32x128xf32>,
    } else {
    }
    %c0 = arith.constant 0 : index
    %c0_1 = arith.constant 0 : index
    %3 = vector.load %arg8[%c0, %c0_1] : memref<32x128xf32, #tpu.memory_space<vmem>>, vector<32x128xf32>
    %c0_2 = arith.constant 0 : index
    %c0_3 = arith.constant 0 : index
    %4 = vector.load %arg3[%c0_2, %c0_3] : memref<32x576xbf16, #tpu.memory_space<vmem>>, vector<32x576xbf16>
    %c0_4 = arith.constant 0 : index
    %c0_5 = arith.constant 0 : index
    %5 = vector.load %arg4[%c0_4, %c0_5] : memref<576x128xbf16, #tpu.memory_space<vmem>>, vector<576x128xbf16>
    %cst = arith.constant dense<0.000000e+00> : vector<32x128xf32>
    %6 = tpu.matmul %4, %5, %cst {dimension_numbers = #tpu.dot_dimension_numbers<[1], [0], [0], [1], [0, 0, 1, 1], [], []>} : vector<32x576xbf16>, vector<576x128xbf16>, vector<32x128xf32> -> vector<32x128xf32>
    %7 = arith.addf %3, %6 : vector<32x128xf32>
    %c0_6 = arith.constant 0 : index
    %c0_7 = arith.constant 0 : index
    %8 = vector.load %arg8[%c0_6, %c0_7] : memref<32x128xf32, #tpu.memory_space<vmem>>, vector<32x128xf32>
    tpu.vector_store %arg8[%c0_6, %c0_7], %7 {strides = array<i32>} : memref<32x128xf32, #tpu.memory_space<vmem>>, vector<32x128xf32>,
    %c0_i32_8 = arith.constant 0 : i32
    %9 = arith.cmpi eq, %arg2, %c0_i32_8 : i32
    %10 = arith.extui %9 : i1 to i32
    %c0_i32_9 = arith.constant 0 : i32
    %11 = arith.cmpi ne, %10, %c0_i32_9 : i32
    scf.if %11 {
      %c0_10 = arith.constant 0 : index
      %c0_11 = arith.constant 0 : index
      %12 = vector.load %arg8[%c0_10, %c0_11] : memref<32x128xf32, #tpu.memory_space<vmem>>, vector<32x128xf32>
      %c0_12 = arith.constant 0 : index
      %c0_13 = arith.constant 0 : index
      %13 = vector.load %arg5[%c0_12, %c0_13] : memref<1x128xf32, #tpu.memory_space<vmem>>, vector<1x128xf32>
      %14 = vector.broadcast %13 : vector<1x128xf32> to vector<32x128xf32>
      %15 = arith.mulf %12, %14 : vector<32x128xf32>
      %c0_14 = arith.constant 0 : index
      %c0_15 = arith.constant 0 : index
      %16 = vector.load %arg6[%c0_14, %c0_15] : memref<1x128xf32, #tpu.memory_space<vmem>>, vector<1x128xf32>
      %17 = vector.broadcast %16 : vector<1x128xf32> to vector<32x128xf32>
      %18 = arith.addf %15, %17 : vector<32x128xf32>
      %cst_16 = arith.constant 0.000000e+00 : f32
      %19 = vector.broadcast %cst_16 : f32 to vector<32x128xf32>
      %20 = arith.maximumf %18, %19 : vector<32x128xf32>
      %c0_17 = arith.constant 0 : index
      %c0_18 = arith.constant 0 : index
      %21 = vector.load %arg7[%c0_17, %c0_18] : memref<32x128xf32, #tpu.memory_space<vmem>>, vector<32x128xf32>
      tpu.vector_store %arg7[%c0_17, %c0_18], %20 {strides = array<i32>} : memref<32x128xf32, #tpu.memory_space<vmem>>, vector<32x128xf32>,
    } else {
    }
    return
  }
  func.func @transform_0(%arg0: i32, %arg1: i32, %arg2: i32) -> (i32, i32) {
    %c0_i32 = arith.constant 0 : i32
    return %arg0, %arg2 : i32, i32
  }
  func.func @transform_1(%arg0: i32, %arg1: i32, %arg2: i32) -> (i32, i32) {
    %c0_i32 = arith.constant 0 : i32
    return %arg2, %arg1 : i32, i32
  }
  func.func @transform_2(%arg0: i32, %arg1: i32, %arg2: i32) -> (i32, i32) {
    %c0_i32 = arith.constant 0 : i32
    %c0_i32_0 = arith.constant 0 : i32
    return %c0_i32, %arg1 : i32, i32
  }
  func.func @transform_3(%arg0: i32, %arg1: i32, %arg2: i32) -> (i32, i32) {
    %c0_i32 = arith.constant 0 : i32
    %c0_i32_0 = arith.constant 0 : i32
    return %c0_i32, %arg1 : i32, i32
  }
  func.func @transform_4(%arg0: i32, %arg1: i32, %arg2: i32) -> (i32, i32) {
    %c0_i32 = arith.constant 0 : i32
    return %arg0, %arg1 : i32, i32
  }
}

module attributes {stable_mosaic.version = 11 : i64} {
  func.func @kernel(%arg0: i32, %arg1: i32, %arg2: i32, %arg3: memref<32x256xbf16, #tpu.memory_space<vmem>>, %arg4: memref<256x128xbf16, #tpu.memory_space<vmem>>, %arg5: memref<1x128xf32, #tpu.memory_space<vmem>>, %arg6: memref<1x128xf32, #tpu.memory_space<vmem>>, %arg7: memref<32x128xf32, #tpu.memory_space<vmem>>, %arg8: memref<32x128xf32, #tpu.memory_space<vmem>>, %arg9: memref<32x128xf32, #tpu.memory_space<vmem>>) attributes {dimension_semantics = [#tpu.dimension_semantics<parallel>, #tpu.dimension_semantics<parallel>, #tpu.dimension_semantics<arbitrary>], iteration_bounds = array<i64: 1, 1, 5>, scalar_prefetch = 0 : i64, scratch_operands = 1 : i64, tpu.core_type = #tpu.core_type<tc>, window_params = [{transform_indices = @transform_0, window_bounds = array<i64: 32, 256>}, {transform_indices = @transform_1, window_bounds = array<i64: 256, 128>}, {transform_indices = @transform_2, window_bounds = array<i64: 1, 128>}, {transform_indices = @transform_3, window_bounds = array<i64: 1, 128>}, {transform_indices = @transform_4, window_bounds = array<i64: 32, 128>}, {transform_indices = @transform_5, window_bounds = array<i64: 32, 128>}]} {
    %c0_i32 = arith.constant 0 : i32
    %0 = arith.cmpi eq, %arg2, %c0_i32 : i32
    %1 = arith.extui %0 : i1 to i32
    %c0_i32_0 = arith.constant 0 : i32
    %2 = arith.cmpi ne, %1, %c0_i32_0 : i32
    scf.if %2 {
      %cst_9 = arith.constant 0.000000e+00 : f32
      %12 = vector.broadcast %cst_9 : f32 to vector<32x128xf32>
      %c0_10 = arith.constant 0 : index
      %c0_11 = arith.constant 0 : index
      %13 = vector.load %arg9[%c0_10, %c0_11] : memref<32x128xf32, #tpu.memory_space<vmem>>, vector<32x128xf32>
      tpu.vector_store %arg9[%c0_10, %c0_11], %12 {strides = array<i32>} : memref<32x128xf32, #tpu.memory_space<vmem>>, vector<32x128xf32>,
    } else {
    }
    %c0 = arith.constant 0 : index
    %c0_1 = arith.constant 0 : index
    %3 = vector.load %arg9[%c0, %c0_1] : memref<32x128xf32, #tpu.memory_space<vmem>>, vector<32x128xf32>
    %c0_2 = arith.constant 0 : index
    %c0_3 = arith.constant 0 : index
    %4 = vector.load %arg3[%c0_2, %c0_3] : memref<32x256xbf16, #tpu.memory_space<vmem>>, vector<32x256xbf16>
    %c0_4 = arith.constant 0 : index
    %c0_5 = arith.constant 0 : index
    %5 = vector.load %arg4[%c0_4, %c0_5] : memref<256x128xbf16, #tpu.memory_space<vmem>>, vector<256x128xbf16>
    %cst = arith.constant dense<0.000000e+00> : vector<32x128xf32>
    %6 = tpu.matmul %4, %5, %cst {dimension_numbers = #tpu.dot_dimension_numbers<[1], [0], [0], [1], [0, 0, 1, 1], [], []>} : vector<32x256xbf16>, vector<256x128xbf16>, vector<32x128xf32> -> vector<32x128xf32>
    %7 = arith.addf %3, %6 : vector<32x128xf32>
    %c0_6 = arith.constant 0 : index
    %c0_7 = arith.constant 0 : index
    %8 = vector.load %arg9[%c0_6, %c0_7] : memref<32x128xf32, #tpu.memory_space<vmem>>, vector<32x128xf32>
    tpu.vector_store %arg9[%c0_6, %c0_7], %7 {strides = array<i32>} : memref<32x128xf32, #tpu.memory_space<vmem>>, vector<32x128xf32>,
    %c4_i32 = arith.constant 4 : i32
    %9 = arith.cmpi eq, %arg2, %c4_i32 : i32
    %10 = arith.extui %9 : i1 to i32
    %c0_i32_8 = arith.constant 0 : i32
    %11 = arith.cmpi ne, %10, %c0_i32_8 : i32
    scf.if %11 {
      %c0_9 = arith.constant 0 : index
      %c0_10 = arith.constant 0 : index
      %12 = vector.load %arg9[%c0_9, %c0_10] : memref<32x128xf32, #tpu.memory_space<vmem>>, vector<32x128xf32>
      %c0_11 = arith.constant 0 : index
      %c0_12 = arith.constant 0 : index
      %13 = vector.load %arg5[%c0_11, %c0_12] : memref<1x128xf32, #tpu.memory_space<vmem>>, vector<1x128xf32>
      %14 = vector.broadcast %13 : vector<1x128xf32> to vector<32x128xf32>
      %15 = arith.mulf %12, %14 : vector<32x128xf32>
      %c0_13 = arith.constant 0 : index
      %c0_14 = arith.constant 0 : index
      %16 = vector.load %arg6[%c0_13, %c0_14] : memref<1x128xf32, #tpu.memory_space<vmem>>, vector<1x128xf32>
      %17 = vector.broadcast %16 : vector<1x128xf32> to vector<32x128xf32>
      %18 = arith.addf %15, %17 : vector<32x128xf32>
      %c0_15 = arith.constant 0 : index
      %c0_16 = arith.constant 0 : index
      %19 = vector.load %arg7[%c0_15, %c0_16] : memref<32x128xf32, #tpu.memory_space<vmem>>, vector<32x128xf32>
      %20 = arith.addf %18, %19 : vector<32x128xf32>
      %cst_17 = arith.constant 0.000000e+00 : f32
      %21 = vector.broadcast %cst_17 : f32 to vector<32x128xf32>
      %22 = arith.maximumf %20, %21 : vector<32x128xf32>
      %c0_18 = arith.constant 0 : index
      %c0_19 = arith.constant 0 : index
      %23 = vector.load %arg8[%c0_18, %c0_19] : memref<32x128xf32, #tpu.memory_space<vmem>>, vector<32x128xf32>
      tpu.vector_store %arg8[%c0_18, %c0_19], %22 {strides = array<i32>} : memref<32x128xf32, #tpu.memory_space<vmem>>, vector<32x128xf32>,
    } else {
    }
    return
  }
  func.func @transform_0(%arg0: i32, %arg1: i32, %arg2: i32) -> (i32, i32) {
    %c0_i32 = arith.constant 0 : i32
    return %arg0, %arg2 : i32, i32
  }
  func.func @transform_1(%arg0: i32, %arg1: i32, %arg2: i32) -> (i32, i32) {
    %c0_i32 = arith.constant 0 : i32
    return %arg2, %arg1 : i32, i32
  }
  func.func @transform_2(%arg0: i32, %arg1: i32, %arg2: i32) -> (i32, i32) {
    %c0_i32 = arith.constant 0 : i32
    %c0_i32_0 = arith.constant 0 : i32
    return %c0_i32, %arg1 : i32, i32
  }
  func.func @transform_3(%arg0: i32, %arg1: i32, %arg2: i32) -> (i32, i32) {
    %c0_i32 = arith.constant 0 : i32
    %c0_i32_0 = arith.constant 0 : i32
    return %c0_i32, %arg1 : i32, i32
  }
  func.func @transform_4(%arg0: i32, %arg1: i32, %arg2: i32) -> (i32, i32) {
    %c0_i32 = arith.constant 0 : i32
    return %arg0, %arg1 : i32, i32
  }
  func.func @transform_5(%arg0: i32, %arg1: i32, %arg2: i32) -> (i32, i32) {
    %c0_i32 = arith.constant 0 : i32
    return %arg0, %arg1 : i32, i32
  }
}

module attributes {stable_mosaic.version = 11 : i64} {
  func.func @kernel(%arg0: i32, %arg1: i32, %arg2: i32, %arg3: memref<32x64xbf16, #tpu.memory_space<vmem>>, %arg4: memref<64x128xbf16, #tpu.memory_space<vmem>>, %arg5: memref<1x128xf32, #tpu.memory_space<vmem>>, %arg6: memref<1x128xf32, #tpu.memory_space<vmem>>, %arg7: memref<32x128xf32, #tpu.memory_space<vmem>>, %arg8: memref<32x128xf32, #tpu.memory_space<vmem>>) attributes {dimension_semantics = [#tpu.dimension_semantics<parallel>, #tpu.dimension_semantics<parallel>, #tpu.dimension_semantics<arbitrary>], iteration_bounds = array<i64: 1, 1, 1>, scalar_prefetch = 0 : i64, scratch_operands = 1 : i64, tpu.core_type = #tpu.core_type<tc>, window_params = [{transform_indices = @transform_0, window_bounds = array<i64: 32, 64>}, {transform_indices = @transform_1, window_bounds = array<i64: 64, 128>}, {transform_indices = @transform_2, window_bounds = array<i64: 1, 128>}, {transform_indices = @transform_3, window_bounds = array<i64: 1, 128>}, {transform_indices = @transform_4, window_bounds = array<i64: 32, 128>}]} {
    %c0_i32 = arith.constant 0 : i32
    %0 = arith.cmpi eq, %arg2, %c0_i32 : i32
    %1 = arith.extui %0 : i1 to i32
    %c0_i32_0 = arith.constant 0 : i32
    %2 = arith.cmpi ne, %1, %c0_i32_0 : i32
    scf.if %2 {
      %cst_10 = arith.constant 0.000000e+00 : f32
      %12 = vector.broadcast %cst_10 : f32 to vector<32x128xf32>
      %c0_11 = arith.constant 0 : index
      %c0_12 = arith.constant 0 : index
      %13 = vector.load %arg8[%c0_11, %c0_12] : memref<32x128xf32, #tpu.memory_space<vmem>>, vector<32x128xf32>
      tpu.vector_store %arg8[%c0_11, %c0_12], %12 {strides = array<i32>} : memref<32x128xf32, #tpu.memory_space<vmem>>, vector<32x128xf32>,
    } else {
    }
    %c0 = arith.constant 0 : index
    %c0_1 = arith.constant 0 : index
    %3 = vector.load %arg8[%c0, %c0_1] : memref<32x128xf32, #tpu.memory_space<vmem>>, vector<32x128xf32>
    %c0_2 = arith.constant 0 : index
    %c0_3 = arith.constant 0 : index
    %4 = vector.load %arg3[%c0_2, %c0_3] : memref<32x64xbf16, #tpu.memory_space<vmem>>, vector<32x64xbf16>
    %c0_4 = arith.constant 0 : index
    %c0_5 = arith.constant 0 : index
    %5 = vector.load %arg4[%c0_4, %c0_5] : memref<64x128xbf16, #tpu.memory_space<vmem>>, vector<64x128xbf16>
    %cst = arith.constant dense<0.000000e+00> : vector<32x128xf32>
    %6 = tpu.matmul %4, %5, %cst {dimension_numbers = #tpu.dot_dimension_numbers<[1], [0], [0], [1], [0, 0, 1, 1], [], []>} : vector<32x64xbf16>, vector<64x128xbf16>, vector<32x128xf32> -> vector<32x128xf32>
    %7 = arith.addf %3, %6 : vector<32x128xf32>
    %c0_6 = arith.constant 0 : index
    %c0_7 = arith.constant 0 : index
    %8 = vector.load %arg8[%c0_6, %c0_7] : memref<32x128xf32, #tpu.memory_space<vmem>>, vector<32x128xf32>
    tpu.vector_store %arg8[%c0_6, %c0_7], %7 {strides = array<i32>} : memref<32x128xf32, #tpu.memory_space<vmem>>, vector<32x128xf32>,
    %c0_i32_8 = arith.constant 0 : i32
    %9 = arith.cmpi eq, %arg2, %c0_i32_8 : i32
    %10 = arith.extui %9 : i1 to i32
    %c0_i32_9 = arith.constant 0 : i32
    %11 = arith.cmpi ne, %10, %c0_i32_9 : i32
    scf.if %11 {
      %c0_10 = arith.constant 0 : index
      %c0_11 = arith.constant 0 : index
      %12 = vector.load %arg8[%c0_10, %c0_11] : memref<32x128xf32, #tpu.memory_space<vmem>>, vector<32x128xf32>
      %c0_12 = arith.constant 0 : index
      %c0_13 = arith.constant 0 : index
      %13 = vector.load %arg5[%c0_12, %c0_13] : memref<1x128xf32, #tpu.memory_space<vmem>>, vector<1x128xf32>
      %14 = vector.broadcast %13 : vector<1x128xf32> to vector<32x128xf32>
      %15 = arith.mulf %12, %14 : vector<32x128xf32>
      %c0_14 = arith.constant 0 : index
      %c0_15 = arith.constant 0 : index
      %16 = vector.load %arg6[%c0_14, %c0_15] : memref<1x128xf32, #tpu.memory_space<vmem>>, vector<1x128xf32>
      %17 = vector.broadcast %16 : vector<1x128xf32> to vector<32x128xf32>
      %18 = arith.addf %15, %17 : vector<32x128xf32>
      %c0_16 = arith.constant 0 : index
      %c0_17 = arith.constant 0 : index
      %19 = vector.load %arg7[%c0_16, %c0_17] : memref<32x128xf32, #tpu.memory_space<vmem>>, vector<32x128xf32>
      tpu.vector_store %arg7[%c0_16, %c0_17], %18 {strides = array<i32>} : memref<32x128xf32, #tpu.memory_space<vmem>>, vector<32x128xf32>,
    } else {
    }
    return
  }
  func.func @transform_0(%arg0: i32, %arg1: i32, %arg2: i32) -> (i32, i32) {
    %c0_i32 = arith.constant 0 : i32
    return %arg0, %arg2 : i32, i32
  }
  func.func @transform_1(%arg0: i32, %arg1: i32, %arg2: i32) -> (i32, i32) {
    %c0_i32 = arith.constant 0 : i32
    return %arg2, %arg1 : i32, i32
  }
  func.func @transform_2(%arg0: i32, %arg1: i32, %arg2: i32) -> (i32, i32) {
    %c0_i32 = arith.constant 0 : i32
    %c0_i32_0 = arith.constant 0 : i32
    return %c0_i32, %arg1 : i32, i32
  }
  func.func @transform_3(%arg0: i32, %arg1: i32, %arg2: i32) -> (i32, i32) {
    %c0_i32 = arith.constant 0 : i32
    %c0_i32_0 = arith.constant 0 : i32
    return %c0_i32, %arg1 : i32, i32
  }
  func.func @transform_4(%arg0: i32, %arg1: i32, %arg2: i32) -> (i32, i32) {
    %c0_i32 = arith.constant 0 : i32
    return %arg0, %arg1 : i32, i32
  }
}

module attributes {stable_mosaic.version = 11 : i64} {
  func.func @kernel(%arg0: i32, %arg1: i32, %arg2: i32, %arg3: memref<32x256xbf16, #tpu.memory_space<vmem>>, %arg4: memref<256x128xbf16, #tpu.memory_space<vmem>>, %arg5: memref<1x128xf32, #tpu.memory_space<vmem>>, %arg6: memref<1x128xf32, #tpu.memory_space<vmem>>, %arg7: memref<32x128xf32, #tpu.memory_space<vmem>>, %arg8: memref<32x128xf32, #tpu.memory_space<vmem>>) attributes {dimension_semantics = [#tpu.dimension_semantics<parallel>, #tpu.dimension_semantics<parallel>, #tpu.dimension_semantics<arbitrary>], iteration_bounds = array<i64: 1, 1, 5>, scalar_prefetch = 0 : i64, scratch_operands = 1 : i64, tpu.core_type = #tpu.core_type<tc>, window_params = [{transform_indices = @transform_0, window_bounds = array<i64: 32, 256>}, {transform_indices = @transform_1, window_bounds = array<i64: 256, 128>}, {transform_indices = @transform_2, window_bounds = array<i64: 1, 128>}, {transform_indices = @transform_3, window_bounds = array<i64: 1, 128>}, {transform_indices = @transform_4, window_bounds = array<i64: 32, 128>}]} {
    %c0_i32 = arith.constant 0 : i32
    %0 = arith.cmpi eq, %arg2, %c0_i32 : i32
    %1 = arith.extui %0 : i1 to i32
    %c0_i32_0 = arith.constant 0 : i32
    %2 = arith.cmpi ne, %1, %c0_i32_0 : i32
    scf.if %2 {
      %cst_9 = arith.constant 0.000000e+00 : f32
      %12 = vector.broadcast %cst_9 : f32 to vector<32x128xf32>
      %c0_10 = arith.constant 0 : index
      %c0_11 = arith.constant 0 : index
      %13 = vector.load %arg8[%c0_10, %c0_11] : memref<32x128xf32, #tpu.memory_space<vmem>>, vector<32x128xf32>
      tpu.vector_store %arg8[%c0_10, %c0_11], %12 {strides = array<i32>} : memref<32x128xf32, #tpu.memory_space<vmem>>, vector<32x128xf32>,
    } else {
    }
    %c0 = arith.constant 0 : index
    %c0_1 = arith.constant 0 : index
    %3 = vector.load %arg8[%c0, %c0_1] : memref<32x128xf32, #tpu.memory_space<vmem>>, vector<32x128xf32>
    %c0_2 = arith.constant 0 : index
    %c0_3 = arith.constant 0 : index
    %4 = vector.load %arg3[%c0_2, %c0_3] : memref<32x256xbf16, #tpu.memory_space<vmem>>, vector<32x256xbf16>
    %c0_4 = arith.constant 0 : index
    %c0_5 = arith.constant 0 : index
    %5 = vector.load %arg4[%c0_4, %c0_5] : memref<256x128xbf16, #tpu.memory_space<vmem>>, vector<256x128xbf16>
    %cst = arith.constant dense<0.000000e+00> : vector<32x128xf32>
    %6 = tpu.matmul %4, %5, %cst {dimension_numbers = #tpu.dot_dimension_numbers<[1], [0], [0], [1], [0, 0, 1, 1], [], []>} : vector<32x256xbf16>, vector<256x128xbf16>, vector<32x128xf32> -> vector<32x128xf32>
    %7 = arith.addf %3, %6 : vector<32x128xf32>
    %c0_6 = arith.constant 0 : index
    %c0_7 = arith.constant 0 : index
    %8 = vector.load %arg8[%c0_6, %c0_7] : memref<32x128xf32, #tpu.memory_space<vmem>>, vector<32x128xf32>
    tpu.vector_store %arg8[%c0_6, %c0_7], %7 {strides = array<i32>} : memref<32x128xf32, #tpu.memory_space<vmem>>, vector<32x128xf32>,
    %c4_i32 = arith.constant 4 : i32
    %9 = arith.cmpi eq, %arg2, %c4_i32 : i32
    %10 = arith.extui %9 : i1 to i32
    %c0_i32_8 = arith.constant 0 : i32
    %11 = arith.cmpi ne, %10, %c0_i32_8 : i32
    scf.if %11 {
      %c0_9 = arith.constant 0 : index
      %c0_10 = arith.constant 0 : index
      %12 = vector.load %arg8[%c0_9, %c0_10] : memref<32x128xf32, #tpu.memory_space<vmem>>, vector<32x128xf32>
      %c0_11 = arith.constant 0 : index
      %c0_12 = arith.constant 0 : index
      %13 = vector.load %arg5[%c0_11, %c0_12] : memref<1x128xf32, #tpu.memory_space<vmem>>, vector<1x128xf32>
      %14 = vector.broadcast %13 : vector<1x128xf32> to vector<32x128xf32>
      %15 = arith.mulf %12, %14 : vector<32x128xf32>
      %c0_13 = arith.constant 0 : index
      %c0_14 = arith.constant 0 : index
      %16 = vector.load %arg6[%c0_13, %c0_14] : memref<1x128xf32, #tpu.memory_space<vmem>>, vector<1x128xf32>
      %17 = vector.broadcast %16 : vector<1x128xf32> to vector<32x128xf32>
      %18 = arith.addf %15, %17 : vector<32x128xf32>
      %cst_15 = arith.constant 0.000000e+00 : f32
      %19 = vector.broadcast %cst_15 : f32 to vector<32x128xf32>
      %20 = arith.maximumf %18, %19 : vector<32x128xf32>
      %c0_16 = arith.constant 0 : index
      %c0_17 = arith.constant 0 : index
      %21 = vector.load %arg7[%c0_16, %c0_17] : memref<32x128xf32, #tpu.memory_space<vmem>>, vector<32x128xf32>
      tpu.vector_store %arg7[%c0_16, %c0_17], %20 {strides = array<i32>} : memref<32x128xf32, #tpu.memory_space<vmem>>, vector<32x128xf32>,
    } else {
    }
    return
  }
  func.func @transform_0(%arg0: i32, %arg1: i32, %arg2: i32) -> (i32, i32) {
    %c0_i32 = arith.constant 0 : i32
    return %arg0, %arg2 : i32, i32
  }
  func.func @transform_1(%arg0: i32, %arg1: i32, %arg2: i32) -> (i32, i32) {
    %c0_i32 = arith.constant 0 : i32
    return %arg2, %arg1 : i32, i32
  }
  func.func @transform_2(%arg0: i32, %arg1: i32, %arg2: i32) -> (i32, i32) {
    %c0_i32 = arith.constant 0 : i32
    %c0_i32_0 = arith.constant 0 : i32
    return %c0_i32, %arg1 : i32, i32
  }
  func.func @transform_3(%arg0: i32, %arg1: i32, %arg2: i32) -> (i32, i32) {
    %c0_i32 = arith.constant 0 : i32
    %c0_i32_0 = arith.constant 0 : i32
    return %c0_i32, %arg1 : i32, i32
  }
  func.func @transform_4(%arg0: i32, %arg1: i32, %arg2: i32) -> (i32, i32) {
    %c0_i32 = arith.constant 0 : i32
    return %arg0, %arg1 : i32, i32
  }
}

module attributes {stable_mosaic.version = 11 : i64} {
  func.func @kernel(%arg0: i32, %arg1: i32, %arg2: i32, %arg3: memref<8x256xbf16, #tpu.memory_space<vmem>>, %arg4: memref<256x256xbf16, #tpu.memory_space<vmem>>, %arg5: memref<1x256xf32, #tpu.memory_space<vmem>>, %arg6: memref<1x256xf32, #tpu.memory_space<vmem>>, %arg7: memref<8x256xf32, #tpu.memory_space<vmem>>, %arg8: memref<8x256xf32, #tpu.memory_space<vmem>>) attributes {dimension_semantics = [#tpu.dimension_semantics<parallel>, #tpu.dimension_semantics<parallel>, #tpu.dimension_semantics<arbitrary>], iteration_bounds = array<i64: 1, 1, 5>, scalar_prefetch = 0 : i64, scratch_operands = 1 : i64, tpu.core_type = #tpu.core_type<tc>, window_params = [{transform_indices = @transform_0, window_bounds = array<i64: 8, 256>}, {transform_indices = @transform_1, window_bounds = array<i64: 256, 256>}, {transform_indices = @transform_2, window_bounds = array<i64: 1, 256>}, {transform_indices = @transform_3, window_bounds = array<i64: 1, 256>}, {transform_indices = @transform_4, window_bounds = array<i64: 8, 256>}]} {
    %c0_i32 = arith.constant 0 : i32
    %0 = arith.cmpi eq, %arg2, %c0_i32 : i32
    %1 = arith.extui %0 : i1 to i32
    %c0_i32_0 = arith.constant 0 : i32
    %2 = arith.cmpi ne, %1, %c0_i32_0 : i32
    scf.if %2 {
      %cst_9 = arith.constant 0.000000e+00 : f32
      %12 = vector.broadcast %cst_9 : f32 to vector<8x256xf32>
      %c0_10 = arith.constant 0 : index
      %c0_11 = arith.constant 0 : index
      %13 = vector.load %arg8[%c0_10, %c0_11] : memref<8x256xf32, #tpu.memory_space<vmem>>, vector<8x256xf32>
      tpu.vector_store %arg8[%c0_10, %c0_11], %12 {strides = array<i32>} : memref<8x256xf32, #tpu.memory_space<vmem>>, vector<8x256xf32>,
    } else {
    }
    %c0 = arith.constant 0 : index
    %c0_1 = arith.constant 0 : index
    %3 = vector.load %arg8[%c0, %c0_1] : memref<8x256xf32, #tpu.memory_space<vmem>>, vector<8x256xf32>
    %c0_2 = arith.constant 0 : index
    %c0_3 = arith.constant 0 : index
    %4 = vector.load %arg3[%c0_2, %c0_3] : memref<8x256xbf16, #tpu.memory_space<vmem>>, vector<8x256xbf16>
    %c0_4 = arith.constant 0 : index
    %c0_5 = arith.constant 0 : index
    %5 = vector.load %arg4[%c0_4, %c0_5] : memref<256x256xbf16, #tpu.memory_space<vmem>>, vector<256x256xbf16>
    %cst = arith.constant dense<0.000000e+00> : vector<8x256xf32>
    %6 = tpu.matmul %4, %5, %cst {dimension_numbers = #tpu.dot_dimension_numbers<[1], [0], [0], [1], [0, 0, 1, 1], [], []>} : vector<8x256xbf16>, vector<256x256xbf16>, vector<8x256xf32> -> vector<8x256xf32>
    %7 = arith.addf %3, %6 : vector<8x256xf32>
    %c0_6 = arith.constant 0 : index
    %c0_7 = arith.constant 0 : index
    %8 = vector.load %arg8[%c0_6, %c0_7] : memref<8x256xf32, #tpu.memory_space<vmem>>, vector<8x256xf32>
    tpu.vector_store %arg8[%c0_6, %c0_7], %7 {strides = array<i32>} : memref<8x256xf32, #tpu.memory_space<vmem>>, vector<8x256xf32>,
    %c4_i32 = arith.constant 4 : i32
    %9 = arith.cmpi eq, %arg2, %c4_i32 : i32
    %10 = arith.extui %9 : i1 to i32
    %c0_i32_8 = arith.constant 0 : i32
    %11 = arith.cmpi ne, %10, %c0_i32_8 : i32
    scf.if %11 {
      %c0_9 = arith.constant 0 : index
      %c0_10 = arith.constant 0 : index
      %12 = vector.load %arg8[%c0_9, %c0_10] : memref<8x256xf32, #tpu.memory_space<vmem>>, vector<8x256xf32>
      %c0_11 = arith.constant 0 : index
      %c0_12 = arith.constant 0 : index
      %13 = vector.load %arg5[%c0_11, %c0_12] : memref<1x256xf32, #tpu.memory_space<vmem>>, vector<1x256xf32>
      %14 = vector.broadcast %13 : vector<1x256xf32> to vector<8x256xf32>
      %15 = arith.mulf %12, %14 : vector<8x256xf32>
      %c0_13 = arith.constant 0 : index
      %c0_14 = arith.constant 0 : index
      %16 = vector.load %arg6[%c0_13, %c0_14] : memref<1x256xf32, #tpu.memory_space<vmem>>, vector<1x256xf32>
      %17 = vector.broadcast %16 : vector<1x256xf32> to vector<8x256xf32>
      %18 = arith.addf %15, %17 : vector<8x256xf32>
      %cst_15 = arith.constant 0.000000e+00 : f32
      %19 = vector.broadcast %cst_15 : f32 to vector<8x256xf32>
      %20 = arith.maximumf %18, %19 : vector<8x256xf32>
      %c0_16 = arith.constant 0 : index
      %c0_17 = arith.constant 0 : index
      %21 = vector.load %arg7[%c0_16, %c0_17] : memref<8x256xf32, #tpu.memory_space<vmem>>, vector<8x256xf32>
      tpu.vector_store %arg7[%c0_16, %c0_17], %20 {strides = array<i32>} : memref<8x256xf32, #tpu.memory_space<vmem>>, vector<8x256xf32>,
    } else {
    }
    return
  }
  func.func @transform_0(%arg0: i32, %arg1: i32, %arg2: i32) -> (i32, i32) {
    %c0_i32 = arith.constant 0 : i32
    return %arg0, %arg2 : i32, i32
  }
  func.func @transform_1(%arg0: i32, %arg1: i32, %arg2: i32) -> (i32, i32) {
    %c0_i32 = arith.constant 0 : i32
    return %arg2, %arg1 : i32, i32
  }
  func.func @transform_2(%arg0: i32, %arg1: i32, %arg2: i32) -> (i32, i32) {
    %c0_i32 = arith.constant 0 : i32
    %c0_i32_0 = arith.constant 0 : i32
    return %c0_i32, %arg1 : i32, i32
  }
  func.func @transform_3(%arg0: i32, %arg1: i32, %arg2: i32) -> (i32, i32) {
    %c0_i32 = arith.constant 0 : i32
    %c0_i32_0 = arith.constant 0 : i32
    return %c0_i32, %arg1 : i32, i32
  }
  func.func @transform_4(%arg0: i32, %arg1: i32, %arg2: i32) -> (i32, i32) {
    %c0_i32 = arith.constant 0 : i32
    return %arg0, %arg1 : i32, i32
  }
}

module attributes {stable_mosaic.version = 11 : i64} {
  func.func @kernel(%arg0: i32, %arg1: i32, %arg2: i32, %arg3: memref<8x128xbf16, #tpu.memory_space<vmem>>, %arg4: memref<128x256xbf16, #tpu.memory_space<vmem>>, %arg5: memref<1x256xf32, #tpu.memory_space<vmem>>, %arg6: memref<1x256xf32, #tpu.memory_space<vmem>>, %arg7: memref<8x256xf32, #tpu.memory_space<vmem>>, %arg8: memref<8x256xf32, #tpu.memory_space<vmem>>) attributes {dimension_semantics = [#tpu.dimension_semantics<parallel>, #tpu.dimension_semantics<parallel>, #tpu.dimension_semantics<arbitrary>], iteration_bounds = array<i64: 1, 1, 1>, scalar_prefetch = 0 : i64, scratch_operands = 1 : i64, tpu.core_type = #tpu.core_type<tc>, window_params = [{transform_indices = @transform_0, window_bounds = array<i64: 8, 128>}, {transform_indices = @transform_1, window_bounds = array<i64: 128, 256>}, {transform_indices = @transform_2, window_bounds = array<i64: 1, 256>}, {transform_indices = @transform_3, window_bounds = array<i64: 1, 256>}, {transform_indices = @transform_4, window_bounds = array<i64: 8, 256>}]} {
    %c0_i32 = arith.constant 0 : i32
    %0 = arith.cmpi eq, %arg2, %c0_i32 : i32
    %1 = arith.extui %0 : i1 to i32
    %c0_i32_0 = arith.constant 0 : i32
    %2 = arith.cmpi ne, %1, %c0_i32_0 : i32
    scf.if %2 {
      %cst_10 = arith.constant 0.000000e+00 : f32
      %12 = vector.broadcast %cst_10 : f32 to vector<8x256xf32>
      %c0_11 = arith.constant 0 : index
      %c0_12 = arith.constant 0 : index
      %13 = vector.load %arg8[%c0_11, %c0_12] : memref<8x256xf32, #tpu.memory_space<vmem>>, vector<8x256xf32>
      tpu.vector_store %arg8[%c0_11, %c0_12], %12 {strides = array<i32>} : memref<8x256xf32, #tpu.memory_space<vmem>>, vector<8x256xf32>,
    } else {
    }
    %c0 = arith.constant 0 : index
    %c0_1 = arith.constant 0 : index
    %3 = vector.load %arg8[%c0, %c0_1] : memref<8x256xf32, #tpu.memory_space<vmem>>, vector<8x256xf32>
    %c0_2 = arith.constant 0 : index
    %c0_3 = arith.constant 0 : index
    %4 = vector.load %arg3[%c0_2, %c0_3] : memref<8x128xbf16, #tpu.memory_space<vmem>>, vector<8x128xbf16>
    %c0_4 = arith.constant 0 : index
    %c0_5 = arith.constant 0 : index
    %5 = vector.load %arg4[%c0_4, %c0_5] : memref<128x256xbf16, #tpu.memory_space<vmem>>, vector<128x256xbf16>
    %cst = arith.constant dense<0.000000e+00> : vector<8x256xf32>
    %6 = tpu.matmul %4, %5, %cst {dimension_numbers = #tpu.dot_dimension_numbers<[1], [0], [0], [1], [0, 0, 1, 1], [], []>} : vector<8x128xbf16>, vector<128x256xbf16>, vector<8x256xf32> -> vector<8x256xf32>
    %7 = arith.addf %3, %6 : vector<8x256xf32>
    %c0_6 = arith.constant 0 : index
    %c0_7 = arith.constant 0 : index
    %8 = vector.load %arg8[%c0_6, %c0_7] : memref<8x256xf32, #tpu.memory_space<vmem>>, vector<8x256xf32>
    tpu.vector_store %arg8[%c0_6, %c0_7], %7 {strides = array<i32>} : memref<8x256xf32, #tpu.memory_space<vmem>>, vector<8x256xf32>,
    %c0_i32_8 = arith.constant 0 : i32
    %9 = arith.cmpi eq, %arg2, %c0_i32_8 : i32
    %10 = arith.extui %9 : i1 to i32
    %c0_i32_9 = arith.constant 0 : i32
    %11 = arith.cmpi ne, %10, %c0_i32_9 : i32
    scf.if %11 {
      %c0_10 = arith.constant 0 : index
      %c0_11 = arith.constant 0 : index
      %12 = vector.load %arg8[%c0_10, %c0_11] : memref<8x256xf32, #tpu.memory_space<vmem>>, vector<8x256xf32>
      %c0_12 = arith.constant 0 : index
      %c0_13 = arith.constant 0 : index
      %13 = vector.load %arg5[%c0_12, %c0_13] : memref<1x256xf32, #tpu.memory_space<vmem>>, vector<1x256xf32>
      %14 = vector.broadcast %13 : vector<1x256xf32> to vector<8x256xf32>
      %15 = arith.mulf %12, %14 : vector<8x256xf32>
      %c0_14 = arith.constant 0 : index
      %c0_15 = arith.constant 0 : index
      %16 = vector.load %arg6[%c0_14, %c0_15] : memref<1x256xf32, #tpu.memory_space<vmem>>, vector<1x256xf32>
      %17 = vector.broadcast %16 : vector<1x256xf32> to vector<8x256xf32>
      %18 = arith.addf %15, %17 : vector<8x256xf32>
      %c0_16 = arith.constant 0 : index
      %c0_17 = arith.constant 0 : index
      %19 = vector.load %arg7[%c0_16, %c0_17] : memref<8x256xf32, #tpu.memory_space<vmem>>, vector<8x256xf32>
      tpu.vector_store %arg7[%c0_16, %c0_17], %18 {strides = array<i32>} : memref<8x256xf32, #tpu.memory_space<vmem>>, vector<8x256xf32>,
    } else {
    }
    return
  }
  func.func @transform_0(%arg0: i32, %arg1: i32, %arg2: i32) -> (i32, i32) {
    %c0_i32 = arith.constant 0 : i32
    return %arg0, %arg2 : i32, i32
  }
  func.func @transform_1(%arg0: i32, %arg1: i32, %arg2: i32) -> (i32, i32) {
    %c0_i32 = arith.constant 0 : i32
    return %arg2, %arg1 : i32, i32
  }
  func.func @transform_2(%arg0: i32, %arg1: i32, %arg2: i32) -> (i32, i32) {
    %c0_i32 = arith.constant 0 : i32
    %c0_i32_0 = arith.constant 0 : i32
    return %c0_i32, %arg1 : i32, i32
  }
  func.func @transform_3(%arg0: i32, %arg1: i32, %arg2: i32) -> (i32, i32) {
    %c0_i32 = arith.constant 0 : i32
    %c0_i32_0 = arith.constant 0 : i32
    return %c0_i32, %arg1 : i32, i32
  }
  func.func @transform_4(%arg0: i32, %arg1: i32, %arg2: i32) -> (i32, i32) {
    %c0_i32 = arith.constant 0 : i32
    return %arg0, %arg1 : i32, i32
  }
}

module attributes {stable_mosaic.version = 11 : i64} {
  func.func @kernel(%arg0: i32, %arg1: i32, %arg2: i32, %arg3: memref<8x256xbf16, #tpu.memory_space<vmem>>, %arg4: memref<256x256xbf16, #tpu.memory_space<vmem>>, %arg5: memref<1x256xf32, #tpu.memory_space<vmem>>, %arg6: memref<1x256xf32, #tpu.memory_space<vmem>>, %arg7: memref<8x256xf32, #tpu.memory_space<vmem>>, %arg8: memref<8x256xf32, #tpu.memory_space<vmem>>, %arg9: memref<8x256xf32, #tpu.memory_space<vmem>>) attributes {dimension_semantics = [#tpu.dimension_semantics<parallel>, #tpu.dimension_semantics<parallel>, #tpu.dimension_semantics<arbitrary>], iteration_bounds = array<i64: 1, 1, 9>, scalar_prefetch = 0 : i64, scratch_operands = 1 : i64, tpu.core_type = #tpu.core_type<tc>, window_params = [{transform_indices = @transform_0, window_bounds = array<i64: 8, 256>}, {transform_indices = @transform_1, window_bounds = array<i64: 256, 256>}, {transform_indices = @transform_2, window_bounds = array<i64: 1, 256>}, {transform_indices = @transform_3, window_bounds = array<i64: 1, 256>}, {transform_indices = @transform_4, window_bounds = array<i64: 8, 256>}, {transform_indices = @transform_5, window_bounds = array<i64: 8, 256>}]} {
    %c0_i32 = arith.constant 0 : i32
    %0 = arith.cmpi eq, %arg2, %c0_i32 : i32
    %1 = arith.extui %0 : i1 to i32
    %c0_i32_0 = arith.constant 0 : i32
    %2 = arith.cmpi ne, %1, %c0_i32_0 : i32
    scf.if %2 {
      %cst_9 = arith.constant 0.000000e+00 : f32
      %12 = vector.broadcast %cst_9 : f32 to vector<8x256xf32>
      %c0_10 = arith.constant 0 : index
      %c0_11 = arith.constant 0 : index
      %13 = vector.load %arg9[%c0_10, %c0_11] : memref<8x256xf32, #tpu.memory_space<vmem>>, vector<8x256xf32>
      tpu.vector_store %arg9[%c0_10, %c0_11], %12 {strides = array<i32>} : memref<8x256xf32, #tpu.memory_space<vmem>>, vector<8x256xf32>,
    } else {
    }
    %c0 = arith.constant 0 : index
    %c0_1 = arith.constant 0 : index
    %3 = vector.load %arg9[%c0, %c0_1] : memref<8x256xf32, #tpu.memory_space<vmem>>, vector<8x256xf32>
    %c0_2 = arith.constant 0 : index
    %c0_3 = arith.constant 0 : index
    %4 = vector.load %arg3[%c0_2, %c0_3] : memref<8x256xbf16, #tpu.memory_space<vmem>>, vector<8x256xbf16>
    %c0_4 = arith.constant 0 : index
    %c0_5 = arith.constant 0 : index
    %5 = vector.load %arg4[%c0_4, %c0_5] : memref<256x256xbf16, #tpu.memory_space<vmem>>, vector<256x256xbf16>
    %cst = arith.constant dense<0.000000e+00> : vector<8x256xf32>
    %6 = tpu.matmul %4, %5, %cst {dimension_numbers = #tpu.dot_dimension_numbers<[1], [0], [0], [1], [0, 0, 1, 1], [], []>} : vector<8x256xbf16>, vector<256x256xbf16>, vector<8x256xf32> -> vector<8x256xf32>
    %7 = arith.addf %3, %6 : vector<8x256xf32>
    %c0_6 = arith.constant 0 : index
    %c0_7 = arith.constant 0 : index
    %8 = vector.load %arg9[%c0_6, %c0_7] : memref<8x256xf32, #tpu.memory_space<vmem>>, vector<8x256xf32>
    tpu.vector_store %arg9[%c0_6, %c0_7], %7 {strides = array<i32>} : memref<8x256xf32, #tpu.memory_space<vmem>>, vector<8x256xf32>,
    %c8_i32 = arith.constant 8 : i32
    %9 = arith.cmpi eq, %arg2, %c8_i32 : i32
    %10 = arith.extui %9 : i1 to i32
    %c0_i32_8 = arith.constant 0 : i32
    %11 = arith.cmpi ne, %10, %c0_i32_8 : i32
    scf.if %11 {
      %c0_9 = arith.constant 0 : index
      %c0_10 = arith.constant 0 : index
      %12 = vector.load %arg9[%c0_9, %c0_10] : memref<8x256xf32, #tpu.memory_space<vmem>>, vector<8x256xf32>
      %c0_11 = arith.constant 0 : index
      %c0_12 = arith.constant 0 : index
      %13 = vector.load %arg5[%c0_11, %c0_12] : memref<1x256xf32, #tpu.memory_space<vmem>>, vector<1x256xf32>
      %14 = vector.broadcast %13 : vector<1x256xf32> to vector<8x256xf32>
      %15 = arith.mulf %12, %14 : vector<8x256xf32>
      %c0_13 = arith.constant 0 : index
      %c0_14 = arith.constant 0 : index
      %16 = vector.load %arg6[%c0_13, %c0_14] : memref<1x256xf32, #tpu.memory_space<vmem>>, vector<1x256xf32>
      %17 = vector.broadcast %16 : vector<1x256xf32> to vector<8x256xf32>
      %18 = arith.addf %15, %17 : vector<8x256xf32>
      %c0_15 = arith.constant 0 : index
      %c0_16 = arith.constant 0 : index
      %19 = vector.load %arg7[%c0_15, %c0_16] : memref<8x256xf32, #tpu.memory_space<vmem>>, vector<8x256xf32>
      %20 = arith.addf %18, %19 : vector<8x256xf32>
      %cst_17 = arith.constant 0.000000e+00 : f32
      %21 = vector.broadcast %cst_17 : f32 to vector<8x256xf32>
      %22 = arith.maximumf %20, %21 : vector<8x256xf32>
      %c0_18 = arith.constant 0 : index
      %c0_19 = arith.constant 0 : index
      %23 = vector.load %arg8[%c0_18, %c0_19] : memref<8x256xf32, #tpu.memory_space<vmem>>, vector<8x256xf32>
      tpu.vector_store %arg8[%c0_18, %c0_19], %22 {strides = array<i32>} : memref<8x256xf32, #tpu.memory_space<vmem>>, vector<8x256xf32>,
    } else {
    }
    return
  }
  func.func @transform_0(%arg0: i32, %arg1: i32, %arg2: i32) -> (i32, i32) {
    %c0_i32 = arith.constant 0 : i32
    return %arg0, %arg2 : i32, i32
  }
  func.func @transform_1(%arg0: i32, %arg1: i32, %arg2: i32) -> (i32, i32) {
    %c0_i32 = arith.constant 0 : i32
    return %arg2, %arg1 : i32, i32
  }
  func.func @transform_2(%arg0: i32, %arg1: i32, %arg2: i32) -> (i32, i32) {
    %c0_i32 = arith.constant 0 : i32
    %c0_i32_0 = arith.constant 0 : i32
    return %c0_i32, %arg1 : i32, i32
  }
  func.func @transform_3(%arg0: i32, %arg1: i32, %arg2: i32) -> (i32, i32) {
    %c0_i32 = arith.constant 0 : i32
    %c0_i32_0 = arith.constant 0 : i32
    return %c0_i32, %arg1 : i32, i32
  }
  func.func @transform_4(%arg0: i32, %arg1: i32, %arg2: i32) -> (i32, i32) {
    %c0_i32 = arith.constant 0 : i32
    return %arg0, %arg1 : i32, i32
  }
  func.func @transform_5(%arg0: i32, %arg1: i32, %arg2: i32) -> (i32, i32) {
    %c0_i32 = arith.constant 0 : i32
    return %arg0, %arg1 : i32, i32
  }
}

module attributes {stable_mosaic.version = 11 : i64} {
  func.func @kernel(%arg0: i32, %arg1: i32, %arg2: i32, %arg3: memref<8x256xbf16, #tpu.memory_space<vmem>>, %arg4: memref<256x256xbf16, #tpu.memory_space<vmem>>, %arg5: memref<1x256xf32, #tpu.memory_space<vmem>>, %arg6: memref<1x256xf32, #tpu.memory_space<vmem>>, %arg7: memref<8x256xf32, #tpu.memory_space<vmem>>, %arg8: memref<8x256xf32, #tpu.memory_space<vmem>>) attributes {dimension_semantics = [#tpu.dimension_semantics<parallel>, #tpu.dimension_semantics<parallel>, #tpu.dimension_semantics<arbitrary>], iteration_bounds = array<i64: 1, 1, 9>, scalar_prefetch = 0 : i64, scratch_operands = 1 : i64, tpu.core_type = #tpu.core_type<tc>, window_params = [{transform_indices = @transform_0, window_bounds = array<i64: 8, 256>}, {transform_indices = @transform_1, window_bounds = array<i64: 256, 256>}, {transform_indices = @transform_2, window_bounds = array<i64: 1, 256>}, {transform_indices = @transform_3, window_bounds = array<i64: 1, 256>}, {transform_indices = @transform_4, window_bounds = array<i64: 8, 256>}]} {
    %c0_i32 = arith.constant 0 : i32
    %0 = arith.cmpi eq, %arg2, %c0_i32 : i32
    %1 = arith.extui %0 : i1 to i32
    %c0_i32_0 = arith.constant 0 : i32
    %2 = arith.cmpi ne, %1, %c0_i32_0 : i32
    scf.if %2 {
      %cst_9 = arith.constant 0.000000e+00 : f32
      %12 = vector.broadcast %cst_9 : f32 to vector<8x256xf32>
      %c0_10 = arith.constant 0 : index
      %c0_11 = arith.constant 0 : index
      %13 = vector.load %arg8[%c0_10, %c0_11] : memref<8x256xf32, #tpu.memory_space<vmem>>, vector<8x256xf32>
      tpu.vector_store %arg8[%c0_10, %c0_11], %12 {strides = array<i32>} : memref<8x256xf32, #tpu.memory_space<vmem>>, vector<8x256xf32>,
    } else {
    }
    %c0 = arith.constant 0 : index
    %c0_1 = arith.constant 0 : index
    %3 = vector.load %arg8[%c0, %c0_1] : memref<8x256xf32, #tpu.memory_space<vmem>>, vector<8x256xf32>
    %c0_2 = arith.constant 0 : index
    %c0_3 = arith.constant 0 : index
    %4 = vector.load %arg3[%c0_2, %c0_3] : memref<8x256xbf16, #tpu.memory_space<vmem>>, vector<8x256xbf16>
    %c0_4 = arith.constant 0 : index
    %c0_5 = arith.constant 0 : index
    %5 = vector.load %arg4[%c0_4, %c0_5] : memref<256x256xbf16, #tpu.memory_space<vmem>>, vector<256x256xbf16>
    %cst = arith.constant dense<0.000000e+00> : vector<8x256xf32>
    %6 = tpu.matmul %4, %5, %cst {dimension_numbers = #tpu.dot_dimension_numbers<[1], [0], [0], [1], [0, 0, 1, 1], [], []>} : vector<8x256xbf16>, vector<256x256xbf16>, vector<8x256xf32> -> vector<8x256xf32>
    %7 = arith.addf %3, %6 : vector<8x256xf32>
    %c0_6 = arith.constant 0 : index
    %c0_7 = arith.constant 0 : index
    %8 = vector.load %arg8[%c0_6, %c0_7] : memref<8x256xf32, #tpu.memory_space<vmem>>, vector<8x256xf32>
    tpu.vector_store %arg8[%c0_6, %c0_7], %7 {strides = array<i32>} : memref<8x256xf32, #tpu.memory_space<vmem>>, vector<8x256xf32>,
    %c8_i32 = arith.constant 8 : i32
    %9 = arith.cmpi eq, %arg2, %c8_i32 : i32
    %10 = arith.extui %9 : i1 to i32
    %c0_i32_8 = arith.constant 0 : i32
    %11 = arith.cmpi ne, %10, %c0_i32_8 : i32
    scf.if %11 {
      %c0_9 = arith.constant 0 : index
      %c0_10 = arith.constant 0 : index
      %12 = vector.load %arg8[%c0_9, %c0_10] : memref<8x256xf32, #tpu.memory_space<vmem>>, vector<8x256xf32>
      %c0_11 = arith.constant 0 : index
      %c0_12 = arith.constant 0 : index
      %13 = vector.load %arg5[%c0_11, %c0_12] : memref<1x256xf32, #tpu.memory_space<vmem>>, vector<1x256xf32>
      %14 = vector.broadcast %13 : vector<1x256xf32> to vector<8x256xf32>
      %15 = arith.mulf %12, %14 : vector<8x256xf32>
      %c0_13 = arith.constant 0 : index
      %c0_14 = arith.constant 0 : index
      %16 = vector.load %arg6[%c0_13, %c0_14] : memref<1x256xf32, #tpu.memory_space<vmem>>, vector<1x256xf32>
      %17 = vector.broadcast %16 : vector<1x256xf32> to vector<8x256xf32>
      %18 = arith.addf %15, %17 : vector<8x256xf32>
      %cst_15 = arith.constant 0.000000e+00 : f32
      %19 = vector.broadcast %cst_15 : f32 to vector<8x256xf32>
      %20 = arith.maximumf %18, %19 : vector<8x256xf32>
      %c0_16 = arith.constant 0 : index
      %c0_17 = arith.constant 0 : index
      %21 = vector.load %arg7[%c0_16, %c0_17] : memref<8x256xf32, #tpu.memory_space<vmem>>, vector<8x256xf32>
      tpu.vector_store %arg7[%c0_16, %c0_17], %20 {strides = array<i32>} : memref<8x256xf32, #tpu.memory_space<vmem>>, vector<8x256xf32>,
    } else {
    }
    return
  }
  func.func @transform_0(%arg0: i32, %arg1: i32, %arg2: i32) -> (i32, i32) {
    %c0_i32 = arith.constant 0 : i32
    return %arg0, %arg2 : i32, i32
  }
  func.func @transform_1(%arg0: i32, %arg1: i32, %arg2: i32) -> (i32, i32) {
    %c0_i32 = arith.constant 0 : i32
    return %arg2, %arg1 : i32, i32
  }
  func.func @transform_2(%arg0: i32, %arg1: i32, %arg2: i32) -> (i32, i32) {
    %c0_i32 = arith.constant 0 : i32
    %c0_i32_0 = arith.constant 0 : i32
    return %c0_i32, %arg1 : i32, i32
  }
  func.func @transform_3(%arg0: i32, %arg1: i32, %arg2: i32) -> (i32, i32) {
    %c0_i32 = arith.constant 0 : i32
    %c0_i32_0 = arith.constant 0 : i32
    return %c0_i32, %arg1 : i32, i32
  }
  func.func @transform_4(%arg0: i32, %arg1: i32, %arg2: i32) -> (i32, i32) {
    %c0_i32 = arith.constant 0 : i32
    return %arg0, %arg1 : i32, i32
  }
}

module attributes {stable_mosaic.version = 11 : i64} {
  func.func @kernel(%arg0: i32, %arg1: i32, %arg2: i32, %arg3: memref<8x256xbf16, #tpu.memory_space<vmem>>, %arg4: memref<256x512xbf16, #tpu.memory_space<vmem>>, %arg5: memref<1x512xf32, #tpu.memory_space<vmem>>, %arg6: memref<1x512xf32, #tpu.memory_space<vmem>>, %arg7: memref<8x512xf32, #tpu.memory_space<vmem>>, %arg8: memref<8x512xf32, #tpu.memory_space<vmem>>) attributes {dimension_semantics = [#tpu.dimension_semantics<parallel>, #tpu.dimension_semantics<parallel>, #tpu.dimension_semantics<arbitrary>], iteration_bounds = array<i64: 1, 1, 9>, scalar_prefetch = 0 : i64, scratch_operands = 1 : i64, tpu.core_type = #tpu.core_type<tc>, window_params = [{transform_indices = @transform_0, window_bounds = array<i64: 8, 256>}, {transform_indices = @transform_1, window_bounds = array<i64: 256, 512>}, {transform_indices = @transform_2, window_bounds = array<i64: 1, 512>}, {transform_indices = @transform_3, window_bounds = array<i64: 1, 512>}, {transform_indices = @transform_4, window_bounds = array<i64: 8, 512>}]} {
    %c0_i32 = arith.constant 0 : i32
    %0 = arith.cmpi eq, %arg2, %c0_i32 : i32
    %1 = arith.extui %0 : i1 to i32
    %c0_i32_0 = arith.constant 0 : i32
    %2 = arith.cmpi ne, %1, %c0_i32_0 : i32
    scf.if %2 {
      %cst_9 = arith.constant 0.000000e+00 : f32
      %12 = vector.broadcast %cst_9 : f32 to vector<8x512xf32>
      %c0_10 = arith.constant 0 : index
      %c0_11 = arith.constant 0 : index
      %13 = vector.load %arg8[%c0_10, %c0_11] : memref<8x512xf32, #tpu.memory_space<vmem>>, vector<8x512xf32>
      tpu.vector_store %arg8[%c0_10, %c0_11], %12 {strides = array<i32>} : memref<8x512xf32, #tpu.memory_space<vmem>>, vector<8x512xf32>,
    } else {
    }
    %c0 = arith.constant 0 : index
    %c0_1 = arith.constant 0 : index
    %3 = vector.load %arg8[%c0, %c0_1] : memref<8x512xf32, #tpu.memory_space<vmem>>, vector<8x512xf32>
    %c0_2 = arith.constant 0 : index
    %c0_3 = arith.constant 0 : index
    %4 = vector.load %arg3[%c0_2, %c0_3] : memref<8x256xbf16, #tpu.memory_space<vmem>>, vector<8x256xbf16>
    %c0_4 = arith.constant 0 : index
    %c0_5 = arith.constant 0 : index
    %5 = vector.load %arg4[%c0_4, %c0_5] : memref<256x512xbf16, #tpu.memory_space<vmem>>, vector<256x512xbf16>
    %cst = arith.constant dense<0.000000e+00> : vector<8x512xf32>
    %6 = tpu.matmul %4, %5, %cst {dimension_numbers = #tpu.dot_dimension_numbers<[1], [0], [0], [1], [0, 0, 1, 1], [], []>} : vector<8x256xbf16>, vector<256x512xbf16>, vector<8x512xf32> -> vector<8x512xf32>
    %7 = arith.addf %3, %6 : vector<8x512xf32>
    %c0_6 = arith.constant 0 : index
    %c0_7 = arith.constant 0 : index
    %8 = vector.load %arg8[%c0_6, %c0_7] : memref<8x512xf32, #tpu.memory_space<vmem>>, vector<8x512xf32>
    tpu.vector_store %arg8[%c0_6, %c0_7], %7 {strides = array<i32>} : memref<8x512xf32, #tpu.memory_space<vmem>>, vector<8x512xf32>,
    %c8_i32 = arith.constant 8 : i32
    %9 = arith.cmpi eq, %arg2, %c8_i32 : i32
    %10 = arith.extui %9 : i1 to i32
    %c0_i32_8 = arith.constant 0 : i32
    %11 = arith.cmpi ne, %10, %c0_i32_8 : i32
    scf.if %11 {
      %c0_9 = arith.constant 0 : index
      %c0_10 = arith.constant 0 : index
      %12 = vector.load %arg8[%c0_9, %c0_10] : memref<8x512xf32, #tpu.memory_space<vmem>>, vector<8x512xf32>
      %c0_11 = arith.constant 0 : index
      %c0_12 = arith.constant 0 : index
      %13 = vector.load %arg5[%c0_11, %c0_12] : memref<1x512xf32, #tpu.memory_space<vmem>>, vector<1x512xf32>
      %14 = vector.broadcast %13 : vector<1x512xf32> to vector<8x512xf32>
      %15 = arith.mulf %12, %14 : vector<8x512xf32>
      %c0_13 = arith.constant 0 : index
      %c0_14 = arith.constant 0 : index
      %16 = vector.load %arg6[%c0_13, %c0_14] : memref<1x512xf32, #tpu.memory_space<vmem>>, vector<1x512xf32>
      %17 = vector.broadcast %16 : vector<1x512xf32> to vector<8x512xf32>
      %18 = arith.addf %15, %17 : vector<8x512xf32>
      %cst_15 = arith.constant 0.000000e+00 : f32
      %19 = vector.broadcast %cst_15 : f32 to vector<8x512xf32>
      %20 = arith.maximumf %18, %19 : vector<8x512xf32>
      %c0_16 = arith.constant 0 : index
      %c0_17 = arith.constant 0 : index
      %21 = vector.load %arg7[%c0_16, %c0_17] : memref<8x512xf32, #tpu.memory_space<vmem>>, vector<8x512xf32>
      tpu.vector_store %arg7[%c0_16, %c0_17], %20 {strides = array<i32>} : memref<8x512xf32, #tpu.memory_space<vmem>>, vector<8x512xf32>,
    } else {
    }
    return
  }
  func.func @transform_0(%arg0: i32, %arg1: i32, %arg2: i32) -> (i32, i32) {
    %c0_i32 = arith.constant 0 : i32
    return %arg0, %arg2 : i32, i32
  }
  func.func @transform_1(%arg0: i32, %arg1: i32, %arg2: i32) -> (i32, i32) {
    %c0_i32 = arith.constant 0 : i32
    return %arg2, %arg1 : i32, i32
  }
  func.func @transform_2(%arg0: i32, %arg1: i32, %arg2: i32) -> (i32, i32) {
    %c0_i32 = arith.constant 0 : i32
    %c0_i32_0 = arith.constant 0 : i32
    return %c0_i32, %arg1 : i32, i32
  }
  func.func @transform_3(%arg0: i32, %arg1: i32, %arg2: i32) -> (i32, i32) {
    %c0_i32 = arith.constant 0 : i32
    %c0_i32_0 = arith.constant 0 : i32
    return %c0_i32, %arg1 : i32, i32
  }
  func.func @transform_4(%arg0: i32, %arg1: i32, %arg2: i32) -> (i32, i32) {
    %c0_i32 = arith.constant 0 : i32
    return %arg0, %arg1 : i32, i32
  }
}

module attributes {stable_mosaic.version = 11 : i64} {
  func.func @kernel(%arg0: i32, %arg1: i32, %arg2: i32, %arg3: memref<8x256xbf16, #tpu.memory_space<vmem>>, %arg4: memref<256x512xbf16, #tpu.memory_space<vmem>>, %arg5: memref<1x512xf32, #tpu.memory_space<vmem>>, %arg6: memref<1x512xf32, #tpu.memory_space<vmem>>, %arg7: memref<8x512xf32, #tpu.memory_space<vmem>>, %arg8: memref<8x512xf32, #tpu.memory_space<vmem>>) attributes {dimension_semantics = [#tpu.dimension_semantics<parallel>, #tpu.dimension_semantics<parallel>, #tpu.dimension_semantics<arbitrary>], iteration_bounds = array<i64: 1, 1, 1>, scalar_prefetch = 0 : i64, scratch_operands = 1 : i64, tpu.core_type = #tpu.core_type<tc>, window_params = [{transform_indices = @transform_0, window_bounds = array<i64: 8, 256>}, {transform_indices = @transform_1, window_bounds = array<i64: 256, 512>}, {transform_indices = @transform_2, window_bounds = array<i64: 1, 512>}, {transform_indices = @transform_3, window_bounds = array<i64: 1, 512>}, {transform_indices = @transform_4, window_bounds = array<i64: 8, 512>}]} {
    %c0_i32 = arith.constant 0 : i32
    %0 = arith.cmpi eq, %arg2, %c0_i32 : i32
    %1 = arith.extui %0 : i1 to i32
    %c0_i32_0 = arith.constant 0 : i32
    %2 = arith.cmpi ne, %1, %c0_i32_0 : i32
    scf.if %2 {
      %cst_10 = arith.constant 0.000000e+00 : f32
      %12 = vector.broadcast %cst_10 : f32 to vector<8x512xf32>
      %c0_11 = arith.constant 0 : index
      %c0_12 = arith.constant 0 : index
      %13 = vector.load %arg8[%c0_11, %c0_12] : memref<8x512xf32, #tpu.memory_space<vmem>>, vector<8x512xf32>
      tpu.vector_store %arg8[%c0_11, %c0_12], %12 {strides = array<i32>} : memref<8x512xf32, #tpu.memory_space<vmem>>, vector<8x512xf32>,
    } else {
    }
    %c0 = arith.constant 0 : index
    %c0_1 = arith.constant 0 : index
    %3 = vector.load %arg8[%c0, %c0_1] : memref<8x512xf32, #tpu.memory_space<vmem>>, vector<8x512xf32>
    %c0_2 = arith.constant 0 : index
    %c0_3 = arith.constant 0 : index
    %4 = vector.load %arg3[%c0_2, %c0_3] : memref<8x256xbf16, #tpu.memory_space<vmem>>, vector<8x256xbf16>
    %c0_4 = arith.constant 0 : index
    %c0_5 = arith.constant 0 : index
    %5 = vector.load %arg4[%c0_4, %c0_5] : memref<256x512xbf16, #tpu.memory_space<vmem>>, vector<256x512xbf16>
    %cst = arith.constant dense<0.000000e+00> : vector<8x512xf32>
    %6 = tpu.matmul %4, %5, %cst {dimension_numbers = #tpu.dot_dimension_numbers<[1], [0], [0], [1], [0, 0, 1, 1], [], []>} : vector<8x256xbf16>, vector<256x512xbf16>, vector<8x512xf32> -> vector<8x512xf32>
    %7 = arith.addf %3, %6 : vector<8x512xf32>
    %c0_6 = arith.constant 0 : index
    %c0_7 = arith.constant 0 : index
    %8 = vector.load %arg8[%c0_6, %c0_7] : memref<8x512xf32, #tpu.memory_space<vmem>>, vector<8x512xf32>
    tpu.vector_store %arg8[%c0_6, %c0_7], %7 {strides = array<i32>} : memref<8x512xf32, #tpu.memory_space<vmem>>, vector<8x512xf32>,
    %c0_i32_8 = arith.constant 0 : i32
    %9 = arith.cmpi eq, %arg2, %c0_i32_8 : i32
    %10 = arith.extui %9 : i1 to i32
    %c0_i32_9 = arith.constant 0 : i32
    %11 = arith.cmpi ne, %10, %c0_i32_9 : i32
    scf.if %11 {
      %c0_10 = arith.constant 0 : index
      %c0_11 = arith.constant 0 : index
      %12 = vector.load %arg8[%c0_10, %c0_11] : memref<8x512xf32, #tpu.memory_space<vmem>>, vector<8x512xf32>
      %c0_12 = arith.constant 0 : index
      %c0_13 = arith.constant 0 : index
      %13 = vector.load %arg5[%c0_12, %c0_13] : memref<1x512xf32, #tpu.memory_space<vmem>>, vector<1x512xf32>
      %14 = vector.broadcast %13 : vector<1x512xf32> to vector<8x512xf32>
      %15 = arith.mulf %12, %14 : vector<8x512xf32>
      %c0_14 = arith.constant 0 : index
      %c0_15 = arith.constant 0 : index
      %16 = vector.load %arg6[%c0_14, %c0_15] : memref<1x512xf32, #tpu.memory_space<vmem>>, vector<1x512xf32>
      %17 = vector.broadcast %16 : vector<1x512xf32> to vector<8x512xf32>
      %18 = arith.addf %15, %17 : vector<8x512xf32>
      %c0_16 = arith.constant 0 : index
      %c0_17 = arith.constant 0 : index
      %19 = vector.load %arg7[%c0_16, %c0_17] : memref<8x512xf32, #tpu.memory_space<vmem>>, vector<8x512xf32>
      tpu.vector_store %arg7[%c0_16, %c0_17], %18 {strides = array<i32>} : memref<8x512xf32, #tpu.memory_space<vmem>>, vector<8x512xf32>,
    } else {
    }
    return
  }
  func.func @transform_0(%arg0: i32, %arg1: i32, %arg2: i32) -> (i32, i32) {
    %c0_i32 = arith.constant 0 : i32
    return %arg0, %arg2 : i32, i32
  }
  func.func @transform_1(%arg0: i32, %arg1: i32, %arg2: i32) -> (i32, i32) {
    %c0_i32 = arith.constant 0 : i32
    return %arg2, %arg1 : i32, i32
  }
  func.func @transform_2(%arg0: i32, %arg1: i32, %arg2: i32) -> (i32, i32) {
    %c0_i32 = arith.constant 0 : i32
    %c0_i32_0 = arith.constant 0 : i32
    return %c0_i32, %arg1 : i32, i32
  }
  func.func @transform_3(%arg0: i32, %arg1: i32, %arg2: i32) -> (i32, i32) {
    %c0_i32 = arith.constant 0 : i32
    %c0_i32_0 = arith.constant 0 : i32
    return %c0_i32, %arg1 : i32, i32
  }
  func.func @transform_4(%arg0: i32, %arg1: i32, %arg2: i32) -> (i32, i32) {
    %c0_i32 = arith.constant 0 : i32
    return %arg0, %arg1 : i32, i32
  }
}

module attributes {stable_mosaic.version = 11 : i64} {
  func.func @kernel(%arg0: i32, %arg1: i32, %arg2: i32, %arg3: memref<8x512xbf16, #tpu.memory_space<vmem>>, %arg4: memref<512x512xbf16, #tpu.memory_space<vmem>>, %arg5: memref<1x512xf32, #tpu.memory_space<vmem>>, %arg6: memref<1x512xf32, #tpu.memory_space<vmem>>, %arg7: memref<8x512xf32, #tpu.memory_space<vmem>>, %arg8: memref<8x512xf32, #tpu.memory_space<vmem>>, %arg9: memref<8x512xf32, #tpu.memory_space<vmem>>) attributes {dimension_semantics = [#tpu.dimension_semantics<parallel>, #tpu.dimension_semantics<parallel>, #tpu.dimension_semantics<arbitrary>], iteration_bounds = array<i64: 1, 1, 9>, scalar_prefetch = 0 : i64, scratch_operands = 1 : i64, tpu.core_type = #tpu.core_type<tc>, window_params = [{transform_indices = @transform_0, window_bounds = array<i64: 8, 512>}, {transform_indices = @transform_1, window_bounds = array<i64: 512, 512>}, {transform_indices = @transform_2, window_bounds = array<i64: 1, 512>}, {transform_indices = @transform_3, window_bounds = array<i64: 1, 512>}, {transform_indices = @transform_4, window_bounds = array<i64: 8, 512>}, {transform_indices = @transform_5, window_bounds = array<i64: 8, 512>}]} {
    %c0_i32 = arith.constant 0 : i32
    %0 = arith.cmpi eq, %arg2, %c0_i32 : i32
    %1 = arith.extui %0 : i1 to i32
    %c0_i32_0 = arith.constant 0 : i32
    %2 = arith.cmpi ne, %1, %c0_i32_0 : i32
    scf.if %2 {
      %cst_9 = arith.constant 0.000000e+00 : f32
      %12 = vector.broadcast %cst_9 : f32 to vector<8x512xf32>
      %c0_10 = arith.constant 0 : index
      %c0_11 = arith.constant 0 : index
      %13 = vector.load %arg9[%c0_10, %c0_11] : memref<8x512xf32, #tpu.memory_space<vmem>>, vector<8x512xf32>
      tpu.vector_store %arg9[%c0_10, %c0_11], %12 {strides = array<i32>} : memref<8x512xf32, #tpu.memory_space<vmem>>, vector<8x512xf32>,
    } else {
    }
    %c0 = arith.constant 0 : index
    %c0_1 = arith.constant 0 : index
    %3 = vector.load %arg9[%c0, %c0_1] : memref<8x512xf32, #tpu.memory_space<vmem>>, vector<8x512xf32>
    %c0_2 = arith.constant 0 : index
    %c0_3 = arith.constant 0 : index
    %4 = vector.load %arg3[%c0_2, %c0_3] : memref<8x512xbf16, #tpu.memory_space<vmem>>, vector<8x512xbf16>
    %c0_4 = arith.constant 0 : index
    %c0_5 = arith.constant 0 : index
    %5 = vector.load %arg4[%c0_4, %c0_5] : memref<512x512xbf16, #tpu.memory_space<vmem>>, vector<512x512xbf16>
    %cst = arith.constant dense<0.000000e+00> : vector<8x512xf32>
    %6 = tpu.matmul %4, %5, %cst {dimension_numbers = #tpu.dot_dimension_numbers<[1], [0], [0], [1], [0, 0, 1, 1], [], []>} : vector<8x512xbf16>, vector<512x512xbf16>, vector<8x512xf32> -> vector<8x512xf32>
    %7 = arith.addf %3, %6 : vector<8x512xf32>
    %c0_6 = arith.constant 0 : index
    %c0_7 = arith.constant 0 : index
    %8 = vector.load %arg9[%c0_6, %c0_7] : memref<8x512xf32, #tpu.memory_space<vmem>>, vector<8x512xf32>
    tpu.vector_store %arg9[%c0_6, %c0_7], %7 {strides = array<i32>} : memref<8x512xf32, #tpu.memory_space<vmem>>, vector<8x512xf32>,
    %c8_i32 = arith.constant 8 : i32
    %9 = arith.cmpi eq, %arg2, %c8_i32 : i32
    %10 = arith.extui %9 : i1 to i32
    %c0_i32_8 = arith.constant 0 : i32
    %11 = arith.cmpi ne, %10, %c0_i32_8 : i32
    scf.if %11 {
      %c0_9 = arith.constant 0 : index
      %c0_10 = arith.constant 0 : index
      %12 = vector.load %arg9[%c0_9, %c0_10] : memref<8x512xf32, #tpu.memory_space<vmem>>, vector<8x512xf32>
      %c0_11 = arith.constant 0 : index
      %c0_12 = arith.constant 0 : index
      %13 = vector.load %arg5[%c0_11, %c0_12] : memref<1x512xf32, #tpu.memory_space<vmem>>, vector<1x512xf32>
      %14 = vector.broadcast %13 : vector<1x512xf32> to vector<8x512xf32>
      %15 = arith.mulf %12, %14 : vector<8x512xf32>
      %c0_13 = arith.constant 0 : index
      %c0_14 = arith.constant 0 : index
      %16 = vector.load %arg6[%c0_13, %c0_14] : memref<1x512xf32, #tpu.memory_space<vmem>>, vector<1x512xf32>
      %17 = vector.broadcast %16 : vector<1x512xf32> to vector<8x512xf32>
      %18 = arith.addf %15, %17 : vector<8x512xf32>
      %c0_15 = arith.constant 0 : index
      %c0_16 = arith.constant 0 : index
      %19 = vector.load %arg7[%c0_15, %c0_16] : memref<8x512xf32, #tpu.memory_space<vmem>>, vector<8x512xf32>
      %20 = arith.addf %18, %19 : vector<8x512xf32>
      %cst_17 = arith.constant 0.000000e+00 : f32
      %21 = vector.broadcast %cst_17 : f32 to vector<8x512xf32>
      %22 = arith.maximumf %20, %21 : vector<8x512xf32>
      %c0_18 = arith.constant 0 : index
      %c0_19 = arith.constant 0 : index
      %23 = vector.load %arg8[%c0_18, %c0_19] : memref<8x512xf32, #tpu.memory_space<vmem>>, vector<8x512xf32>
      tpu.vector_store %arg8[%c0_18, %c0_19], %22 {strides = array<i32>} : memref<8x512xf32, #tpu.memory_space<vmem>>, vector<8x512xf32>,
    } else {
    }
    return
  }
  func.func @transform_0(%arg0: i32, %arg1: i32, %arg2: i32) -> (i32, i32) {
    %c0_i32 = arith.constant 0 : i32
    return %arg0, %arg2 : i32, i32
  }
  func.func @transform_1(%arg0: i32, %arg1: i32, %arg2: i32) -> (i32, i32) {
    %c0_i32 = arith.constant 0 : i32
    return %arg2, %arg1 : i32, i32
  }
  func.func @transform_2(%arg0: i32, %arg1: i32, %arg2: i32) -> (i32, i32) {
    %c0_i32 = arith.constant 0 : i32
    %c0_i32_0 = arith.constant 0 : i32
    return %c0_i32, %arg1 : i32, i32
  }
  func.func @transform_3(%arg0: i32, %arg1: i32, %arg2: i32) -> (i32, i32) {
    %c0_i32 = arith.constant 0 : i32
    %c0_i32_0 = arith.constant 0 : i32
    return %c0_i32, %arg1 : i32, i32
  }
  func.func @transform_4(%arg0: i32, %arg1: i32, %arg2: i32) -> (i32, i32) {
    %c0_i32 = arith.constant 0 : i32
    return %arg0, %arg1 : i32, i32
  }
  func.func @transform_5(%arg0: i32, %arg1: i32, %arg2: i32) -> (i32, i32) {
    %c0_i32 = arith.constant 0 : i32
    return %arg0, %arg1 : i32, i32
  }
}

module attributes {stable_mosaic.version = 11 : i64} {
  func.func @kernel(%arg0: i32, %arg1: i32, %arg2: i32, %arg3: memref<8x512xbf16, #tpu.memory_space<vmem>>, %arg4: memref<512x512xbf16, #tpu.memory_space<vmem>>, %arg5: memref<1x512xf32, #tpu.memory_space<vmem>>, %arg6: memref<1x512xf32, #tpu.memory_space<vmem>>, %arg7: memref<8x512xf32, #tpu.memory_space<vmem>>, %arg8: memref<8x512xf32, #tpu.memory_space<vmem>>) attributes {dimension_semantics = [#tpu.dimension_semantics<parallel>, #tpu.dimension_semantics<parallel>, #tpu.dimension_semantics<arbitrary>], iteration_bounds = array<i64: 1, 1, 9>, scalar_prefetch = 0 : i64, scratch_operands = 1 : i64, tpu.core_type = #tpu.core_type<tc>, window_params = [{transform_indices = @transform_0, window_bounds = array<i64: 8, 512>}, {transform_indices = @transform_1, window_bounds = array<i64: 512, 512>}, {transform_indices = @transform_2, window_bounds = array<i64: 1, 512>}, {transform_indices = @transform_3, window_bounds = array<i64: 1, 512>}, {transform_indices = @transform_4, window_bounds = array<i64: 8, 512>}]} {
    %c0_i32 = arith.constant 0 : i32
    %0 = arith.cmpi eq, %arg2, %c0_i32 : i32
    %1 = arith.extui %0 : i1 to i32
    %c0_i32_0 = arith.constant 0 : i32
    %2 = arith.cmpi ne, %1, %c0_i32_0 : i32
    scf.if %2 {
      %cst_9 = arith.constant 0.000000e+00 : f32
      %12 = vector.broadcast %cst_9 : f32 to vector<8x512xf32>
      %c0_10 = arith.constant 0 : index
      %c0_11 = arith.constant 0 : index
      %13 = vector.load %arg8[%c0_10, %c0_11] : memref<8x512xf32, #tpu.memory_space<vmem>>, vector<8x512xf32>
      tpu.vector_store %arg8[%c0_10, %c0_11], %12 {strides = array<i32>} : memref<8x512xf32, #tpu.memory_space<vmem>>, vector<8x512xf32>,
    } else {
    }
    %c0 = arith.constant 0 : index
    %c0_1 = arith.constant 0 : index
    %3 = vector.load %arg8[%c0, %c0_1] : memref<8x512xf32, #tpu.memory_space<vmem>>, vector<8x512xf32>
    %c0_2 = arith.constant 0 : index
    %c0_3 = arith.constant 0 : index
    %4 = vector.load %arg3[%c0_2, %c0_3] : memref<8x512xbf16, #tpu.memory_space<vmem>>, vector<8x512xbf16>
    %c0_4 = arith.constant 0 : index
    %c0_5 = arith.constant 0 : index
    %5 = vector.load %arg4[%c0_4, %c0_5] : memref<512x512xbf16, #tpu.memory_space<vmem>>, vector<512x512xbf16>
    %cst = arith.constant dense<0.000000e+00> : vector<8x512xf32>
    %6 = tpu.matmul %4, %5, %cst {dimension_numbers = #tpu.dot_dimension_numbers<[1], [0], [0], [1], [0, 0, 1, 1], [], []>} : vector<8x512xbf16>, vector<512x512xbf16>, vector<8x512xf32> -> vector<8x512xf32>
    %7 = arith.addf %3, %6 : vector<8x512xf32>
    %c0_6 = arith.constant 0 : index
    %c0_7 = arith.constant 0 : index
    %8 = vector.load %arg8[%c0_6, %c0_7] : memref<8x512xf32, #tpu.memory_space<vmem>>, vector<8x512xf32>
    tpu.vector_store %arg8[%c0_6, %c0_7], %7 {strides = array<i32>} : memref<8x512xf32, #tpu.memory_space<vmem>>, vector<8x512xf32>,
    %c8_i32 = arith.constant 8 : i32
    %9 = arith.cmpi eq, %arg2, %c8_i32 : i32
    %10 = arith.extui %9 : i1 to i32
    %c0_i32_8 = arith.constant 0 : i32
    %11 = arith.cmpi ne, %10, %c0_i32_8 : i32
    scf.if %11 {
      %c0_9 = arith.constant 0 : index
      %c0_10 = arith.constant 0 : index
      %12 = vector.load %arg8[%c0_9, %c0_10] : memref<8x512xf32, #tpu.memory_space<vmem>>, vector<8x512xf32>
      %c0_11 = arith.constant 0 : index
      %c0_12 = arith.constant 0 : index
      %13 = vector.load %arg5[%c0_11, %c0_12] : memref<1x512xf32, #tpu.memory_space<vmem>>, vector<1x512xf32>
      %14 = vector.broadcast %13 : vector<1x512xf32> to vector<8x512xf32>
      %15 = arith.mulf %12, %14 : vector<8x512xf32>
      %c0_13 = arith.constant 0 : index
      %c0_14 = arith.constant 0 : index
      %16 = vector.load %arg6[%c0_13, %c0_14] : memref<1x512xf32, #tpu.memory_space<vmem>>, vector<1x512xf32>
      %17 = vector.broadcast %16 : vector<1x512xf32> to vector<8x512xf32>
      %18 = arith.addf %15, %17 : vector<8x512xf32>
      %cst_15 = arith.constant 0.000000e+00 : f32
      %19 = vector.broadcast %cst_15 : f32 to vector<8x512xf32>
      %20 = arith.maximumf %18, %19 : vector<8x512xf32>
      %c0_16 = arith.constant 0 : index
      %c0_17 = arith.constant 0 : index
      %21 = vector.load %arg7[%c0_16, %c0_17] : memref<8x512xf32, #tpu.memory_space<vmem>>, vector<8x512xf32>
      tpu.vector_store %arg7[%c0_16, %c0_17], %20 {strides = array<i32>} : memref<8x512xf32, #tpu.memory_space<vmem>>, vector<8x512xf32>,
    } else {
    }
    return
  }
  func.func @transform_0(%arg0: i32, %arg1: i32, %arg2: i32) -> (i32, i32) {
    %c0_i32 = arith.constant 0 : i32
    return %arg0, %arg2 : i32, i32
  }
  func.func @transform_1(%arg0: i32, %arg1: i32, %arg2: i32) -> (i32, i32) {
    %c0_i32 = arith.constant 0 : i32
    return %arg2, %arg1 : i32, i32
  }
  func.func @transform_2(%arg0: i32, %arg1: i32, %arg2: i32) -> (i32, i32) {
    %c0_i32 = arith.constant 0 : i32
    %c0_i32_0 = arith.constant 0 : i32
    return %c0_i32, %arg1 : i32, i32
  }
  func.func @transform_3(%arg0: i32, %arg1: i32, %arg2: i32) -> (i32, i32) {
    %c0_i32 = arith.constant 0 : i32
    %c0_i32_0 = arith.constant 0 : i32
    return %c0_i32, %arg1 : i32, i32
  }
  func.func @transform_4(%arg0: i32, %arg1: i32, %arg2: i32) -> (i32, i32) {
    %c0_i32 = arith.constant 0 : i32
    return %arg0, %arg1 : i32, i32
  }
}

module attributes {stable_mosaic.version = 11 : i64} {
  func.func @_avgpool_kernel(%arg0: i32, %arg1: memref<2x1x512xf32, #tpu.memory_space<vmem>>, %arg2: memref<2x512xf32, #tpu.memory_space<vmem>>) attributes {dimension_semantics = [#tpu.dimension_semantics<arbitrary>], iteration_bounds = array<i64: 1>, scalar_prefetch = 0 : i64, scratch_operands = 0 : i64, tpu.core_type = #tpu.core_type<tc>, window_params = [{pipeline_mode = #tpu.pipeline_mode<synchronous>, transform_indices = @transform_0, window_bounds = array<i64: 2, 1, 512>}, {pipeline_mode = #tpu.pipeline_mode<synchronous>, transform_indices = @transform_1, window_bounds = array<i64: 2, 512>}]} {
    %c0 = arith.constant 0 : index
    %c0_0 = arith.constant 0 : index
    %c0_1 = arith.constant 0 : index
    %0 = vector.load %arg1[%c0, %c0_0, %c0_1] : memref<2x1x512xf32, #tpu.memory_space<vmem>>, vector<2x1x512xf32>
    %cst = arith.constant dense<0.000000e+00> : vector<2x512xf32>
    %1 = vector.multi_reduction <add>, %0, %cst [1] : vector<2x1x512xf32> to vector<2x512xf32>
    %cst_2 = arith.constant 1.000000e+00 : f32
    %2 = vector.broadcast %cst_2 : f32 to vector<2x512xf32>
    %3 = arith.divf %1, %2 : vector<2x512xf32>
    %c0_3 = arith.constant 0 : index
    %c0_4 = arith.constant 0 : index
    %4 = vector.load %arg2[%c0_3, %c0_4] : memref<2x512xf32, #tpu.memory_space<vmem>>, vector<2x512xf32>
    tpu.vector_store %arg2[%c0_3, %c0_4], %3 {strides = array<i32>} : memref<2x512xf32, #tpu.memory_space<vmem>>, vector<2x512xf32>,
    return
  }
  func.func @transform_0(%arg0: i32) -> (i32, i32, i32) {
    %c0_i32 = arith.constant 0 : i32
    %c0_i32_0 = arith.constant 0 : i32
    %c0_i32_1 = arith.constant 0 : i32
    %c0_i32_2 = arith.constant 0 : i32
    return %c0_i32, %c0_i32_0, %c0_i32_1 : i32, i32, i32
  }
  func.func @transform_1(%arg0: i32) -> (i32, i32) {
    %c0_i32 = arith.constant 0 : i32
    %c0_i32_0 = arith.constant 0 : i32
    %c0_i32_1 = arith.constant 0 : i32
    return %c0_i32, %c0_i32_0 : i32, i32
  }
}

</mosaic_0001>

<bundles_post_ra>
// kernel: resnet18_forward.23
= control target key start
LH: loop header
LB: loop body
LE: loop exit
PB: predicated region body
PF: predicated region fallthrough
CT: control target
= control target key end

     0   :  { %s637_s15 = smov 0   ;;  %s807_s0 = inlined_call_operand.vmem [shape: f32[2,9,9,64], index: 0, kind: input, shape index: {}]   ;;  %s808_s1 = inlined_call_operand.vmem [shape: f32[2,9,8,64], index: 1, kind: input, shape index: {}]   ;;  %s809_s2 = inlined_call_operand.vmem [shape: f32[2,8,9,64], index: 2, kind: input, shape index: {}]   ;;  %s810_s3 = inlined_call_operand.vmem [shape: f32[2,8,8,64], index: 3, kind: input, shape index: {}]   ;;  %s811_s4 = inlined_call_operand.vmem [shape: f32[2,8,8,64], index: 4, kind: output, shape index: {}]  }
   0x1 LB: > { %s576_s16 = sadd.s32 4294967295, %s610_s15   ;;  %p580_p0 = scmp.ge.s32.totalorder %s610_s15, 1  ;;  %s610_s15 = sphi %s637_s15, %s14_s15  }
   0x2   : > { %p192_p1 = scmp.lt.s32.totalorder %s610_s15, 3 }
   0x4   : > { %p193_p2 = pnand %p580_p0, %p192_p1 }
   0x5   : > { %p233_p3 = scmp.lt.s32.totalorder (!%p193_p2), %s576_s16, 1  ;;  %vm349_vm0 = vcmask (!%p193_p2), 1046528   ;;  %vm476_vm1 = vcmask (!%p193_p2), 523264  }
   0x6   : > { %196 = sbr.rel (%p193_p2) target bundleno = 57 (0x39), region = 36 }
   0xd   : > { %s813_s16 = smov (!%p233_p3, %s576_s16), 1 }
   0xe   : > { %s594_s17 = smul.u32 144, %s813_s16  ;;  %s591_s18 = sshll.u32 %s813_s16, 7 }
   0xf   : > { %s595_s19 = smul.u32 72, %s813_s16  ;;  %s653_s22 = scalar_lea.vmem %s809_s2, %s591_s18 }
  0x10   : > { %s658_s25 = scalar_lea.vmem %s807_s0, %s594_s17  ;;  %s592_s26 = sshll.u32 %s813_s16, 6  ;;  %v662_v0 = vld [vmem:[%s653_s22] sm:$0xff]  ;;  %v286_v1 = vld [vmem:[%s653_s22 + $0x8] sm:$0x1]  ;;  %v666_v2 = vld [vmem:[%s653_s22 + $0x10] sm:$0xff] }
  0x11   : > { %s671_s29 = scalar_lea.vmem %s808_s1, %s595_s19  ;;  %s678_s6 = scalar_lea.vmem %s810_s3, %s592_s26  ;;  %v681_v3 = vld [vmem:[%s658_s25] sm:$0xff]  ;;  %v259_v4 = vld [vmem:[%s658_s25 + $0x8] sm:$0x1]  ;;  %v685_v5 = vld [vmem:[%s658_s25 + $0x10] sm:$0xff]  ;;  %v350_v6 = vrot.slane %v662_v0, 1  ;;  %v351_v7 = vrot.slane %v286_v1, 1 }
  0x12   : > { %v261_v8 = vld [vmem:[%s658_s25 + $0x18] sm:$0x1]  ;;  %v276_v9 = vld [vmem:[%s671_s29] sm:$0xff]  ;;  %v277_v10 = vld [vmem:[%s671_s29 + $0x8] sm:$0xff]  ;;  %v353_v11 = vrot.slane %v666_v2, 1  ;;  %v414_v12 = vrot.slane %v681_v3, 1  ;;  %s756_s9 = scalar_lea.vmem %s811_s4, %s592_s26 }
  0x13   : > { %v278_v13 = vld [vmem:[%s671_s29 + $0x10] sm:$0xff]  ;;  %v288_v14 = vld [vmem:[%s653_s22 + $0x18] sm:$0x1]  ;;  %v301_v15 = vld [vmem:[%s678_s6] sm:$0xff]  ;;  %v415_v16 = vrot.slane %v259_v4, 1  ;;  %v417_v17 = vrot.slane %v685_v5, 1  ;;  %v352_v20 = vsel %vm349_vm0, %v350_v6, %v351_v7 }
  0x14   : > { %v302_v18 = vld [vmem:[%s678_s6 + $0x8] sm:$0xff]  ;;  %v309_v19 = vmax.f32 %v301_v15, %v276_v9  ;;  %v354_v21 = vrot.slane %v288_v14, 1  ;;  %v418_v22 = vrot.slane %v261_v8, 1  ;;  %v700_v23 = vld [vmem:[%s658_s25 + $0x20] sm:$0xff]  ;;  %v279_v34 = vld [vmem:[%s671_s29 + $0x18] sm:$0xff] }
  0x15   : > { %v263_v24 = vld [vmem:[%s658_s25 + $0x28] sm:$0x1]  ;;  %v310_v25 = vmax.f32 %v302_v18, %v277_v10  ;;  %v416_v26 = vsel %vm349_vm0, %v414_v12, %v415_v16  ;;  %v289_v27 = vld [vmem:[%s653_s22 + $0x20] sm:$0xff]  ;;  %v420_v29 = vrot.slane %v700_v23, 1  ;;  %v303_v35 = vld [vmem:[%s678_s6 + $0x10] sm:$0xff] }
  0x16   : > { %v290_v28 = vld [vmem:[%s653_s22 + $0x28] sm:$0x1]  ;;  %v421_v30 = vrot.slane %v263_v24, 1  ;;  %v317_v31 = vmax.f32 %v309_v19, %v277_v10  ;;  %v355_v32 = vsel %vm349_vm0, %v353_v11, %v354_v21  ;;  %v709_v33 = vsel %vm349_vm0, %v417_v17, %v418_v22  ;;  %v714_v37 = vld [vmem:[%s658_s25 + $0x30] sm:$0xff]  ;;  %v265_v42 = vld [vmem:[%s658_s25 + $0x38] sm:$0x1] }
  0x17   : > { %v356_v36 = vrot.slane %v289_v27, 1  ;;  %v318_v38 = vmax.f32 %v310_v25, %v278_v13  ;;  %v311_v39 = vmax.f32 %v303_v35, %v278_v13  ;;  %v357_v40 = vrot.slane %v290_v28, 1  ;;  %v291_v43 = vld [vmem:[%s653_s22 + $0x30] sm:$0xff]  ;;  %v292_v44 = vld [vmem:[%s653_s22 + $0x38] sm:$0x1]  ;;  %v280_v46 = vld [vmem:[%s671_s29 + $0x20] sm:$0xff] }
  0x18   : > { %v717_v41 = vsel %vm349_vm0, %v420_v29, %v421_v30  ;;  %v325_v45 = vmax.f32 %v317_v31, %v662_v0  ;;  %v304_v47 = vld [vmem:[%s678_s6 + $0x18] sm:$0xff]  ;;  %v359_v48 = vrot.slane %v291_v43, 1  ;;  %v360_v49 = vrot.slane %v292_v44, 1  ;;  %v729_v55 = vld [vmem:[%s658_s25 + $0x40] sm:$0xff]  ;;  %v294_v57 = vld [vmem:[%s653_s22 + $0x48] sm:$0x1] }
  0x19   : > { %v423_v50 = vrot.slane %v714_v37, 1  ;;  %v326_v51 = vmax.f32 %v318_v38, %v666_v2  ;;  %v319_v52 = vmax.f32 %v311_v39, %v279_v34  ;;  %v358_v53 = vsel %vm349_vm0, %v356_v36, %v357_v40  ;;  %v293_v56 = vld [vmem:[%s653_s22 + $0x40] sm:$0xff]  ;;  %v267_v2 = vld [vmem:[%s658_s25 + $0x48] sm:$0x1]  ;;  %v295_v16 = vld [vmem:[%s653_s22 + $0x50] sm:$0xff] }
  0x1a   : > { %v312_v54 = vmax.f32 %v304_v47, %v279_v34  ;;  %v382_v58 = vmax.f32 %v325_v45, %v352_v20  ;;  %v361_v59 = vsel %vm349_vm0, %v359_v48, %v360_v49  ;;  %v424_v60 = vrot.slane %v265_v42, 1  ;;  %v305_v61 = vld [vmem:[%s678_s6 + $0x20] sm:$0xff]  ;;  %v281_v4 = vld [vmem:[%s671_s29 + $0x28] sm:$0xff]  ;;  %v268_v25 = vld [vmem:[%s658_s25 + $0x50] sm:$0xff] }
  0x1b   : > { %v362_v62 = vrot.slane %v293_v56, 1  ;;  %v383_v63 = vmax.f32 %v326_v51, %v355_v32  ;;  %v327_v0 = vmax.f32 %v319_v52, %v289_v27  ;;  %v313_v6 = vmax.f32 %v305_v61, %v280_v46  ;;  %v306_v11 = vld [vmem:[%s678_s6 + $0x28] sm:$0xff]  ;;  %v282_v27 = vld [vmem:[%s671_s29 + $0x30] sm:$0xff]  ;;  %v296_v28 = vld [vmem:[%s653_s22 + $0x58] sm:$0x1] }
  0x1c   : > { %v320_v1 = vmax.f32 %v312_v54, %v280_v46  ;;  %v390_v7 = vmax.f32 %v382_v58, %v681_v3  ;;  %v425_v8 = vsel %vm349_vm0, %v423_v50, %v424_v60  ;;  %v363_v9 = vrot.slane %v294_v57, 1  ;;  %v269_v36 = vld [vmem:[%s658_s25 + $0x58] sm:$0x1]  ;;  %v297_v38 = vld [vmem:[%s653_s22 + $0x60] sm:$0xff]  ;;  %v307_v39 = vld [vmem:[%s678_s6 + $0x30] sm:$0xff] }
  0x1d   : > { %v426_v10 = vrot.slane %v729_v55, 1  ;;  %v391_v12 = vmax.f32 %v383_v63, %v685_v5  ;;  %v384_v13 = vmax.f32 %v327_v0, %v358_v53  ;;  %v321_v15 = vmax.f32 %v313_v6, %v281_v4  ;;  %v270_v48 = vld [vmem:[%s658_s25 + $0x60] sm:$0xff]  ;;  %v298_v49 = vld [vmem:[%s653_s22 + $0x68] sm:$0x1]  ;;  %v283_v57 = vld [vmem:[%s671_s29 + $0x38] sm:$0xff] }
  0x1e   : > { %v328_v14 = vmax.f32 %v320_v1, %v291_v43  ;;  %v446_v17 = vmax.f32 %v390_v7, %v416_v26  ;;  %v364_v18 = vsel %vm349_vm0, %v362_v62, %v363_v9  ;;  %v427_v3 = vrot.slane %v267_v2, 1  ;;  %v271_v51 = vld [vmem:[%s658_s25 + $0x68] sm:$0x1]  ;;  %v299_v58 = vld [vmem:[%s653_s22 + $0x70] sm:$0xff]  ;;  %v300_v0 = vld [vmem:[%s653_s22 + $0x78] sm:$0x1] }
  0x1f   : > { %v314_v19 = vmax.f32 %v306_v11, %v281_v4  ;;  %v447_v20 = vmax.f32 %v391_v12, %v709_v33  ;;  %v392_v21 = vmax.f32 %v384_v13, %v700_v23  ;;  %v329_v24 = vmax.f32 %v321_v15, %v293_v56  ;;  %v284_v6 = vld [vmem:[%s671_s29 + $0x40] sm:$0xff]  ;;  %v272_v9 = vld [vmem:[%s658_s25 + $0x70] sm:$0xff] }
  0x20   : > { %v385_v22 = vmax.f32 %v328_v14, %v361_v59  ;;  %v454_v29 = vmax.f32 %v446_v17, %v685_v5  ;;  %v428_v26 = vsel %vm349_vm0, %v426_v10, %v427_v3  ;;  %v365_v31 = vrot.slane %v295_v16, 1  ;;  %v308_v59 = vld [vmem:[%s678_s6 + $0x38] sm:$0xff] }
  0x21   : > { %v322_v30 = vmax.f32 %v314_v19, %v282_v27  ;;  %v448_v32 = vmax.f32 %v392_v21, %v717_v41  ;;  %v455_v34 = vmax.f32 %v447_v20, %v700_v23  ;;  %v386_v5 = vmax.f32 %v329_v24, %v364_v18  ;;  %v273_v10 = vld [vmem:[%s658_s25 + $0x78] sm:$0x1] }
  0x22   : > { %v393_v35 = vmax.f32 %v385_v22, %v714_v37  ;;  %v468_v40 = vmax.f32 %v454_v29, %v709_v33  ;;  %v366_v43 = vrot.slane %v296_v28, 1  ;;  %v429_v44 = vrot.slane %v268_v25, 1 }
  0x23   : > { %v330_v42 = vmax.f32 %v322_v30, %v295_v16  ;;  %v469_v45 = vmax.f32 %v455_v34, %v717_v41  ;;  %v456_v23 = vmax.f32 %v448_v32, %v714_v37  ;;  %v394_v47 = vmax.f32 %v386_v5, %v729_v55 }
  0x24   : > { %v449_v46 = vmax.f32 %v393_v35, %v425_v8  ;;  %477 = vst.msk [vmem:[%s756_s9] sm:$0xff] %vm476_vm1, %v468_v40  ;;  %v367_v33 = vsel %vm349_vm0, %v365_v31, %v366_v43  ;;  %v430_v50 = vrot.slane %v269_v36, 1  ;;  %v315_v52 = vmax.f32 %v307_v39, %v282_v27  ;;  %v275_v27 = vld [vmem:[%s658_s25 + $0x88] sm:$0x1] }
  0x25   : > { %v368_v41 = vrot.slane %v297_v38, 1  ;;  %478 = vst.msk [vmem:[%s756_s9 + $0x8] sm:$0xff] %vm476_vm1, %v469_v45  ;;  %v470_v53 = vmax.f32 %v456_v23, %v425_v8  ;;  %v450_v37 = vmax.f32 %v394_v47, %v428_v26  ;;  %v387_v56 = vmax.f32 %v330_v42, %v367_v33 }
  0x26   : > { %v457_v54 = vmax.f32 %v449_v46, %v729_v55  ;;  %v431_v60 = vsel %vm349_vm0, %v429_v44, %v430_v50  ;;  %v323_v61 = vmax.f32 %v315_v52, %v283_v57  ;;  %v369_v62 = vrot.slane %v298_v49, 1 }
  0x27   : > { %v432_v63 = vrot.slane %v270_v48, 1  ;;  %479 = vst.msk [vmem:[%s756_s9 + $0x10] sm:$0xff] %vm476_vm1, %v470_v53  ;;  %v395_v2 = vmax.f32 %v387_v56, %v268_v25  ;;  %v458_v4 = vmax.f32 %v450_v37, %v268_v25  ;;  %v433_v55 = vrot.slane %v271_v51, 1  ;;  %v274_v25 = vld [vmem:[%s658_s25 + $0x80] sm:$0xff] }
  0x28   : > { %v471_v1 = vmax.f32 %v457_v54, %v428_v26  ;;  %v331_v7 = vmax.f32 %v323_v61, %v297_v38  ;;  %v370_v8 = vsel %vm349_vm0, %v368_v41, %v369_v62  ;;  %v316_v11 = vmax.f32 %v308_v59, %v283_v57 }
  0x29   : > { %v371_v12 = vrot.slane %v299_v58, 1  ;;  %v451_v13 = vmax.f32 %v395_v2, %v431_v60  ;;  %v472_v14 = vmax.f32 %v458_v4, %v431_v60  ;;  %v372_v15 = vrot.slane %v300_v0, 1 }
  0x2a   : > { %480 = vst.msk [vmem:[%s756_s9 + $0x18] sm:$0xff] %vm476_vm1, %v471_v1  ;;  %v388_v16 = vmax.f32 %v331_v7, %v370_v8  ;;  %v434_v17 = vsel %vm349_vm0, %v432_v63, %v433_v55  ;;  %v324_v18 = vmax.f32 %v316_v11, %v284_v6  ;;  %v435_v20 = vrot.slane %v272_v9, 1 }
  0x2b   : > { %481 = vst.msk [vmem:[%s756_s9 + $0x20] sm:$0xff] %vm476_vm1, %v472_v14  ;;  %v459_v3 = vmax.f32 %v451_v13, %v270_v48  ;;  %v373_v19 = vsel %vm349_vm0, %v371_v12, %v372_v15  ;;  %v436_v21 = vrot.slane %v273_v10, 1  ;;  %v464_v31 = vrot.slane %v274_v25, 1 }
  0x2c   : > { %v396_v22 = vmax.f32 %v388_v16, %v270_v48  ;;  %v332_v24 = vmax.f32 %v324_v18, %v299_v58  ;;  %v465_v32 = vrot.slane %v275_v27, 1 }
  0x2d   : > { %v473_v28 = vmax.f32 %v459_v3, %v434_v17  ;;  %v437_v30 = vsel %vm349_vm0, %v435_v20, %v436_v21 }
  0x2e   : > { %v452_v29 = vmax.f32 %v396_v22, %v434_v17  ;;  %v389_v26 = vmax.f32 %v332_v24, %v373_v19  ;;  %v466_v38 = vsel %vm349_vm0, %v464_v31, %v465_v32 }
  0x2f   : > { %482 = vst.msk [vmem:[%s756_s9 + $0x28] sm:$0xff] %vm476_vm1, %v473_v28 }
  0x30   : > { %v397_v34 = vmax.f32 %v389_v26, %v272_v9  ;;  %v460_v35 = vmax.f32 %v452_v29, %v272_v9 }
  0x32   : > { %v453_v5 = vmax.f32 %v397_v34, %v437_v30  ;;  %v474_v36 = vmax.f32 %v460_v35, %v437_v30 }
  0x34   : > { %483 = vst.msk [vmem:[%s756_s9 + $0x30] sm:$0xff] %vm476_vm1, %v474_v36  ;;  %v461_v39 = vmax.f32 %v453_v5, %v274_v25 }
  0x36   : > { %v475_v40 = vmax.f32 %v461_v39, %v466_v38 }
  0x38   : > { %484 = vst.msk [vmem:[%s756_s9 + $0x38] sm:$0xff] %vm476_vm1, %v475_v40 }
  0x39 PF: > { %s14_s15 = sadd.s32 1, %s610_s15  }
  0x3a   : > { %p11_p4 = scmp.ge.s32.totalorder %s14_s15, 4  }
  0x3c   :  { %13 = sbr.rel (!%p11_p4) target bundleno = 1 (0x1), region = 75 }

// kernel: resnet18_forward.22
= control target key start
LH: loop header
LB: loop body
LE: loop exit
PB: predicated region body
PF: predicated region fallthrough
CT: control target
= control target key end

     0   :  { %s1448_s15 = smov 0   ;;  %s1450_s16 = smov 0   ;;  %s1792_s0 = inlined_call_operand.vmem [shape: bf16[512,147], index: 0, kind: input, shape index: {}]   ;;  %s1793_s1 = inlined_call_operand.vmem [shape: bf16[147,64], index: 1, kind: input, shape index: {}]   ;;  %s1794_s2 = inlined_call_operand.vmem [shape: f32[1,64], index: 2, kind: input, shape index: {}]   ;;  %s1795_s3 = inlined_call_operand.vmem [shape: f32[1,64], index: 3, kind: input, shape index: {}]   ;;  %s1796_s4 = inlined_call_operand.vmem [shape: f32[512,64], index: 4, kind: output, shape index: {}]  }
   0x1   :  { %s1452_s17 = smov 0  }
   0x2 LB: > { %s33_s18 = sadd.s32 1, %s1414_s16  ;;  %p1222_p0 = scmp.ge.s32.totalorder %s1418_s17, 1  ;;  %s1418_s17 = sphi %s1452_s17, %s14_s17   ;;  %s1414_s16 = sphi %s1450_s16, %s1798_s16   ;;  %s1410_s15 = sphi %s1448_s15, %s1797_s15  }
   0x3   : > { %p35_p1 = scmp.ge.s32.totalorder %s33_s18, 2  ;;  %p224_p2 = scmp.lt.s32.totalorder %s1418_s17, 3 }
   0x5   : > { %s1800_s18 = smov (%p35_p1, %s33_s18), 0  ;;  %p225_p3 = pnand %p1222_p0, %p224_p2 }
   0x6   : > { %v1338_v0 = vld [vmem:[%s1793_s1] sm:$0xff] (!%p225_p3)   ;;  %v1420_v1 = vmov (!%p225_p3), 0   ;;  %v1339_v2 = vld [vmem:[%s1793_s1 + $0x8] sm:$0xff] (!%p225_p3)   ;;  %v1340_v3 = vld [vmem:[%s1793_s1 + $0x10] sm:$0xff] (!%p225_p3)   ;;  %s1223_s25 = sshll.u32 (!%p225_p3), %s1410_s15, 5  ;;  %vm313_vm0 = vcmask (!%p225_p3), 523264  }
   0x7   : > { %228 = sbr.rel (%p225_p3) target bundleno = 335 (0x14f), region = 36  ;;  %686 = vmatprep.subr.bf16.mxu0 (!%p225_p3), %v1420_v1  ;;  %1291 = vmatprep.subr.bf16.mxu1 (!%p225_p3), %v1420_v1  ;;  %p274_p4 = scmp.lt.s32.totalorder (!%p225_p3), %s1223_s25, 63  ;;  %v1341_v4 = vld [vmem:[%s1793_s1 + $0x18] sm:$0xff] (!%p225_p3)   ;;  %v1421_v5 = vmov (!%p225_p3), 0.0   ;;  %v1342_v6 = vld [vmem:[%s1793_s1 + $0x20] sm:$0xff] (!%p225_p3)   ;;  %vm630_vm1 = vcmask (!%p225_p3), 154624  }
   0x8   : > { %687 = vmatpush1.bf16.msra.mxu0 (!%p225_p3), %v1338_v0  ;;  %1301 = vmatpush1.bf16.msra.mxu1 (!%p225_p3), %v1338_v0  ;;  %314 = vst.msk [vmem:[#allocation2] sm:$0xff] (!%p225_p3), %vm313_vm0, %v1421_v5  ;;  %315 = vst.msk [vmem:[#allocation2 + $0x8] sm:$0xff] (!%p225_p3), %vm313_vm0, %v1421_v5  ;;  %v1343_v9 = vld [vmem:[%s1793_s1 + $0x28] sm:$0xff] (!%p225_p3)   ;;  %v1344_v10 = vld [vmem:[%s1793_s1 + $0x30] sm:$0xff] (!%p225_p3)   ;;  %vm679_vm2 = vcmask (!%p225_p3), 1040384   ;;  %vm680_vm3 = vcmask (!%p225_p3), 1041408  }
   0x9   : > { %688 = vmatprep.subr.bf16.mxu0 (!%p225_p3), %v1420_v1  ;;  %1292 = vmatprep.subr.bf16.mxu1 (!%p225_p3), %v1420_v1  ;;  %316 = vst.msk [vmem:[#allocation2 + $0x10] sm:$0xff] (!%p225_p3), %vm313_vm0, %v1421_v5  ;;  %317 = vst.msk [vmem:[#allocation2 + $0x18] sm:$0xff] (!%p225_p3), %vm313_vm0, %v1421_v5  ;;  %v1345_v11 = vld [vmem:[%s1793_s1 + $0x38] sm:$0xff] (!%p225_p3)   ;;  %v1422_v12 = vmov (!%p225_p3), 65535   ;;  %v1346_v14 = vld [vmem:[%s1793_s1 + $0x40] sm:$0xff] (!%p225_p3)  }
   0xa   : > { %318 = vst.msk [vmem:[#allocation2 + $0x20] sm:$0xff] (!%p225_p3), %vm313_vm0, %v1421_v5  ;;  %319 = vst.msk [vmem:[#allocation2 + $0x28] sm:$0xff] (!%p225_p3), %vm313_vm0, %v1421_v5  ;;  %v681_v13 = vsel (!%p225_p3), %vm679_vm2, 4294967295, %v1422_v12  ;;  %v1347_v15 = vld [vmem:[%s1793_s1 + $0x48] ss:$0 sps:$4 sm:$0x33] (!%p225_p3)  }
   0xb   : > { %320 = vst.msk [vmem:[#allocation2 + $0x30] sm:$0xff] (!%p225_p3), %vm313_vm0, %v1421_v5  ;;  %321 = vst.msk [vmem:[#allocation2 + $0x38] sm:$0xff] (!%p225_p3), %vm313_vm0, %v1421_v5  ;;  %v682_v16 = vsel (!%p225_p3), %vm680_vm3, %v681_v13, 0  ;;  %v1618_v12 = vld [vmem:[%s1795_s3] ss:$0 sm:$0xff] (!%p225_p3) }
   0xc   : > { %689 = vmatpush1.bf16.msra.mxu0 (!%p225_p3), %v1339_v2  ;;  %1302 = vmatpush1.bf16.msra.mxu1 (!%p225_p3), %v1339_v2  ;;  %322 = vst.msk [vmem:[#allocation2 + $0x40] sm:$0xff] (!%p225_p3), %vm313_vm0, %v1421_v5  ;;  %323 = vst.msk [vmem:[#allocation2 + $0x48] sm:$0xff] (!%p225_p3), %vm313_vm0, %v1421_v5  ;;  %v684_v17 = vand.u32 (!%p225_p3), %v1347_v15, %v682_v16  ;;  %v1613_v2 = vld [vmem:[%s1794_s2] ss:$0 sm:$0xff] (!%p225_p3) }
   0xd   : > { %690 = vmatprep.subr.bf16.mxu0 (!%p225_p3), %v1420_v1  ;;  %1293 = vmatprep.subr.bf16.mxu1 (!%p225_p3), %v1420_v1  ;;  %324 = vst.msk [vmem:[#allocation2 + $0x50] sm:$0xff] (!%p225_p3), %vm313_vm0, %v1421_v5  ;;  %325 = vst.msk [vmem:[#allocation2 + $0x58] sm:$0xff] (!%p225_p3), %vm313_vm0, %v1421_v5 }
   0xe   : > { %s1802_s25 = smov (!%p274_p4, %s1223_s25), 63  ;;  %326 = vst.msk [vmem:[#allocation2 + $0x60] sm:$0xff] %vm313_vm0, %v1421_v5  ;;  %327 = vst.msk [vmem:[#allocation2 + $0x68] sm:$0xff] %vm313_vm0, %v1421_v5 }
   0xf   : > { %s1290_s28 = sshll.u32 %s1802_s25, 3  ;;  %328 = vst.msk [vmem:[#allocation2 + $0x70] sm:$0xff] %vm313_vm0, %v1421_v5  ;;  %329 = vst.msk [vmem:[#allocation2 + $0x78] sm:$0xff] %vm313_vm0, %v1421_v5  ;;  %v346_v48 = vld [vmem:[#allocation2] sm:$0xff]  ;;  %v347_v52 = vld [vmem:[#allocation2 + $0x8] sm:$0xff] }
  0x10   : > { %691 = vmatpush1.bf16.msra.mxu0 %v1340_v3  ;;  %1303 = vmatpush1.bf16.msra.mxu1 %v1340_v3  ;;  %330 = vst.msk [vmem:[#allocation2 + $0x80] sm:$0xff] %vm313_vm0, %v1421_v5  ;;  %331 = vst.msk [vmem:[#allocation2 + $0x88] sm:$0xff] %vm313_vm0, %v1421_v5  ;;  %s1526_s5 = scalar_lea.vmem %s1792_s0, %s1290_s28  ;;  %v348_v0 = vld [vmem:[#allocation2 + $0x10] sm:$0xff]  ;;  %s1635_s29 = scalar_lea.vmem %s1796_s4, %s1290_s28 }
  0x11   : > { %692 = vmatprep.subr.bf16.mxu0 %v1420_v1  ;;  %1294 = vmatprep.subr.bf16.mxu1 %v1420_v1  ;;  %332 = vst.msk [vmem:[#allocation2 + $0x90] sm:$0xff] %vm313_vm0, %v1421_v5  ;;  %333 = vst.msk [vmem:[#allocation2 + $0x98] sm:$0xff] %vm313_vm0, %v1421_v5  ;;  %v1350_v7 = vld [vmem:[%s1526_s5 + $0x4] ss:$8 sps:$4 sm:$0xff]   ;;  %v1348_v18 = vld [vmem:[%s1526_s5] ss:$8 sps:$4 sm:$0xff]  }
  0x12   : > { %334 = vst.msk [vmem:[#allocation2 + $0xa0] sm:$0xff] %vm313_vm0, %v1421_v5  ;;  %335 = vst.msk [vmem:[#allocation2 + $0xa8] sm:$0xff] %vm313_vm0, %v1421_v5  ;;  %v1353_v8 = vld [vmem:[%s1526_s5 + $0x84] ss:$8 sps:$4 sm:$0xff]   ;;  %1270 = vmatprep.mubr.msk.bf16.mxu0 %vm630_vm1, %v1350_v7  ;;  %v1351_v19 = vld [vmem:[%s1526_s5 + $0x80] ss:$8 sps:$4 sm:$0xff]  }
  0x13   : > { %336 = vst.msk [vmem:[#allocation2 + $0xb0] sm:$0xff] %vm313_vm0, %v1421_v5  ;;  %337 = vst.msk [vmem:[#allocation2 + $0xb8] sm:$0xff] %vm313_vm0, %v1421_v5  ;;  %1278 = vmatprep.mubr.msk.bf16.mxu1 %vm630_vm1, %v1353_v8  ;;  %v1354_v20 = vld [vmem:[%s1526_s5 + $0x14] ss:$8 sps:$4 sm:$0xff]   ;;  %v1358_v22 = vld [vmem:[%s1526_s5 + $0x10] ss:$8 sps:$4 sm:$0xff]  }
  0x14   : > { %338 = vst.msk [vmem:[#allocation2 + $0xc0] sm:$0xff] %vm313_vm0, %v1421_v5  ;;  %339 = vst.msk [vmem:[#allocation2 + $0xc8] sm:$0xff] %vm313_vm0, %v1421_v5  ;;  %693 = vmatpush1.bf16.msra.mxu0 %v1341_v4  ;;  %1304 = vmatpush1.bf16.msra.mxu1 %v1341_v4  ;;  %v1356_v21 = vld [vmem:[%s1526_s5 + $0x94] ss:$8 sps:$4 sm:$0xff]   ;;  %v1359_v23 = vld [vmem:[%s1526_s5 + $0x90] ss:$8 sps:$4 sm:$0xff]  }
  0x15   : > { %340 = vst.msk [vmem:[#allocation2 + $0xd0] sm:$0xff] %vm313_vm0, %v1421_v5  ;;  %341 = vst.msk [vmem:[#allocation2 + $0xd8] sm:$0xff] %vm313_vm0, %v1421_v5  ;;  %694 = vmatprep.subr.bf16.mxu0 %v1420_v1  ;;  %1295 = vmatprep.subr.bf16.mxu1 %v1420_v1  ;;  %v1360_v24 = vld [vmem:[%s1526_s5 + $0x24] ss:$8 sps:$4 sm:$0xff]   ;;  %v1364_v26 = vld [vmem:[%s1526_s5 + $0x20] ss:$8 sps:$4 sm:$0xff]  }
  0x16   : > { %342 = vst.msk [vmem:[#allocation2 + $0xe0] sm:$0xff] %vm313_vm0, %v1421_v5  ;;  %343 = vst.msk [vmem:[#allocation2 + $0xe8] sm:$0xff] %vm313_vm0, %v1421_v5  ;;  %v1362_v25 = vld [vmem:[%s1526_s5 + $0xa4] ss:$8 sps:$4 sm:$0xff]   ;;  %v1365_v27 = vld [vmem:[%s1526_s5 + $0xa0] ss:$8 sps:$4 sm:$0xff]  }
  0x17   : > { %344 = vst.msk [vmem:[#allocation2 + $0xf0] sm:$0xff] %vm313_vm0, %v1421_v5  ;;  %345 = vst.msk [vmem:[#allocation2 + $0xf8] sm:$0xff] %vm313_vm0, %v1421_v5  ;;  %v1366_v28 = vld [vmem:[%s1526_s5 + $0x34] ss:$8 sps:$4 sm:$0xff]   ;;  %v1370_v30 = vld [vmem:[%s1526_s5 + $0x30] ss:$8 sps:$4 sm:$0xff]  }
  0x18   : > { %695 = vmatpush1.bf16.msra.mxu0 %v1342_v6  ;;  %1305 = vmatpush1.bf16.msra.mxu1 %v1342_v6  ;;  %v1368_v29 = vld [vmem:[%s1526_s5 + $0xb4] ss:$8 sps:$4 sm:$0xff]   ;;  %v1371_v31 = vld [vmem:[%s1526_s5 + $0xb0] ss:$8 sps:$4 sm:$0xff]   ;;  %v1372_v32 = vld [vmem:[%s1526_s5 + $0x44] ss:$8 sps:$4 sm:$0xff]  }
  0x19   : > { %696 = vmatprep.subr.bf16.mxu0 %v1420_v1  ;;  %1296 = vmatprep.subr.bf16.mxu1 %v1420_v1  ;;  %v1374_v33 = vld [vmem:[%s1526_s5 + $0xc4] ss:$8 sps:$4 sm:$0xff]   ;;  %v1376_v34 = vld [vmem:[%s1526_s5 + $0x40] ss:$8 sps:$4 sm:$0xff]   ;;  %v1378_v36 = vld [vmem:[%s1526_s5 + $0x54] ss:$8 sps:$4 sm:$0xff]  }
  0x1a   : > { %v1377_v35 = vld [vmem:[%s1526_s5 + $0xc0] ss:$8 sps:$4 sm:$0xff]   ;;  %v1380_v37 = vld [vmem:[%s1526_s5 + $0xd4] ss:$8 sps:$4 sm:$0xff]   ;;  %v1382_v38 = vld [vmem:[%s1526_s5 + $0x50] ss:$8 sps:$4 sm:$0xff]  }
  0x1b   : > { %v1383_v39 = vld [vmem:[%s1526_s5 + $0xd0] ss:$8 sps:$4 sm:$0xff]   ;;  %v1384_v40 = vld [vmem:[%s1526_s5 + $0x64] ss:$8 sps:$4 sm:$0xff]   ;;  %v1388_v42 = vld [vmem:[%s1526_s5 + $0x60] ss:$8 sps:$4 sm:$0xff]  }
  0x1c   : > { %697 = vmatpush1.bf16.msra.mxu0 %v1343_v9  ;;  %1306 = vmatpush1.bf16.msra.mxu1 %v1343_v9  ;;  %v1386_v41 = vld [vmem:[%s1526_s5 + $0xe4] ss:$8 sps:$4 sm:$0xff]   ;;  %v1389_v43 = vld [vmem:[%s1526_s5 + $0xe0] ss:$8 sps:$4 sm:$0xff]   ;;  %v1390_v44 = vld [vmem:[%s1526_s5 + $0x74] ss:$8 sps:$4 sm:$0xff]  }
  0x1d   : > { %698 = vmatprep.subr.bf16.mxu0 %v1420_v1  ;;  %1297 = vmatprep.subr.bf16.mxu1 %v1420_v1  ;;  %v1392_v45 = vld [vmem:[%s1526_s5 + $0xf4] ss:$8 sps:$4 sm:$0xff]   ;;  %v1394_v46 = vld [vmem:[%s1526_s5 + $0x70] ss:$8 sps:$4 sm:$0xff]   ;;  %v362_v49 = vld [vmem:[#allocation2 + $0x80] sm:$0xff] }
  0x1e   : > { %v1395_v47 = vld [vmem:[%s1526_s5 + $0xf0] ss:$8 sps:$4 sm:$0xff]   ;;  %v363_v53 = vld [vmem:[#allocation2 + $0x88] sm:$0xff] }
  0x1f   : > { %v349_v5 = vld [vmem:[#allocation2 + $0x18] sm:$0xff] }
  0x20   : > { %699 = vmatpush1.bf16.msra.mxu0 %v1344_v10  ;;  %1307 = vmatpush1.bf16.msra.mxu1 %v1344_v10  ;;  %v365_v6 = vld [vmem:[#allocation2 + $0x98] sm:$0xff] }
  0x21   : > { %700 = vmatprep.subr.bf16.mxu0 %v1420_v1  ;;  %1298 = vmatprep.subr.bf16.mxu1 %v1420_v1 }
  0x24   : > { %701 = vmatpush1.bf16.msra.mxu0 %v1345_v11  ;;  %1308 = vmatpush1.bf16.msra.mxu1 %v1345_v11 }
  0x25   : > { %702 = vmatprep.subr.bf16.mxu0 %v1420_v1  ;;  %1299 = vmatprep.subr.bf16.mxu1 %v1420_v1 }
  0x28   : > { %703 = vmatpush1.bf16.msra.mxu0 %v1346_v14  ;;  %1309 = vmatpush1.bf16.msra.mxu1 %v1346_v14 }
  0x29   : > { %704 = vmatprep.subr.bf16.mxu0 %v1420_v1  ;;  %1300 = vmatprep.subr.bf16.mxu1 %v1420_v1  ;;  %v364_v1 = vld [vmem:[#allocation2 + $0x90] sm:$0xff] }
  0x2c   : > { %705 = vmatpush1.bf16.msra.mxu0 %v684_v17  ;;  %1310 = vmatpush1.bf16.msra.mxu1 %v684_v17 }
  0x2f   : > { %719 = vmatmul.mubr.bf16.vlgmr.msra.gmra.mrb[0].mxu0 %v1348_v18  ;;  %783 = vmatmul.mubr.bf16.vlgmr.msra.gmra.mrb[0].mxu1 %v1351_v19 }
  0x30   : > { %1271 = vmatprep.mubr.msk.bf16.mxu0 %vm630_vm1, %v1354_v20  ;;  %1279 = vmatprep.mubr.msk.bf16.mxu1 %vm630_vm1, %v1356_v21 }
  0x37   : > { %727 = vmatmul.mubr.bf16.gmra.mrb[4].mxu0 %v1358_v22  ;;  %791 = vmatmul.mubr.bf16.gmra.mrb[4].mxu1 %v1359_v23 }
  0x38   : > { %1272 = vmatprep.mubr.msk.bf16.mxu0 %vm630_vm1, %v1360_v24  ;;  %1280 = vmatprep.mubr.msk.bf16.mxu1 %vm630_vm1, %v1362_v25 }
  0x3f   : > { %735 = vmatmul.mubr.bf16.gmra.mrb[8].mxu0 %v1364_v26  ;;  %799 = vmatmul.mubr.bf16.gmra.mrb[8].mxu1 %v1365_v27 }
  0x40   : > { %1273 = vmatprep.mubr.msk.bf16.mxu0 %vm630_vm1, %v1366_v28  ;;  %1281 = vmatprep.mubr.msk.bf16.mxu1 %vm630_vm1, %v1368_v29  ;;  %v350_v28 = vld [vmem:[#allocation2 + $0x20] sm:$0xff] }
  0x41   : > { %v366_v29 = vld [vmem:[#allocation2 + $0xa0] sm:$0xff] }
  0x47   : > { %743 = vmatmul.mubr.bf16.gmra.mrb[12].mxu0 %v1370_v30  ;;  %807 = vmatmul.mubr.bf16.gmra.mrb[12].mxu1 %v1371_v31 }
  0x48   : > { %1274 = vmatprep.mubr.msk.bf16.mxu0 %vm630_vm1, %v1372_v32  ;;  %1282 = vmatprep.mubr.msk.bf16.mxu1 %vm630_vm1, %v1374_v33 }
  0x4f   : > { %751 = vmatmul.mubr.bf16.gmra.mrb[16].mxu0 %v1376_v34  ;;  %815 = vmatmul.mubr.bf16.gmra.mrb[16].mxu1 %v1377_v35 }
  0x50   : > { %1275 = vmatprep.mubr.msk.bf16.mxu0 %vm630_vm1, %v1378_v36  ;;  %1283 = vmatprep.mubr.msk.bf16.mxu1 %vm630_vm1, %v1380_v37  ;;  %v351_v36 = vld [vmem:[#allocation2 + $0x28] sm:$0xff] }
  0x51   : > { %v367_v37 = vld [vmem:[#allocation2 + $0xa8] sm:$0xff] }
  0x57   : > { %759 = vmatmul.mubr.bf16.gmra.mrb[20].mxu0 %v1382_v38  ;;  %823 = vmatmul.mubr.bf16.gmra.mrb[20].mxu1 %v1383_v39 }
  0x58   : > { %1276 = vmatprep.mubr.msk.bf16.mxu0 %vm630_vm1, %v1384_v40  ;;  %1284 = vmatprep.mubr.msk.bf16.mxu1 %vm630_vm1, %v1386_v41 }
  0x5f   : > { %767 = vmatmul.mubr.bf16.gmra.mrb[24].mxu0 %v1388_v42  ;;  %831 = vmatmul.mubr.bf16.gmra.mrb[24].mxu1 %v1389_v43 }
  0x60   : > { %1277 = vmatprep.mubr.msk.bf16.mxu0 %vm630_vm1, %v1390_v44  ;;  %1285 = vmatprep.mubr.msk.bf16.mxu1 %vm630_vm1, %v1392_v45 }
  0x67   : > { %775 = vmatmul.mubr.bf16.gmra.mrb[28].mxu0 %v1394_v46  ;;  %839 = vmatmul.mubr.bf16.gmra.mrb[28].mxu1 %v1395_v47 }
 0x102   : > { %v720_v50 = vpop.f32.mrb[0].mxu0  ;;  %v784_v51 = vpop.f32.mrb[0].mxu1 }
 0x103   : > { %v847_v54 = vadd.f32 %v720_v50, %v346_v48  ;;  %v863_v55 = vadd.f32 %v784_v51, %v362_v49  ;;  %v722_v56 = vpop.f32.mrb[1].mxu0  ;;  %v786_v57 = vpop.f32.mrb[1].mxu1 }
 0x104   : > { %v723_v58 = vpop.f32.mrb[2].mxu0  ;;  %v787_v59 = vpop.f32.mrb[2].mxu1 }
 0x105   : > { %880 = vst.msk [vmem:[#allocation2] sm:$0xff] %vm313_vm0, %v847_v54  ;;  %896 = vst.msk [vmem:[#allocation2 + $0x80] sm:$0xff] %vm313_vm0, %v863_v55  ;;  %v848_v60 = vadd.f32 %v723_v58, %v347_v52  ;;  %v864_v61 = vadd.f32 %v787_v59, %v363_v53  ;;  %v725_v62 = vpop.f32.mrb[3].mxu0  ;;  %v789_v63 = vpop.f32.mrb[3].mxu1 }
 0x107   : > { %881 = vst.msk [vmem:[#allocation2 + $0x8] sm:$0xff] %vm313_vm0, %v848_v60  ;;  %897 = vst.msk [vmem:[#allocation2 + $0x88] sm:$0xff] %vm313_vm0, %v864_v61  ;;  %v352_v60 = vld [vmem:[#allocation2 + $0x30] sm:$0xff] }
 0x108   : > { %v368_v61 = vld [vmem:[#allocation2 + $0xb0] sm:$0xff] }
 0x10a   : > { %v728_v3 = vpop.f32.mrb[4].mxu0  ;;  %v792_v4 = vpop.f32.mrb[4].mxu1 }
 0x10b   : > { %v849_v7 = vadd.f32 %v728_v3, %v348_v0  ;;  %v865_v8 = vadd.f32 %v792_v4, %v364_v1  ;;  %v730_v9 = vpop.f32.mrb[5].mxu0  ;;  %v794_v10 = vpop.f32.mrb[5].mxu1 }
 0x10c   : > { %v915_v11 = vld [vmem:[#allocation2] sm:$0xff]  ;;  %v731_v14 = vpop.f32.mrb[6].mxu0  ;;  %v795_v15 = vpop.f32.mrb[6].mxu1 }
 0x10d   : > { %v931_v13 = vld [vmem:[#allocation2 + $0x80] sm:$0xff]  ;;  %v954_v16 = vmul.f32 %v1613_v2, %v915_v11  ;;  %882 = vst.msk [vmem:[#allocation2 + $0x10] sm:$0xff] %vm313_vm0, %v849_v7  ;;  %898 = vst.msk [vmem:[#allocation2 + $0x90] sm:$0xff] %vm313_vm0, %v865_v8  ;;  %v850_v18 = vadd.f32 %v731_v14, %v349_v5  ;;  %v866_v19 = vadd.f32 %v795_v15, %v365_v6  ;;  %v733_v20 = vpop.f32.mrb[7].mxu0  ;;  %v797_v21 = vpop.f32.mrb[7].mxu1  ;;  %v353_v5 = vld [vmem:[#allocation2 + $0x38] sm:$0xff] }
 0x10e   : > { %v970_v17 = vmul.f32 %v1613_v2, %v931_v13  ;;  %v916_v22 = vld [vmem:[#allocation2 + $0x8] sm:$0xff]  ;;  %v369_v6 = vld [vmem:[#allocation2 + $0xb8] sm:$0xff] }
 0x10f   : > { %v932_v23 = vld [vmem:[#allocation2 + $0x88] sm:$0xff]  ;;  %v993_v24 = vadd.f32 %v1618_v12, %v954_v16  ;;  %v955_v26 = vmul.f32 %v1613_v2, %v916_v22  ;;  %883 = vst.msk [vmem:[#allocation2 + $0x18] sm:$0xff] %vm313_vm0, %v850_v18  ;;  %899 = vst.msk [vmem:[#allocation2 + $0x98] sm:$0xff] %vm313_vm0, %v866_v19 }
 0x110   : > { %v1009_v25 = vadd.f32 %v1618_v12, %v970_v17  ;;  %v971_v27 = vmul.f32 %v1613_v2, %v932_v23 }
 0x111   : > { %v1025_v30 = vmax.f32 %v993_v24, 0.0  ;;  %v994_v32 = vadd.f32 %v1618_v12, %v955_v26 }
 0x112   : > { %v1041_v31 = vmax.f32 %v1009_v25, 0.0  ;;  %v1010_v33 = vadd.f32 %v1618_v12, %v971_v27  ;;  %v736_v34 = vpop.f32.mrb[8].mxu0  ;;  %v800_v35 = vpop.f32.mrb[8].mxu1 }
 0x113   : > { %1057 = vst.msk [vmem:[%s1635_s29] sm:$0xff] %vm313_vm0, %v1025_v30  ;;  %v1026_v38 = vmax.f32 %v994_v32, 0.0  ;;  %v851_v40 = vadd.f32 %v736_v34, %v350_v28  ;;  %v867_v41 = vadd.f32 %v800_v35, %v366_v29  ;;  %v738_v42 = vpop.f32.mrb[9].mxu0  ;;  %v802_v43 = vpop.f32.mrb[9].mxu1  ;;  %v354_v30 = vld [vmem:[#allocation2 + $0x40] sm:$0xff] }
 0x114   : > { %1073 = vst.msk [vmem:[%s1635_s29 + $0x80] sm:$0xff] %vm313_vm0, %v1041_v31  ;;  %v1042_v39 = vmax.f32 %v1010_v33, 0.0  ;;  %v917_v44 = vld [vmem:[#allocation2 + $0x10] sm:$0xff]  ;;  %v739_v46 = vpop.f32.mrb[10].mxu0  ;;  %v803_v47 = vpop.f32.mrb[10].mxu1  ;;  %v370_v31 = vld [vmem:[#allocation2 + $0xc0] sm:$0xff] }
 0x115   : > { %v933_v45 = vld [vmem:[#allocation2 + $0x90] sm:$0xff]  ;;  %1058 = vst.msk [vmem:[%s1635_s29 + $0x8] sm:$0xff] %vm313_vm0, %v1026_v38  ;;  %v956_v48 = vmul.f32 %v1613_v2, %v917_v44  ;;  %884 = vst.msk [vmem:[#allocation2 + $0x20] sm:$0xff] %vm313_vm0, %v851_v40  ;;  %v852_v50 = vadd.f32 %v739_v46, %v351_v36  ;;  %v868_v51 = vadd.f32 %v803_v47, %v367_v37  ;;  %v741_v52 = vpop.f32.mrb[11].mxu0  ;;  %v805_v53 = vpop.f32.mrb[11].mxu1  ;;  %v355_v38 = vld [vmem:[#allocation2 + $0x48] sm:$0xff] }
 0x116   : > { %1074 = vst.msk [vmem:[%s1635_s29 + $0x88] sm:$0xff] %vm313_vm0, %v1042_v39  ;;  %v972_v49 = vmul.f32 %v1613_v2, %v933_v45  ;;  %900 = vst.msk [vmem:[#allocation2 + $0xa0] sm:$0xff] %vm313_vm0, %v867_v41  ;;  %v918_v54 = vld [vmem:[#allocation2 + $0x18] sm:$0xff]  ;;  %v371_v39 = vld [vmem:[#allocation2 + $0xc8] sm:$0xff] }
 0x117   : > { %v934_v55 = vld [vmem:[#allocation2 + $0x98] sm:$0xff]  ;;  %v995_v56 = vadd.f32 %v1618_v12, %v956_v48  ;;  %v957_v58 = vmul.f32 %v1613_v2, %v918_v54  ;;  %885 = vst.msk [vmem:[#allocation2 + $0x28] sm:$0xff] %vm313_vm0, %v852_v50  ;;  %901 = vst.msk [vmem:[#allocation2 + $0xa8] sm:$0xff] %vm313_vm0, %v868_v51 }
 0x118   : > { %v1011_v57 = vadd.f32 %v1618_v12, %v972_v49  ;;  %v973_v59 = vmul.f32 %v1613_v2, %v934_v55 }
 0x119   : > { %v1027_v62 = vmax.f32 %v995_v56, 0.0  ;;  %v996_v0 = vadd.f32 %v1618_v12, %v957_v58 }
 0x11a   : > { %v1043_v63 = vmax.f32 %v1011_v57, 0.0  ;;  %v1012_v1 = vadd.f32 %v1618_v12, %v973_v59  ;;  %v744_v3 = vpop.f32.mrb[12].mxu0  ;;  %v808_v4 = vpop.f32.mrb[12].mxu1 }
 0x11b   : > { %1059 = vst.msk [vmem:[%s1635_s29 + $0x10] sm:$0xff] %vm313_vm0, %v1027_v62  ;;  %v1028_v7 = vmax.f32 %v996_v0, 0.0  ;;  %v853_v9 = vadd.f32 %v744_v3, %v352_v60  ;;  %v869_v10 = vadd.f32 %v808_v4, %v368_v61  ;;  %v746_v11 = vpop.f32.mrb[13].mxu0  ;;  %v810_v13 = vpop.f32.mrb[13].mxu1  ;;  %v356_v62 = vld [vmem:[#allocation2 + $0x50] sm:$0xff] }
 0x11c   : > { %1075 = vst.msk [vmem:[%s1635_s29 + $0x90] sm:$0xff] %vm313_vm0, %v1043_v63  ;;  %v1044_v8 = vmax.f32 %v1012_v1, 0.0  ;;  %v919_v14 = vld [vmem:[#allocation2 + $0x20] sm:$0xff]  ;;  %v747_v16 = vpop.f32.mrb[14].mxu0  ;;  %v811_v17 = vpop.f32.mrb[14].mxu1  ;;  %v372_v63 = vld [vmem:[#allocation2 + $0xd0] sm:$0xff] }
 0x11d   : > { %v935_v15 = vld [vmem:[#allocation2 + $0xa0] sm:$0xff]  ;;  %1060 = vst.msk [vmem:[%s1635_s29 + $0x18] sm:$0xff] %vm313_vm0, %v1028_v7  ;;  %v958_v18 = vmul.f32 %v1613_v2, %v919_v14  ;;  %886 = vst.msk [vmem:[#allocation2 + $0x30] sm:$0xff] %vm313_vm0, %v853_v9  ;;  %v854_v20 = vadd.f32 %v747_v16, %v353_v5  ;;  %v870_v21 = vadd.f32 %v811_v17, %v369_v6  ;;  %v749_v22 = vpop.f32.mrb[15].mxu0  ;;  %v813_v23 = vpop.f32.mrb[15].mxu1  ;;  %v357_v7 = vld [vmem:[#allocation2 + $0x58] sm:$0xff] }
 0x11e   : > { %1076 = vst.msk [vmem:[%s1635_s29 + $0x98] sm:$0xff] %vm313_vm0, %v1044_v8  ;;  %v974_v19 = vmul.f32 %v1613_v2, %v935_v15  ;;  %902 = vst.msk [vmem:[#allocation2 + $0xb0] sm:$0xff] %vm313_vm0, %v869_v10  ;;  %v920_v24 = vld [vmem:[#allocation2 + $0x28] sm:$0xff]  ;;  %v373_v8 = vld [vmem:[#allocation2 + $0xd8] sm:$0xff] }
 0x11f   : > { %v936_v25 = vld [vmem:[#allocation2 + $0xa8] sm:$0xff]  ;;  %v997_v26 = vadd.f32 %v1618_v12, %v958_v18  ;;  %v959_v28 = vmul.f32 %v1613_v2, %v920_v24  ;;  %887 = vst.msk [vmem:[#allocation2 + $0x38] sm:$0xff] %vm313_vm0, %v854_v20  ;;  %903 = vst.msk [vmem:[#allocation2 + $0xb8] sm:$0xff] %vm313_vm0, %v870_v21 }
 0x120   : > { %v1013_v27 = vadd.f32 %v1618_v12, %v974_v19  ;;  %v975_v29 = vmul.f32 %v1613_v2, %v936_v25 }
 0x121   : > { %v1029_v32 = vmax.f32 %v997_v26, 0.0  ;;  %v998_v34 = vadd.f32 %v1618_v12, %v959_v28 }
 0x122   : > { %v1045_v33 = vmax.f32 %v1013_v27, 0.0  ;;  %v1014_v35 = vadd.f32 %v1618_v12, %v975_v29  ;;  %v752_v36 = vpop.f32.mrb[16].mxu0  ;;  %v816_v37 = vpop.f32.mrb[16].mxu1 }
 0x123   : > { %1061 = vst.msk [vmem:[%s1635_s29 + $0x20] sm:$0xff] %vm313_vm0, %v1029_v32  ;;  %v1030_v40 = vmax.f32 %v998_v34, 0.0  ;;  %v855_v42 = vadd.f32 %v752_v36, %v354_v30  ;;  %v871_v43 = vadd.f32 %v816_v37, %v370_v31  ;;  %v754_v44 = vpop.f32.mrb[17].mxu0  ;;  %v818_v45 = vpop.f32.mrb[17].mxu1  ;;  %v358_v32 = vld [vmem:[#allocation2 + $0x60] sm:$0xff] }
 0x124   : > { %1077 = vst.msk [vmem:[%s1635_s29 + $0xa0] sm:$0xff] %vm313_vm0, %v1045_v33  ;;  %v1046_v41 = vmax.f32 %v1014_v35, 0.0  ;;  %v921_v46 = vld [vmem:[#allocation2 + $0x30] sm:$0xff]  ;;  %v755_v48 = vpop.f32.mrb[18].mxu0  ;;  %v819_v49 = vpop.f32.mrb[18].mxu1  ;;  %v374_v33 = vld [vmem:[#allocation2 + $0xe0] sm:$0xff] }
 0x125   : > { %v937_v47 = vld [vmem:[#allocation2 + $0xb0] sm:$0xff]  ;;  %1062 = vst.msk [vmem:[%s1635_s29 + $0x28] sm:$0xff] %vm313_vm0, %v1030_v40  ;;  %v960_v50 = vmul.f32 %v1613_v2, %v921_v46  ;;  %888 = vst.msk [vmem:[#allocation2 + $0x40] sm:$0xff] %vm313_vm0, %v855_v42  ;;  %v856_v52 = vadd.f32 %v755_v48, %v355_v38  ;;  %v872_v53 = vadd.f32 %v819_v49, %v371_v39  ;;  %v757_v54 = vpop.f32.mrb[19].mxu0  ;;  %v821_v55 = vpop.f32.mrb[19].mxu1  ;;  %v359_v40 = vld [vmem:[#allocation2 + $0x68] sm:$0xff] }
 0x126   : > { %1078 = vst.msk [vmem:[%s1635_s29 + $0xa8] sm:$0xff] %vm313_vm0, %v1046_v41  ;;  %v976_v51 = vmul.f32 %v1613_v2, %v937_v47  ;;  %904 = vst.msk [vmem:[#allocation2 + $0xc0] sm:$0xff] %vm313_vm0, %v871_v43  ;;  %v922_v56 = vld [vmem:[#allocation2 + $0x38] sm:$0xff]  ;;  %v375_v41 = vld [vmem:[#allocation2 + $0xe8] sm:$0xff] }
 0x127   : > { %v938_v57 = vld [vmem:[#allocation2 + $0xb8] sm:$0xff]  ;;  %v999_v58 = vadd.f32 %v1618_v12, %v960_v50  ;;  %v961_v60 = vmul.f32 %v1613_v2, %v922_v56  ;;  %889 = vst.msk [vmem:[#allocation2 + $0x48] sm:$0xff] %vm313_vm0, %v856_v52  ;;  %905 = vst.msk [vmem:[#allocation2 + $0xc8] sm:$0xff] %vm313_vm0, %v872_v53 }
 0x128   : > { %v1015_v59 = vadd.f32 %v1618_v12, %v976_v51  ;;  %v977_v61 = vmul.f32 %v1613_v2, %v938_v57 }
 0x129   : > { %v1031_v0 = vmax.f32 %v999_v58, 0.0  ;;  %v1000_v3 = vadd.f32 %v1618_v12, %v961_v60 }
 0x12a   : > { %v1047_v1 = vmax.f32 %v1015_v59, 0.0  ;;  %v1016_v4 = vadd.f32 %v1618_v12, %v977_v61  ;;  %v760_v5 = vpop.f32.mrb[20].mxu0  ;;  %v824_v6 = vpop.f32.mrb[20].mxu1 }
 0x12b   : > { %1063 = vst.msk [vmem:[%s1635_s29 + $0x30] sm:$0xff] %vm313_vm0, %v1031_v0  ;;  %v1032_v9 = vmax.f32 %v1000_v3, 0.0  ;;  %v857_v11 = vadd.f32 %v760_v5, %v356_v62  ;;  %v873_v13 = vadd.f32 %v824_v6, %v372_v63  ;;  %v762_v14 = vpop.f32.mrb[21].mxu0  ;;  %v826_v15 = vpop.f32.mrb[21].mxu1  ;;  %v360_v0 = vld [vmem:[#allocation2 + $0x70] sm:$0xff] }
 0x12c   : > { %1079 = vst.msk [vmem:[%s1635_s29 + $0xb0] sm:$0xff] %vm313_vm0, %v1047_v1  ;;  %v1048_v10 = vmax.f32 %v1016_v4, 0.0  ;;  %v923_v16 = vld [vmem:[#allocation2 + $0x40] sm:$0xff]  ;;  %v763_v18 = vpop.f32.mrb[22].mxu0  ;;  %v827_v19 = vpop.f32.mrb[22].mxu1  ;;  %v376_v1 = vld [vmem:[#allocation2 + $0xf0] sm:$0xff] }
 0x12d   : > { %v939_v17 = vld [vmem:[#allocation2 + $0xc0] sm:$0xff]  ;;  %1064 = vst.msk [vmem:[%s1635_s29 + $0x38] sm:$0xff] %vm313_vm0, %v1032_v9  ;;  %v962_v20 = vmul.f32 %v1613_v2, %v923_v16  ;;  %890 = vst.msk [vmem:[#allocation2 + $0x50] sm:$0xff] %vm313_vm0, %v857_v11  ;;  %v858_v22 = vadd.f32 %v763_v18, %v357_v7  ;;  %v874_v23 = vadd.f32 %v827_v19, %v373_v8  ;;  %v765_v24 = vpop.f32.mrb[23].mxu0  ;;  %v829_v25 = vpop.f32.mrb[23].mxu1  ;;  %v361_v9 = vld [vmem:[#allocation2 + $0x78] sm:$0xff] }
 0x12e   : > { %1080 = vst.msk [vmem:[%s1635_s29 + $0xb8] sm:$0xff] %vm313_vm0, %v1048_v10  ;;  %v978_v21 = vmul.f32 %v1613_v2, %v939_v17  ;;  %906 = vst.msk [vmem:[#allocation2 + $0xd0] sm:$0xff] %vm313_vm0, %v873_v13  ;;  %v924_v26 = vld [vmem:[#allocation2 + $0x48] sm:$0xff]  ;;  %v377_v10 = vld [vmem:[#allocation2 + $0xf8] sm:$0xff] }
 0x12f   : > { %v940_v27 = vld [vmem:[#allocation2 + $0xc8] sm:$0xff]  ;;  %v1001_v28 = vadd.f32 %v1618_v12, %v962_v20  ;;  %v963_v30 = vmul.f32 %v1613_v2, %v924_v26  ;;  %891 = vst.msk [vmem:[#allocation2 + $0x58] sm:$0xff] %vm313_vm0, %v858_v22  ;;  %907 = vst.msk [vmem:[#allocation2 + $0xd8] sm:$0xff] %vm313_vm0, %v874_v23 }
 0x130   : > { %v1017_v29 = vadd.f32 %v1618_v12, %v978_v21  ;;  %v979_v31 = vmul.f32 %v1613_v2, %v940_v27 }
 0x131   : > { %v1033_v34 = vmax.f32 %v1001_v28, 0.0  ;;  %v1002_v36 = vadd.f32 %v1618_v12, %v963_v30 }
 0x132   : > { %v1049_v35 = vmax.f32 %v1017_v29, 0.0  ;;  %v1018_v37 = vadd.f32 %v1618_v12, %v979_v31  ;;  %v768_v38 = vpop.f32.mrb[24].mxu0  ;;  %v832_v39 = vpop.f32.mrb[24].mxu1 }
 0x133   : > { %1065 = vst.msk [vmem:[%s1635_s29 + $0x40] sm:$0xff] %vm313_vm0, %v1033_v34  ;;  %v1034_v42 = vmax.f32 %v1002_v36, 0.0  ;;  %v859_v44 = vadd.f32 %v768_v38, %v358_v32  ;;  %v875_v45 = vadd.f32 %v832_v39, %v374_v33  ;;  %v770_v46 = vpop.f32.mrb[25].mxu0  ;;  %v834_v47 = vpop.f32.mrb[25].mxu1 }
 0x134   : > { %1081 = vst.msk [vmem:[%s1635_s29 + $0xc0] sm:$0xff] %vm313_vm0, %v1049_v35  ;;  %v1050_v43 = vmax.f32 %v1018_v37, 0.0  ;;  %v925_v48 = vld [vmem:[#allocation2 + $0x50] sm:$0xff]  ;;  %v771_v50 = vpop.f32.mrb[26].mxu0  ;;  %v835_v51 = vpop.f32.mrb[26].mxu1 }
 0x135   : > { %v941_v49 = vld [vmem:[#allocation2 + $0xd0] sm:$0xff]  ;;  %1066 = vst.msk [vmem:[%s1635_s29 + $0x48] sm:$0xff] %vm313_vm0, %v1034_v42  ;;  %v964_v52 = vmul.f32 %v1613_v2, %v925_v48  ;;  %892 = vst.msk [vmem:[#allocation2 + $0x60] sm:$0xff] %vm313_vm0, %v859_v44  ;;  %v860_v54 = vadd.f32 %v771_v50, %v359_v40  ;;  %v876_v55 = vadd.f32 %v835_v51, %v375_v41  ;;  %v773_v56 = vpop.f32.mrb[27].mxu0  ;;  %v837_v57 = vpop.f32.mrb[27].mxu1 }
 0x136   : > { %1082 = vst.msk [vmem:[%s1635_s29 + $0xc8] sm:$0xff] %vm313_vm0, %v1050_v43  ;;  %v980_v53 = vmul.f32 %v1613_v2, %v941_v49  ;;  %908 = vst.msk [vmem:[#allocation2 + $0xe0] sm:$0xff] %vm313_vm0, %v875_v45  ;;  %v926_v58 = vld [vmem:[#allocation2 + $0x58] sm:$0xff] }
 0x137   : > { %v942_v59 = vld [vmem:[#allocation2 + $0xd8] sm:$0xff]  ;;  %v1003_v60 = vadd.f32 %v1618_v12, %v964_v52  ;;  %v965_v62 = vmul.f32 %v1613_v2, %v926_v58  ;;  %893 = vst.msk [vmem:[#allocation2 + $0x68] sm:$0xff] %vm313_vm0, %v860_v54  ;;  %909 = vst.msk [vmem:[#allocation2 + $0xe8] sm:$0xff] %vm313_vm0, %v876_v55 }
 0x138   : > { %v1019_v61 = vadd.f32 %v1618_v12, %v980_v53  ;;  %v981_v63 = vmul.f32 %v1613_v2, %v942_v59 }
 0x139   : > { %v1035_v3 = vmax.f32 %v1003_v60, 0.0  ;;  %v1004_v5 = vadd.f32 %v1618_v12, %v965_v62 }
 0x13a   : > { %v1051_v4 = vmax.f32 %v1019_v61, 0.0  ;;  %v1020_v6 = vadd.f32 %v1618_v12, %v981_v63  ;;  %v776_v7 = vpop.f32.mrb[28].mxu0  ;;  %v840_v8 = vpop.f32.mrb[28].mxu1 }
 0x13b   : > { %1067 = vst.msk [vmem:[%s1635_s29 + $0x50] sm:$0xff] %vm313_vm0, %v1035_v3  ;;  %v1036_v11 = vmax.f32 %v1004_v5, 0.0  ;;  %v861_v14 = vadd.f32 %v776_v7, %v360_v0  ;;  %v877_v15 = vadd.f32 %v840_v8, %v376_v1  ;;  %v778_v16 = vpop.f32.mrb[29].mxu0  ;;  %v842_v17 = vpop.f32.mrb[29].mxu1 }
 0x13c   : > { %1083 = vst.msk [vmem:[%s1635_s29 + $0xd0] sm:$0xff] %vm313_vm0, %v1051_v4  ;;  %v1052_v13 = vmax.f32 %v1020_v6, 0.0  ;;  %v927_v18 = vld [vmem:[#allocation2 + $0x60] sm:$0xff]  ;;  %v779_v20 = vpop.f32.mrb[30].mxu0  ;;  %v843_v21 = vpop.f32.mrb[30].mxu1 }
 0x13d   : > { %v943_v19 = vld [vmem:[#allocation2 + $0xe0] sm:$0xff]  ;;  %1068 = vst.msk [vmem:[%s1635_s29 + $0x58] sm:$0xff] %vm313_vm0, %v1036_v11  ;;  %v966_v22 = vmul.f32 %v1613_v2, %v927_v18  ;;  %894 = vst.msk [vmem:[#allocation2 + $0x70] sm:$0xff] %vm313_vm0, %v861_v14  ;;  %v862_v24 = vadd.f32 %v779_v20, %v361_v9  ;;  %v878_v25 = vadd.f32 %v843_v21, %v377_v10  ;;  %v781_v26 = vpop.f32.mrb[31].mxu0  ;;  %v845_v27 = vpop.f32.mrb[31].mxu1 }
 0x13e   : > { %1084 = vst.msk [vmem:[%s1635_s29 + $0xd8] sm:$0xff] %vm313_vm0, %v1052_v13  ;;  %v982_v23 = vmul.f32 %v1613_v2, %v943_v19  ;;  %910 = vst.msk [vmem:[#allocation2 + $0xf0] sm:$0xff] %vm313_vm0, %v877_v15  ;;  %v928_v28 = vld [vmem:[#allocation2 + $0x68] sm:$0xff] }
 0x13f   : > { %v944_v29 = vld [vmem:[#allocation2 + $0xe8] sm:$0xff]  ;;  %v1005_v30 = vadd.f32 %v1618_v12, %v966_v22  ;;  %v967_v32 = vmul.f32 %v1613_v2, %v928_v28  ;;  %895 = vst.msk [vmem:[#allocation2 + $0x78] sm:$0xff] %vm313_vm0, %v862_v24  ;;  %911 = vst.msk [vmem:[#allocation2 + $0xf8] sm:$0xff] %vm313_vm0, %v878_v25 }
 0x140   : > { %v1021_v31 = vadd.f32 %v1618_v12, %v982_v23  ;;  %v983_v33 = vmul.f32 %v1613_v2, %v944_v29 }
 0x141   : > { %v1037_v34 = vmax.f32 %v1005_v30, 0.0  ;;  %v1006_v36 = vadd.f32 %v1618_v12, %v967_v32 }
 0x142   : > { %v1053_v35 = vmax.f32 %v1021_v31, 0.0  ;;  %v1022_v37 = vadd.f32 %v1618_v12, %v983_v33 }
 0x143   : > { %1069 = vst.msk [vmem:[%s1635_s29 + $0x60] sm:$0xff] %vm313_vm0, %v1037_v34  ;;  %v1038_v38 = vmax.f32 %v1006_v36, 0.0 }
 0x144   : > { %1085 = vst.msk [vmem:[%s1635_s29 + $0xe0] sm:$0xff] %vm313_vm0, %v1053_v35  ;;  %v1054_v39 = vmax.f32 %v1022_v37, 0.0  ;;  %v929_v40 = vld [vmem:[#allocation2 + $0x70] sm:$0xff] }
 0x145   : > { %v945_v41 = vld [vmem:[#allocation2 + $0xf0] sm:$0xff]  ;;  %1070 = vst.msk [vmem:[%s1635_s29 + $0x68] sm:$0xff] %vm313_vm0, %v1038_v38  ;;  %v968_v42 = vmul.f32 %v1613_v2, %v929_v40 }
 0x146   : > { %1086 = vst.msk [vmem:[%s1635_s29 + $0xe8] sm:$0xff] %vm313_vm0, %v1054_v39  ;;  %v984_v43 = vmul.f32 %v1613_v2, %v945_v41  ;;  %v930_v44 = vld [vmem:[#allocation2 + $0x78] sm:$0xff] }
 0x147   : > { %v946_v45 = vld [vmem:[#allocation2 + $0xf8] sm:$0xff]  ;;  %v1007_v46 = vadd.f32 %v1618_v12, %v968_v42  ;;  %v969_v48 = vmul.f32 %v1613_v2, %v930_v44 }
 0x148   : > { %v1023_v47 = vadd.f32 %v1618_v12, %v984_v43  ;;  %v985_v49 = vmul.f32 %v1613_v2, %v946_v45 }
 0x149   : > { %v1039_v50 = vmax.f32 %v1007_v46, 0.0  ;;  %v1008_v52 = vadd.f32 %v1618_v12, %v969_v48 }
 0x14a   : > { %v1055_v51 = vmax.f32 %v1023_v47, 0.0  ;;  %v1024_v53 = vadd.f32 %v1618_v12, %v985_v49 }
 0x14b   : > { %1071 = vst.msk [vmem:[%s1635_s29 + $0x70] sm:$0xff] %vm313_vm0, %v1039_v50  ;;  %v1040_v54 = vmax.f32 %v1008_v52, 0.0 }
 0x14c   : > { %1087 = vst.msk [vmem:[%s1635_s29 + $0xf0] sm:$0xff] %vm313_vm0, %v1055_v51  ;;  %v1056_v55 = vmax.f32 %v1024_v53, 0.0 }
 0x14d   : > { %1072 = vst.msk [vmem:[%s1635_s29 + $0x78] sm:$0xff] %vm313_vm0, %v1040_v54 }
 0x14e   : > { %1088 = vst.msk [vmem:[%s1635_s29 + $0xf8] sm:$0xff] %vm313_vm0, %v1056_v55 }
 0x14f PF: > { %s14_s17 = sadd.s32 1, %s1418_s17   ;;  %s1797_s15 = smov %s1414_s16 }
 0x150   : > { %p11_p5 = scmp.ge.s32.totalorder %s14_s17, 4   ;;  %s1798_s16 = smov %s1800_s18 }
 0x152   :  { %13 = sbr.rel (!%p11_p5) target bundleno = 2 (0x2), region = 83 }

// kernel: resnet18_forward.24
= control target key start
LH: loop header
LB: loop body
LE: loop exit
PB: predicated region body
PF: predicated region fallthrough
CT: control target
= control target key end

     0   :  { %vm22_vm0 = vcmask 523264   ;;  %s1827_s1 = inlined_call_operand.vmem [shape: bf16[576,64], index: 1, kind: input, shape index: {}]   ;;  %s1828_s0 = inlined_call_operand.vmem [shape: bf16[128,576], index: 0, kind: input, shape index: {}]   ;;  %s1829_s2 = inlined_call_operand.vmem [shape: f32[1,64], index: 2, kind: input, shape index: {}]   ;;  %s1830_s3 = inlined_call_operand.vmem [shape: f32[1,64], index: 3, kind: input, shape index: {}]   ;;  %s1831_s4 = inlined_call_operand.vmem [shape: f32[128,64], index: 4, kind: output, shape index: {}]  }
   0x1   :  { %v1299_v0 = vld [vmem:[%s1827_s1 + $0x40] sm:$0xff]   ;;  %v1303_v4 = vld [vmem:[%s1827_s1 + $0x48] sm:$0xff]   ;;  %v1307_v8 = vld [vmem:[%s1827_s1 + $0x50] sm:$0xff]  }
   0x2   :  { %v1300_v1 = vld [vmem:[%s1827_s1 + $0xc0] sm:$0xff]   ;;  %1126 = vmatprep.subr.bf16.mxu0 %v1299_v0  ;;  %v1304_v5 = vld [vmem:[%s1827_s1 + $0xc8] sm:$0xff]   ;;  %v1308_v9 = vld [vmem:[%s1827_s1 + $0xd0] sm:$0xff]  }
   0x3   :  { %v1301_v2 = vld [vmem:[%s1827_s1] sm:$0xff]   ;;  %1190 = vmatprep.subr.bf16.mxu1 %v1300_v1  ;;  %v1305_v6 = vld [vmem:[%s1827_s1 + $0x8] sm:$0xff]   ;;  %v1309_v10 = vld [vmem:[%s1827_s1 + $0x10] sm:$0xff]  }
   0x4   :  { %v1302_v3 = vld [vmem:[%s1827_s1 + $0x80] sm:$0xff]   ;;  %1127 = vmatpush3.bf16.msra.mxu0 %v1301_v2  ;;  %v1306_v7 = vld [vmem:[%s1827_s1 + $0x88] sm:$0xff]   ;;  %v1310_v11 = vld [vmem:[%s1827_s1 + $0x90] sm:$0xff]  }
   0x5   :  { %1191 = vmatpush3.bf16.msra.mxu1 %v1302_v3  ;;  %1128 = vmatprep.subr.bf16.mxu0 %v1303_v4  ;;  %v1311_v12 = vld [vmem:[%s1827_s1 + $0x58] sm:$0xff]   ;;  %v1315_v16 = vld [vmem:[%s1827_s1 + $0x60] sm:$0xff]   ;;  %v1319_v20 = vld [vmem:[%s1827_s1 + $0x68] sm:$0xff]  }
   0x6   :  { %1192 = vmatprep.subr.bf16.mxu1 %v1304_v5  ;;  %v1312_v13 = vld [vmem:[%s1827_s1 + $0xd8] sm:$0xff]   ;;  %v1316_v17 = vld [vmem:[%s1827_s1 + $0xe0] sm:$0xff]   ;;  %v1320_v21 = vld [vmem:[%s1827_s1 + $0xe8] sm:$0xff]  }
   0x7   :  { %v1313_v14 = vld [vmem:[%s1827_s1 + $0x18] sm:$0xff]   ;;  %v1317_v18 = vld [vmem:[%s1827_s1 + $0x20] sm:$0xff]   ;;  %v1321_v22 = vld [vmem:[%s1827_s1 + $0x28] sm:$0xff]  }
   0x8   :  { %1129 = vmatpush3.bf16.msra.mxu0 %v1305_v6  ;;  %v1314_v15 = vld [vmem:[%s1827_s1 + $0x98] sm:$0xff]   ;;  %v1318_v19 = vld [vmem:[%s1827_s1 + $0xa0] sm:$0xff]   ;;  %v1322_v23 = vld [vmem:[%s1827_s1 + $0xa8] sm:$0xff]  }
   0x9   :  { %1193 = vmatpush3.bf16.msra.mxu1 %v1306_v7  ;;  %1130 = vmatprep.subr.bf16.mxu0 %v1307_v8  ;;  %v1323_v24 = vld [vmem:[%s1827_s1 + $0x70] sm:$0xff]   ;;  %v1327_v28 = vld [vmem:[%s1827_s1 + $0x78] sm:$0xff]   ;;  %v1336_v35 = vld [vmem:[%s1828_s0 + $0xc] ss:$20 sps:$4 sm:$0xff]  }
   0xa   :  { %1194 = vmatprep.subr.bf16.mxu1 %v1308_v9  ;;  %v1324_v25 = vld [vmem:[%s1827_s1 + $0xf0] sm:$0xff]   ;;  %v1328_v29 = vld [vmem:[%s1827_s1 + $0xf8] sm:$0xff]   ;;  %v1337_v36 = vld [vmem:[%s1827_s1 + $0x100] sm:$0xff]   ;;  %745 = vmatprep.mubr.bf16.mxu1 %v1336_v35 }
   0xb   :  { %v1325_v26 = vld [vmem:[%s1827_s1 + $0x30] sm:$0xff]   ;;  %v1329_v30 = vld [vmem:[%s1827_s1 + $0x38] sm:$0xff]   ;;  %v1338_v37 = vld [vmem:[%s1828_s0 + $0x2c] ss:$20 sps:$4 sm:$0xff]  }
   0xc   :  { %1131 = vmatpush3.bf16.msra.mxu0 %v1309_v10  ;;  %v1326_v27 = vld [vmem:[%s1827_s1 + $0xb0] sm:$0xff]   ;;  %v1330_v31 = vld [vmem:[%s1827_s1 + $0xb8] sm:$0xff]   ;;  %v1350_v42 = vld [vmem:[%s1827_s1 + $0x108] sm:$0xff]  }
   0xd   :  { %1195 = vmatpush3.bf16.msra.mxu1 %v1310_v11  ;;  %1132 = vmatprep.subr.bf16.mxu0 %v1311_v12  ;;  %v1331_v32 = vld [vmem:[%s1828_s0] ss:$20 sps:$4 sm:$0xff]   ;;  %v1333_v33 = vld [vmem:[%s1828_s0 + $0x4] ss:$20 sps:$4 sm:$0xff]   ;;  %v1334_v34 = vld [vmem:[%s1828_s0 + $0x8] ss:$20 sps:$4 sm:$0xff]  }
   0xe   :  { %1196 = vmatprep.subr.bf16.mxu1 %v1312_v13  ;;  %648 = vmatprep.mubr.bf16.mxu0 %v1333_v33  ;;  %v1340_v38 = vld [vmem:[%s1828_s0 + $0x34] ss:$20 sps:$4 sm:$0xff]   ;;  %v1343_v40 = vld [vmem:[%s1828_s0 + $0x30] ss:$20 sps:$4 sm:$0xff]   ;;  %v1349_v45 = vld [vmem:[%s1828_s0 + $0x58] ss:$20 sps:$4 sm:$0xff]  }
   0xf   :  { %v1342_v39 = vld [vmem:[%s1828_s0 + $0x28] ss:$20 sps:$4 sm:$0xff]   ;;  %v1348_v44 = vld [vmem:[%s1828_s0 + $0x50] ss:$20 sps:$4 sm:$0xff]   ;;  %v1355_v50 = vld [vmem:[%s1828_s0 + $0x78] ss:$20 sps:$4 sm:$0xff]  }
  0x10   :  { %1133 = vmatpush3.bf16.msra.mxu0 %v1313_v14  ;;  %v1344_v41 = vld [vmem:[%s1828_s0 + $0x54] ss:$20 sps:$4 sm:$0xff]   ;;  %v1346_v43 = vld [vmem:[%s1828_s0 + $0x5c] ss:$20 sps:$4 sm:$0xff]   ;;  %v1353_v48 = vld [vmem:[%s1828_s0 + $0x84] ss:$20 sps:$4 sm:$0xff]  }
  0x11   :  { %1197 = vmatpush3.bf16.msra.mxu1 %v1314_v15  ;;  %1134 = vmatprep.subr.bf16.mxu0 %v1315_v16  ;;  %v1363_v46 = vld [vmem:[%s1827_s1 + $0x110] sm:$0xff]   ;;  %v1376_v49 = vld [vmem:[%s1827_s1 + $0x118] sm:$0xff]   ;;  %v1359_v53 = vld [vmem:[%s1828_s0 + $0xac] ss:$20 sps:$4 sm:$0xff]   ;;  %v1391_v12 = vmov 0.0  }
  0x12   :  { %1198 = vmatprep.subr.bf16.mxu1 %v1316_v17  ;;  %v1351_v47 = vld [vmem:[%s1828_s0 + $0x7c] ss:$20 sps:$4 sm:$0xff]   ;;  %v1356_v51 = vld [vmem:[%s1828_s0 + $0x80] ss:$20 sps:$4 sm:$0xff]   ;;  %v1357_v52 = vld [vmem:[%s1828_s0 + $0xa4] ss:$20 sps:$4 sm:$0xff]  }
  0x13   :  { %v1361_v54 = vld [vmem:[%s1828_s0 + $0xa0] ss:$20 sps:$4 sm:$0xff]   ;;  %v1362_v55 = vld [vmem:[%s1828_s0 + $0xa8] ss:$20 sps:$4 sm:$0xff]   ;;  %v1369_v59 = vld [vmem:[%s1828_s0 + $0xd0] ss:$20 sps:$4 sm:$0xff]  }
  0x14   :  { %1135 = vmatpush3.bf16.msra.mxu0 %v1317_v18  ;;  %v1364_v56 = vld [vmem:[%s1828_s0 + $0xcc] ss:$20 sps:$4 sm:$0xff]   ;;  %v1366_v57 = vld [vmem:[%s1828_s0 + $0xd4] ss:$20 sps:$4 sm:$0xff]   ;;  %v1372_v61 = vld [vmem:[%s1828_s0 + $0xfc] ss:$20 sps:$4 sm:$0xff]  }
  0x15   :  { %1199 = vmatpush3.bf16.msra.mxu1 %v1318_v19  ;;  %1136 = vmatprep.subr.bf16.mxu0 %v1319_v20  ;;  %v1368_v58 = vld [vmem:[%s1828_s0 + $0xc8] ss:$20 sps:$4 sm:$0xff]   ;;  %v1374_v62 = vld [vmem:[%s1828_s0 + $0xf0] ss:$20 sps:$4 sm:$0xff]   ;;  %v1375_v63 = vld [vmem:[%s1828_s0 + $0xf8] ss:$20 sps:$4 sm:$0xff]  }
  0x16   :  { %1200 = vmatprep.subr.bf16.mxu1 %v1320_v21  ;;  %v1370_v60 = vld [vmem:[%s1828_s0 + $0xf4] ss:$20 sps:$4 sm:$0xff]   ;;  %v1377_v0 = vld [vmem:[%s1828_s0 + $0x11c] ss:$20 sps:$4 sm:$0xff]   ;;  %v1379_v1 = vld [vmem:[%s1828_s0 + $0x124] ss:$20 sps:$4 sm:$0xff]  }
  0x17   :  { %v1381_v2 = vld [vmem:[%s1828_s0 + $0x118] ss:$20 sps:$4 sm:$0xff]   ;;  %v1382_v3 = vld [vmem:[%s1828_s0 + $0x120] ss:$20 sps:$4 sm:$0xff]   ;;  %v1383_v4 = vld [vmem:[%s1828_s0 + $0x10] ss:$20 sps:$4 sm:$0xff]  }
  0x18   :  { %1137 = vmatpush3.bf16.msra.mxu0 %v1321_v22  ;;  %v1384_v5 = vld [vmem:[%s1828_s0 + $0xb0] ss:$20 sps:$4 sm:$0xff]   ;;  %v1385_v6 = vld [vmem:[%s1828_s0 + $0x38] ss:$20 sps:$4 sm:$0xff]   ;;  %v1387_v8 = vld [vmem:[%s1828_s0 + $0x60] ss:$20 sps:$4 sm:$0xff]  }
  0x19   :  { %1201 = vmatpush3.bf16.msra.mxu1 %v1322_v23  ;;  %1138 = vmatprep.subr.bf16.mxu0 %v1323_v24  ;;  %v1386_v7 = vld [vmem:[%s1828_s0 + $0xd8] ss:$20 sps:$4 sm:$0xff]   ;;  %v1388_v9 = vld [vmem:[%s1828_s0 + $0x100] ss:$20 sps:$4 sm:$0xff]   ;;  %v1389_v10 = vld [vmem:[%s1828_s0 + $0x88] ss:$20 sps:$4 sm:$0xff]  }
  0x1a   :  { %1202 = vmatprep.subr.bf16.mxu1 %v1324_v25  ;;  %v1390_v11 = vld [vmem:[%s1828_s0 + $0x128] ss:$20 sps:$4 sm:$0xff]   ;;  %25 = vst.msk [vmem:[#allocation2 + $0x10] sm:$0xff] %vm22_vm0, %v1391_v12  ;;  %23 = vst.msk [vmem:[#allocation2] sm:$0xff] %vm22_vm0, %v1391_v12 }
  0x1b   :  { %24 = vst.msk [vmem:[#allocation2 + $0x8] sm:$0xff] %vm22_vm0, %v1391_v12  ;;  %26 = vst.msk [vmem:[#allocation2 + $0x18] sm:$0xff] %vm22_vm0, %v1391_v12 }
  0x1c   :  { %1139 = vmatpush3.bf16.msra.mxu0 %v1325_v26  ;;  %27 = vst.msk [vmem:[#allocation2 + $0x20] sm:$0xff] %vm22_vm0, %v1391_v12  ;;  %28 = vst.msk [vmem:[#allocation2 + $0x28] sm:$0xff] %vm22_vm0, %v1391_v12 }
  0x1d   :  { %1203 = vmatpush3.bf16.msra.mxu1 %v1326_v27  ;;  %1140 = vmatprep.subr.bf16.mxu0 %v1327_v28  ;;  %29 = vst.msk [vmem:[#allocation2 + $0x30] sm:$0xff] %vm22_vm0, %v1391_v12  ;;  %30 = vst.msk [vmem:[#allocation2 + $0x38] sm:$0xff] %vm22_vm0, %v1391_v12 }
  0x1e   :  { %1204 = vmatprep.subr.bf16.mxu1 %v1328_v29  ;;  %31 = vst.msk [vmem:[#allocation2 + $0x40] sm:$0xff] %vm22_vm0, %v1391_v12  ;;  %32 = vst.msk [vmem:[#allocation2 + $0x48] sm:$0xff] %vm22_vm0, %v1391_v12 }
  0x1f   :  { %33 = vst.msk [vmem:[#allocation2 + $0x50] sm:$0xff] %vm22_vm0, %v1391_v12  ;;  %34 = vst.msk [vmem:[#allocation2 + $0x58] sm:$0xff] %vm22_vm0, %v1391_v12 }
  0x20   :  { %1141 = vmatpush3.bf16.msra.mxu0 %v1329_v30  ;;  %35 = vst.msk [vmem:[#allocation2 + $0x60] sm:$0xff] %vm22_vm0, %v1391_v12  ;;  %36 = vst.msk [vmem:[#allocation2 + $0x68] sm:$0xff] %vm22_vm0, %v1391_v12 }
  0x21   :  { %1205 = vmatpush3.bf16.msra.mxu1 %v1330_v31  ;;  %1266 = vmatprep.subr.bf16.mxu0 %v1337_v36  ;;  %37 = vst.msk [vmem:[#allocation2 + $0x70] sm:$0xff] %vm22_vm0, %v1391_v12  ;;  %38 = vst.msk [vmem:[#allocation2 + $0x78] sm:$0xff] %vm22_vm0, %v1391_v12 }
  0x22   :  { %1290 = vmatprep.subr.bf16.mxu1 %v1337_v36 }
  0x23   :  { %649 = vmatmul.mubr.bf16.vlgmr.msra.gmra.mrb[0].mxu0 %v1331_v32 }
  0x24   :  { %746 = vmatmul.mubr.bf16.vlgmr.msra.gmra.mrb[0].mxu1 %v1334_v34  ;;  %1267 = vmatpush3.bf16.msra.mxu0 %v1337_v36 }
  0x25   :  { %1294 = vmatpush3.bf16.msra.mxu1 %v1337_v36  ;;  %656 = vmatprep.mubr.bf16.mxu0 %v1338_v37 }
  0x26   :  { %753 = vmatprep.mubr.bf16.mxu1 %v1340_v38  ;;  %1268 = vmatprep.subr.bf16.mxu0 %v1350_v42 }
  0x27   :  { %1291 = vmatprep.subr.bf16.mxu1 %v1350_v42 }
  0x28   :  { %1269 = vmatpush3.bf16.msra.mxu0 %v1350_v42 }
  0x29   :  { %1295 = vmatpush3.bf16.msra.mxu1 %v1350_v42  ;;  %1270 = vmatprep.subr.bf16.mxu0 %v1363_v46 }
  0x2a   :  { %1292 = vmatprep.subr.bf16.mxu1 %v1363_v46 }
  0x2b   :  { %657 = vmatmul.mubr.bf16.gmra.mrb[4].mxu0 %v1342_v39 }
  0x2c   :  { %754 = vmatmul.mubr.bf16.gmra.mrb[4].mxu1 %v1343_v40  ;;  %664 = vmatprep.mubr.bf16.mxu0 %v1344_v41 }
  0x2d   :  { %761 = vmatprep.mubr.bf16.mxu1 %v1346_v43  ;;  %1271 = vmatpush3.bf16.msra.mxu0 %v1363_v46 }
  0x2e   :  { %1296 = vmatpush3.bf16.msra.mxu1 %v1363_v46  ;;  %1272 = vmatprep.subr.bf16.mxu0 %v1376_v49 }
  0x2f   :  { %1293 = vmatprep.subr.bf16.mxu1 %v1376_v49 }
  0x31   :  { %1273 = vmatpush3.bf16.msra.mxu0 %v1376_v49 }
  0x32   :  { %1297 = vmatpush3.bf16.msra.mxu1 %v1376_v49 }
  0x33   :  { %665 = vmatmul.mubr.bf16.gmra.mrb[8].mxu0 %v1348_v44 }
  0x34   :  { %762 = vmatmul.mubr.bf16.gmra.mrb[8].mxu1 %v1349_v45  ;;  %672 = vmatprep.mubr.bf16.mxu0 %v1351_v47 }
  0x35   :  { %769 = vmatprep.mubr.bf16.mxu1 %v1353_v48 }
  0x3b   :  { %673 = vmatmul.mubr.bf16.gmra.mrb[12].mxu0 %v1355_v50 }
  0x3c   :  { %770 = vmatmul.mubr.bf16.gmra.mrb[12].mxu1 %v1356_v51  ;;  %680 = vmatprep.mubr.bf16.mxu0 %v1357_v52 }
  0x3d   :  { %777 = vmatprep.mubr.bf16.mxu1 %v1359_v53 }
  0x43   :  { %681 = vmatmul.mubr.bf16.gmra.mrb[16].mxu0 %v1361_v54 }
  0x44   :  { %778 = vmatmul.mubr.bf16.gmra.mrb[16].mxu1 %v1362_v55  ;;  %688 = vmatprep.mubr.bf16.mxu0 %v1364_v56 }
  0x45   :  { %785 = vmatprep.mubr.bf16.mxu1 %v1366_v57 }
  0x4b   :  { %689 = vmatmul.mubr.bf16.gmra.mrb[20].mxu0 %v1368_v58 }
  0x4c   :  { %786 = vmatmul.mubr.bf16.gmra.mrb[20].mxu1 %v1369_v59  ;;  %696 = vmatprep.mubr.bf16.mxu0 %v1370_v60 }
  0x4d   :  { %793 = vmatprep.mubr.bf16.mxu1 %v1372_v61 }
  0x53   :  { %697 = vmatmul.mubr.bf16.gmra.mrb[24].mxu0 %v1374_v62 }
  0x54   :  { %794 = vmatmul.mubr.bf16.gmra.mrb[24].mxu1 %v1375_v63  ;;  %704 = vmatprep.mubr.bf16.mxu0 %v1377_v0 }
  0x55   :  { %801 = vmatprep.mubr.bf16.mxu1 %v1379_v1 }
  0x5b   :  { %705 = vmatmul.mubr.bf16.gmra.mrb[28].mxu0 %v1381_v2 }
  0x5c   :  { %802 = vmatmul.mubr.bf16.gmra.mrb[28].mxu1 %v1382_v3  ;;  %1274 = vmatprep.mubr.msk.bf16.mxu0 %vm22_vm0, %v1383_v4 }
  0x5d   :  { %1282 = vmatprep.mubr.msk.bf16.mxu1 %vm22_vm0, %v1384_v5 }
  0x63   :  { %1275 = vmatmul.mubr.msk.bf16.vlgmr.msra.gmra.mrb[32].mxu0 %vm22_vm0, %v1385_v6 }
  0x64   :  { %1283 = vmatmul.mubr.msk.bf16.vlgmr.msra.gmra.mrb[32].mxu1 %vm22_vm0, %v1386_v7  ;;  %1278 = vmatprep.mubr.msk.bf16.mxu0 %vm22_vm0, %v1387_v8 }
  0x65   :  { %1286 = vmatprep.mubr.msk.bf16.mxu1 %vm22_vm0, %v1388_v9 }
  0x6b   :  { %1279 = vmatmul.mubr.msk.bf16.gmra.mrb[36].mxu0 %vm22_vm0, %v1389_v10 }
  0x6c   :  { %1287 = vmatmul.mubr.msk.bf16.gmra.mrb[36].mxu1 %vm22_vm0, %v1390_v11 }
  0xf6   :  { %v1142_v13 = vpop.f32.mrb[0].mxu0 }
  0xf7   :  { %v1206_v14 = vpop.f32.mrb[0].mxu1  ;;  %v1143_v15 = vpop.f32.mrb[1].mxu0 }
  0xf8   :  { %v1144_v16 = vadd.f32 %v1143_v15, %v1142_v13  ;;  %v1207_v17 = vpop.f32.mrb[1].mxu1  ;;  %v1145_v18 = vpop.f32.mrb[2].mxu0 }
  0xf9   :  { %v1208_v19 = vadd.f32 %v1207_v17, %v1206_v14  ;;  %v1209_v20 = vpop.f32.mrb[2].mxu1  ;;  %v1146_v21 = vpop.f32.mrb[3].mxu0 }
  0xfa   :  { %v1147_v22 = vadd.f32 %v1146_v21, %v1145_v18  ;;  %v1210_v23 = vpop.f32.mrb[3].mxu1 }
  0xfb   :  { %v1211_v24 = vadd.f32 %v1210_v23, %v1209_v20  ;;  %v1669_v25 = vadd.f32 %v1208_v19, %v1144_v16 }
  0xfd   :  { %v1671_v26 = vadd.f32 %v1211_v24, %v1147_v22 }
  0xfe   :  { %v1148_v27 = vpop.f32.mrb[4].mxu0 }
  0xff   :  { %v1212_v28 = vpop.f32.mrb[4].mxu1  ;;  %v1149_v29 = vpop.f32.mrb[5].mxu0 }
 0x100   :  { %v1150_v30 = vadd.f32 %v1149_v29, %v1148_v27  ;;  %v1213_v31 = vpop.f32.mrb[5].mxu1  ;;  %v1151_v32 = vpop.f32.mrb[6].mxu0 }
 0x101   :  { %v1214_v33 = vadd.f32 %v1213_v31, %v1212_v28  ;;  %v1215_v34 = vpop.f32.mrb[6].mxu1  ;;  %v1152_v35 = vpop.f32.mrb[7].mxu0 }
 0x102   :  { %v1153_v36 = vadd.f32 %v1152_v35, %v1151_v32  ;;  %v1216_v37 = vpop.f32.mrb[7].mxu1 }
 0x103   :  { %v1217_v38 = vadd.f32 %v1216_v37, %v1215_v34  ;;  %v1673_v39 = vadd.f32 %v1214_v33, %v1150_v30 }
 0x105   :  { %v1675_v40 = vadd.f32 %v1217_v38, %v1153_v36 }
 0x106   :  { %v1154_v41 = vpop.f32.mrb[8].mxu0 }
 0x107   :  { %v1218_v42 = vpop.f32.mrb[8].mxu1  ;;  %v1155_v43 = vpop.f32.mrb[9].mxu0 }
 0x108   :  { %v1156_v44 = vadd.f32 %v1155_v43, %v1154_v41  ;;  %v1219_v45 = vpop.f32.mrb[9].mxu1  ;;  %v1157_v46 = vpop.f32.mrb[10].mxu0 }
 0x109   :  { %v1220_v47 = vadd.f32 %v1219_v45, %v1218_v42  ;;  %v1221_v48 = vpop.f32.mrb[10].mxu1  ;;  %v1158_v49 = vpop.f32.mrb[11].mxu0 }
 0x10a   :  { %v1159_v50 = vadd.f32 %v1158_v49, %v1157_v46  ;;  %v1222_v51 = vpop.f32.mrb[11].mxu1 }
 0x10b   :  { %v1223_v52 = vadd.f32 %v1222_v51, %v1221_v48  ;;  %v1677_v53 = vadd.f32 %v1220_v47, %v1156_v44 }
 0x10d   :  { %v1679_v54 = vadd.f32 %v1223_v52, %v1159_v50 }
 0x10e   :  { %v1160_v55 = vpop.f32.mrb[12].mxu0 }
 0x10f   :  { %v1224_v56 = vpop.f32.mrb[12].mxu1  ;;  %v1161_v57 = vpop.f32.mrb[13].mxu0 }
 0x110   :  { %v1162_v58 = vadd.f32 %v1161_v57, %v1160_v55  ;;  %v1225_v59 = vpop.f32.mrb[13].mxu1  ;;  %v1163_v60 = vpop.f32.mrb[14].mxu0 }
 0x111   :  { %v1226_v61 = vadd.f32 %v1225_v59, %v1224_v56  ;;  %v1227_v62 = vpop.f32.mrb[14].mxu1  ;;  %v1164_v63 = vpop.f32.mrb[15].mxu0 }
 0x112   :  { %v1165_v0 = vadd.f32 %v1164_v63, %v1163_v60  ;;  %v1228_v1 = vpop.f32.mrb[15].mxu1 }
 0x113   :  { %v1229_v2 = vadd.f32 %v1228_v1, %v1227_v62  ;;  %v1681_v3 = vadd.f32 %v1226_v61, %v1162_v58 }
 0x115   :  { %v1683_v4 = vadd.f32 %v1229_v2, %v1165_v0 }
 0x116   :  { %v1166_v5 = vpop.f32.mrb[16].mxu0 }
 0x117   :  { %v1230_v6 = vpop.f32.mrb[16].mxu1  ;;  %v1167_v7 = vpop.f32.mrb[17].mxu0 }
 0x118   :  { %v1168_v8 = vadd.f32 %v1167_v7, %v1166_v5  ;;  %v1231_v9 = vpop.f32.mrb[17].mxu1  ;;  %v1169_v10 = vpop.f32.mrb[18].mxu0  ;;  %v41_v5 = vld [vmem:[#allocation2 + $0x10] sm:$0xff] }
 0x119   :  { %v1232_v11 = vadd.f32 %v1231_v9, %v1230_v6  ;;  %v1233_v12 = vpop.f32.mrb[18].mxu1  ;;  %v1170_v13 = vpop.f32.mrb[19].mxu0 }
 0x11a   :  { %v1171_v14 = vadd.f32 %v1170_v13, %v1169_v10  ;;  %v1234_v15 = vpop.f32.mrb[19].mxu1  ;;  %v39_v10 = vld [vmem:[#allocation2] sm:$0xff] }
 0x11b   :  { %v1235_v16 = vadd.f32 %v1234_v15, %v1233_v12  ;;  %v780_v17 = vadd.f32 %v1232_v11, %v1168_v8  ;;  %v49_v8 = vld [vmem:[#allocation2 + $0x50] sm:$0xff] }
 0x11d   :  { %v1685_v18 = vadd.f32 %v1235_v16, %v1171_v14  ;;  %v47_v14 = vld [vmem:[#allocation2 + $0x40] sm:$0xff]  ;;  %v42_v16 = vld [vmem:[#allocation2 + $0x18] sm:$0xff] }
 0x11e   :  { %v1172_v19 = vpop.f32.mrb[20].mxu0 }
 0x11f   :  { %v1236_v20 = vpop.f32.mrb[20].mxu1  ;;  %v1173_v21 = vpop.f32.mrb[21].mxu0 }
 0x120   :  { %v1174_v22 = vadd.f32 %v1173_v21, %v1172_v19  ;;  %v1237_v23 = vpop.f32.mrb[21].mxu1  ;;  %v1175_v24 = vpop.f32.mrb[22].mxu0 }
 0x121   :  { %v1238_v27 = vadd.f32 %v1237_v23, %v1236_v20  ;;  %v1239_v28 = vpop.f32.mrb[22].mxu1  ;;  %v1176_v29 = vpop.f32.mrb[23].mxu0  ;;  %v50_v23 = vld [vmem:[#allocation2 + $0x58] sm:$0xff] }
 0x122   :  { %v1177_v30 = vadd.f32 %v1176_v29, %v1175_v24  ;;  %v1240_v31 = vpop.f32.mrb[23].mxu1 }
 0x123   :  { %v1241_v32 = vadd.f32 %v1240_v31, %v1239_v28  ;;  %v788_v33 = vadd.f32 %v1238_v27, %v1174_v22  ;;  %v40_v27 = vld [vmem:[#allocation2 + $0x8] sm:$0xff] }
 0x125   :  { %v791_v34 = vadd.f32 %v1241_v32, %v1177_v30  ;;  %v48_v32 = vld [vmem:[#allocation2 + $0x48] sm:$0xff] }
 0x126   :  { %v1178_v35 = vpop.f32.mrb[24].mxu0 }
 0x127   :  { %v1242_v36 = vpop.f32.mrb[24].mxu1  ;;  %v1179_v37 = vpop.f32.mrb[25].mxu0 }
 0x128   :  { %v1180_v38 = vadd.f32 %v1179_v37, %v1178_v35  ;;  %v1243_v41 = vpop.f32.mrb[25].mxu1  ;;  %v1181_v42 = vpop.f32.mrb[26].mxu0 }
 0x129   :  { %v1244_v43 = vadd.f32 %v1243_v41, %v1242_v36  ;;  %v1245_v44 = vpop.f32.mrb[26].mxu1  ;;  %v1182_v45 = vpop.f32.mrb[27].mxu0 }
 0x12a   :  { %v1183_v46 = vadd.f32 %v1182_v45, %v1181_v42  ;;  %v1246_v47 = vpop.f32.mrb[27].mxu1  ;;  %v43_v42 = vld [vmem:[#allocation2 + $0x20] sm:$0xff] }
 0x12b   :  { %v1247_v48 = vadd.f32 %v1246_v47, %v1245_v44  ;;  %v1687_v49 = vadd.f32 %v1244_v43, %v1180_v38  ;;  %v53_v38 = vld [vmem:[#allocation2 + $0x70] sm:$0xff]  ;;  %v1710_v44 = vld [vmem:[%s1829_s2] ss:$0 sm:$0xff] }
 0x12c   :  { %v51_v47 = vld [vmem:[#allocation2 + $0x60] sm:$0xff] }
 0x12d   :  { %v1689_v50 = vadd.f32 %v1247_v48, %v1183_v46 }
 0x12e   :  { %v1184_v51 = vpop.f32.mrb[28].mxu0 }
 0x12f   :  { %v1248_v52 = vpop.f32.mrb[28].mxu1  ;;  %v1185_v55 = vpop.f32.mrb[29].mxu0 }
 0x130   :  { %v1186_v56 = vadd.f32 %v1185_v55, %v1184_v51  ;;  %v1249_v57 = vpop.f32.mrb[29].mxu1  ;;  %v1187_v58 = vpop.f32.mrb[30].mxu0  ;;  %v46_v51 = vld [vmem:[#allocation2 + $0x38] sm:$0xff] }
 0x131   :  { %v1250_v59 = vadd.f32 %v1249_v57, %v1248_v52  ;;  %v1251_v60 = vpop.f32.mrb[30].mxu1  ;;  %v1188_v61 = vpop.f32.mrb[31].mxu0  ;;  %v54_v57 = vld [vmem:[#allocation2 + $0x78] sm:$0xff] }
 0x132   :  { %v1189_v62 = vadd.f32 %v1188_v61, %v1187_v58  ;;  %v1252_v63 = vpop.f32.mrb[31].mxu1 }
 0x133   :  { %v1253_v0 = vadd.f32 %v1252_v63, %v1251_v60  ;;  %v804_v1 = vadd.f32 %v1250_v59, %v1186_v56  ;;  %v44_v59 = vld [vmem:[#allocation2 + $0x28] sm:$0xff] }
 0x135   :  { %v1691_v2 = vadd.f32 %v1253_v0, %v1189_v62  ;;  %v1718_v62 = vld [vmem:[%s1830_s3] ss:$0 sm:$0xff] }
 0x136   :  { %v1276_v6 = vpop.f32.mrb[32].mxu0 }
 0x137   :  { %v853_v7 = vadd.f32 %v1276_v6, %v1673_v39  ;;  %v1284_v9 = vpop.f32.mrb[32].mxu1  ;;  %v844_v11 = vpop.f32.mrb[33].mxu0 }
 0x138   :  { %v885_v12 = vadd.f32 %v1284_v9, %v788_v33  ;;  %v845_v13 = vadd.f32 %v844_v11, %v1669_v25  ;;  %v876_v15 = vpop.f32.mrb[33].mxu1  ;;  %v1277_v19 = vpop.f32.mrb[34].mxu0 }
 0x139   :  { %v909_v20 = vadd.f32 %v853_v7, %v41_v5  ;;  %v877_v21 = vadd.f32 %v876_v15, %v780_v17  ;;  %v856_v22 = vadd.f32 %v1277_v19, %v1675_v40  ;;  %v1285_v24 = vpop.f32.mrb[34].mxu1  ;;  %v847_v28 = vpop.f32.mrb[35].mxu0  ;;  %v52_v5 = vld [vmem:[#allocation2 + $0x68] sm:$0xff] }
 0x13a   :  { %v917_v39 = vadd.f32 %v885_v12, %v49_v8  ;;  %v907_v29 = vadd.f32 %v845_v13, %v39_v10  ;;  %v888_v30 = vadd.f32 %v1285_v24, %v791_v34  ;;  %v848_v31 = vadd.f32 %v847_v28, %v1671_v26  ;;  %v879_v33 = vpop.f32.mrb[35].mxu1  ;;  %v45_v26 = vld [vmem:[#allocation2 + $0x30] sm:$0xff] }
 0x13b   :  { %925 = vst.msk [vmem:[#allocation2 + $0x10] sm:$0xff] %vm22_vm0, %v909_v20  ;;  %v915_v25 = vadd.f32 %v877_v21, %v47_v14  ;;  %v910_v35 = vadd.f32 %v856_v22, %v42_v16  ;;  %v880_v36 = vadd.f32 %v879_v33, %v1685_v18 }
 0x13c   :  { %933 = vst.msk [vmem:[#allocation2 + $0x50] sm:$0xff] %vm22_vm0, %v917_v39  ;;  %923 = vst.msk [vmem:[#allocation2] sm:$0xff] %vm22_vm0, %v907_v29  ;;  %v918_v40 = vadd.f32 %v888_v30, %v50_v23  ;;  %v908_v17 = vadd.f32 %v848_v31, %v40_v27 }
 0x13d   :  { %931 = vst.msk [vmem:[#allocation2 + $0x40] sm:$0xff] %vm22_vm0, %v915_v25  ;;  %926 = vst.msk [vmem:[#allocation2 + $0x18] sm:$0xff] %vm22_vm0, %v910_v35  ;;  %v916_v34 = vadd.f32 %v880_v36, %v48_v32 }
 0x13e   :  { %934 = vst.msk [vmem:[#allocation2 + $0x58] sm:$0xff] %vm22_vm0, %v918_v40  ;;  %924 = vst.msk [vmem:[#allocation2 + $0x8] sm:$0xff] %vm22_vm0, %v908_v17  ;;  %v1280_v37 = vpop.f32.mrb[36].mxu0 }
 0x13f   :  { %932 = vst.msk [vmem:[#allocation2 + $0x48] sm:$0xff] %vm22_vm0, %v916_v34  ;;  %v869_v18 = vadd.f32 %v1280_v37, %v1681_v3  ;;  %v1288_v41 = vpop.f32.mrb[36].mxu1  ;;  %v860_v43 = vpop.f32.mrb[37].mxu0 }
 0x140   :  { %v901_v45 = vadd.f32 %v1288_v41, %v804_v1  ;;  %v861_v46 = vadd.f32 %v860_v43, %v1677_v53  ;;  %v892_v48 = vpop.f32.mrb[37].mxu1  ;;  %v1281_v52 = vpop.f32.mrb[38].mxu0 }
 0x141   :  { %v913_v55 = vadd.f32 %v869_v18, %v45_v26  ;;  %v893_v56 = vadd.f32 %v892_v48, %v1687_v49  ;;  %v872_v3 = vadd.f32 %v1281_v52, %v1683_v4  ;;  %v1289_v58 = vpop.f32.mrb[38].mxu1  ;;  %v863_v60 = vpop.f32.mrb[39].mxu0 }
 0x142   :  { %v944_v61 = vld [vmem:[#allocation2 + $0x10] sm:$0xff]  ;;  %v921_v53 = vadd.f32 %v901_v45, %v53_v38  ;;  %v911_v63 = vadd.f32 %v861_v46, %v43_v42  ;;  %v904_v0 = vadd.f32 %v1289_v58, %v1691_v2  ;;  %v864_v1 = vadd.f32 %v863_v60, %v1679_v54  ;;  %v895_v49 = vpop.f32.mrb[39].mxu1 }
 0x143   :  { %v967_v4 = vmul.f32 %v1710_v44, %v944_v61  ;;  %v952_v6 = vld [vmem:[#allocation2 + $0x50] sm:$0xff]  ;;  %v942_v7 = vld [vmem:[#allocation2] sm:$0xff]  ;;  %929 = vst.msk [vmem:[#allocation2 + $0x30] sm:$0xff] %vm22_vm0, %v913_v55  ;;  %v919_v8 = vadd.f32 %v893_v56, %v51_v47  ;;  %v914_v9 = vadd.f32 %v872_v3, %v46_v51  ;;  %v896_v10 = vadd.f32 %v895_v49, %v1689_v50 }
 0x144   :  { %v975_v11 = vmul.f32 %v1710_v44, %v952_v6  ;;  %v965_v12 = vmul.f32 %v1710_v44, %v942_v7  ;;  %v950_v13 = vld [vmem:[#allocation2 + $0x40] sm:$0xff]  ;;  %v945_v2 = vld [vmem:[#allocation2 + $0x18] sm:$0xff]  ;;  %937 = vst.msk [vmem:[#allocation2 + $0x70] sm:$0xff] %vm22_vm0, %v921_v53  ;;  %927 = vst.msk [vmem:[#allocation2 + $0x20] sm:$0xff] %vm22_vm0, %v911_v63  ;;  %v922_v54 = vadd.f32 %v904_v0, %v54_v57 }
 0x145   :  { %v912_v14 = vadd.f32 %v864_v1, %v44_v59  ;;  %v990_v15 = vadd.f32 %v1718_v62, %v967_v4  ;;  %v973_v16 = vmul.f32 %v1710_v44, %v950_v13  ;;  %v968_v19 = vmul.f32 %v1710_v44, %v945_v2  ;;  %v953_v20 = vld [vmem:[#allocation2 + $0x58] sm:$0xff]  ;;  %v943_v50 = vld [vmem:[#allocation2 + $0x8] sm:$0xff]  ;;  %935 = vst.msk [vmem:[#allocation2 + $0x60] sm:$0xff] %vm22_vm0, %v919_v8 }
 0x146   :  { %930 = vst.msk [vmem:[#allocation2 + $0x38] sm:$0xff] %vm22_vm0, %v914_v9  ;;  %v920_v21 = vadd.f32 %v896_v10, %v52_v5  ;;  %v998_v22 = vadd.f32 %v1718_v62, %v975_v11  ;;  %v988_v23 = vadd.f32 %v1718_v62, %v965_v12  ;;  %v976_v24 = vmul.f32 %v1710_v44, %v953_v20  ;;  %v951_v28 = vld [vmem:[#allocation2 + $0x48] sm:$0xff] }
 0x147   :  { %v966_v27 = vmul.f32 %v1710_v44, %v943_v50  ;;  %938 = vst.msk [vmem:[#allocation2 + $0x78] sm:$0xff] %vm22_vm0, %v922_v54  ;;  %928 = vst.msk [vmem:[#allocation2 + $0x28] sm:$0xff] %vm22_vm0, %v912_v14  ;;  %v1006_v39 = vmax.f32 %v990_v15, 0.0  ;;  %v996_v29 = vadd.f32 %v1718_v62, %v973_v16  ;;  %v991_v30 = vadd.f32 %v1718_v62, %v968_v19 }
 0x148   :  { %v974_v31 = vmul.f32 %v1710_v44, %v951_v28  ;;  %936 = vst.msk [vmem:[#allocation2 + $0x68] sm:$0xff] %vm22_vm0, %v920_v21  ;;  %v1014_v32 = vmax.f32 %v998_v22, 0.0  ;;  %v1004_v33 = vmax.f32 %v988_v23, 0.0  ;;  %v999_v25 = vadd.f32 %v1718_v62, %v976_v24 }
 0x149   :  { %v989_v35 = vadd.f32 %v1718_v62, %v966_v27  ;;  %1022 = vst.msk [vmem:[%s1831_s4 + $0x10] sm:$0xff] %vm22_vm0, %v1006_v39  ;;  %v1012_v36 = vmax.f32 %v996_v29, 0.0  ;;  %v1007_v40 = vmax.f32 %v991_v30, 0.0 }
 0x14a   :  { %v997_v17 = vadd.f32 %v1718_v62, %v974_v31  ;;  %1030 = vst.msk [vmem:[%s1831_s4 + $0x50] sm:$0xff] %vm22_vm0, %v1014_v32  ;;  %1020 = vst.msk [vmem:[%s1831_s4] sm:$0xff] %vm22_vm0, %v1004_v33  ;;  %v1015_v34 = vmax.f32 %v999_v25, 0.0  ;;  %v948_v37 = vld [vmem:[#allocation2 + $0x30] sm:$0xff] }
 0x14b   :  { %v1005_v26 = vmax.f32 %v989_v35, 0.0  ;;  %1028 = vst.msk [vmem:[%s1831_s4 + $0x40] sm:$0xff] %vm22_vm0, %v1012_v36  ;;  %1023 = vst.msk [vmem:[%s1831_s4 + $0x18] sm:$0xff] %vm22_vm0, %v1007_v40  ;;  %v971_v38 = vmul.f32 %v1710_v44, %v948_v37  ;;  %v956_v41 = vld [vmem:[#allocation2 + $0x70] sm:$0xff]  ;;  %v946_v42 = vld [vmem:[#allocation2 + $0x20] sm:$0xff] }
 0x14c   :  { %v1013_v18 = vmax.f32 %v997_v17, 0.0  ;;  %1031 = vst.msk [vmem:[%s1831_s4 + $0x58] sm:$0xff] %vm22_vm0, %v1015_v34  ;;  %v979_v43 = vmul.f32 %v1710_v44, %v956_v41  ;;  %v969_v45 = vmul.f32 %v1710_v44, %v946_v42  ;;  %v954_v46 = vld [vmem:[#allocation2 + $0x60] sm:$0xff] }
 0x14d   :  { %1021 = vst.msk [vmem:[%s1831_s4 + $0x8] sm:$0xff] %vm22_vm0, %v1005_v26  ;;  %v949_v47 = vld [vmem:[#allocation2 + $0x38] sm:$0xff]  ;;  %v994_v48 = vadd.f32 %v1718_v62, %v971_v38  ;;  %v977_v51 = vmul.f32 %v1710_v44, %v954_v46 }
 0x14e   :  { %1029 = vst.msk [vmem:[%s1831_s4 + $0x48] sm:$0xff] %vm22_vm0, %v1013_v18  ;;  %v972_v52 = vmul.f32 %v1710_v44, %v949_v47  ;;  %v957_v55 = vld [vmem:[#allocation2 + $0x78] sm:$0xff]  ;;  %v947_v56 = vld [vmem:[#allocation2 + $0x28] sm:$0xff]  ;;  %v1002_v3 = vadd.f32 %v1718_v62, %v979_v43  ;;  %v992_v57 = vadd.f32 %v1718_v62, %v969_v45 }
 0x14f   :  { %v980_v58 = vmul.f32 %v1710_v44, %v957_v55  ;;  %v970_v59 = vmul.f32 %v1710_v44, %v947_v56  ;;  %v955_v60 = vld [vmem:[#allocation2 + $0x68] sm:$0xff]  ;;  %v1010_v61 = vmax.f32 %v994_v48, 0.0  ;;  %v1000_v53 = vadd.f32 %v1718_v62, %v977_v51 }
 0x150   :  { %v995_v63 = vadd.f32 %v1718_v62, %v972_v52  ;;  %v978_v0 = vmul.f32 %v1710_v44, %v955_v60  ;;  %v1018_v1 = vmax.f32 %v1002_v3, 0.0  ;;  %v1008_v5 = vmax.f32 %v992_v57, 0.0 }
 0x151   :  { %v1003_v49 = vadd.f32 %v1718_v62, %v980_v58  ;;  %v993_v4 = vadd.f32 %v1718_v62, %v970_v59  ;;  %1026 = vst.msk [vmem:[%s1831_s4 + $0x30] sm:$0xff] %vm22_vm0, %v1010_v61  ;;  %v1016_v6 = vmax.f32 %v1000_v53, 0.0 }
 0x152   :  { %v1011_v7 = vmax.f32 %v995_v63, 0.0  ;;  %v1001_v8 = vadd.f32 %v1718_v62, %v978_v0  ;;  %1034 = vst.msk [vmem:[%s1831_s4 + $0x70] sm:$0xff] %vm22_vm0, %v1018_v1  ;;  %1024 = vst.msk [vmem:[%s1831_s4 + $0x20] sm:$0xff] %vm22_vm0, %v1008_v5 }
 0x153   :  { %v1019_v44 = vmax.f32 %v1003_v49, 0.0  ;;  %v1009_v9 = vmax.f32 %v993_v4, 0.0  ;;  %1032 = vst.msk [vmem:[%s1831_s4 + $0x60] sm:$0xff] %vm22_vm0, %v1016_v6 }
 0x154   :  { %1027 = vst.msk [vmem:[%s1831_s4 + $0x38] sm:$0xff] %vm22_vm0, %v1011_v7  ;;  %v1017_v62 = vmax.f32 %v1001_v8, 0.0 }
 0x155   :  { %1035 = vst.msk [vmem:[%s1831_s4 + $0x78] sm:$0xff] %vm22_vm0, %v1019_v44  ;;  %1025 = vst.msk [vmem:[%s1831_s4 + $0x28] sm:$0xff] %vm22_vm0, %v1009_v9 }
 0x156   :  { %1033 = vst.msk [vmem:[%s1831_s4 + $0x68] sm:$0xff] %vm22_vm0, %v1017_v62 }

// kernel: resnet18_forward.25
= control target key start
LH: loop header
LB: loop body
LE: loop exit
PB: predicated region body
PF: predicated region fallthrough
CT: control target
= control target key end

     0   :  { %vm25_vm0 = vcmask 523264   ;;  %s1915_s1 = inlined_call_operand.vmem [shape: bf16[576,64], index: 1, kind: input, shape index: {}]   ;;  %s1916_s0 = inlined_call_operand.vmem [shape: bf16[128,576], index: 0, kind: input, shape index: {}]   ;;  %s1917_s2 = inlined_call_operand.vmem [shape: f32[1,64], index: 2, kind: input, shape index: {}]   ;;  %s1918_s3 = inlined_call_operand.vmem [shape: f32[1,64], index: 3, kind: input, shape index: {}]   ;;  %s1919_s4 = inlined_call_operand.vmem [shape: f32[128,64], index: 4, kind: input, shape index: {}]   ;;  %s1920_s5 = inlined_call_operand.vmem [shape: f32[128,64], index: 5, kind: output, shape index: {}]  }
   0x1   :  { %v1334_v0 = vld [vmem:[%s1915_s1 + $0x40] sm:$0xff]   ;;  %v1338_v4 = vld [vmem:[%s1915_s1 + $0x48] sm:$0xff]   ;;  %v1342_v8 = vld [vmem:[%s1915_s1 + $0x50] sm:$0xff]  }
   0x2   :  { %v1335_v1 = vld [vmem:[%s1915_s1 + $0xc0] sm:$0xff]   ;;  %1161 = vmatprep.subr.bf16.mxu0 %v1334_v0  ;;  %v1339_v5 = vld [vmem:[%s1915_s1 + $0xc8] sm:$0xff]   ;;  %v1343_v9 = vld [vmem:[%s1915_s1 + $0xd0] sm:$0xff]  }
   0x3   :  { %v1336_v2 = vld [vmem:[%s1915_s1] sm:$0xff]   ;;  %1225 = vmatprep.subr.bf16.mxu1 %v1335_v1  ;;  %v1340_v6 = vld [vmem:[%s1915_s1 + $0x8] sm:$0xff]   ;;  %v1344_v10 = vld [vmem:[%s1915_s1 + $0x10] sm:$0xff]  }
   0x4   :  { %v1337_v3 = vld [vmem:[%s1915_s1 + $0x80] sm:$0xff]   ;;  %1162 = vmatpush3.bf16.msra.mxu0 %v1336_v2  ;;  %v1341_v7 = vld [vmem:[%s1915_s1 + $0x88] sm:$0xff]   ;;  %v1345_v11 = vld [vmem:[%s1915_s1 + $0x90] sm:$0xff]  }
   0x5   :  { %1226 = vmatpush3.bf16.msra.mxu1 %v1337_v3  ;;  %1163 = vmatprep.subr.bf16.mxu0 %v1338_v4  ;;  %v1346_v12 = vld [vmem:[%s1915_s1 + $0x58] sm:$0xff]   ;;  %v1350_v16 = vld [vmem:[%s1915_s1 + $0x60] sm:$0xff]   ;;  %v1354_v20 = vld [vmem:[%s1915_s1 + $0x68] sm:$0xff]  }
   0x6   :  { %1227 = vmatprep.subr.bf16.mxu1 %v1339_v5  ;;  %v1347_v13 = vld [vmem:[%s1915_s1 + $0xd8] sm:$0xff]   ;;  %v1351_v17 = vld [vmem:[%s1915_s1 + $0xe0] sm:$0xff]   ;;  %v1355_v21 = vld [vmem:[%s1915_s1 + $0xe8] sm:$0xff]  }
   0x7   :  { %v1348_v14 = vld [vmem:[%s1915_s1 + $0x18] sm:$0xff]   ;;  %v1352_v18 = vld [vmem:[%s1915_s1 + $0x20] sm:$0xff]   ;;  %v1356_v22 = vld [vmem:[%s1915_s1 + $0x28] sm:$0xff]  }
   0x8   :  { %1164 = vmatpush3.bf16.msra.mxu0 %v1340_v6  ;;  %v1349_v15 = vld [vmem:[%s1915_s1 + $0x98] sm:$0xff]   ;;  %v1353_v19 = vld [vmem:[%s1915_s1 + $0xa0] sm:$0xff]   ;;  %v1357_v23 = vld [vmem:[%s1915_s1 + $0xa8] sm:$0xff]  }
   0x9   :  { %1228 = vmatpush3.bf16.msra.mxu1 %v1341_v7  ;;  %1165 = vmatprep.subr.bf16.mxu0 %v1342_v8  ;;  %v1358_v24 = vld [vmem:[%s1915_s1 + $0x70] sm:$0xff]   ;;  %v1362_v28 = vld [vmem:[%s1915_s1 + $0x78] sm:$0xff]   ;;  %v1371_v35 = vld [vmem:[%s1916_s0 + $0xc] ss:$20 sps:$4 sm:$0xff]  }
   0xa   :  { %1229 = vmatprep.subr.bf16.mxu1 %v1343_v9  ;;  %v1359_v25 = vld [vmem:[%s1915_s1 + $0xf0] sm:$0xff]   ;;  %v1363_v29 = vld [vmem:[%s1915_s1 + $0xf8] sm:$0xff]   ;;  %v1372_v36 = vld [vmem:[%s1915_s1 + $0x100] sm:$0xff]   ;;  %748 = vmatprep.mubr.bf16.mxu1 %v1371_v35 }
   0xb   :  { %v1360_v26 = vld [vmem:[%s1915_s1 + $0x30] sm:$0xff]   ;;  %v1364_v30 = vld [vmem:[%s1915_s1 + $0x38] sm:$0xff]   ;;  %v1373_v37 = vld [vmem:[%s1916_s0 + $0x2c] ss:$20 sps:$4 sm:$0xff]  }
   0xc   :  { %1166 = vmatpush3.bf16.msra.mxu0 %v1344_v10  ;;  %v1361_v27 = vld [vmem:[%s1915_s1 + $0xb0] sm:$0xff]   ;;  %v1365_v31 = vld [vmem:[%s1915_s1 + $0xb8] sm:$0xff]   ;;  %v1385_v42 = vld [vmem:[%s1915_s1 + $0x108] sm:$0xff]  }
   0xd   :  { %1230 = vmatpush3.bf16.msra.mxu1 %v1345_v11  ;;  %1167 = vmatprep.subr.bf16.mxu0 %v1346_v12  ;;  %v1366_v32 = vld [vmem:[%s1916_s0] ss:$20 sps:$4 sm:$0xff]   ;;  %v1368_v33 = vld [vmem:[%s1916_s0 + $0x4] ss:$20 sps:$4 sm:$0xff]   ;;  %v1369_v34 = vld [vmem:[%s1916_s0 + $0x8] ss:$20 sps:$4 sm:$0xff]  }
   0xe   :  { %1231 = vmatprep.subr.bf16.mxu1 %v1347_v13  ;;  %651 = vmatprep.mubr.bf16.mxu0 %v1368_v33  ;;  %v1375_v38 = vld [vmem:[%s1916_s0 + $0x34] ss:$20 sps:$4 sm:$0xff]   ;;  %v1378_v40 = vld [vmem:[%s1916_s0 + $0x30] ss:$20 sps:$4 sm:$0xff]   ;;  %v1384_v45 = vld [vmem:[%s1916_s0 + $0x58] ss:$20 sps:$4 sm:$0xff]  }
   0xf   :  { %v1377_v39 = vld [vmem:[%s1916_s0 + $0x28] ss:$20 sps:$4 sm:$0xff]   ;;  %v1383_v44 = vld [vmem:[%s1916_s0 + $0x50] ss:$20 sps:$4 sm:$0xff]   ;;  %v1390_v50 = vld [vmem:[%s1916_s0 + $0x78] ss:$20 sps:$4 sm:$0xff]  }
  0x10   :  { %1168 = vmatpush3.bf16.msra.mxu0 %v1348_v14  ;;  %v1379_v41 = vld [vmem:[%s1916_s0 + $0x54] ss:$20 sps:$4 sm:$0xff]   ;;  %v1381_v43 = vld [vmem:[%s1916_s0 + $0x5c] ss:$20 sps:$4 sm:$0xff]   ;;  %v1388_v48 = vld [vmem:[%s1916_s0 + $0x84] ss:$20 sps:$4 sm:$0xff]  }
  0x11   :  { %1232 = vmatpush3.bf16.msra.mxu1 %v1349_v15  ;;  %1169 = vmatprep.subr.bf16.mxu0 %v1350_v16  ;;  %v1398_v46 = vld [vmem:[%s1915_s1 + $0x110] sm:$0xff]   ;;  %v1411_v49 = vld [vmem:[%s1915_s1 + $0x118] sm:$0xff]   ;;  %v1394_v53 = vld [vmem:[%s1916_s0 + $0xac] ss:$20 sps:$4 sm:$0xff]   ;;  %v1426_v12 = vmov 0.0  }
  0x12   :  { %1233 = vmatprep.subr.bf16.mxu1 %v1351_v17  ;;  %v1386_v47 = vld [vmem:[%s1916_s0 + $0x7c] ss:$20 sps:$4 sm:$0xff]   ;;  %v1391_v51 = vld [vmem:[%s1916_s0 + $0x80] ss:$20 sps:$4 sm:$0xff]   ;;  %v1392_v52 = vld [vmem:[%s1916_s0 + $0xa4] ss:$20 sps:$4 sm:$0xff]  }
  0x13   :  { %v1396_v54 = vld [vmem:[%s1916_s0 + $0xa0] ss:$20 sps:$4 sm:$0xff]   ;;  %v1397_v55 = vld [vmem:[%s1916_s0 + $0xa8] ss:$20 sps:$4 sm:$0xff]   ;;  %v1404_v59 = vld [vmem:[%s1916_s0 + $0xd0] ss:$20 sps:$4 sm:$0xff]  }
  0x14   :  { %1170 = vmatpush3.bf16.msra.mxu0 %v1352_v18  ;;  %v1399_v56 = vld [vmem:[%s1916_s0 + $0xcc] ss:$20 sps:$4 sm:$0xff]   ;;  %v1401_v57 = vld [vmem:[%s1916_s0 + $0xd4] ss:$20 sps:$4 sm:$0xff]   ;;  %v1407_v61 = vld [vmem:[%s1916_s0 + $0xfc] ss:$20 sps:$4 sm:$0xff]  }
  0x15   :  { %1234 = vmatpush3.bf16.msra.mxu1 %v1353_v19  ;;  %1171 = vmatprep.subr.bf16.mxu0 %v1354_v20  ;;  %v1403_v58 = vld [vmem:[%s1916_s0 + $0xc8] ss:$20 sps:$4 sm:$0xff]   ;;  %v1409_v62 = vld [vmem:[%s1916_s0 + $0xf0] ss:$20 sps:$4 sm:$0xff]   ;;  %v1410_v63 = vld [vmem:[%s1916_s0 + $0xf8] ss:$20 sps:$4 sm:$0xff]  }
  0x16   :  { %1235 = vmatprep.subr.bf16.mxu1 %v1355_v21  ;;  %v1405_v60 = vld [vmem:[%s1916_s0 + $0xf4] ss:$20 sps:$4 sm:$0xff]   ;;  %v1412_v0 = vld [vmem:[%s1916_s0 + $0x11c] ss:$20 sps:$4 sm:$0xff]   ;;  %v1414_v1 = vld [vmem:[%s1916_s0 + $0x124] ss:$20 sps:$4 sm:$0xff]  }
  0x17   :  { %v1416_v2 = vld [vmem:[%s1916_s0 + $0x118] ss:$20 sps:$4 sm:$0xff]   ;;  %v1417_v3 = vld [vmem:[%s1916_s0 + $0x120] ss:$20 sps:$4 sm:$0xff]   ;;  %v1418_v4 = vld [vmem:[%s1916_s0 + $0x10] ss:$20 sps:$4 sm:$0xff]  }
  0x18   :  { %1172 = vmatpush3.bf16.msra.mxu0 %v1356_v22  ;;  %v1419_v5 = vld [vmem:[%s1916_s0 + $0xb0] ss:$20 sps:$4 sm:$0xff]   ;;  %v1420_v6 = vld [vmem:[%s1916_s0 + $0x38] ss:$20 sps:$4 sm:$0xff]   ;;  %v1422_v8 = vld [vmem:[%s1916_s0 + $0x60] ss:$20 sps:$4 sm:$0xff]  }
  0x19   :  { %1236 = vmatpush3.bf16.msra.mxu1 %v1357_v23  ;;  %1173 = vmatprep.subr.bf16.mxu0 %v1358_v24  ;;  %v1421_v7 = vld [vmem:[%s1916_s0 + $0xd8] ss:$20 sps:$4 sm:$0xff]   ;;  %v1423_v9 = vld [vmem:[%s1916_s0 + $0x100] ss:$20 sps:$4 sm:$0xff]   ;;  %v1424_v10 = vld [vmem:[%s1916_s0 + $0x88] ss:$20 sps:$4 sm:$0xff]  }
  0x1a   :  { %1237 = vmatprep.subr.bf16.mxu1 %v1359_v25  ;;  %v1425_v11 = vld [vmem:[%s1916_s0 + $0x128] ss:$20 sps:$4 sm:$0xff]   ;;  %28 = vst.msk [vmem:[#allocation2 + $0x10] sm:$0xff] %vm25_vm0, %v1426_v12  ;;  %26 = vst.msk [vmem:[#allocation2] sm:$0xff] %vm25_vm0, %v1426_v12 }
  0x1b   :  { %27 = vst.msk [vmem:[#allocation2 + $0x8] sm:$0xff] %vm25_vm0, %v1426_v12  ;;  %29 = vst.msk [vmem:[#allocation2 + $0x18] sm:$0xff] %vm25_vm0, %v1426_v12 }
  0x1c   :  { %1174 = vmatpush3.bf16.msra.mxu0 %v1360_v26  ;;  %30 = vst.msk [vmem:[#allocation2 + $0x20] sm:$0xff] %vm25_vm0, %v1426_v12  ;;  %31 = vst.msk [vmem:[#allocation2 + $0x28] sm:$0xff] %vm25_vm0, %v1426_v12 }
  0x1d   :  { %1238 = vmatpush3.bf16.msra.mxu1 %v1361_v27  ;;  %1175 = vmatprep.subr.bf16.mxu0 %v1362_v28  ;;  %32 = vst.msk [vmem:[#allocation2 + $0x30] sm:$0xff] %vm25_vm0, %v1426_v12  ;;  %33 = vst.msk [vmem:[#allocation2 + $0x38] sm:$0xff] %vm25_vm0, %v1426_v12 }
  0x1e   :  { %1239 = vmatprep.subr.bf16.mxu1 %v1363_v29  ;;  %34 = vst.msk [vmem:[#allocation2 + $0x40] sm:$0xff] %vm25_vm0, %v1426_v12  ;;  %35 = vst.msk [vmem:[#allocation2 + $0x48] sm:$0xff] %vm25_vm0, %v1426_v12 }
  0x1f   :  { %36 = vst.msk [vmem:[#allocation2 + $0x50] sm:$0xff] %vm25_vm0, %v1426_v12  ;;  %37 = vst.msk [vmem:[#allocation2 + $0x58] sm:$0xff] %vm25_vm0, %v1426_v12 }
  0x20   :  { %1176 = vmatpush3.bf16.msra.mxu0 %v1364_v30  ;;  %38 = vst.msk [vmem:[#allocation2 + $0x60] sm:$0xff] %vm25_vm0, %v1426_v12  ;;  %39 = vst.msk [vmem:[#allocation2 + $0x68] sm:$0xff] %vm25_vm0, %v1426_v12 }
  0x21   :  { %1240 = vmatpush3.bf16.msra.mxu1 %v1365_v31  ;;  %1301 = vmatprep.subr.bf16.mxu0 %v1372_v36  ;;  %40 = vst.msk [vmem:[#allocation2 + $0x70] sm:$0xff] %vm25_vm0, %v1426_v12  ;;  %41 = vst.msk [vmem:[#allocation2 + $0x78] sm:$0xff] %vm25_vm0, %v1426_v12 }
  0x22   :  { %1325 = vmatprep.subr.bf16.mxu1 %v1372_v36 }
  0x23   :  { %652 = vmatmul.mubr.bf16.vlgmr.msra.gmra.mrb[0].mxu0 %v1366_v32 }
  0x24   :  { %749 = vmatmul.mubr.bf16.vlgmr.msra.gmra.mrb[0].mxu1 %v1369_v34  ;;  %1302 = vmatpush3.bf16.msra.mxu0 %v1372_v36 }
  0x25   :  { %1329 = vmatpush3.bf16.msra.mxu1 %v1372_v36  ;;  %659 = vmatprep.mubr.bf16.mxu0 %v1373_v37 }
  0x26   :  { %756 = vmatprep.mubr.bf16.mxu1 %v1375_v38  ;;  %1303 = vmatprep.subr.bf16.mxu0 %v1385_v42 }
  0x27   :  { %1326 = vmatprep.subr.bf16.mxu1 %v1385_v42 }
  0x28   :  { %1304 = vmatpush3.bf16.msra.mxu0 %v1385_v42 }
  0x29   :  { %1330 = vmatpush3.bf16.msra.mxu1 %v1385_v42  ;;  %1305 = vmatprep.subr.bf16.mxu0 %v1398_v46 }
  0x2a   :  { %1327 = vmatprep.subr.bf16.mxu1 %v1398_v46 }
  0x2b   :  { %660 = vmatmul.mubr.bf16.gmra.mrb[4].mxu0 %v1377_v39 }
  0x2c   :  { %757 = vmatmul.mubr.bf16.gmra.mrb[4].mxu1 %v1378_v40  ;;  %667 = vmatprep.mubr.bf16.mxu0 %v1379_v41 }
  0x2d   :  { %764 = vmatprep.mubr.bf16.mxu1 %v1381_v43  ;;  %1306 = vmatpush3.bf16.msra.mxu0 %v1398_v46 }
  0x2e   :  { %1331 = vmatpush3.bf16.msra.mxu1 %v1398_v46  ;;  %1307 = vmatprep.subr.bf16.mxu0 %v1411_v49 }
  0x2f   :  { %1328 = vmatprep.subr.bf16.mxu1 %v1411_v49 }
  0x31   :  { %1308 = vmatpush3.bf16.msra.mxu0 %v1411_v49 }
  0x32   :  { %1332 = vmatpush3.bf16.msra.mxu1 %v1411_v49 }
  0x33   :  { %668 = vmatmul.mubr.bf16.gmra.mrb[8].mxu0 %v1383_v44 }
  0x34   :  { %765 = vmatmul.mubr.bf16.gmra.mrb[8].mxu1 %v1384_v45  ;;  %675 = vmatprep.mubr.bf16.mxu0 %v1386_v47 }
  0x35   :  { %772 = vmatprep.mubr.bf16.mxu1 %v1388_v48 }
  0x3b   :  { %676 = vmatmul.mubr.bf16.gmra.mrb[12].mxu0 %v1390_v50 }
  0x3c   :  { %773 = vmatmul.mubr.bf16.gmra.mrb[12].mxu1 %v1391_v51  ;;  %683 = vmatprep.mubr.bf16.mxu0 %v1392_v52 }
  0x3d   :  { %780 = vmatprep.mubr.bf16.mxu1 %v1394_v53 }
  0x43   :  { %684 = vmatmul.mubr.bf16.gmra.mrb[16].mxu0 %v1396_v54 }
  0x44   :  { %781 = vmatmul.mubr.bf16.gmra.mrb[16].mxu1 %v1397_v55  ;;  %691 = vmatprep.mubr.bf16.mxu0 %v1399_v56 }
  0x45   :  { %788 = vmatprep.mubr.bf16.mxu1 %v1401_v57 }
  0x4b   :  { %692 = vmatmul.mubr.bf16.gmra.mrb[20].mxu0 %v1403_v58 }
  0x4c   :  { %789 = vmatmul.mubr.bf16.gmra.mrb[20].mxu1 %v1404_v59  ;;  %699 = vmatprep.mubr.bf16.mxu0 %v1405_v60 }
  0x4d   :  { %796 = vmatprep.mubr.bf16.mxu1 %v1407_v61 }
  0x53   :  { %700 = vmatmul.mubr.bf16.gmra.mrb[24].mxu0 %v1409_v62 }
  0x54   :  { %797 = vmatmul.mubr.bf16.gmra.mrb[24].mxu1 %v1410_v63  ;;  %707 = vmatprep.mubr.bf16.mxu0 %v1412_v0 }
  0x55   :  { %804 = vmatprep.mubr.bf16.mxu1 %v1414_v1 }
  0x5b   :  { %708 = vmatmul.mubr.bf16.gmra.mrb[28].mxu0 %v1416_v2 }
  0x5c   :  { %805 = vmatmul.mubr.bf16.gmra.mrb[28].mxu1 %v1417_v3  ;;  %1309 = vmatprep.mubr.msk.bf16.mxu0 %vm25_vm0, %v1418_v4 }
  0x5d   :  { %1317 = vmatprep.mubr.msk.bf16.mxu1 %vm25_vm0, %v1419_v5 }
  0x63   :  { %1310 = vmatmul.mubr.msk.bf16.vlgmr.msra.gmra.mrb[32].mxu0 %vm25_vm0, %v1420_v6 }
  0x64   :  { %1318 = vmatmul.mubr.msk.bf16.vlgmr.msra.gmra.mrb[32].mxu1 %vm25_vm0, %v1421_v7  ;;  %1313 = vmatprep.mubr.msk.bf16.mxu0 %vm25_vm0, %v1422_v8 }
  0x65   :  { %1321 = vmatprep.mubr.msk.bf16.mxu1 %vm25_vm0, %v1423_v9 }
  0x6b   :  { %1314 = vmatmul.mubr.msk.bf16.gmra.mrb[36].mxu0 %vm25_vm0, %v1424_v10 }
  0x6c   :  { %1322 = vmatmul.mubr.msk.bf16.gmra.mrb[36].mxu1 %vm25_vm0, %v1425_v11 }
  0xf6   :  { %v1177_v13 = vpop.f32.mrb[0].mxu0 }
  0xf7   :  { %v1241_v14 = vpop.f32.mrb[0].mxu1  ;;  %v1178_v15 = vpop.f32.mrb[1].mxu0 }
  0xf8   :  { %v1179_v16 = vadd.f32 %v1178_v15, %v1177_v13  ;;  %v1242_v17 = vpop.f32.mrb[1].mxu1  ;;  %v1180_v18 = vpop.f32.mrb[2].mxu0 }
  0xf9   :  { %v1243_v19 = vadd.f32 %v1242_v17, %v1241_v14  ;;  %v1244_v20 = vpop.f32.mrb[2].mxu1  ;;  %v1181_v21 = vpop.f32.mrb[3].mxu0 }
  0xfa   :  { %v1182_v22 = vadd.f32 %v1181_v21, %v1180_v18  ;;  %v1245_v23 = vpop.f32.mrb[3].mxu1 }
  0xfb   :  { %v1246_v24 = vadd.f32 %v1245_v23, %v1244_v20  ;;  %v1709_v25 = vadd.f32 %v1243_v19, %v1179_v16 }
  0xfd   :  { %v1711_v26 = vadd.f32 %v1246_v24, %v1182_v22 }
  0xfe   :  { %v1183_v27 = vpop.f32.mrb[4].mxu0 }
  0xff   :  { %v1247_v28 = vpop.f32.mrb[4].mxu1  ;;  %v1184_v29 = vpop.f32.mrb[5].mxu0 }
 0x100   :  { %v1185_v30 = vadd.f32 %v1184_v29, %v1183_v27  ;;  %v1248_v31 = vpop.f32.mrb[5].mxu1  ;;  %v1186_v32 = vpop.f32.mrb[6].mxu0 }
 0x101   :  { %v1249_v33 = vadd.f32 %v1248_v31, %v1247_v28  ;;  %v1250_v34 = vpop.f32.mrb[6].mxu1  ;;  %v1187_v35 = vpop.f32.mrb[7].mxu0 }
 0x102   :  { %v1188_v36 = vadd.f32 %v1187_v35, %v1186_v32  ;;  %v1251_v37 = vpop.f32.mrb[7].mxu1 }
 0x103   :  { %v1252_v38 = vadd.f32 %v1251_v37, %v1250_v34  ;;  %v1713_v39 = vadd.f32 %v1249_v33, %v1185_v30 }
 0x105   :  { %v1715_v40 = vadd.f32 %v1252_v38, %v1188_v36 }
 0x106   :  { %v1189_v41 = vpop.f32.mrb[8].mxu0 }
 0x107   :  { %v1253_v42 = vpop.f32.mrb[8].mxu1  ;;  %v1190_v43 = vpop.f32.mrb[9].mxu0 }
 0x108   :  { %v1191_v44 = vadd.f32 %v1190_v43, %v1189_v41  ;;  %v1254_v45 = vpop.f32.mrb[9].mxu1  ;;  %v1192_v46 = vpop.f32.mrb[10].mxu0 }
 0x109   :  { %v1255_v47 = vadd.f32 %v1254_v45, %v1253_v42  ;;  %v1256_v48 = vpop.f32.mrb[10].mxu1  ;;  %v1193_v49 = vpop.f32.mrb[11].mxu0 }
 0x10a   :  { %v1194_v50 = vadd.f32 %v1193_v49, %v1192_v46  ;;  %v1257_v51 = vpop.f32.mrb[11].mxu1 }
 0x10b   :  { %v1258_v52 = vadd.f32 %v1257_v51, %v1256_v48  ;;  %v1717_v53 = vadd.f32 %v1255_v47, %v1191_v44 }
 0x10d   :  { %v1719_v54 = vadd.f32 %v1258_v52, %v1194_v50 }
 0x10e   :  { %v1195_v55 = vpop.f32.mrb[12].mxu0 }
 0x10f   :  { %v1259_v56 = vpop.f32.mrb[12].mxu1  ;;  %v1196_v57 = vpop.f32.mrb[13].mxu0 }
 0x110   :  { %v1197_v58 = vadd.f32 %v1196_v57, %v1195_v55  ;;  %v1260_v59 = vpop.f32.mrb[13].mxu1  ;;  %v1198_v60 = vpop.f32.mrb[14].mxu0 }
 0x111   :  { %v1261_v61 = vadd.f32 %v1260_v59, %v1259_v56  ;;  %v1262_v62 = vpop.f32.mrb[14].mxu1  ;;  %v1199_v63 = vpop.f32.mrb[15].mxu0 }
 0x112   :  { %v1200_v0 = vadd.f32 %v1199_v63, %v1198_v60  ;;  %v1263_v1 = vpop.f32.mrb[15].mxu1 }
 0x113   :  { %v1264_v2 = vadd.f32 %v1263_v1, %v1262_v62  ;;  %v1721_v3 = vadd.f32 %v1261_v61, %v1197_v58 }
 0x115   :  { %v1723_v4 = vadd.f32 %v1264_v2, %v1200_v0 }
 0x116   :  { %v1201_v5 = vpop.f32.mrb[16].mxu0 }
 0x117   :  { %v1265_v6 = vpop.f32.mrb[16].mxu1  ;;  %v1202_v7 = vpop.f32.mrb[17].mxu0 }
 0x118   :  { %v1203_v8 = vadd.f32 %v1202_v7, %v1201_v5  ;;  %v1266_v9 = vpop.f32.mrb[17].mxu1  ;;  %v1204_v10 = vpop.f32.mrb[18].mxu0  ;;  %v44_v5 = vld [vmem:[#allocation2 + $0x10] sm:$0xff] }
 0x119   :  { %v1267_v11 = vadd.f32 %v1266_v9, %v1265_v6  ;;  %v1268_v12 = vpop.f32.mrb[18].mxu1  ;;  %v1205_v13 = vpop.f32.mrb[19].mxu0 }
 0x11a   :  { %v1206_v14 = vadd.f32 %v1205_v13, %v1204_v10  ;;  %v1269_v15 = vpop.f32.mrb[19].mxu1  ;;  %v42_v10 = vld [vmem:[#allocation2] sm:$0xff] }
 0x11b   :  { %v1270_v16 = vadd.f32 %v1269_v15, %v1268_v12  ;;  %v783_v17 = vadd.f32 %v1267_v11, %v1203_v8  ;;  %v52_v8 = vld [vmem:[#allocation2 + $0x50] sm:$0xff] }
 0x11d   :  { %v1725_v18 = vadd.f32 %v1270_v16, %v1206_v14  ;;  %v50_v14 = vld [vmem:[#allocation2 + $0x40] sm:$0xff]  ;;  %v45_v16 = vld [vmem:[#allocation2 + $0x18] sm:$0xff] }
 0x11e   :  { %v1207_v19 = vpop.f32.mrb[20].mxu0 }
 0x11f   :  { %v1271_v20 = vpop.f32.mrb[20].mxu1  ;;  %v1208_v21 = vpop.f32.mrb[21].mxu0 }
 0x120   :  { %v1209_v22 = vadd.f32 %v1208_v21, %v1207_v19  ;;  %v1272_v23 = vpop.f32.mrb[21].mxu1  ;;  %v1210_v24 = vpop.f32.mrb[22].mxu0 }
 0x121   :  { %v1273_v27 = vadd.f32 %v1272_v23, %v1271_v20  ;;  %v1274_v28 = vpop.f32.mrb[22].mxu1  ;;  %v1211_v29 = vpop.f32.mrb[23].mxu0  ;;  %v53_v23 = vld [vmem:[#allocation2 + $0x58] sm:$0xff] }
 0x122   :  { %v1212_v30 = vadd.f32 %v1211_v29, %v1210_v24  ;;  %v1275_v31 = vpop.f32.mrb[23].mxu1 }
 0x123   :  { %v1276_v32 = vadd.f32 %v1275_v31, %v1274_v28  ;;  %v791_v33 = vadd.f32 %v1273_v27, %v1209_v22  ;;  %v43_v27 = vld [vmem:[#allocation2 + $0x8] sm:$0xff] }
 0x125   :  { %v794_v34 = vadd.f32 %v1276_v32, %v1212_v30  ;;  %v51_v32 = vld [vmem:[#allocation2 + $0x48] sm:$0xff] }
 0x126   :  { %v1213_v35 = vpop.f32.mrb[24].mxu0 }
 0x127   :  { %v1277_v36 = vpop.f32.mrb[24].mxu1  ;;  %v1214_v37 = vpop.f32.mrb[25].mxu0 }
 0x128   :  { %v1215_v38 = vadd.f32 %v1214_v37, %v1213_v35  ;;  %v1278_v41 = vpop.f32.mrb[25].mxu1  ;;  %v1216_v42 = vpop.f32.mrb[26].mxu0 }
 0x129   :  { %v1279_v43 = vadd.f32 %v1278_v41, %v1277_v36  ;;  %v1280_v44 = vpop.f32.mrb[26].mxu1  ;;  %v1217_v45 = vpop.f32.mrb[27].mxu0 }
 0x12a   :  { %v1218_v46 = vadd.f32 %v1217_v45, %v1216_v42  ;;  %v1281_v47 = vpop.f32.mrb[27].mxu1  ;;  %v46_v42 = vld [vmem:[#allocation2 + $0x20] sm:$0xff] }
 0x12b   :  { %v1282_v48 = vadd.f32 %v1281_v47, %v1280_v44  ;;  %v1727_v49 = vadd.f32 %v1279_v43, %v1215_v38  ;;  %v56_v38 = vld [vmem:[#allocation2 + $0x70] sm:$0xff]  ;;  %v1750_v44 = vld [vmem:[%s1917_s2] ss:$0 sm:$0xff] }
 0x12c   :  { %v54_v47 = vld [vmem:[#allocation2 + $0x60] sm:$0xff] }
 0x12d   :  { %v1729_v50 = vadd.f32 %v1282_v48, %v1218_v46 }
 0x12e   :  { %v1219_v51 = vpop.f32.mrb[28].mxu0 }
 0x12f   :  { %v1283_v52 = vpop.f32.mrb[28].mxu1  ;;  %v1220_v55 = vpop.f32.mrb[29].mxu0 }
 0x130   :  { %v1221_v56 = vadd.f32 %v1220_v55, %v1219_v51  ;;  %v1284_v57 = vpop.f32.mrb[29].mxu1  ;;  %v1222_v58 = vpop.f32.mrb[30].mxu0  ;;  %v49_v51 = vld [vmem:[#allocation2 + $0x38] sm:$0xff] }
 0x131   :  { %v1285_v59 = vadd.f32 %v1284_v57, %v1283_v52  ;;  %v1286_v60 = vpop.f32.mrb[30].mxu1  ;;  %v1223_v61 = vpop.f32.mrb[31].mxu0  ;;  %v57_v57 = vld [vmem:[#allocation2 + $0x78] sm:$0xff] }
 0x132   :  { %v1224_v62 = vadd.f32 %v1223_v61, %v1222_v58  ;;  %v1287_v63 = vpop.f32.mrb[31].mxu1 }
 0x133   :  { %v1288_v0 = vadd.f32 %v1287_v63, %v1286_v60  ;;  %v807_v1 = vadd.f32 %v1285_v59, %v1221_v56  ;;  %v47_v59 = vld [vmem:[#allocation2 + $0x28] sm:$0xff] }
 0x135   :  { %v1731_v2 = vadd.f32 %v1288_v0, %v1224_v62  ;;  %v1758_v62 = vld [vmem:[%s1918_s3] ss:$0 sm:$0xff] }
 0x136   :  { %v1311_v6 = vpop.f32.mrb[32].mxu0 }
 0x137   :  { %v856_v7 = vadd.f32 %v1311_v6, %v1713_v39  ;;  %v1319_v9 = vpop.f32.mrb[32].mxu1  ;;  %v847_v11 = vpop.f32.mrb[33].mxu0  ;;  %v1009_v6 = vld [vmem:[%s1919_s4 + $0x10] sm:$0xff] }
 0x138   :  { %v888_v12 = vadd.f32 %v1319_v9, %v791_v33  ;;  %v848_v13 = vadd.f32 %v847_v11, %v1709_v25  ;;  %v879_v15 = vpop.f32.mrb[33].mxu1  ;;  %v1312_v19 = vpop.f32.mrb[34].mxu0 }
 0x139   :  { %v912_v20 = vadd.f32 %v856_v7, %v44_v5  ;;  %v880_v21 = vadd.f32 %v879_v15, %v783_v17  ;;  %v859_v22 = vadd.f32 %v1312_v19, %v1715_v40  ;;  %v1320_v24 = vpop.f32.mrb[34].mxu1  ;;  %v850_v28 = vpop.f32.mrb[35].mxu0  ;;  %v55_v5 = vld [vmem:[#allocation2 + $0x68] sm:$0xff] }
 0x13a   :  { %v920_v39 = vadd.f32 %v888_v12, %v52_v8  ;;  %v910_v29 = vadd.f32 %v848_v13, %v42_v10  ;;  %v891_v30 = vadd.f32 %v1320_v24, %v794_v34  ;;  %v851_v31 = vadd.f32 %v850_v28, %v1711_v26  ;;  %v882_v33 = vpop.f32.mrb[35].mxu1  ;;  %v48_v26 = vld [vmem:[#allocation2 + $0x30] sm:$0xff] }
 0x13b   :  { %928 = vst.msk [vmem:[#allocation2 + $0x10] sm:$0xff] %vm25_vm0, %v912_v20  ;;  %v918_v25 = vadd.f32 %v880_v21, %v50_v14  ;;  %v913_v35 = vadd.f32 %v859_v22, %v45_v16  ;;  %v883_v36 = vadd.f32 %v882_v33, %v1725_v18 }
 0x13c   :  { %936 = vst.msk [vmem:[#allocation2 + $0x50] sm:$0xff] %vm25_vm0, %v920_v39  ;;  %926 = vst.msk [vmem:[#allocation2] sm:$0xff] %vm25_vm0, %v910_v29  ;;  %v921_v40 = vadd.f32 %v891_v30, %v53_v23  ;;  %v911_v17 = vadd.f32 %v851_v31, %v43_v27  ;;  %v1015_v39 = vld [vmem:[%s1919_s4 + $0x40] sm:$0xff]  ;;  %v1010_v29 = vld [vmem:[%s1919_s4 + $0x18] sm:$0xff] }
 0x13d   :  { %934 = vst.msk [vmem:[#allocation2 + $0x40] sm:$0xff] %vm25_vm0, %v918_v25  ;;  %929 = vst.msk [vmem:[#allocation2 + $0x18] sm:$0xff] %vm25_vm0, %v913_v35  ;;  %v919_v34 = vadd.f32 %v883_v36, %v51_v32  ;;  %v1018_v36 = vld [vmem:[%s1919_s4 + $0x58] sm:$0xff] }
 0x13e   :  { %937 = vst.msk [vmem:[#allocation2 + $0x58] sm:$0xff] %vm25_vm0, %v921_v40  ;;  %927 = vst.msk [vmem:[#allocation2 + $0x8] sm:$0xff] %vm25_vm0, %v911_v17  ;;  %v1315_v37 = vpop.f32.mrb[36].mxu0  ;;  %v1008_v40 = vld [vmem:[%s1919_s4 + $0x8] sm:$0xff] }
 0x13f   :  { %935 = vst.msk [vmem:[#allocation2 + $0x48] sm:$0xff] %vm25_vm0, %v919_v34  ;;  %v872_v18 = vadd.f32 %v1315_v37, %v1721_v3  ;;  %v1323_v41 = vpop.f32.mrb[36].mxu1  ;;  %v863_v43 = vpop.f32.mrb[37].mxu0 }
 0x140   :  { %v904_v45 = vadd.f32 %v1323_v41, %v807_v1  ;;  %v864_v46 = vadd.f32 %v863_v43, %v1717_v53  ;;  %v895_v48 = vpop.f32.mrb[37].mxu1  ;;  %v1316_v52 = vpop.f32.mrb[38].mxu0 }
 0x141   :  { %v916_v55 = vadd.f32 %v872_v18, %v48_v26  ;;  %v896_v56 = vadd.f32 %v895_v48, %v1727_v49  ;;  %v875_v3 = vadd.f32 %v1316_v52, %v1723_v4  ;;  %v1324_v58 = vpop.f32.mrb[38].mxu1  ;;  %v866_v60 = vpop.f32.mrb[39].mxu0 }
 0x142   :  { %v947_v61 = vld [vmem:[#allocation2 + $0x10] sm:$0xff]  ;;  %v924_v53 = vadd.f32 %v904_v45, %v56_v38  ;;  %v914_v63 = vadd.f32 %v864_v46, %v46_v42  ;;  %v907_v0 = vadd.f32 %v1324_v58, %v1731_v2  ;;  %v867_v1 = vadd.f32 %v866_v60, %v1719_v54  ;;  %v898_v49 = vpop.f32.mrb[39].mxu1  ;;  %v1016_v38 = vld [vmem:[%s1919_s4 + $0x48] sm:$0xff] }
 0x143   :  { %v970_v4 = vmul.f32 %v1750_v44, %v947_v61  ;;  %v955_v7 = vld [vmem:[#allocation2 + $0x50] sm:$0xff]  ;;  %v945_v8 = vld [vmem:[#allocation2] sm:$0xff]  ;;  %932 = vst.msk [vmem:[#allocation2 + $0x30] sm:$0xff] %vm25_vm0, %v916_v55  ;;  %v922_v9 = vadd.f32 %v896_v56, %v54_v47  ;;  %v917_v10 = vadd.f32 %v875_v3, %v49_v51  ;;  %v899_v11 = vadd.f32 %v898_v49, %v1729_v50 }
 0x144   :  { %v978_v2 = vmul.f32 %v1750_v44, %v955_v7  ;;  %v1017_v54 = vld [vmem:[%s1919_s4 + $0x50] sm:$0xff]  ;;  %v968_v12 = vmul.f32 %v1750_v44, %v945_v8  ;;  %v953_v13 = vld [vmem:[#allocation2 + $0x40] sm:$0xff]  ;;  %v948_v14 = vld [vmem:[#allocation2 + $0x18] sm:$0xff]  ;;  %940 = vst.msk [vmem:[#allocation2 + $0x70] sm:$0xff] %vm25_vm0, %v924_v53  ;;  %v925_v15 = vadd.f32 %v907_v0, %v57_v57  ;;  %v915_v16 = vadd.f32 %v867_v1, %v47_v59 }
 0x145   :  { %930 = vst.msk [vmem:[#allocation2 + $0x20] sm:$0xff] %vm25_vm0, %v914_v63  ;;  %v993_v19 = vadd.f32 %v1758_v62, %v970_v4  ;;  %v1007_v50 = vld [vmem:[%s1919_s4] sm:$0xff]  ;;  %v976_v20 = vmul.f32 %v1750_v44, %v953_v13  ;;  %v971_v21 = vmul.f32 %v1750_v44, %v948_v14  ;;  %v956_v22 = vld [vmem:[#allocation2 + $0x58] sm:$0xff]  ;;  %v946_v23 = vld [vmem:[#allocation2 + $0x8] sm:$0xff]  ;;  %v923_v24 = vadd.f32 %v899_v11, %v55_v5 }
 0x146   :  { %938 = vst.msk [vmem:[#allocation2 + $0x60] sm:$0xff] %vm25_vm0, %v922_v9  ;;  %933 = vst.msk [vmem:[#allocation2 + $0x38] sm:$0xff] %vm25_vm0, %v917_v10  ;;  %v1001_v27 = vadd.f32 %v1758_v62, %v978_v2  ;;  %v991_v28 = vadd.f32 %v1758_v62, %v968_v12  ;;  %v979_v30 = vmul.f32 %v1750_v44, %v956_v22  ;;  %v954_v32 = vld [vmem:[#allocation2 + $0x48] sm:$0xff]  ;;  %v1013_v58 = vld [vmem:[%s1919_s4 + $0x30] sm:$0xff] }
 0x147   :  { %v969_v31 = vmul.f32 %v1750_v44, %v946_v23  ;;  %941 = vst.msk [vmem:[#allocation2 + $0x78] sm:$0xff] %vm25_vm0, %v925_v15  ;;  %931 = vst.msk [vmem:[#allocation2 + $0x28] sm:$0xff] %vm25_vm0, %v915_v16  ;;  %v1025_v33 = vadd.f32 %v1009_v6, %v993_v19  ;;  %v999_v25 = vadd.f32 %v1758_v62, %v976_v20  ;;  %v1021_v0 = vld [vmem:[%s1919_s4 + $0x70] sm:$0xff]  ;;  %v1011_v7 = vld [vmem:[%s1919_s4 + $0x20] sm:$0xff] }
 0x148   :  { %v994_v35 = vadd.f32 %v1758_v62, %v971_v21  ;;  %v977_v17 = vmul.f32 %v1750_v44, %v954_v32  ;;  %939 = vst.msk [vmem:[#allocation2 + $0x68] sm:$0xff] %vm25_vm0, %v923_v24  ;;  %v1033_v34 = vadd.f32 %v1017_v54, %v1001_v27  ;;  %v1023_v26 = vadd.f32 %v1007_v50, %v991_v28  ;;  %v1019_v12 = vld [vmem:[%s1919_s4 + $0x60] sm:$0xff]  ;;  %v1014_v13 = vld [vmem:[%s1919_s4 + $0x38] sm:$0xff]  ;;  %v1012_v22 = vld [vmem:[%s1919_s4 + $0x28] sm:$0xff] }
 0x149   :  { %v1002_v37 = vadd.f32 %v1758_v62, %v979_v30  ;;  %v992_v18 = vadd.f32 %v1758_v62, %v969_v31  ;;  %v1041_v41 = vmax.f32 %v1025_v33, 0.0  ;;  %v1031_v42 = vadd.f32 %v1015_v39, %v999_v25  ;;  %v1022_v21 = vld [vmem:[%s1919_s4 + $0x78] sm:$0xff] }
 0x14a   :  { %v1026_v43 = vadd.f32 %v1010_v29, %v994_v35  ;;  %v1000_v45 = vadd.f32 %v1758_v62, %v977_v17  ;;  %v1049_v46 = vmax.f32 %v1033_v34, 0.0  ;;  %v1039_v47 = vmax.f32 %v1023_v26, 0.0  ;;  %v951_v52 = vld [vmem:[#allocation2 + $0x30] sm:$0xff]  ;;  %v1020_v29 = vld [vmem:[%s1919_s4 + $0x68] sm:$0xff] }
 0x14b   :  { %v1034_v48 = vadd.f32 %v1018_v36, %v1002_v37  ;;  %v1024_v51 = vadd.f32 %v1008_v40, %v992_v18  ;;  %1057 = vst.msk [vmem:[%s1920_s5 + $0x10] sm:$0xff] %vm25_vm0, %v1041_v41  ;;  %v1047_v55 = vmax.f32 %v1031_v42, 0.0  ;;  %v974_v57 = vmul.f32 %v1750_v44, %v951_v52  ;;  %v959_v59 = vld [vmem:[#allocation2 + $0x70] sm:$0xff] }
 0x14c   :  { %v1042_v56 = vmax.f32 %v1026_v43, 0.0  ;;  %v1032_v3 = vadd.f32 %v1016_v38, %v1000_v45  ;;  %v949_v60 = vld [vmem:[#allocation2 + $0x20] sm:$0xff]  ;;  %1065 = vst.msk [vmem:[%s1920_s5 + $0x50] sm:$0xff] %vm25_vm0, %v1049_v46  ;;  %1055 = vst.msk [vmem:[%s1920_s5] sm:$0xff] %vm25_vm0, %v1039_v47  ;;  %v982_v63 = vmul.f32 %v1750_v44, %v959_v59 }
 0x14d   :  { %v1050_v61 = vmax.f32 %v1034_v48, 0.0  ;;  %v1040_v53 = vmax.f32 %v1024_v51, 0.0  ;;  %v972_v1 = vmul.f32 %v1750_v44, %v949_v60  ;;  %v957_v5 = vld [vmem:[#allocation2 + $0x60] sm:$0xff]  ;;  %v952_v49 = vld [vmem:[#allocation2 + $0x38] sm:$0xff]  ;;  %1063 = vst.msk [vmem:[%s1920_s5 + $0x40] sm:$0xff] %vm25_vm0, %v1047_v55  ;;  %v997_v6 = vadd.f32 %v1758_v62, %v974_v57 }
 0x14e   :  { %1058 = vst.msk [vmem:[%s1920_s5 + $0x18] sm:$0xff] %vm25_vm0, %v1042_v56  ;;  %v1048_v4 = vmax.f32 %v1032_v3, 0.0  ;;  %v980_v8 = vmul.f32 %v1750_v44, %v957_v5  ;;  %v975_v9 = vmul.f32 %v1750_v44, %v952_v49  ;;  %v960_v10 = vld [vmem:[#allocation2 + $0x78] sm:$0xff]  ;;  %v950_v11 = vld [vmem:[#allocation2 + $0x28] sm:$0xff]  ;;  %v1005_v2 = vadd.f32 %v1758_v62, %v982_v63 }
 0x14f   :  { %1066 = vst.msk [vmem:[%s1920_s5 + $0x58] sm:$0xff] %vm25_vm0, %v1050_v61  ;;  %1056 = vst.msk [vmem:[%s1920_s5 + $0x8] sm:$0xff] %vm25_vm0, %v1040_v53  ;;  %v995_v54 = vadd.f32 %v1758_v62, %v972_v1  ;;  %v983_v14 = vmul.f32 %v1750_v44, %v960_v10  ;;  %v973_v15 = vmul.f32 %v1750_v44, %v950_v11  ;;  %v958_v16 = vld [vmem:[#allocation2 + $0x68] sm:$0xff] }
 0x150   :  { %1064 = vst.msk [vmem:[%s1920_s5 + $0x48] sm:$0xff] %vm25_vm0, %v1048_v4  ;;  %v1029_v19 = vadd.f32 %v1013_v58, %v997_v6  ;;  %v1003_v50 = vadd.f32 %v1758_v62, %v980_v8  ;;  %v998_v20 = vadd.f32 %v1758_v62, %v975_v9  ;;  %v981_v23 = vmul.f32 %v1750_v44, %v958_v16 }
 0x151   :  { %v1037_v24 = vadd.f32 %v1021_v0, %v1005_v2  ;;  %v1027_v27 = vadd.f32 %v1011_v7, %v995_v54  ;;  %v1006_v28 = vadd.f32 %v1758_v62, %v983_v14  ;;  %v996_v39 = vadd.f32 %v1758_v62, %v973_v15 }
 0x152   :  { %v1045_v30 = vmax.f32 %v1029_v19, 0.0  ;;  %v1035_v31 = vadd.f32 %v1019_v12, %v1003_v50  ;;  %v1030_v32 = vadd.f32 %v1014_v13, %v998_v20  ;;  %v1004_v33 = vadd.f32 %v1758_v62, %v981_v23 }
 0x153   :  { %v1053_v25 = vmax.f32 %v1037_v24, 0.0  ;;  %v1043_v35 = vmax.f32 %v1027_v27, 0.0  ;;  %v1038_v36 = vadd.f32 %v1022_v21, %v1006_v28  ;;  %v1028_v40 = vadd.f32 %v1012_v22, %v996_v39 }
 0x154   :  { %1061 = vst.msk [vmem:[%s1920_s5 + $0x30] sm:$0xff] %vm25_vm0, %v1045_v30  ;;  %v1051_v44 = vmax.f32 %v1035_v31, 0.0  ;;  %v1046_v17 = vmax.f32 %v1030_v32, 0.0  ;;  %v1036_v34 = vadd.f32 %v1020_v29, %v1004_v33 }
 0x155   :  { %1069 = vst.msk [vmem:[%s1920_s5 + $0x70] sm:$0xff] %vm25_vm0, %v1053_v25  ;;  %1059 = vst.msk [vmem:[%s1920_s5 + $0x20] sm:$0xff] %vm25_vm0, %v1043_v35  ;;  %v1054_v62 = vmax.f32 %v1038_v36, 0.0  ;;  %v1044_v26 = vmax.f32 %v1028_v40, 0.0 }
 0x156   :  { %1067 = vst.msk [vmem:[%s1920_s5 + $0x60] sm:$0xff] %vm25_vm0, %v1051_v44  ;;  %1062 = vst.msk [vmem:[%s1920_s5 + $0x38] sm:$0xff] %vm25_vm0, %v1046_v17  ;;  %v1052_v37 = vmax.f32 %v1036_v34, 0.0 }
 0x157   :  { %1070 = vst.msk [vmem:[%s1920_s5 + $0x78] sm:$0xff] %vm25_vm0, %v1054_v62  ;;  %1060 = vst.msk [vmem:[%s1920_s5 + $0x28] sm:$0xff] %vm25_vm0, %v1044_v26 }
 0x158   :  { %1068 = vst.msk [vmem:[%s1920_s5 + $0x68] sm:$0xff] %vm25_vm0, %v1052_v37 }

// kernel: resnet18_forward.28
= control target key start
LH: loop header
LB: loop body
LE: loop exit
PB: predicated region body
PF: predicated region fallthrough
CT: control target
= control target key end

     0   :  { %vm380_vm0 = vcmask 523264   ;;  %s938_s1 = inlined_call_operand.vmem [shape: bf16[576,128], index: 1, kind: input, shape index: {}]   ;;  %s939_s0 = inlined_call_operand.vmem [shape: bf16[32,576], index: 0, kind: input, shape index: {}]   ;;  %s940_s2 = inlined_call_operand.vmem [shape: f32[1,128], index: 2, kind: input, shape index: {}]   ;;  %s941_s3 = inlined_call_operand.vmem [shape: f32[1,128], index: 3, kind: input, shape index: {}]   ;;  %s942_s4 = inlined_call_operand.vmem [shape: f32[32,128], index: 4, kind: output, shape index: {}]  }
   0x1   :  { %v707_v0 = vld [vmem:[%s938_s1 + $0x40] sm:$0xff]   ;;  %v711_v4 = vld [vmem:[%s938_s1 + $0x48] sm:$0xff]   ;;  %v715_v8 = vld [vmem:[%s938_s1 + $0x50] sm:$0xff]  }
   0x2   :  { %v708_v1 = vld [vmem:[%s938_s1 + $0xc0] sm:$0xff]   ;;  %633 = vmatprep.subr.bf16.mxu0 %v707_v0  ;;  %v712_v5 = vld [vmem:[%s938_s1 + $0xc8] sm:$0xff]   ;;  %v716_v9 = vld [vmem:[%s938_s1 + $0xd0] sm:$0xff]  }
   0x3   :  { %v709_v2 = vld [vmem:[%s938_s1] sm:$0xff]   ;;  %661 = vmatprep.subr.bf16.mxu1 %v708_v1  ;;  %v713_v6 = vld [vmem:[%s938_s1 + $0x8] sm:$0xff]   ;;  %v717_v10 = vld [vmem:[%s938_s1 + $0x10] sm:$0xff]  }
   0x4   :  { %v710_v3 = vld [vmem:[%s938_s1 + $0x80] sm:$0xff]   ;;  %634 = vmatpush3.bf16.msra.mxu0 %v709_v2  ;;  %v714_v7 = vld [vmem:[%s938_s1 + $0x88] sm:$0xff]   ;;  %v718_v11 = vld [vmem:[%s938_s1 + $0x90] sm:$0xff]  }
   0x5   :  { %662 = vmatpush3.bf16.msra.mxu1 %v710_v3  ;;  %635 = vmatprep.subr.bf16.mxu0 %v711_v4  ;;  %v719_v12 = vld [vmem:[%s938_s1 + $0x58] sm:$0xff]   ;;  %v723_v16 = vld [vmem:[%s938_s1 + $0x60] sm:$0xff]   ;;  %v727_v20 = vld [vmem:[%s938_s1 + $0x68] sm:$0xff]  }
   0x6   :  { %663 = vmatprep.subr.bf16.mxu1 %v712_v5  ;;  %v720_v13 = vld [vmem:[%s938_s1 + $0xd8] sm:$0xff]   ;;  %v724_v17 = vld [vmem:[%s938_s1 + $0xe0] sm:$0xff]   ;;  %v728_v21 = vld [vmem:[%s938_s1 + $0xe8] sm:$0xff]  }
   0x7   :  { %v721_v14 = vld [vmem:[%s938_s1 + $0x18] sm:$0xff]   ;;  %v725_v18 = vld [vmem:[%s938_s1 + $0x20] sm:$0xff]   ;;  %v729_v22 = vld [vmem:[%s938_s1 + $0x28] sm:$0xff]  }
   0x8   :  { %636 = vmatpush3.bf16.msra.mxu0 %v713_v6  ;;  %v722_v15 = vld [vmem:[%s938_s1 + $0x98] sm:$0xff]   ;;  %v726_v19 = vld [vmem:[%s938_s1 + $0xa0] sm:$0xff]   ;;  %v730_v23 = vld [vmem:[%s938_s1 + $0xa8] sm:$0xff]  }
   0x9   :  { %664 = vmatpush3.bf16.msra.mxu1 %v714_v7  ;;  %637 = vmatprep.subr.bf16.mxu0 %v715_v8  ;;  %v731_v24 = vld [vmem:[%s938_s1 + $0x70] sm:$0xff]   ;;  %v735_v28 = vld [vmem:[%s938_s1 + $0x78] sm:$0xff]   ;;  %v744_v35 = vld [vmem:[%s939_s0 + $0xc] ss:$20 sps:$4 sm:$0xff]  }
   0xa   :  { %665 = vmatprep.subr.bf16.mxu1 %v716_v9  ;;  %v732_v25 = vld [vmem:[%s938_s1 + $0xf0] sm:$0xff]   ;;  %v736_v29 = vld [vmem:[%s938_s1 + $0xf8] sm:$0xff]   ;;  %v745_v36 = vld [vmem:[%s938_s1 + $0x100] sm:$0xff]   ;;  %468 = vmatprep.mubr.bf16.mxu1 %v744_v35 }
   0xb   :  { %v733_v26 = vld [vmem:[%s938_s1 + $0x30] sm:$0xff]   ;;  %v737_v30 = vld [vmem:[%s938_s1 + $0x38] sm:$0xff]   ;;  %v746_v37 = vld [vmem:[%s938_s1 + $0x108] sm:$0xff]  }
   0xc   :  { %638 = vmatpush3.bf16.msra.mxu0 %v717_v10  ;;  %v734_v27 = vld [vmem:[%s938_s1 + $0xb0] sm:$0xff]   ;;  %v738_v31 = vld [vmem:[%s938_s1 + $0xb8] sm:$0xff]   ;;  %v747_v38 = vld [vmem:[%s939_s0 + $0x2c] ss:$20 sps:$4 sm:$0xff]  }
   0xd   :  { %666 = vmatpush3.bf16.msra.mxu1 %v718_v11  ;;  %639 = vmatprep.subr.bf16.mxu0 %v719_v12  ;;  %v739_v32 = vld [vmem:[%s939_s0] ss:$20 sps:$4 sm:$0xff]   ;;  %v741_v33 = vld [vmem:[%s939_s0 + $0x4] ss:$20 sps:$4 sm:$0xff]   ;;  %v742_v34 = vld [vmem:[%s939_s0 + $0x8] ss:$20 sps:$4 sm:$0xff]  }
   0xe   :  { %667 = vmatprep.subr.bf16.mxu1 %v720_v13  ;;  %419 = vmatprep.mubr.bf16.mxu0 %v741_v33  ;;  %v749_v39 = vld [vmem:[%s939_s0 + $0x34] ss:$20 sps:$4 sm:$0xff]   ;;  %v752_v42 = vld [vmem:[%s939_s0 + $0x30] ss:$20 sps:$4 sm:$0xff]   ;;  %v754_v44 = vld [vmem:[%s938_s1 + $0x118] sm:$0xff]  }
   0xf   :  { %v751_v40 = vld [vmem:[%s939_s0 + $0x28] ss:$20 sps:$4 sm:$0xff]   ;;  %v753_v41 = vld [vmem:[%s938_s1 + $0x110] sm:$0xff]   ;;  %v756_v45 = vld [vmem:[%s939_s0 + $0x38] ss:$20 sps:$4 sm:$0xff]  }
  0x10   :  { %640 = vmatpush3.bf16.msra.mxu0 %v721_v14  ;;  %v755_v43 = vld [vmem:[%s939_s0 + $0x10] ss:$20 sps:$4 sm:$0xff]   ;;  %v631_v11 = vld [vmem:[%s940_s2] ss:$0 sm:$0xff] }
  0x11   :  { %668 = vmatpush3.bf16.msra.mxu1 %v722_v15  ;;  %641 = vmatprep.subr.bf16.mxu0 %v723_v16  ;;  %v632_v14 = vld [vmem:[%s941_s3] ss:$0 sm:$0xff] }
  0x12   :  { %669 = vmatprep.subr.bf16.mxu1 %v724_v17 }
  0x14   :  { %642 = vmatpush3.bf16.msra.mxu0 %v725_v18 }
  0x15   :  { %670 = vmatpush3.bf16.msra.mxu1 %v726_v19  ;;  %643 = vmatprep.subr.bf16.mxu0 %v727_v20 }
  0x16   :  { %671 = vmatprep.subr.bf16.mxu1 %v728_v21 }
  0x18   :  { %644 = vmatpush3.bf16.msra.mxu0 %v729_v22 }
  0x19   :  { %672 = vmatpush3.bf16.msra.mxu1 %v730_v23  ;;  %645 = vmatprep.subr.bf16.mxu0 %v731_v24 }
  0x1a   :  { %673 = vmatprep.subr.bf16.mxu1 %v732_v25 }
  0x1c   :  { %646 = vmatpush3.bf16.msra.mxu0 %v733_v26 }
  0x1d   :  { %674 = vmatpush3.bf16.msra.mxu1 %v734_v27  ;;  %647 = vmatprep.subr.bf16.mxu0 %v735_v28 }
  0x1e   :  { %675 = vmatprep.subr.bf16.mxu1 %v736_v29 }
  0x20   :  { %648 = vmatpush3.bf16.msra.mxu0 %v737_v30 }
  0x21   :  { %676 = vmatpush3.bf16.msra.mxu1 %v738_v31  ;;  %695 = vmatprep.subr.bf16.mxu0 %v745_v36 }
  0x23   :  { %420 = vmatmul.mubr.bf16.vlgmr.msra.gmra.mrb[0].mxu0 %v739_v32 }
  0x24   :  { %469 = vmatmul.mubr.bf16.vlgmr.msra.gmra.mrb[0].mxu1 %v742_v34  ;;  %696 = vmatpush3.bf16.msra.mxu0 %v745_v36 }
  0x25   :  { %697 = vmatprep.subr.bf16.mxu0 %v746_v37  ;;  %427 = vmatprep.mubr.bf16.mxu0 %v747_v38 }
  0x26   :  { %476 = vmatprep.mubr.bf16.mxu1 %v749_v39 }
  0x28   :  { %698 = vmatpush3.bf16.msra.mxu0 %v746_v37 }
  0x29   :  { %699 = vmatprep.subr.bf16.mxu0 %v753_v41 }
  0x2b   :  { %428 = vmatmul.mubr.bf16.gmra.mrb[4].mxu0 %v751_v40 }
  0x2c   :  { %477 = vmatmul.mubr.bf16.gmra.mrb[4].mxu1 %v752_v42  ;;  %703 = vmatprep.mubr.msk.bf16.mxu0 %vm380_vm0, %v755_v43 }
  0x2d   :  { %700 = vmatpush3.bf16.msra.mxu0 %v753_v41 }
  0x2e   :  { %701 = vmatprep.subr.bf16.mxu0 %v754_v44 }
  0x31   :  { %702 = vmatpush3.bf16.msra.mxu0 %v754_v44 }
  0x34   :  { %704 = vmatmul.mubr.msk.bf16.vlgmr.msra.gmra.mrb[8].mxu0 %vm380_vm0, %v756_v45 }
  0xf6   :  { %v649_v46 = vpop.f32.mrb[0].mxu0 }
  0xf7   :  { %v677_v47 = vpop.f32.mrb[0].mxu1  ;;  %v650_v48 = vpop.f32.mrb[1].mxu0 }
  0xf8   :  { %v651_v49 = vadd.f32 %v650_v48, %v649_v46  ;;  %v678_v50 = vpop.f32.mrb[1].mxu1  ;;  %v652_v51 = vpop.f32.mrb[2].mxu0 }
  0xf9   :  { %v679_v52 = vadd.f32 %v678_v50, %v677_v47  ;;  %v680_v53 = vpop.f32.mrb[2].mxu1  ;;  %v653_v54 = vpop.f32.mrb[3].mxu0 }
  0xfa   :  { %v654_v55 = vadd.f32 %v653_v54, %v652_v51  ;;  %v681_v56 = vpop.f32.mrb[3].mxu1 }
  0xfb   :  { %v682_v57 = vadd.f32 %v681_v56, %v680_v53  ;;  %v471_v58 = vadd.f32 %v679_v52, %v651_v49 }
  0xfd   :  { %v474_v59 = vadd.f32 %v682_v57, %v654_v55 }
  0xfe   :  { %v655_v60 = vpop.f32.mrb[4].mxu0 }
  0xff   :  { %v683_v61 = vpop.f32.mrb[4].mxu1  ;;  %v656_v62 = vpop.f32.mrb[5].mxu0 }
 0x100   :  { %v657_v63 = vadd.f32 %v656_v62, %v655_v60  ;;  %v684_v0 = vpop.f32.mrb[5].mxu1  ;;  %v658_v1 = vpop.f32.mrb[6].mxu0 }
 0x101   :  { %v685_v2 = vadd.f32 %v684_v0, %v683_v61  ;;  %v686_v3 = vpop.f32.mrb[6].mxu1  ;;  %v659_v4 = vpop.f32.mrb[7].mxu0 }
 0x102   :  { %v660_v5 = vadd.f32 %v659_v4, %v658_v1  ;;  %v687_v6 = vpop.f32.mrb[7].mxu1 }
 0x103   :  { %v688_v7 = vadd.f32 %v687_v6, %v686_v3  ;;  %v479_v8 = vadd.f32 %v685_v2, %v657_v63 }
 0x105   :  { %v482_v9 = vadd.f32 %v688_v7, %v660_v5 }
 0x107   :  { %v705_v10 = vpop.f32.mrb[8].mxu0 }
 0x108   :  { %v528_v12 = vadd.f32 %v705_v10, %v479_v8  ;;  %v519_v13 = vpop.f32.mrb[9].mxu0 }
 0x109   :  { %v520_v15 = vadd.f32 %v519_v13, %v471_v58  ;;  %v706_v16 = vpop.f32.mrb[10].mxu0 }
 0x10a   :  { %v558_v17 = vmul.f32 %v631_v11, %v528_v12  ;;  %v531_v18 = vadd.f32 %v706_v16, %v482_v9  ;;  %v522_v19 = vpop.f32.mrb[11].mxu0 }
 0x10b   :  { %v556_v20 = vmul.f32 %v631_v11, %v520_v15  ;;  %v523_v21 = vadd.f32 %v522_v19, %v474_v59 }
 0x10c   :  { %v569_v22 = vadd.f32 %v632_v14, %v558_v17  ;;  %v559_v23 = vmul.f32 %v631_v11, %v531_v18 }
 0x10d   :  { %v567_v24 = vadd.f32 %v632_v14, %v556_v20  ;;  %v557_v25 = vmul.f32 %v631_v11, %v523_v21 }
 0x10e   :  { %v573_v26 = vmax.f32 %v569_v22, 0.0  ;;  %v570_v27 = vadd.f32 %v632_v14, %v559_v23 }
 0x10f   :  { %v571_v28 = vmax.f32 %v567_v24, 0.0  ;;  %v568_v29 = vadd.f32 %v632_v14, %v557_v25 }
 0x110   :  { %577 = vst [vmem:[%s942_s4 + $0x10] sm:$0xff] %v573_v26  ;;  %v574_v30 = vmax.f32 %v570_v27, 0.0 }
 0x111   :  { %575 = vst [vmem:[%s942_s4] sm:$0xff] %v571_v28  ;;  %v572_v31 = vmax.f32 %v568_v29, 0.0 }
 0x112   :  { %578 = vst [vmem:[%s942_s4 + $0x18] sm:$0xff] %v574_v30 }
 0x113   :  { %576 = vst [vmem:[%s942_s4 + $0x8] sm:$0xff] %v572_v31 }

// kernel: resnet18_forward.29
= control target key start
LH: loop header
LB: loop body
LE: loop exit
PB: predicated region body
PF: predicated region fallthrough
CT: control target
= control target key end

     0   :  { %vm76_vm0 = vcmask 523264   ;;  %s272_s1 = inlined_call_operand.vmem [shape: bf16[64,128], index: 1, kind: input, shape index: {}]   ;;  %s273_s0 = inlined_call_operand.vmem [shape: bf16[32,64], index: 0, kind: input, shape index: {}]   ;;  %s274_s2 = inlined_call_operand.vmem [shape: f32[1,128], index: 2, kind: input, shape index: {}]   ;;  %s275_s3 = inlined_call_operand.vmem [shape: f32[1,128], index: 3, kind: input, shape index: {}]   ;;  %s276_s4 = inlined_call_operand.vmem [shape: f32[32,128], index: 4, kind: output, shape index: {}]  }
   0x1   :  { %v205_v0 = vld [vmem:[%s272_s1] sm:$0xff]   ;;  %v206_v1 = vld [vmem:[%s272_s1 + $0x8] sm:$0xff]   ;;  %v207_v2 = vld [vmem:[%s272_s1 + $0x10] sm:$0xff]  }
   0x2   :  { %193 = vmatprep.subr.bf16.mxu0 %v205_v0  ;;  %v209_v3 = vld [vmem:[%s273_s0] sm:$0xff]   ;;  %v208_v4 = vld [vmem:[%s272_s1 + $0x18] sm:$0xff]   ;;  %v210_v5 = vld [vmem:[%s273_s0 + $0x8] sm:$0xff]  }
   0x3   :  { %194 = vmatpush3.bf16.msra.mxu0 %v205_v0  ;;  %201 = vmatprep.mubr.msk.bf16.mxu0 %vm76_vm0, %v209_v3  ;;  %v185_v6 = vld [vmem:[%s274_s2] ss:$0 sm:$0xff] }
   0x4   :  { %195 = vmatprep.subr.bf16.mxu0 %v206_v1  ;;  %v186_v8 = vld [vmem:[%s275_s3] ss:$0 sm:$0xff] }
   0x7   :  { %196 = vmatpush3.bf16.msra.mxu0 %v206_v1 }
   0x8   :  { %197 = vmatprep.subr.bf16.mxu0 %v207_v2 }
   0xb   :  { %198 = vmatpush3.bf16.msra.mxu0 %v207_v2 }
   0xc   :  { %199 = vmatprep.subr.bf16.mxu0 %v208_v4 }
   0xf   :  { %200 = vmatpush3.bf16.msra.mxu0 %v208_v4 }
  0x12   :  { %202 = vmatmul.mubr.msk.bf16.vlgmr.msra.gmra.mrb[0].mxu0 %vm76_vm0, %v210_v5 }
  0xe5   :  { %v203_v7 = vpop.f32.mrb[0].mxu0 }
  0xe6   :  { %v156_v9 = vmul.f32 %v203_v7, %v185_v6  ;;  %v117_v10 = vpop.f32.mrb[1].mxu0 }
  0xe7   :  { %v154_v11 = vmul.f32 %v185_v6, %v117_v10  ;;  %v204_v12 = vpop.f32.mrb[2].mxu0 }
  0xe8   :  { %v167_v13 = vadd.f32 %v186_v8, %v156_v9  ;;  %v157_v14 = vmul.f32 %v204_v12, %v185_v6  ;;  %v120_v15 = vpop.f32.mrb[3].mxu0 }
  0xe9   :  { %v165_v16 = vadd.f32 %v186_v8, %v154_v11  ;;  %v155_v17 = vmul.f32 %v185_v6, %v120_v15 }
  0xea   :  { %171 = vst [vmem:[%s276_s4 + $0x10] sm:$0xff] %v167_v13  ;;  %v168_v18 = vadd.f32 %v186_v8, %v157_v14 }
  0xeb   :  { %169 = vst [vmem:[%s276_s4] sm:$0xff] %v165_v16  ;;  %v166_v19 = vadd.f32 %v186_v8, %v155_v17 }
  0xec   :  { %172 = vst [vmem:[%s276_s4 + $0x18] sm:$0xff] %v168_v18 }
  0xed   :  { %170 = vst [vmem:[%s276_s4 + $0x8] sm:$0xff] %v166_v19 }

// kernel: resnet18_forward.30
= control target key start
LH: loop header
LB: loop body
LE: loop exit
PB: predicated region body
PF: predicated region fallthrough
CT: control target
= control target key end

     0   :  { %s1030_s18 = smov 0   ;;  %s1032_s19 = smov 0   ;;  %s1151_s0 = inlined_call_operand.vmem [shape: bf16[32,1280], index: 0, kind: input, shape index: {}]   ;;  %s1152_s1 = inlined_call_operand.vmem [shape: bf16[1280,128], index: 1, kind: input, shape index: {}]   ;;  %s1153_s2 = inlined_call_operand.vmem [shape: f32[1,128], index: 2, kind: input, shape index: {}]   ;;  %s1154_s3 = inlined_call_operand.vmem [shape: f32[1,128], index: 3, kind: input, shape index: {}]   ;;  %s1155_s4 = inlined_call_operand.vmem [shape: f32[32,128], index: 4, kind: input, shape index: {}]   ;;  %s1156_s5 = inlined_call_operand.vmem [shape: f32[32,128], index: 5, kind: output, shape index: {}]  }
   0x1   :  { %s1034_s20 = smov 0   ;;  %s1036_s21 = smov 0  }
   0x2   :  { %s1038_s22 = smov 0  }
   0x3 LB: > { %s27_s23 = sadd.s32 1, %s993_s21  ;;  %p50_p1 = scmp.ne.s32.totalorder %s985_s19, %s981_s18  ;;  %s997_s22 = sphi %s1038_s22, %s15_s22   ;;  %s993_s21 = sphi %s1036_s21, %s1160_s21   ;;  %s989_s20 = sphi %s1034_s20, %s1159_s20   ;;  %s985_s19 = sphi %s1032_s19, %s1158_s19   ;;  %s981_s18 = sphi %s1030_s18, %s1157_s18  }
   0x4   : > { %p28_p0 = scmp.ge.s32.totalorder %s27_s23, 5  ;;  %p51_p2 = scmp.eq.s32.totalorder %s997_s22, 0 }
   0x5   : > { %s43_s25 = sadd.s32 1, %s985_s19  ;;  %p815_p5 = scmp.ge.s32.totalorder %s997_s22, 5 }
   0x6   : > { %s1162_s23 = smov (%p28_p0, %s27_s23), 0  ;;  %p52_p3 = por %p51_p2, %p50_p1 }
   0x7   : > { %s39_s24 = ssub.s32 %s993_s21, %s1162_s23  ;;  %236 = sbr.rel (%p815_p5) target bundleno = 21 (0x15), region = 28 }
   0x8   : > { %p41_p4 = scmp.eq.s32.totalorder %s39_s24, 0 }
   0xa   : > { %s1065_s26 = scalar_select %p41_p4, %s985_s19, %s43_s25  }
   0xe   : > { %239 = sbr.rel (!%p52_p3) target bundleno = 21 (0x15), region = 32  ;;  %s241_s27 = sand.u32 (%p52_p3), 1, %s985_s19  }
   0xf   : > { %s851_s28 = sshll.u32 (%p52_p3), %s993_s21, 3  ;;  %s816_s29 = sshll.u32 (%p52_p3), %s241_s27, 5 }
  0x10   : > { %s249_s7 = scalar_lea.vmem (%p52_p3), %s1151_s0, %s851_s28  ;;  %s243_s8 = scalar_lea.vmem (%p52_p3), [#allocation3], %s816_s29 }
  0x11   : > { %v283_v0 = vld [vmem:[%s249_s7] sm:$0xff] (%p52_p3)  ;;  %v285_v1 = vld [vmem:[%s249_s7 + $0x28] sm:$0xff] (%p52_p3)  ;;  %v287_v2 = vld [vmem:[%s249_s7 + $0x50] sm:$0xff] (%p52_p3) }
  0x12   : > { %284 = vst [vmem:[%s243_s8] sm:$0xff] (%p52_p3), %v283_v0  ;;  %286 = vst [vmem:[%s243_s8 + $0x8] sm:$0xff] (%p52_p3), %v285_v1  ;;  %v289_v3 = vld [vmem:[%s249_s7 + $0x78] sm:$0xff] (%p52_p3) }
  0x13   : > { %288 = vst [vmem:[%s243_s8 + $0x10] sm:$0xff] (%p52_p3), %v287_v2  ;;  %290 = vst [vmem:[%s243_s8 + $0x18] sm:$0xff] (%p52_p3), %v289_v3 }
  0x15 PF: > { %p819_p6 = scmp.ge.s32.totalorder %s997_s22, 1  ;;  %p307_p7 = scmp.lt.s32.totalorder %s997_s22, 6 }
  0x17   : > { %p308_p8 = pnand %p819_p6, %p307_p7 }
  0x18   : > { %s314_s9 = sand.u32 (!%p308_p8), 1, %s981_s18   ;;  %s821_s10 = sshll.u32 (!%p308_p8), %s989_s20, 5 }
  0x19   : > { %311 = sbr.rel (%p308_p8) target bundleno = 308 (0x134), region = 74  ;;  %s820_s11 = sshll.u32 (!%p308_p8), %s314_s9, 5 }
  0x1a   : > { %p369_p9 = scmp.lt.s32.totalorder (!%p308_p8), %s821_s10, 159  ;;  %s1082_s16 = scalar_lea.vmem (!%p308_p8), [#allocation3], %s820_s11 }
  0x1b   : > { %p823_p10 = scmp.ne.s32.totalorder (!%p308_p8), %s989_s20, 0 }
  0x20   : > { %s1164_s10 = smov (!%p369_p9, %s821_s10), 159  ;;  %405 = sbr.rel (%p823_p10) target bundleno = 39 (0x27), region = 82 }
  0x21   : > { %s822_s12 = sshll.u32 %s1164_s10, 2  ;;  %v999_v4 = vmov (!%p823_p10), 0.0  }
  0x22   : > { %s1080_s15 = scalar_lea.vmem %s1152_s1, %s822_s12  ;;  %406 = vst [vmem:[#allocation2] sm:$0xff] (!%p823_p10), %v999_v4  ;;  %407 = vst [vmem:[#allocation2 + $0x8] sm:$0xff] (!%p823_p10), %v999_v4 }
  0x23   : > { %408 = vst [vmem:[#allocation2 + $0x10] sm:$0xff] (!%p823_p10), %v999_v4  ;;  %409 = vst [vmem:[#allocation2 + $0x18] sm:$0xff] (!%p823_p10), %v999_v4 }
  0x27 PF: > { %v937_v5 = vld [vmem:[%s1080_s15 + $0x40] sm:$0xff]   ;;  %v939_v7 = vld [vmem:[%s1080_s15 + $0x48] sm:$0xff]   ;;  %v941_v9 = vld [vmem:[%s1080_s15 + $0x50] sm:$0xff]   ;;  %p844_p11 = scmp.ne.s32.totalorder %s989_s20, 4 }
  0x28   : > { %v938_v6 = vld [vmem:[%s1080_s15] sm:$0xff]   ;;  %852 = vmatprep.subr.bf16.mxu0 %v937_v5  ;;  %880 = vmatprep.subr.bf16.mxu1 %v937_v5  ;;  %v940_v8 = vld [vmem:[%s1080_s15 + $0x8] sm:$0xff]   ;;  %v942_v10 = vld [vmem:[%s1080_s15 + $0x10] sm:$0xff]  }
  0x29   : > { %853 = vmatpush3.bf16.msra.mxu0 %v938_v6  ;;  %888 = vmatpush3.bf16.msra.mxu1 %v938_v6  ;;  %v943_v11 = vld [vmem:[%s1080_s15 + $0x58] sm:$0xff]   ;;  %v945_v13 = vld [vmem:[%s1080_s15 + $0x60] sm:$0xff]   ;;  %v947_v15 = vld [vmem:[%s1080_s15 + $0x68] sm:$0xff]  }
  0x2a   : > { %854 = vmatprep.subr.bf16.mxu0 %v939_v7  ;;  %881 = vmatprep.subr.bf16.mxu1 %v939_v7  ;;  %v944_v12 = vld [vmem:[%s1080_s15 + $0x18] sm:$0xff]   ;;  %v946_v14 = vld [vmem:[%s1080_s15 + $0x20] sm:$0xff]   ;;  %v948_v18 = vld [vmem:[%s1080_s15 + $0x28] sm:$0xff]  }
  0x2b   : > { %v955_v16 = vld [vmem:[%s1082_s16 + $0x4] ss:$8 sps:$4 sm:$0xff]   ;;  %v958_v17 = vld [vmem:[%s1082_s16 + $0x14] ss:$8 sps:$4 sm:$0xff]   ;;  %v953_v23 = vld [vmem:[%s1082_s16] ss:$8 sps:$4 sm:$0xff]  }
  0x2c   : > { %v949_v19 = vld [vmem:[%s1080_s15 + $0x70] sm:$0xff]   ;;  %598 = vmatprep.mubr.bf16.mxu0 %v955_v16  ;;  %606 = vmatprep.mubr.bf16.mxu1 %v958_v17  ;;  %v951_v21 = vld [vmem:[%s1080_s15 + $0x78] sm:$0xff]   ;;  %v410_v27 = vld [vmem:[#allocation2] sm:$0xff] }
  0x2d   : > { %855 = vmatpush3.bf16.msra.mxu0 %v940_v8  ;;  %889 = vmatpush3.bf16.msra.mxu1 %v940_v8  ;;  %v950_v20 = vld [vmem:[%s1080_s15 + $0x30] sm:$0xff]   ;;  %v952_v22 = vld [vmem:[%s1080_s15 + $0x38] sm:$0xff]   ;;  %v411_v35 = vld [vmem:[#allocation2 + $0x8] sm:$0xff] }
  0x2e   : > { %856 = vmatprep.subr.bf16.mxu0 %v941_v9  ;;  %882 = vmatprep.subr.bf16.mxu1 %v941_v9  ;;  %v956_v24 = vld [vmem:[%s1082_s16 + $0x10] ss:$8 sps:$4 sm:$0xff]   ;;  %v845_v46 = vld [vmem:[%s1153_s2] ss:$0 sm:$0xff] (!%p844_p11)  ;;  %v654_v55 = vld [vmem:[%s1155_s4 + $0x8] sm:$0xff] (!%p844_p11) }
  0x2f   : > { %v412_v29 = vld [vmem:[#allocation2 + $0x10] sm:$0xff]  ;;  %v413_v37 = vld [vmem:[#allocation2 + $0x18] sm:$0xff]  ;;  %v846_v47 = vld [vmem:[%s1154_s3] ss:$0 sm:$0xff] (!%p844_p11) }
  0x30   : > { %v653_v50 = vld [vmem:[%s1155_s4] sm:$0xff] (!%p844_p11)  ;;  %v655_v59 = vld [vmem:[%s1155_s4 + $0x10] sm:$0xff] (!%p844_p11)  ;;  %v656_v60 = vld [vmem:[%s1155_s4 + $0x18] sm:$0xff] (!%p844_p11) }
  0x31   : > { %857 = vmatpush3.bf16.msra.mxu0 %v942_v10  ;;  %890 = vmatpush3.bf16.msra.mxu1 %v942_v10 }
  0x32   : > { %858 = vmatprep.subr.bf16.mxu0 %v943_v11  ;;  %883 = vmatprep.subr.bf16.mxu1 %v943_v11 }
  0x35   : > { %859 = vmatpush3.bf16.msra.mxu0 %v944_v12  ;;  %891 = vmatpush3.bf16.msra.mxu1 %v944_v12 }
  0x36   : > { %860 = vmatprep.subr.bf16.mxu0 %v945_v13  ;;  %884 = vmatprep.subr.bf16.mxu1 %v945_v13 }
  0x39   : > { %861 = vmatpush3.bf16.msra.mxu0 %v946_v14  ;;  %892 = vmatpush3.bf16.msra.mxu1 %v946_v14 }
  0x3a   : > { %862 = vmatprep.subr.bf16.mxu0 %v947_v15  ;;  %885 = vmatprep.subr.bf16.mxu1 %v947_v15 }
  0x3d   : > { %863 = vmatpush3.bf16.msra.mxu0 %v948_v18  ;;  %893 = vmatpush3.bf16.msra.mxu1 %v948_v18 }
  0x3e   : > { %864 = vmatprep.subr.bf16.mxu0 %v949_v19  ;;  %886 = vmatprep.subr.bf16.mxu1 %v949_v19 }
  0x41   : > { %865 = vmatpush3.bf16.msra.mxu0 %v950_v20  ;;  %894 = vmatpush3.bf16.msra.mxu1 %v950_v20 }
  0x42   : > { %866 = vmatprep.subr.bf16.mxu0 %v951_v21  ;;  %887 = vmatprep.subr.bf16.mxu1 %v951_v21 }
  0x45   : > { %867 = vmatpush3.bf16.msra.mxu0 %v952_v22  ;;  %895 = vmatpush3.bf16.msra.mxu1 %v952_v22 }
  0x48   : > { %599 = vmatmul.mubr.bf16.vlgmr.msra.gmra.mrb[0].mxu0 %v953_v23  ;;  %607 = vmatmul.mubr.bf16.vlgmr.msra.gmra.mrb[0].mxu1 %v956_v24 }
 0x11b   : > { %v868_v25 = vpop.f32.mrb[0].mxu0  ;;  %v874_v26 = vpop.f32.mrb[0].mxu1 }
 0x11c   : > { %v869_v28 = vpop.f32.mrb[1].mxu0  ;;  %v875_v30 = vpop.f32.mrb[1].mxu1 }
 0x11d   : > { %v870_v31 = vadd.f32 %v869_v28, %v868_v25  ;;  %v876_v32 = vadd.f32 %v875_v30, %v874_v26  ;;  %v871_v33 = vpop.f32.mrb[2].mxu0  ;;  %v877_v34 = vpop.f32.mrb[2].mxu1  ;;  %626 = sbr.rel (%p844_p11) target bundleno = 308 (0x134), region = 86 }
 0x11e   : > { %v872_v36 = vpop.f32.mrb[3].mxu0  ;;  %v878_v38 = vpop.f32.mrb[3].mxu1 }
 0x11f   : > { %v615_v39 = vadd.f32 %v870_v31, %v410_v27  ;;  %v617_v40 = vadd.f32 %v876_v32, %v412_v29  ;;  %v873_v41 = vadd.f32 %v872_v36, %v871_v33  ;;  %v879_v42 = vadd.f32 %v878_v38, %v877_v34 }
 0x121   : > { %619 = vst [vmem:[#allocation2] sm:$0xff] %v615_v39  ;;  %621 = vst [vmem:[#allocation2 + $0x10] sm:$0xff] %v617_v40  ;;  %v616_v43 = vadd.f32 %v873_v41, %v411_v35  ;;  %v618_v44 = vadd.f32 %v879_v42, %v413_v37 }
 0x123   : > { %620 = vst [vmem:[#allocation2 + $0x8] sm:$0xff] %v616_v43  ;;  %622 = vst [vmem:[#allocation2 + $0x18] sm:$0xff] %v618_v44 }
 0x128   : > { %v627_v45 = vld [vmem:[#allocation2] sm:$0xff]  ;;  %v629_v52 = vld [vmem:[#allocation2 + $0x10] sm:$0xff] }
 0x129   : > { %v638_v48 = vmul.f32 %v845_v46, %v627_v45  ;;  %v640_v56 = vmul.f32 %v845_v46, %v629_v52 }
 0x12a   : > { %v628_v49 = vld [vmem:[#allocation2 + $0x8] sm:$0xff]  ;;  %v630_v53 = vld [vmem:[#allocation2 + $0x18] sm:$0xff] }
 0x12b   : > { %v639_v51 = vmul.f32 %v845_v46, %v628_v49  ;;  %v649_v54 = vadd.f32 %v846_v47, %v638_v48  ;;  %v641_v57 = vmul.f32 %v845_v46, %v630_v53  ;;  %v651_v62 = vadd.f32 %v846_v47, %v640_v56 }
 0x12d   : > { %v650_v58 = vadd.f32 %v846_v47, %v639_v51  ;;  %v657_v61 = vadd.f32 %v653_v50, %v649_v54  ;;  %v652_v63 = vadd.f32 %v846_v47, %v641_v57  ;;  %v659_v2 = vadd.f32 %v655_v59, %v651_v62 }
 0x12f   : > { %v658_v0 = vadd.f32 %v654_v55, %v650_v58  ;;  %v661_v1 = vmax.f32 %v657_v61, 0.0  ;;  %v660_v3 = vadd.f32 %v656_v60, %v652_v63  ;;  %v663_v5 = vmax.f32 %v659_v2, 0.0 }
 0x131   : > { %v662_v4 = vmax.f32 %v658_v0, 0.0  ;;  %665 = vst [vmem:[%s1156_s5] sm:$0xff] %v661_v1  ;;  %v664_v6 = vmax.f32 %v660_v3, 0.0  ;;  %667 = vst [vmem:[%s1156_s5 + $0x10] sm:$0xff] %v663_v5 }
 0x133   : > { %666 = vst [vmem:[%s1156_s5 + $0x8] sm:$0xff] %v662_v4  ;;  %668 = vst [vmem:[%s1156_s5 + $0x18] sm:$0xff] %v664_v6 }
 0x134 PF: > { %s15_s22 = sadd.s32 1, %s997_s22   ;;  %s1157_s18 = smov %s985_s19 }
 0x135   : > { %p12_p12 = scmp.ge.s32.totalorder %s15_s22, 7   ;;  %s1158_s19 = smov %s1065_s26 }
 0x136   : > { %s1159_s20 = smov %s993_s21  ;;  %s1160_s21 = smov %s1162_s23 }
 0x137   :  { %14 = sbr.rel (!%p12_p12) target bundleno = 3 (0x3), region = 133 }

// kernel: resnet18_forward.31
= control target key start
LH: loop header
LB: loop body
LE: loop exit
PB: predicated region body
PF: predicated region fallthrough
CT: control target
= control target key end

     0   :  { %s938_s15 = smov 0   ;;  %s940_s16 = smov 0   ;;  %s1047_s0 = inlined_call_operand.vmem [shape: bf16[32,1280], index: 0, kind: input, shape index: {}]   ;;  %s1048_s1 = inlined_call_operand.vmem [shape: bf16[1280,128], index: 1, kind: input, shape index: {}]   ;;  %s1049_s2 = inlined_call_operand.vmem [shape: f32[1,128], index: 2, kind: input, shape index: {}]   ;;  %s1050_s3 = inlined_call_operand.vmem [shape: f32[1,128], index: 3, kind: input, shape index: {}]   ;;  %s1051_s4 = inlined_call_operand.vmem [shape: f32[32,128], index: 4, kind: output, shape index: {}]  }
   0x1   :  { %s942_s17 = smov 0   ;;  %s944_s18 = smov 0  }
   0x2   :  { %s946_s19 = smov 0  }
   0x3 LB: > { %s26_s20 = sadd.s32 1, %s906_s18  ;;  %p49_p1 = scmp.ne.s32.totalorder %s898_s16, %s894_s15  ;;  %s910_s19 = sphi %s946_s19, %s14_s19   ;;  %s906_s18 = sphi %s944_s18, %s1055_s18   ;;  %s902_s17 = sphi %s942_s17, %s1054_s17   ;;  %s898_s16 = sphi %s940_s16, %s1053_s16   ;;  %s894_s15 = sphi %s938_s15, %s1052_s15  }
   0x4   : > { %p27_p0 = scmp.ge.s32.totalorder %s26_s20, 5  ;;  %p50_p2 = scmp.eq.s32.totalorder %s910_s19, 0 }
   0x5   : > { %s42_s22 = sadd.s32 1, %s898_s16  ;;  %p728_p5 = scmp.ge.s32.totalorder %s910_s19, 5 }
   0x6   : > { %s1057_s20 = smov (%p27_p0, %s26_s20), 0  ;;  %p51_p3 = por %p50_p2, %p49_p1 }
   0x7   : > { %s38_s21 = ssub.s32 %s906_s18, %s1057_s20  ;;  %195 = sbr.rel (%p728_p5) target bundleno = 21 (0x15), region = 24 }
   0x8   : > { %p40_p4 = scmp.eq.s32.totalorder %s38_s21, 0 }
   0xa   : > { %s973_s23 = scalar_select %p40_p4, %s898_s16, %s42_s22  }
   0xe   : > { %198 = sbr.rel (!%p51_p3) target bundleno = 21 (0x15), region = 28  ;;  %s200_s24 = sand.u32 (%p51_p3), 1, %s898_s16  }
   0xf   : > { %s764_s25 = sshll.u32 (%p51_p3), %s906_s18, 3  ;;  %s729_s26 = sshll.u32 (%p51_p3), %s200_s24, 5 }
  0x10   : > { %s208_s29 = scalar_lea.vmem (%p51_p3), %s1047_s0, %s764_s25  ;;  %s202_s30 = scalar_lea.vmem (%p51_p3), [#allocation3], %s729_s26 }
  0x11   : > { %v242_v0 = vld [vmem:[%s208_s29] sm:$0xff] (%p51_p3)  ;;  %v244_v1 = vld [vmem:[%s208_s29 + $0x28] sm:$0xff] (%p51_p3)  ;;  %v246_v2 = vld [vmem:[%s208_s29 + $0x50] sm:$0xff] (%p51_p3) }
  0x12   : > { %243 = vst [vmem:[%s202_s30] sm:$0xff] (%p51_p3), %v242_v0  ;;  %245 = vst [vmem:[%s202_s30 + $0x8] sm:$0xff] (%p51_p3), %v244_v1  ;;  %v248_v3 = vld [vmem:[%s208_s29 + $0x78] sm:$0xff] (%p51_p3) }
  0x13   : > { %247 = vst [vmem:[%s202_s30 + $0x10] sm:$0xff] (%p51_p3), %v246_v2  ;;  %249 = vst [vmem:[%s202_s30 + $0x18] sm:$0xff] (%p51_p3), %v248_v3 }
  0x15 PF: > { %p732_p6 = scmp.ge.s32.totalorder %s910_s19, 1  ;;  %p266_p7 = scmp.lt.s32.totalorder %s910_s19, 6 }
  0x17   : > { %p267_p8 = pnand %p732_p6, %p266_p7 }
  0x18   : > { %s273_s5 = sand.u32 (!%p267_p8), 1, %s894_s15   ;;  %s734_s6 = sshll.u32 (!%p267_p8), %s902_s17, 5 }
  0x19   : > { %270 = sbr.rel (%p267_p8) target bundleno = 306 (0x132), region = 70  ;;  %s733_s7 = sshll.u32 (!%p267_p8), %s273_s5, 5 }
  0x1a   : > { %p318_p9 = scmp.lt.s32.totalorder (!%p267_p8), %s734_s6, 159  ;;  %s990_s12 = scalar_lea.vmem (!%p267_p8), [#allocation3], %s733_s7 }
  0x1b   : > { %p736_p10 = scmp.ne.s32.totalorder (!%p267_p8), %s902_s17, 0 }
  0x20   : > { %s1059_s6 = smov (!%p318_p9, %s734_s6), 159  ;;  %345 = sbr.rel (%p736_p10) target bundleno = 39 (0x27), region = 78 }
  0x21   : > { %s735_s8 = sshll.u32 %s1059_s6, 2  ;;  %v912_v4 = vmov (!%p736_p10), 0.0  }
  0x22   : > { %s988_s11 = scalar_lea.vmem %s1048_s1, %s735_s8  ;;  %346 = vst [vmem:[#allocation2] sm:$0xff] (!%p736_p10), %v912_v4  ;;  %347 = vst [vmem:[#allocation2 + $0x8] sm:$0xff] (!%p736_p10), %v912_v4 }
  0x23   : > { %348 = vst [vmem:[#allocation2 + $0x10] sm:$0xff] (!%p736_p10), %v912_v4  ;;  %349 = vst [vmem:[#allocation2 + $0x18] sm:$0xff] (!%p736_p10), %v912_v4 }
  0x27 PF: > { %v850_v5 = vld [vmem:[%s988_s11 + $0x40] sm:$0xff]   ;;  %v852_v7 = vld [vmem:[%s988_s11 + $0x48] sm:$0xff]   ;;  %v854_v9 = vld [vmem:[%s988_s11 + $0x50] sm:$0xff]   ;;  %p757_p11 = scmp.ne.s32.totalorder %s902_s17, 4 }
  0x28   : > { %v851_v6 = vld [vmem:[%s988_s11] sm:$0xff]   ;;  %765 = vmatprep.subr.bf16.mxu0 %v850_v5  ;;  %793 = vmatprep.subr.bf16.mxu1 %v850_v5  ;;  %v853_v8 = vld [vmem:[%s988_s11 + $0x8] sm:$0xff]   ;;  %v855_v10 = vld [vmem:[%s988_s11 + $0x10] sm:$0xff]  }
  0x29   : > { %766 = vmatpush3.bf16.msra.mxu0 %v851_v6  ;;  %801 = vmatpush3.bf16.msra.mxu1 %v851_v6  ;;  %v856_v11 = vld [vmem:[%s988_s11 + $0x58] sm:$0xff]   ;;  %v858_v13 = vld [vmem:[%s988_s11 + $0x60] sm:$0xff]   ;;  %v860_v15 = vld [vmem:[%s988_s11 + $0x68] sm:$0xff]  }
  0x2a   : > { %767 = vmatprep.subr.bf16.mxu0 %v852_v7  ;;  %794 = vmatprep.subr.bf16.mxu1 %v852_v7  ;;  %v857_v12 = vld [vmem:[%s988_s11 + $0x18] sm:$0xff]   ;;  %v859_v14 = vld [vmem:[%s988_s11 + $0x20] sm:$0xff]   ;;  %v861_v18 = vld [vmem:[%s988_s11 + $0x28] sm:$0xff]  }
  0x2b   : > { %v868_v16 = vld [vmem:[%s990_s12 + $0x4] ss:$8 sps:$4 sm:$0xff]   ;;  %v871_v17 = vld [vmem:[%s990_s12 + $0x14] ss:$8 sps:$4 sm:$0xff]   ;;  %v866_v23 = vld [vmem:[%s990_s12] ss:$8 sps:$4 sm:$0xff]  }
  0x2c   : > { %v862_v19 = vld [vmem:[%s988_s11 + $0x70] sm:$0xff]   ;;  %538 = vmatprep.mubr.bf16.mxu0 %v868_v16  ;;  %546 = vmatprep.mubr.bf16.mxu1 %v871_v17  ;;  %v864_v21 = vld [vmem:[%s988_s11 + $0x78] sm:$0xff]   ;;  %v350_v27 = vld [vmem:[#allocation2] sm:$0xff] }
  0x2d   : > { %768 = vmatpush3.bf16.msra.mxu0 %v853_v8  ;;  %802 = vmatpush3.bf16.msra.mxu1 %v853_v8  ;;  %v863_v20 = vld [vmem:[%s988_s11 + $0x30] sm:$0xff]   ;;  %v865_v22 = vld [vmem:[%s988_s11 + $0x38] sm:$0xff]   ;;  %v351_v35 = vld [vmem:[#allocation2 + $0x8] sm:$0xff] }
  0x2e   : > { %769 = vmatprep.subr.bf16.mxu0 %v854_v9  ;;  %795 = vmatprep.subr.bf16.mxu1 %v854_v9  ;;  %v869_v24 = vld [vmem:[%s990_s12 + $0x10] ss:$8 sps:$4 sm:$0xff]   ;;  %v758_v46 = vld [vmem:[%s1049_s2] ss:$0 sm:$0xff] (!%p757_p11) }
  0x2f   : > { %v352_v29 = vld [vmem:[#allocation2 + $0x10] sm:$0xff]  ;;  %v353_v37 = vld [vmem:[#allocation2 + $0x18] sm:$0xff]  ;;  %v759_v47 = vld [vmem:[%s1050_s3] ss:$0 sm:$0xff] (!%p757_p11) }
  0x31   : > { %770 = vmatpush3.bf16.msra.mxu0 %v855_v10  ;;  %803 = vmatpush3.bf16.msra.mxu1 %v855_v10 }
  0x32   : > { %771 = vmatprep.subr.bf16.mxu0 %v856_v11  ;;  %796 = vmatprep.subr.bf16.mxu1 %v856_v11 }
  0x35   : > { %772 = vmatpush3.bf16.msra.mxu0 %v857_v12  ;;  %804 = vmatpush3.bf16.msra.mxu1 %v857_v12 }
  0x36   : > { %773 = vmatprep.subr.bf16.mxu0 %v858_v13  ;;  %797 = vmatprep.subr.bf16.mxu1 %v858_v13 }
  0x39   : > { %774 = vmatpush3.bf16.msra.mxu0 %v859_v14  ;;  %805 = vmatpush3.bf16.msra.mxu1 %v859_v14 }
  0x3a   : > { %775 = vmatprep.subr.bf16.mxu0 %v860_v15  ;;  %798 = vmatprep.subr.bf16.mxu1 %v860_v15 }
  0x3d   : > { %776 = vmatpush3.bf16.msra.mxu0 %v861_v18  ;;  %806 = vmatpush3.bf16.msra.mxu1 %v861_v18 }
  0x3e   : > { %777 = vmatprep.subr.bf16.mxu0 %v862_v19  ;;  %799 = vmatprep.subr.bf16.mxu1 %v862_v19 }
  0x41   : > { %778 = vmatpush3.bf16.msra.mxu0 %v863_v20  ;;  %807 = vmatpush3.bf16.msra.mxu1 %v863_v20 }
  0x42   : > { %779 = vmatprep.subr.bf16.mxu0 %v864_v21  ;;  %800 = vmatprep.subr.bf16.mxu1 %v864_v21 }
  0x45   : > { %780 = vmatpush3.bf16.msra.mxu0 %v865_v22  ;;  %808 = vmatpush3.bf16.msra.mxu1 %v865_v22 }
  0x48   : > { %539 = vmatmul.mubr.bf16.vlgmr.msra.gmra.mrb[0].mxu0 %v866_v23  ;;  %547 = vmatmul.mubr.bf16.vlgmr.msra.gmra.mrb[0].mxu1 %v869_v24 }
 0x11b   : > { %v781_v25 = vpop.f32.mrb[0].mxu0  ;;  %v787_v26 = vpop.f32.mrb[0].mxu1 }
 0x11c   : > { %v782_v28 = vpop.f32.mrb[1].mxu0  ;;  %v788_v30 = vpop.f32.mrb[1].mxu1 }
 0x11d   : > { %v783_v31 = vadd.f32 %v782_v28, %v781_v25  ;;  %v789_v32 = vadd.f32 %v788_v30, %v787_v26  ;;  %v784_v33 = vpop.f32.mrb[2].mxu0  ;;  %v790_v34 = vpop.f32.mrb[2].mxu1  ;;  %566 = sbr.rel (%p757_p11) target bundleno = 306 (0x132), region = 82 }
 0x11e   : > { %v785_v36 = vpop.f32.mrb[3].mxu0  ;;  %v791_v38 = vpop.f32.mrb[3].mxu1 }
 0x11f   : > { %v555_v39 = vadd.f32 %v783_v31, %v350_v27  ;;  %v557_v40 = vadd.f32 %v789_v32, %v352_v29  ;;  %v786_v41 = vadd.f32 %v785_v36, %v784_v33  ;;  %v792_v42 = vadd.f32 %v791_v38, %v790_v34 }
 0x121   : > { %559 = vst [vmem:[#allocation2] sm:$0xff] %v555_v39  ;;  %561 = vst [vmem:[#allocation2 + $0x10] sm:$0xff] %v557_v40  ;;  %v556_v43 = vadd.f32 %v786_v41, %v351_v35  ;;  %v558_v44 = vadd.f32 %v792_v42, %v353_v37 }
 0x123   : > { %560 = vst [vmem:[#allocation2 + $0x8] sm:$0xff] %v556_v43  ;;  %562 = vst [vmem:[#allocation2 + $0x18] sm:$0xff] %v558_v44 }
 0x128   : > { %v567_v45 = vld [vmem:[#allocation2] sm:$0xff]  ;;  %v569_v50 = vld [vmem:[#allocation2 + $0x10] sm:$0xff] }
 0x129   : > { %v578_v48 = vmul.f32 %v758_v46, %v567_v45  ;;  %v580_v53 = vmul.f32 %v758_v46, %v569_v50 }
 0x12a   : > { %v568_v49 = vld [vmem:[#allocation2 + $0x8] sm:$0xff]  ;;  %v570_v51 = vld [vmem:[#allocation2 + $0x18] sm:$0xff] }
 0x12b   : > { %v579_v52 = vmul.f32 %v758_v46, %v568_v49  ;;  %v581_v54 = vmul.f32 %v758_v46, %v570_v51  ;;  %v589_v55 = vadd.f32 %v759_v47, %v578_v48  ;;  %v591_v57 = vadd.f32 %v759_v47, %v580_v53 }
 0x12d   : > { %v590_v56 = vadd.f32 %v759_v47, %v579_v52  ;;  %v592_v58 = vadd.f32 %v759_v47, %v581_v54  ;;  %v593_v59 = vmax.f32 %v589_v55, 0.0  ;;  %v595_v61 = vmax.f32 %v591_v57, 0.0 }
 0x12f   : > { %v594_v60 = vmax.f32 %v590_v56, 0.0  ;;  %v596_v62 = vmax.f32 %v592_v58, 0.0  ;;  %597 = vst [vmem:[%s1051_s4] sm:$0xff] %v593_v59  ;;  %599 = vst [vmem:[%s1051_s4 + $0x10] sm:$0xff] %v595_v61 }
 0x131   : > { %598 = vst [vmem:[%s1051_s4 + $0x8] sm:$0xff] %v594_v60  ;;  %600 = vst [vmem:[%s1051_s4 + $0x18] sm:$0xff] %v596_v62 }
 0x132 PF: > { %s14_s19 = sadd.s32 1, %s910_s19   ;;  %s1052_s15 = smov %s898_s16 }
 0x133   : > { %p11_p12 = scmp.ge.s32.totalorder %s14_s19, 7   ;;  %s1053_s16 = smov %s973_s23 }
 0x134   : > { %s1054_s17 = smov %s906_s18  ;;  %s1055_s18 = smov %s1057_s20 }
 0x135   :  { %13 = sbr.rel (!%p11_p12) target bundleno = 3 (0x3), region = 126 }

// kernel: resnet18_forward.33
= control target key start
LH: loop header
LB: loop body
LE: loop exit
PB: predicated region body
PF: predicated region fallthrough
CT: control target
= control target key end

     0   :  { %s920_s15 = smov 0   ;;  %s922_s16 = smov 0   ;;  %s1008_s0 = inlined_call_operand.vmem [shape: bf16[8,1280], index: 0, kind: input, shape index: {}]   ;;  %s1009_s1 = inlined_call_operand.vmem [shape: bf16[1280,256], index: 1, kind: input, shape index: {}]   ;;  %s1010_s2 = inlined_call_operand.vmem [shape: f32[1,256], index: 2, kind: input, shape index: {}]   ;;  %s1011_s3 = inlined_call_operand.vmem [shape: f32[1,256], index: 3, kind: input, shape index: {}]   ;;  %s1012_s4 = inlined_call_operand.vmem [shape: f32[8,256], index: 4, kind: output, shape index: {}]  }
   0x1   :  { %s924_s17 = smov 0  }
   0x2 LB: > { %s26_s18 = sadd.s32 1, %s888_s16  ;;  %p748_p0 = scmp.ge.s32.totalorder %s892_s17, 1  ;;  %s892_s17 = sphi %s924_s17, %s14_s17   ;;  %s888_s16 = sphi %s922_s16, %s1014_s16   ;;  %s884_s15 = sphi %s920_s15, %s1013_s15  }
   0x3   : > { %p27_p1 = scmp.ge.s32.totalorder %s26_s18, 5  ;;  %p229_p2 = scmp.lt.s32.totalorder %s892_s17, 6 }
   0x5   : > { %s1016_s18 = smov (%p27_p1, %s26_s18), 0  ;;  %p230_p3 = pnand %p748_p0, %p229_p2 }
   0x6   : > { %s749_s19 = sshll.u32 (!%p230_p3), %s884_s15, 1  ;;  %s751_s20 = sshll.u32 (!%p230_p3), %s884_s15, 5 }
   0x7   : > { %233 = sbr.rel (%p230_p3) target bundleno = 319 (0x13f), region = 36  ;;  %p284_p4 = scmp.lt.s32.totalorder (!%p230_p3), %s749_s19, 9 }
   0x8   : > { %p293_p5 = scmp.lt.s32.totalorder (!%p230_p3), %s751_s20, 159  ;;  %p754_p6 = scmp.ne.s32.totalorder (!%p230_p3), %s884_s15, 0 }
   0xe   : > { %s1018_s19 = smov (!%p284_p4, %s749_s19), 9  ;;  %s1020_s20 = smov (!%p293_p5, %s751_s20), 159 }
   0xf   : > { %s750_s21 = sshll.u32 %s1018_s19, 2  ;;  %s794_s25 = sshll.u32 %s1020_s20, 3  ;;  %v894_v0 = vmov (!%p754_p6), 0.0  }
  0x10   : > { %s945_s24 = scalar_lea.vmem %s1008_s0, %s750_s21  ;;  %s950_s28 = scalar_lea.vmem %s1009_s1, %s794_s25  ;;  %327 = vst [vmem:[#allocation2] sm:$0xff] (!%p754_p6), %v894_v0  ;;  %328 = vst [vmem:[#allocation2 + $0x8] sm:$0xff] (!%p754_p6), %v894_v0 }
  0x11   : > { %326 = sbr.rel (%p754_p6) target bundleno = 24 (0x18), region = 40 }
  0x18 PF: > { %v820_v1 = vld [vmem:[%s950_s28 + $0x4] ss:$8 sps:$4 sm:$0xff]   ;;  %v822_v2 = vld [vmem:[%s950_s28] ss:$8 sps:$4 sm:$0xff]   ;;  %v823_v3 = vld [vmem:[%s950_s28 + $0x14] ss:$8 sps:$4 sm:$0xff]  }
  0x19   : > { %531 = vmatprep.subr.bf16.mxu0 %v820_v1  ;;  %v825_v4 = vld [vmem:[%s950_s28 + $0x10] ss:$8 sps:$4 sm:$0xff]   ;;  %v826_v5 = vld [vmem:[%s950_s28 + $0x24] ss:$8 sps:$4 sm:$0xff]   ;;  %v828_v6 = vld [vmem:[%s950_s28 + $0x20] ss:$8 sps:$4 sm:$0xff]  }
  0x1a   : > { %532 = vmatpush1.bf16.msra.mxu0 %v822_v2  ;;  %v829_v7 = vld [vmem:[%s950_s28 + $0x34] ss:$8 sps:$4 sm:$0xff]   ;;  %v831_v8 = vld [vmem:[%s950_s28 + $0x30] ss:$8 sps:$4 sm:$0xff]   ;;  %v832_v9 = vld [vmem:[%s950_s28 + $0x44] ss:$8 sps:$4 sm:$0xff]  }
  0x1b   : > { %533 = vmatprep.subr.bf16.mxu0 %v823_v3  ;;  %v834_v10 = vld [vmem:[%s950_s28 + $0x40] ss:$8 sps:$4 sm:$0xff]   ;;  %v835_v11 = vld [vmem:[%s950_s28 + $0x54] ss:$8 sps:$4 sm:$0xff]   ;;  %v837_v12 = vld [vmem:[%s950_s28 + $0x50] ss:$8 sps:$4 sm:$0xff]  }
  0x1c   : > { %v838_v13 = vld [vmem:[%s950_s28 + $0x64] ss:$8 sps:$4 sm:$0xff]   ;;  %v840_v16 = vld [vmem:[%s950_s28 + $0x60] ss:$8 sps:$4 sm:$0xff]   ;;  %v841_v17 = vld [vmem:[%s950_s28 + $0x74] ss:$8 sps:$4 sm:$0xff]  }
  0x1d   : > { %v331_v14 = vld [vmem:[%s945_s24] sm:$0xff]  ;;  %v843_v18 = vld [vmem:[%s950_s28 + $0x70] ss:$8 sps:$4 sm:$0xff]   ;;  %v847_v21 = vld [vmem:[%s950_s28 + $0x94] ss:$8 sps:$4 sm:$0xff]   ;;  %p789_p7 = scmp.ne.s32.totalorder %s884_s15, 4 }
  0x1e   : > { %534 = vmatpush1.bf16.msra.mxu0 %v825_v4  ;;  %v756_v15 = vcombine.high %v331_v14, %v331_v14  ;;  %v844_v19 = vld [vmem:[%s950_s28 + $0x84] ss:$8 sps:$4 sm:$0xff]   ;;  %v846_v20 = vld [vmem:[%s950_s28 + $0x80] ss:$8 sps:$4 sm:$0xff]   ;;  %v849_v22 = vld [vmem:[%s950_s28 + $0x90] ss:$8 sps:$4 sm:$0xff]   ;;  %v755_v35 = vcombine.low %v331_v14, %v331_v14  ;;  %v584_v44 = vlaneseq (!%p789_p7) }
  0x1f   : > { %535 = vmatprep.subr.bf16.mxu0 %v826_v5  ;;  %v850_v23 = vld [vmem:[%s950_s28 + $0xa4] ss:$8 sps:$4 sm:$0xff]   ;;  %v852_v24 = vld [vmem:[%s950_s28 + $0xa0] ss:$8 sps:$4 sm:$0xff]   ;;  %v853_v25 = vld [vmem:[%s950_s28 + $0xb4] ss:$8 sps:$4 sm:$0xff]  }
  0x20   : > { %563 = vmatprep.mubr.bf16.mxu0 %v756_v15  ;;  %v855_v26 = vld [vmem:[%s950_s28 + $0xb0] ss:$8 sps:$4 sm:$0xff]   ;;  %v856_v27 = vld [vmem:[%s950_s28 + $0xc4] ss:$8 sps:$4 sm:$0xff]   ;;  %v858_v28 = vld [vmem:[%s950_s28 + $0xc0] ss:$8 sps:$4 sm:$0xff]  }
  0x21   : > { %v859_v29 = vld [vmem:[%s950_s28 + $0xd4] ss:$8 sps:$4 sm:$0xff]   ;;  %v861_v30 = vld [vmem:[%s950_s28 + $0xd0] ss:$8 sps:$4 sm:$0xff]   ;;  %v862_v31 = vld [vmem:[%s950_s28 + $0xe4] ss:$8 sps:$4 sm:$0xff]  }
  0x22   : > { %536 = vmatpush1.bf16.msra.mxu0 %v828_v6  ;;  %v864_v32 = vld [vmem:[%s950_s28 + $0xe0] ss:$8 sps:$4 sm:$0xff]   ;;  %v865_v33 = vld [vmem:[%s950_s28 + $0xf4] ss:$8 sps:$4 sm:$0xff]   ;;  %v867_v34 = vld [vmem:[%s950_s28 + $0xf0] ss:$8 sps:$4 sm:$0xff]  }
  0x23   : > { %537 = vmatprep.subr.bf16.mxu0 %v829_v7  ;;  %v329_v36 = vld [vmem:[#allocation2] sm:$0xff]  ;;  %v330_v37 = vld [vmem:[#allocation2 + $0x8] sm:$0xff]  ;;  %v585_v45 = vshrl.u32 (!%p789_p7), %v584_v44, 7 }
  0x24   : > { %v582_v46 = vld [vmem:[%s1010_s2] sm:$0x3] (!%p789_p7) }
  0x25   : > { %v596_v47 = vld [vmem:[%s1011_s3] sm:$0x3] (!%p789_p7)  ;;  %v586_v48 = vsub.s32 (!%p789_p7), 0, %v585_v45  ;;  %v590_v49 = vsub.s32 (!%p789_p7), 1, %v585_v45 }
  0x26   : > { %538 = vmatpush1.bf16.msra.mxu0 %v831_v8 }
  0x27   : > { %539 = vmatprep.subr.bf16.mxu0 %v832_v9  ;;  %v587_v52 = vrot.slane (!%p789_p7), %v582_v46, %v586_v48  ;;  %v601_v53 = vrot.slane (!%p789_p7), %v596_v47, %v586_v48  ;;  %v591_v54 = vrot.slane (!%p789_p7), %v582_v46, %v590_v49  ;;  %v605_v55 = vrot.slane (!%p789_p7), %v596_v47, %v590_v49 }
  0x2a   : > { %540 = vmatpush1.bf16.msra.mxu0 %v834_v10 }
  0x2b   : > { %541 = vmatprep.subr.bf16.mxu0 %v835_v11 }
  0x2e   : > { %542 = vmatpush1.bf16.msra.mxu0 %v837_v12 }
  0x2f   : > { %543 = vmatprep.subr.bf16.mxu0 %v838_v13 }
  0x32   : > { %544 = vmatpush1.bf16.msra.mxu0 %v840_v16 }
  0x33   : > { %545 = vmatprep.subr.bf16.mxu0 %v841_v17 }
  0x36   : > { %546 = vmatpush1.bf16.msra.mxu0 %v843_v18 }
  0x37   : > { %547 = vmatprep.subr.bf16.mxu0 %v844_v19 }
  0x3a   : > { %548 = vmatpush1.bf16.msra.mxu0 %v846_v20 }
  0x3b   : > { %549 = vmatprep.subr.bf16.mxu0 %v847_v21 }
  0x3e   : > { %550 = vmatpush1.bf16.msra.mxu0 %v849_v22 }
  0x3f   : > { %551 = vmatprep.subr.bf16.mxu0 %v850_v23 }
  0x42   : > { %552 = vmatpush1.bf16.msra.mxu0 %v852_v24 }
  0x43   : > { %553 = vmatprep.subr.bf16.mxu0 %v853_v25 }
  0x46   : > { %554 = vmatpush1.bf16.msra.mxu0 %v855_v26 }
  0x47   : > { %555 = vmatprep.subr.bf16.mxu0 %v856_v27 }
  0x4a   : > { %556 = vmatpush1.bf16.msra.mxu0 %v858_v28 }
  0x4b   : > { %557 = vmatprep.subr.bf16.mxu0 %v859_v29 }
  0x4e   : > { %558 = vmatpush1.bf16.msra.mxu0 %v861_v30 }
  0x4f   : > { %559 = vmatprep.subr.bf16.mxu0 %v862_v31 }
  0x52   : > { %560 = vmatpush1.bf16.msra.mxu0 %v864_v32 }
  0x53   : > { %561 = vmatprep.subr.bf16.mxu0 %v865_v33 }
  0x56   : > { %562 = vmatpush1.bf16.msra.mxu0 %v867_v34 }
  0x59   : > { %564 = vmatmul.mubr.bf16.vlgmr.msra.gmra.mrb[0].mxu0 %v755_v35 }
 0x12a   : > { %579 = sbr.rel (%p789_p7) target bundleno = 319 (0x13f), region = 44 }
 0x12c   : > { %v565_v38 = vpop.f32.mrb[0].mxu0 }
 0x12d   : > { %v572_v39 = vadd.f32 %v565_v38, %v329_v36  ;;  %v567_v40 = vpop.f32.mrb[1].mxu0 }
 0x12e   : > { %v573_v41 = vadd.f32 %v567_v40, %v330_v37  ;;  %v569_v42 = vpop.f32.mrb[2].mxu0 }
 0x12f   : > { %574 = vst [vmem:[#allocation2] sm:$0xff] %v572_v39  ;;  %v570_v43 = vpop.f32.mrb[3].mxu0 }
 0x130   : > { %575 = vst [vmem:[#allocation2 + $0x8] sm:$0xff] %v573_v41 }
 0x136   : > { %v580_v50 = vld [vmem:[#allocation2] sm:$0xff] }
 0x137   : > { %v581_v51 = vld [vmem:[#allocation2 + $0x8] sm:$0xff]  ;;  %v594_v56 = vmul.f32 %v587_v52, %v580_v50 }
 0x138   : > { %v595_v57 = vmul.f32 %v591_v54, %v581_v51 }
 0x139   : > { %v608_v58 = vadd.f32 %v601_v53, %v594_v56 }
 0x13a   : > { %v609_v59 = vadd.f32 %v605_v55, %v595_v57 }
 0x13b   : > { %v610_v60 = vmax.f32 %v608_v58, 0.0 }
 0x13c   : > { %v611_v61 = vmax.f32 %v609_v59, 0.0 }
 0x13d   : > { %612 = vst [vmem:[%s1012_s4] sm:$0xff] %v610_v60 }
 0x13e   : > { %613 = vst [vmem:[%s1012_s4 + $0x8] sm:$0xff] %v611_v61 }
 0x13f PF: > { %s14_s17 = sadd.s32 1, %s892_s17   ;;  %s1013_s15 = smov %s888_s16 }
 0x140   : > { %p11_p8 = scmp.ge.s32.totalorder %s14_s17, 7   ;;  %s1014_s16 = smov %s1016_s18 }
 0x142   :  { %13 = sbr.rel (!%p11_p8) target bundleno = 2 (0x2), region = 83 }

// kernel: resnet18_forward.34
= control target key start
LH: loop header
LB: loop body
LE: loop exit
PB: predicated region body
PF: predicated region fallthrough
CT: control target
= control target key end

     0   :  { %v248_v1 = vmov 0   ;;  %v175_v18 = vlaneseq  ;;  %s337_s1 = inlined_call_operand.vmem [shape: bf16[128,256], index: 1, kind: input, shape index: {}]   ;;  %s338_s0 = inlined_call_operand.vmem [shape: bf16[8,128], index: 0, kind: input, shape index: {}]   ;;  %s339_s2 = inlined_call_operand.vmem [shape: f32[1,256], index: 2, kind: input, shape index: {}]   ;;  %s340_s3 = inlined_call_operand.vmem [shape: f32[1,256], index: 3, kind: input, shape index: {}]   ;;  %s341_s4 = inlined_call_operand.vmem [shape: f32[8,256], index: 4, kind: output, shape index: {}]  }
   0x1   :  { %v224_v0 = vld [vmem:[%s337_s1 + $0x4] ss:$8 sps:$4 sm:$0xff]   ;;  %155 = vmatprep.mubr.bf16.mxu0 %v248_v1  ;;  %v226_v2 = vld [vmem:[%s337_s1] ss:$8 sps:$4 sm:$0xff]   ;;  %v227_v3 = vld [vmem:[%s337_s1 + $0x14] ss:$8 sps:$4 sm:$0xff]  }
   0x2   :  { %123 = vmatprep.subr.bf16.mxu0 %v224_v0  ;;  %v229_v4 = vld [vmem:[%s337_s1 + $0x10] ss:$8 sps:$4 sm:$0xff]   ;;  %v230_v5 = vld [vmem:[%s337_s1 + $0x24] ss:$8 sps:$4 sm:$0xff]   ;;  %v232_v6 = vld [vmem:[%s337_s1 + $0x20] ss:$8 sps:$4 sm:$0xff]  }
   0x3   :  { %124 = vmatpush1.bf16.msra.mxu0 %v226_v2  ;;  %v233_v7 = vld [vmem:[%s337_s1 + $0x34] ss:$8 sps:$4 sm:$0xff]   ;;  %v235_v8 = vld [vmem:[%s337_s1 + $0x30] ss:$8 sps:$4 sm:$0xff]   ;;  %v236_v9 = vld [vmem:[%s337_s1 + $0x44] ss:$8 sps:$4 sm:$0xff]  }
   0x4   :  { %125 = vmatprep.subr.bf16.mxu0 %v227_v3  ;;  %v238_v10 = vld [vmem:[%s337_s1 + $0x40] ss:$8 sps:$4 sm:$0xff]   ;;  %v239_v11 = vld [vmem:[%s337_s1 + $0x54] ss:$8 sps:$4 sm:$0xff]   ;;  %v241_v12 = vld [vmem:[%s337_s1 + $0x50] ss:$8 sps:$4 sm:$0xff]  }
   0x5   :  { %v242_v13 = vld [vmem:[%s337_s1 + $0x64] ss:$8 sps:$4 sm:$0xff]   ;;  %v244_v14 = vld [vmem:[%s337_s1 + $0x60] ss:$8 sps:$4 sm:$0xff]   ;;  %v245_v15 = vld [vmem:[%s337_s1 + $0x74] ss:$8 sps:$4 sm:$0xff]  }
   0x6   :  { %v247_v16 = vld [vmem:[%s337_s1 + $0x70] ss:$8 sps:$4 sm:$0xff]   ;;  %v26_v17 = vld [vmem:[%s338_s0] sm:$0xf]  ;;  %v176_v19 = vshrl.u32 %v175_v18, 7 }
   0x7   :  { %126 = vmatpush1.bf16.msra.mxu0 %v229_v4  ;;  %v173_v21 = vld [vmem:[%s339_s2] sm:$0x3] }
   0x8   :  { %127 = vmatprep.subr.bf16.mxu0 %v230_v5  ;;  %v177_v20 = vsub.s32 0, %v176_v19  ;;  %v181_v22 = vsub.s32 1, %v176_v19  ;;  %v187_v23 = vld [vmem:[%s340_s3] sm:$0x3] }
   0xa   :  { %v178_v24 = vrot.slane %v173_v21, %v177_v20  ;;  %v182_v25 = vrot.slane %v173_v21, %v181_v22  ;;  %v192_v26 = vrot.slane %v187_v23, %v177_v20  ;;  %v196_v28 = vrot.slane %v187_v23, %v181_v22 }
   0xb   :  { %128 = vmatpush1.bf16.msra.mxu0 %v232_v6 }
   0xc   :  { %129 = vmatprep.subr.bf16.mxu0 %v233_v7 }
   0xf   :  { %130 = vmatpush1.bf16.msra.mxu0 %v235_v8 }
  0x10   :  { %131 = vmatprep.subr.bf16.mxu0 %v236_v9 }
  0x13   :  { %132 = vmatpush1.bf16.msra.mxu0 %v238_v10 }
  0x14   :  { %133 = vmatprep.subr.bf16.mxu0 %v239_v11 }
  0x17   :  { %134 = vmatpush1.bf16.msra.mxu0 %v241_v12 }
  0x18   :  { %135 = vmatprep.subr.bf16.mxu0 %v242_v13 }
  0x1b   :  { %136 = vmatpush1.bf16.msra.mxu0 %v244_v14 }
  0x1c   :  { %137 = vmatprep.subr.bf16.mxu0 %v245_v15 }
  0x1f   :  { %138 = vmatpush1.bf16.msra.mxu0 %v247_v16 }
  0x22   :  { %156 = vmatmul.mubr.bf16.vlgmr.msra.gmra.mrb[0].mxu0 %v26_v17 }
  0xf5   :  { %v157_v27 = vpop.f32.mrb[0].mxu0 }
  0xf6   :  { %v185_v29 = vmul.f32 %v178_v24, %v157_v27  ;;  %v159_v30 = vpop.f32.mrb[1].mxu0 }
  0xf7   :  { %v186_v31 = vmul.f32 %v182_v25, %v159_v30  ;;  %v161_v32 = vpop.f32.mrb[2].mxu0 }
  0xf8   :  { %v199_v33 = vadd.f32 %v192_v26, %v185_v29  ;;  %v162_v34 = vpop.f32.mrb[3].mxu0 }
  0xf9   :  { %v200_v35 = vadd.f32 %v196_v28, %v186_v31 }
  0xfa   :  { %201 = vst [vmem:[%s341_s4] sm:$0xff] %v199_v33 }
  0xfb   :  { %202 = vst [vmem:[%s341_s4 + $0x8] sm:$0xff] %v200_v35 }

// kernel: resnet18_forward.36
= control target key start
LH: loop header
LB: loop body
LE: loop exit
PB: predicated region body
PF: predicated region fallthrough
CT: control target
= control target key end

     0   :  { %s920_s15 = smov 0   ;;  %s922_s16 = smov 0   ;;  %s1008_s0 = inlined_call_operand.vmem [shape: bf16[8,2304], index: 0, kind: input, shape index: {}]   ;;  %s1009_s1 = inlined_call_operand.vmem [shape: bf16[2304,256], index: 1, kind: input, shape index: {}]   ;;  %s1010_s2 = inlined_call_operand.vmem [shape: f32[1,256], index: 2, kind: input, shape index: {}]   ;;  %s1011_s3 = inlined_call_operand.vmem [shape: f32[1,256], index: 3, kind: input, shape index: {}]   ;;  %s1012_s4 = inlined_call_operand.vmem [shape: f32[8,256], index: 4, kind: output, shape index: {}]  }
   0x1   :  { %s924_s17 = smov 0  }
   0x2 LB: > { %s26_s18 = sadd.s32 1, %s888_s16  ;;  %p748_p0 = scmp.ge.s32.totalorder %s892_s17, 1  ;;  %s892_s17 = sphi %s924_s17, %s14_s17   ;;  %s888_s16 = sphi %s922_s16, %s1014_s16   ;;  %s884_s15 = sphi %s920_s15, %s1013_s15  }
   0x3   : > { %p27_p1 = scmp.ge.s32.totalorder %s26_s18, 9  ;;  %p229_p2 = scmp.lt.s32.totalorder %s892_s17, 10 }
   0x5   : > { %s1016_s18 = smov (%p27_p1, %s26_s18), 0  ;;  %p230_p3 = pnand %p748_p0, %p229_p2 }
   0x6   : > { %s749_s19 = sshll.u32 (!%p230_p3), %s884_s15, 1  ;;  %s751_s20 = sshll.u32 (!%p230_p3), %s884_s15, 5 }
   0x7   : > { %233 = sbr.rel (%p230_p3) target bundleno = 319 (0x13f), region = 36  ;;  %p284_p4 = scmp.lt.s32.totalorder (!%p230_p3), %s749_s19, 17 }
   0x8   : > { %p293_p5 = scmp.lt.s32.totalorder (!%p230_p3), %s751_s20, 287  ;;  %p754_p6 = scmp.ne.s32.totalorder (!%p230_p3), %s884_s15, 0 }
   0xe   : > { %s1018_s19 = smov (!%p284_p4, %s749_s19), 17  ;;  %s1020_s20 = smov (!%p293_p5, %s751_s20), 287 }
   0xf   : > { %s750_s21 = sshll.u32 %s1018_s19, 2  ;;  %s794_s25 = sshll.u32 %s1020_s20, 3  ;;  %v894_v0 = vmov (!%p754_p6), 0.0  }
  0x10   : > { %s945_s24 = scalar_lea.vmem %s1008_s0, %s750_s21  ;;  %s950_s28 = scalar_lea.vmem %s1009_s1, %s794_s25  ;;  %327 = vst [vmem:[#allocation2] sm:$0xff] (!%p754_p6), %v894_v0  ;;  %328 = vst [vmem:[#allocation2 + $0x8] sm:$0xff] (!%p754_p6), %v894_v0 }
  0x11   : > { %326 = sbr.rel (%p754_p6) target bundleno = 24 (0x18), region = 40 }
  0x18 PF: > { %v820_v1 = vld [vmem:[%s950_s28 + $0x4] ss:$8 sps:$4 sm:$0xff]   ;;  %v822_v2 = vld [vmem:[%s950_s28] ss:$8 sps:$4 sm:$0xff]   ;;  %v823_v3 = vld [vmem:[%s950_s28 + $0x14] ss:$8 sps:$4 sm:$0xff]  }
  0x19   : > { %531 = vmatprep.subr.bf16.mxu0 %v820_v1  ;;  %v825_v4 = vld [vmem:[%s950_s28 + $0x10] ss:$8 sps:$4 sm:$0xff]   ;;  %v826_v5 = vld [vmem:[%s950_s28 + $0x24] ss:$8 sps:$4 sm:$0xff]   ;;  %v828_v6 = vld [vmem:[%s950_s28 + $0x20] ss:$8 sps:$4 sm:$0xff]  }
  0x1a   : > { %532 = vmatpush1.bf16.msra.mxu0 %v822_v2  ;;  %v829_v7 = vld [vmem:[%s950_s28 + $0x34] ss:$8 sps:$4 sm:$0xff]   ;;  %v831_v8 = vld [vmem:[%s950_s28 + $0x30] ss:$8 sps:$4 sm:$0xff]   ;;  %v832_v9 = vld [vmem:[%s950_s28 + $0x44] ss:$8 sps:$4 sm:$0xff]  }
  0x1b   : > { %533 = vmatprep.subr.bf16.mxu0 %v823_v3  ;;  %v834_v10 = vld [vmem:[%s950_s28 + $0x40] ss:$8 sps:$4 sm:$0xff]   ;;  %v835_v11 = vld [vmem:[%s950_s28 + $0x54] ss:$8 sps:$4 sm:$0xff]   ;;  %v837_v12 = vld [vmem:[%s950_s28 + $0x50] ss:$8 sps:$4 sm:$0xff]  }
  0x1c   : > { %v838_v13 = vld [vmem:[%s950_s28 + $0x64] ss:$8 sps:$4 sm:$0xff]   ;;  %v840_v16 = vld [vmem:[%s950_s28 + $0x60] ss:$8 sps:$4 sm:$0xff]   ;;  %v841_v17 = vld [vmem:[%s950_s28 + $0x74] ss:$8 sps:$4 sm:$0xff]  }
  0x1d   : > { %v331_v14 = vld [vmem:[%s945_s24] sm:$0xff]  ;;  %v843_v18 = vld [vmem:[%s950_s28 + $0x70] ss:$8 sps:$4 sm:$0xff]   ;;  %v847_v21 = vld [vmem:[%s950_s28 + $0x94] ss:$8 sps:$4 sm:$0xff]   ;;  %p789_p7 = scmp.ne.s32.totalorder %s884_s15, 8 }
  0x1e   : > { %534 = vmatpush1.bf16.msra.mxu0 %v825_v4  ;;  %v756_v15 = vcombine.high %v331_v14, %v331_v14  ;;  %v844_v19 = vld [vmem:[%s950_s28 + $0x84] ss:$8 sps:$4 sm:$0xff]   ;;  %v846_v20 = vld [vmem:[%s950_s28 + $0x80] ss:$8 sps:$4 sm:$0xff]   ;;  %v849_v22 = vld [vmem:[%s950_s28 + $0x90] ss:$8 sps:$4 sm:$0xff]   ;;  %v755_v35 = vcombine.low %v331_v14, %v331_v14  ;;  %v584_v44 = vlaneseq (!%p789_p7) }
  0x1f   : > { %535 = vmatprep.subr.bf16.mxu0 %v826_v5  ;;  %v850_v23 = vld [vmem:[%s950_s28 + $0xa4] ss:$8 sps:$4 sm:$0xff]   ;;  %v852_v24 = vld [vmem:[%s950_s28 + $0xa0] ss:$8 sps:$4 sm:$0xff]   ;;  %v853_v25 = vld [vmem:[%s950_s28 + $0xb4] ss:$8 sps:$4 sm:$0xff]  }
  0x20   : > { %563 = vmatprep.mubr.bf16.mxu0 %v756_v15  ;;  %v855_v26 = vld [vmem:[%s950_s28 + $0xb0] ss:$8 sps:$4 sm:$0xff]   ;;  %v856_v27 = vld [vmem:[%s950_s28 + $0xc4] ss:$8 sps:$4 sm:$0xff]   ;;  %v858_v28 = vld [vmem:[%s950_s28 + $0xc0] ss:$8 sps:$4 sm:$0xff]  }
  0x21   : > { %v859_v29 = vld [vmem:[%s950_s28 + $0xd4] ss:$8 sps:$4 sm:$0xff]   ;;  %v861_v30 = vld [vmem:[%s950_s28 + $0xd0] ss:$8 sps:$4 sm:$0xff]   ;;  %v862_v31 = vld [vmem:[%s950_s28 + $0xe4] ss:$8 sps:$4 sm:$0xff]  }
  0x22   : > { %536 = vmatpush1.bf16.msra.mxu0 %v828_v6  ;;  %v864_v32 = vld [vmem:[%s950_s28 + $0xe0] ss:$8 sps:$4 sm:$0xff]   ;;  %v865_v33 = vld [vmem:[%s950_s28 + $0xf4] ss:$8 sps:$4 sm:$0xff]   ;;  %v867_v34 = vld [vmem:[%s950_s28 + $0xf0] ss:$8 sps:$4 sm:$0xff]  }
  0x23   : > { %537 = vmatprep.subr.bf16.mxu0 %v829_v7  ;;  %v329_v36 = vld [vmem:[#allocation2] sm:$0xff]  ;;  %v330_v37 = vld [vmem:[#allocation2 + $0x8] sm:$0xff]  ;;  %v585_v45 = vshrl.u32 (!%p789_p7), %v584_v44, 7 }
  0x24   : > { %v582_v46 = vld [vmem:[%s1010_s2] sm:$0x3] (!%p789_p7) }
  0x25   : > { %v596_v47 = vld [vmem:[%s1011_s3] sm:$0x3] (!%p789_p7)  ;;  %v586_v48 = vsub.s32 (!%p789_p7), 0, %v585_v45  ;;  %v590_v49 = vsub.s32 (!%p789_p7), 1, %v585_v45 }
  0x26   : > { %538 = vmatpush1.bf16.msra.mxu0 %v831_v8 }
  0x27   : > { %539 = vmatprep.subr.bf16.mxu0 %v832_v9  ;;  %v587_v52 = vrot.slane (!%p789_p7), %v582_v46, %v586_v48  ;;  %v601_v53 = vrot.slane (!%p789_p7), %v596_v47, %v586_v48  ;;  %v591_v54 = vrot.slane (!%p789_p7), %v582_v46, %v590_v49  ;;  %v605_v55 = vrot.slane (!%p789_p7), %v596_v47, %v590_v49 }
  0x2a   : > { %540 = vmatpush1.bf16.msra.mxu0 %v834_v10 }
  0x2b   : > { %541 = vmatprep.subr.bf16.mxu0 %v835_v11 }
  0x2e   : > { %542 = vmatpush1.bf16.msra.mxu0 %v837_v12 }
  0x2f   : > { %543 = vmatprep.subr.bf16.mxu0 %v838_v13 }
  0x32   : > { %544 = vmatpush1.bf16.msra.mxu0 %v840_v16 }
  0x33   : > { %545 = vmatprep.subr.bf16.mxu0 %v841_v17 }
  0x36   : > { %546 = vmatpush1.bf16.msra.mxu0 %v843_v18 }
  0x37   : > { %547 = vmatprep.subr.bf16.mxu0 %v844_v19 }
  0x3a   : > { %548 = vmatpush1.bf16.msra.mxu0 %v846_v20 }
  0x3b   : > { %549 = vmatprep.subr.bf16.mxu0 %v847_v21 }
  0x3e   : > { %550 = vmatpush1.bf16.msra.mxu0 %v849_v22 }
  0x3f   : > { %551 = vmatprep.subr.bf16.mxu0 %v850_v23 }
  0x42   : > { %552 = vmatpush1.bf16.msra.mxu0 %v852_v24 }
  0x43   : > { %553 = vmatprep.subr.bf16.mxu0 %v853_v25 }
  0x46   : > { %554 = vmatpush1.bf16.msra.mxu0 %v855_v26 }
  0x47   : > { %555 = vmatprep.subr.bf16.mxu0 %v856_v27 }
  0x4a   : > { %556 = vmatpush1.bf16.msra.mxu0 %v858_v28 }
  0x4b   : > { %557 = vmatprep.subr.bf16.mxu0 %v859_v29 }
  0x4e   : > { %558 = vmatpush1.bf16.msra.mxu0 %v861_v30 }
  0x4f   : > { %559 = vmatprep.subr.bf16.mxu0 %v862_v31 }
  0x52   : > { %560 = vmatpush1.bf16.msra.mxu0 %v864_v32 }
  0x53   : > { %561 = vmatprep.subr.bf16.mxu0 %v865_v33 }
  0x56   : > { %562 = vmatpush1.bf16.msra.mxu0 %v867_v34 }
  0x59   : > { %564 = vmatmul.mubr.bf16.vlgmr.msra.gmra.mrb[0].mxu0 %v755_v35 }
 0x12a   : > { %579 = sbr.rel (%p789_p7) target bundleno = 319 (0x13f), region = 44 }
 0x12c   : > { %v565_v38 = vpop.f32.mrb[0].mxu0 }
 0x12d   : > { %v572_v39 = vadd.f32 %v565_v38, %v329_v36  ;;  %v567_v40 = vpop.f32.mrb[1].mxu0 }
 0x12e   : > { %v573_v41 = vadd.f32 %v567_v40, %v330_v37  ;;  %v569_v42 = vpop.f32.mrb[2].mxu0 }
 0x12f   : > { %574 = vst [vmem:[#allocation2] sm:$0xff] %v572_v39  ;;  %v570_v43 = vpop.f32.mrb[3].mxu0 }
 0x130   : > { %575 = vst [vmem:[#allocation2 + $0x8] sm:$0xff] %v573_v41 }
 0x136   : > { %v580_v50 = vld [vmem:[#allocation2] sm:$0xff] }
 0x137   : > { %v581_v51 = vld [vmem:[#allocation2 + $0x8] sm:$0xff]  ;;  %v594_v56 = vmul.f32 %v587_v52, %v580_v50 }
 0x138   : > { %v595_v57 = vmul.f32 %v591_v54, %v581_v51 }
 0x139   : > { %v608_v58 = vadd.f32 %v601_v53, %v594_v56 }
 0x13a   : > { %v609_v59 = vadd.f32 %v605_v55, %v595_v57 }
 0x13b   : > { %v610_v60 = vmax.f32 %v608_v58, 0.0 }
 0x13c   : > { %v611_v61 = vmax.f32 %v609_v59, 0.0 }
 0x13d   : > { %612 = vst [vmem:[%s1012_s4] sm:$0xff] %v610_v60 }
 0x13e   : > { %613 = vst [vmem:[%s1012_s4 + $0x8] sm:$0xff] %v611_v61 }
 0x13f PF: > { %s14_s17 = sadd.s32 1, %s892_s17   ;;  %s1013_s15 = smov %s888_s16 }
 0x140   : > { %p11_p8 = scmp.ge.s32.totalorder %s14_s17, 11   ;;  %s1014_s16 = smov %s1016_s18 }
 0x142   :  { %13 = sbr.rel (!%p11_p8) target bundleno = 2 (0x2), region = 83 }

// kernel: resnet18_forward.35
= control target key start
LH: loop header
LB: loop body
LE: loop exit
PB: predicated region body
PF: predicated region fallthrough
CT: control target
= control target key end

     0   :  { %s1014_s18 = smov 0   ;;  %s1016_s19 = smov 0   ;;  %s1108_s0 = inlined_call_operand.vmem [shape: bf16[8,2304], index: 0, kind: input, shape index: {}]   ;;  %s1109_s1 = inlined_call_operand.vmem [shape: bf16[2304,256], index: 1, kind: input, shape index: {}]   ;;  %s1110_s2 = inlined_call_operand.vmem [shape: f32[1,256], index: 2, kind: input, shape index: {}]   ;;  %s1111_s3 = inlined_call_operand.vmem [shape: f32[1,256], index: 3, kind: input, shape index: {}]   ;;  %s1112_s4 = inlined_call_operand.vmem [shape: f32[8,256], index: 4, kind: input, shape index: {}]   ;;  %s1113_s5 = inlined_call_operand.vmem [shape: f32[8,256], index: 5, kind: output, shape index: {}]  }
   0x1   :  { %s1018_s20 = smov 0  }
   0x2 LB: > { %s27_s21 = sadd.s32 1, %s977_s19  ;;  %p837_p0 = scmp.ge.s32.totalorder %s981_s20, 1  ;;  %s981_s20 = sphi %s1018_s20, %s15_s20   ;;  %s977_s19 = sphi %s1016_s19, %s1115_s19   ;;  %s973_s18 = sphi %s1014_s18, %s1114_s18  }
   0x3   : > { %p28_p1 = scmp.ge.s32.totalorder %s27_s21, 9  ;;  %p271_p2 = scmp.lt.s32.totalorder %s981_s20, 10 }
   0x5   : > { %s1117_s21 = smov (%p28_p1, %s27_s21), 0  ;;  %p272_p3 = pnand %p837_p0, %p271_p2 }
   0x6   : > { %s838_s22 = sshll.u32 (!%p272_p3), %s973_s18, 1  ;;  %s840_s23 = sshll.u32 (!%p272_p3), %s973_s18, 5 }
   0x7   : > { %275 = sbr.rel (%p272_p3) target bundleno = 321 (0x141), region = 40  ;;  %p337_p4 = scmp.lt.s32.totalorder (!%p272_p3), %s838_s22, 17 }
   0x8   : > { %p346_p5 = scmp.lt.s32.totalorder (!%p272_p3), %s840_s23, 287  ;;  %p843_p6 = scmp.ne.s32.totalorder (!%p272_p3), %s973_s18, 0 }
   0xe   : > { %s1119_s22 = smov (!%p337_p4, %s838_s22), 17  ;;  %s1121_s23 = smov (!%p346_p5, %s840_s23), 287 }
   0xf   : > { %s839_s24 = sshll.u32 %s1119_s22, 2  ;;  %s883_s28 = sshll.u32 %s1121_s23, 3  ;;  %v983_v0 = vmov (!%p843_p6), 0.0  }
  0x10   : > { %s1039_s27 = scalar_lea.vmem %s1108_s0, %s839_s24  ;;  %s1044_s6 = scalar_lea.vmem %s1109_s1, %s883_s28  ;;  %390 = vst [vmem:[#allocation2] sm:$0xff] (!%p843_p6), %v983_v0  ;;  %391 = vst [vmem:[#allocation2 + $0x8] sm:$0xff] (!%p843_p6), %v983_v0 }
  0x11   : > { %389 = sbr.rel (%p843_p6) target bundleno = 24 (0x18), region = 44 }
  0x18 PF: > { %v909_v1 = vld [vmem:[%s1044_s6 + $0x4] ss:$8 sps:$4 sm:$0xff]   ;;  %v911_v2 = vld [vmem:[%s1044_s6] ss:$8 sps:$4 sm:$0xff]   ;;  %v912_v3 = vld [vmem:[%s1044_s6 + $0x14] ss:$8 sps:$4 sm:$0xff]  }
  0x19   : > { %594 = vmatprep.subr.bf16.mxu0 %v909_v1  ;;  %v914_v4 = vld [vmem:[%s1044_s6 + $0x10] ss:$8 sps:$4 sm:$0xff]   ;;  %v915_v5 = vld [vmem:[%s1044_s6 + $0x24] ss:$8 sps:$4 sm:$0xff]   ;;  %v917_v6 = vld [vmem:[%s1044_s6 + $0x20] ss:$8 sps:$4 sm:$0xff]  }
  0x1a   : > { %595 = vmatpush1.bf16.msra.mxu0 %v911_v2  ;;  %v918_v7 = vld [vmem:[%s1044_s6 + $0x34] ss:$8 sps:$4 sm:$0xff]   ;;  %v920_v8 = vld [vmem:[%s1044_s6 + $0x30] ss:$8 sps:$4 sm:$0xff]   ;;  %v921_v9 = vld [vmem:[%s1044_s6 + $0x44] ss:$8 sps:$4 sm:$0xff]  }
  0x1b   : > { %596 = vmatprep.subr.bf16.mxu0 %v912_v3  ;;  %v923_v10 = vld [vmem:[%s1044_s6 + $0x40] ss:$8 sps:$4 sm:$0xff]   ;;  %v924_v11 = vld [vmem:[%s1044_s6 + $0x54] ss:$8 sps:$4 sm:$0xff]   ;;  %v926_v12 = vld [vmem:[%s1044_s6 + $0x50] ss:$8 sps:$4 sm:$0xff]  }
  0x1c   : > { %v927_v13 = vld [vmem:[%s1044_s6 + $0x64] ss:$8 sps:$4 sm:$0xff]   ;;  %v929_v16 = vld [vmem:[%s1044_s6 + $0x60] ss:$8 sps:$4 sm:$0xff]   ;;  %v930_v17 = vld [vmem:[%s1044_s6 + $0x74] ss:$8 sps:$4 sm:$0xff]  }
  0x1d   : > { %v394_v14 = vld [vmem:[%s1039_s27] sm:$0xff]  ;;  %v932_v18 = vld [vmem:[%s1044_s6 + $0x70] ss:$8 sps:$4 sm:$0xff]   ;;  %v936_v21 = vld [vmem:[%s1044_s6 + $0x94] ss:$8 sps:$4 sm:$0xff]   ;;  %p878_p7 = scmp.ne.s32.totalorder %s973_s18, 8 }
  0x1e   : > { %597 = vmatpush1.bf16.msra.mxu0 %v914_v4  ;;  %v845_v15 = vcombine.high %v394_v14, %v394_v14  ;;  %v933_v19 = vld [vmem:[%s1044_s6 + $0x84] ss:$8 sps:$4 sm:$0xff]   ;;  %v935_v20 = vld [vmem:[%s1044_s6 + $0x80] ss:$8 sps:$4 sm:$0xff]   ;;  %v938_v22 = vld [vmem:[%s1044_s6 + $0x90] ss:$8 sps:$4 sm:$0xff]   ;;  %v844_v35 = vcombine.low %v394_v14, %v394_v14  ;;  %v647_v44 = vlaneseq (!%p878_p7) }
  0x1f   : > { %598 = vmatprep.subr.bf16.mxu0 %v915_v5  ;;  %v939_v23 = vld [vmem:[%s1044_s6 + $0xa4] ss:$8 sps:$4 sm:$0xff]   ;;  %v941_v24 = vld [vmem:[%s1044_s6 + $0xa0] ss:$8 sps:$4 sm:$0xff]   ;;  %v942_v25 = vld [vmem:[%s1044_s6 + $0xb4] ss:$8 sps:$4 sm:$0xff]  }
  0x20   : > { %626 = vmatprep.mubr.bf16.mxu0 %v845_v15  ;;  %v944_v26 = vld [vmem:[%s1044_s6 + $0xb0] ss:$8 sps:$4 sm:$0xff]   ;;  %v945_v27 = vld [vmem:[%s1044_s6 + $0xc4] ss:$8 sps:$4 sm:$0xff]   ;;  %v947_v28 = vld [vmem:[%s1044_s6 + $0xc0] ss:$8 sps:$4 sm:$0xff]  }
  0x21   : > { %v948_v29 = vld [vmem:[%s1044_s6 + $0xd4] ss:$8 sps:$4 sm:$0xff]   ;;  %v950_v30 = vld [vmem:[%s1044_s6 + $0xd0] ss:$8 sps:$4 sm:$0xff]   ;;  %v951_v31 = vld [vmem:[%s1044_s6 + $0xe4] ss:$8 sps:$4 sm:$0xff]  }
  0x22   : > { %599 = vmatpush1.bf16.msra.mxu0 %v917_v6  ;;  %v953_v32 = vld [vmem:[%s1044_s6 + $0xe0] ss:$8 sps:$4 sm:$0xff]   ;;  %v954_v33 = vld [vmem:[%s1044_s6 + $0xf4] ss:$8 sps:$4 sm:$0xff]   ;;  %v956_v34 = vld [vmem:[%s1044_s6 + $0xf0] ss:$8 sps:$4 sm:$0xff]  }
  0x23   : > { %600 = vmatprep.subr.bf16.mxu0 %v918_v7  ;;  %v392_v36 = vld [vmem:[#allocation2] sm:$0xff]  ;;  %v393_v37 = vld [vmem:[#allocation2 + $0x8] sm:$0xff]  ;;  %v648_v45 = vshrl.u32 (!%p878_p7), %v647_v44, 7 }
  0x24   : > { %v645_v46 = vld [vmem:[%s1110_s2] sm:$0x3] (!%p878_p7)  ;;  %v674_v59 = vld [vmem:[%s1112_s4 + $0x8] sm:$0xff] (!%p878_p7) }
  0x25   : > { %v659_v47 = vld [vmem:[%s1111_s3] sm:$0x3] (!%p878_p7)  ;;  %v649_v48 = vsub.s32 (!%p878_p7), 0, %v648_v45  ;;  %v653_v49 = vsub.s32 (!%p878_p7), 1, %v648_v45 }
  0x26   : > { %601 = vmatpush1.bf16.msra.mxu0 %v920_v8  ;;  %v673_v58 = vld [vmem:[%s1112_s4] sm:$0xff] (!%p878_p7) }
  0x27   : > { %602 = vmatprep.subr.bf16.mxu0 %v921_v9  ;;  %v650_v52 = vrot.slane (!%p878_p7), %v645_v46, %v649_v48  ;;  %v664_v53 = vrot.slane (!%p878_p7), %v659_v47, %v649_v48  ;;  %v654_v54 = vrot.slane (!%p878_p7), %v645_v46, %v653_v49  ;;  %v668_v55 = vrot.slane (!%p878_p7), %v659_v47, %v653_v49 }
  0x2a   : > { %603 = vmatpush1.bf16.msra.mxu0 %v923_v10 }
  0x2b   : > { %604 = vmatprep.subr.bf16.mxu0 %v924_v11 }
  0x2e   : > { %605 = vmatpush1.bf16.msra.mxu0 %v926_v12 }
  0x2f   : > { %606 = vmatprep.subr.bf16.mxu0 %v927_v13 }
  0x32   : > { %607 = vmatpush1.bf16.msra.mxu0 %v929_v16 }
  0x33   : > { %608 = vmatprep.subr.bf16.mxu0 %v930_v17 }
  0x36   : > { %609 = vmatpush1.bf16.msra.mxu0 %v932_v18 }
  0x37   : > { %610 = vmatprep.subr.bf16.mxu0 %v933_v19 }
  0x3a   : > { %611 = vmatpush1.bf16.msra.mxu0 %v935_v20 }
  0x3b   : > { %612 = vmatprep.subr.bf16.mxu0 %v936_v21 }
  0x3e   : > { %613 = vmatpush1.bf16.msra.mxu0 %v938_v22 }
  0x3f   : > { %614 = vmatprep.subr.bf16.mxu0 %v939_v23 }
  0x42   : > { %615 = vmatpush1.bf16.msra.mxu0 %v941_v24 }
  0x43   : > { %616 = vmatprep.subr.bf16.mxu0 %v942_v25 }
  0x46   : > { %617 = vmatpush1.bf16.msra.mxu0 %v944_v26 }
  0x47   : > { %618 = vmatprep.subr.bf16.mxu0 %v945_v27 }
  0x4a   : > { %619 = vmatpush1.bf16.msra.mxu0 %v947_v28 }
  0x4b   : > { %620 = vmatprep.subr.bf16.mxu0 %v948_v29 }
  0x4e   : > { %621 = vmatpush1.bf16.msra.mxu0 %v950_v30 }
  0x4f   : > { %622 = vmatprep.subr.bf16.mxu0 %v951_v31 }
  0x52   : > { %623 = vmatpush1.bf16.msra.mxu0 %v953_v32 }
  0x53   : > { %624 = vmatprep.subr.bf16.mxu0 %v954_v33 }
  0x56   : > { %625 = vmatpush1.bf16.msra.mxu0 %v956_v34 }
  0x59   : > { %627 = vmatmul.mubr.bf16.vlgmr.msra.gmra.mrb[0].mxu0 %v844_v35 }
 0x12a   : > { %642 = sbr.rel (%p878_p7) target bundleno = 321 (0x141), region = 48 }
 0x12c   : > { %v628_v38 = vpop.f32.mrb[0].mxu0 }
 0x12d   : > { %v635_v39 = vadd.f32 %v628_v38, %v392_v36  ;;  %v630_v40 = vpop.f32.mrb[1].mxu0 }
 0x12e   : > { %v636_v41 = vadd.f32 %v630_v40, %v393_v37  ;;  %v632_v42 = vpop.f32.mrb[2].mxu0 }
 0x12f   : > { %637 = vst [vmem:[#allocation2] sm:$0xff] %v635_v39  ;;  %v633_v43 = vpop.f32.mrb[3].mxu0 }
 0x130   : > { %638 = vst [vmem:[#allocation2 + $0x8] sm:$0xff] %v636_v41 }
 0x136   : > { %v643_v50 = vld [vmem:[#allocation2] sm:$0xff] }
 0x137   : > { %v644_v51 = vld [vmem:[#allocation2 + $0x8] sm:$0xff]  ;;  %v657_v56 = vmul.f32 %v650_v52, %v643_v50 }
 0x138   : > { %v658_v57 = vmul.f32 %v654_v54, %v644_v51 }
 0x139   : > { %v671_v60 = vadd.f32 %v664_v53, %v657_v56 }
 0x13a   : > { %v672_v61 = vadd.f32 %v668_v55, %v658_v57 }
 0x13b   : > { %v675_v62 = vadd.f32 %v673_v58, %v671_v60 }
 0x13c   : > { %v676_v63 = vadd.f32 %v674_v59, %v672_v61 }
 0x13d   : > { %v677_v0 = vmax.f32 %v675_v62, 0.0 }
 0x13e   : > { %v678_v1 = vmax.f32 %v676_v63, 0.0 }
 0x13f   : > { %679 = vst [vmem:[%s1113_s5] sm:$0xff] %v677_v0 }
 0x140   : > { %680 = vst [vmem:[%s1113_s5 + $0x8] sm:$0xff] %v678_v1 }
 0x141 PF: > { %s15_s20 = sadd.s32 1, %s981_s20   ;;  %s1114_s18 = smov %s977_s19 }
 0x142   : > { %p12_p8 = scmp.ge.s32.totalorder %s15_s20, 11   ;;  %s1115_s19 = smov %s1117_s21 }
 0x144   :  { %14 = sbr.rel (!%p12_p8) target bundleno = 2 (0x2), region = 90 }

// kernel: resnet18_forward.38
= control target key start
LH: loop header
LB: loop body
LE: loop exit
PB: predicated region body
PF: predicated region fallthrough
CT: control target
= control target key end

     0   :  { %s1271_s15 = smov 0   ;;  %s1273_s16 = smov 0   ;;  %s1397_s0 = inlined_call_operand.vmem [shape: bf16[8,2304], index: 0, kind: input, shape index: {}]   ;;  %s1398_s1 = inlined_call_operand.vmem [shape: bf16[2304,512], index: 1, kind: input, shape index: {}]   ;;  %s1399_s2 = inlined_call_operand.vmem [shape: f32[1,512], index: 2, kind: input, shape index: {}]   ;;  %s1400_s3 = inlined_call_operand.vmem [shape: f32[1,512], index: 3, kind: input, shape index: {}]   ;;  %s1401_s4 = inlined_call_operand.vmem [shape: f32[8,512], index: 4, kind: output, shape index: {}]  }
   0x1   :  { %s1275_s17 = smov 0  }
   0x2 LB: > { %s26_s18 = sadd.s32 1, %s1239_s16  ;;  %p1019_p0 = scmp.ge.s32.totalorder %s1243_s17, 1  ;;  %s1243_s17 = sphi %s1275_s17, %s14_s17   ;;  %s1239_s16 = sphi %s1273_s16, %s1403_s16   ;;  %s1235_s15 = sphi %s1271_s15, %s1402_s15  }
   0x3   : > { %p27_p1 = scmp.ge.s32.totalorder %s26_s18, 9  ;;  %p229_p2 = scmp.lt.s32.totalorder %s1243_s17, 10 }
   0x5   : > { %s1405_s18 = smov (%p27_p1, %s26_s18), 0  ;;  %p230_p3 = pnand %p1019_p0, %p229_p2 }
   0x6   : > { %s1020_s19 = sshll.u32 (!%p230_p3), %s1235_s15, 1  ;;  %s1022_s20 = sshll.u32 (!%p230_p3), %s1235_s15, 5 }
   0x7   : > { %233 = sbr.rel (%p230_p3) target bundleno = 319 (0x13f), region = 36  ;;  %p284_p4 = scmp.lt.s32.totalorder (!%p230_p3), %s1020_s19, 17 }
   0x8   : > { %p293_p5 = scmp.lt.s32.totalorder (!%p230_p3), %s1022_s20, 287  ;;  %p1025_p6 = scmp.ne.s32.totalorder (!%p230_p3), %s1235_s15, 0 }
   0xe   : > { %s1407_s19 = smov (!%p284_p4, %s1020_s19), 17  ;;  %s1409_s20 = smov (!%p293_p5, %s1022_s20), 287 }
   0xf   : > { %s1021_s21 = sshll.u32 %s1407_s19, 2  ;;  %s1097_s25 = sshll.u32 %s1409_s20, 4  ;;  %v1245_v0 = vmov (!%p1025_p6), 0.0  }
  0x10   : > { %s1296_s24 = scalar_lea.vmem %s1397_s0, %s1021_s21  ;;  %s1301_s28 = scalar_lea.vmem %s1398_s1, %s1097_s25  ;;  %327 = vst [vmem:[#allocation2] sm:$0xff] (!%p1025_p6), %v1245_v0  ;;  %328 = vst [vmem:[#allocation2 + $0x8] sm:$0xff] (!%p1025_p6), %v1245_v0 }
  0x11   : > { %326 = sbr.rel (%p1025_p6) target bundleno = 24 (0x18), region = 40  ;;  %329 = vst [vmem:[#allocation2 + $0x10] sm:$0xff] (!%p1025_p6), %v1245_v0  ;;  %330 = vst [vmem:[#allocation2 + $0x18] sm:$0xff] (!%p1025_p6), %v1245_v0 }
  0x18 PF: > { %v1123_v1 = vld [vmem:[%s1301_s28 + $0x4] ss:$16 sps:$4 sm:$0xff]   ;;  %v1125_v2 = vld [vmem:[%s1301_s28 + $0xc] ss:$16 sps:$4 sm:$0xff]   ;;  %v1127_v3 = vld [vmem:[%s1301_s28] ss:$16 sps:$4 sm:$0xff]  }
  0x19   : > { %727 = vmatprep.subr.bf16.mxu0 %v1123_v1  ;;  %v1128_v4 = vld [vmem:[%s1301_s28 + $0x8] ss:$16 sps:$4 sm:$0xff]   ;;  %768 = vmatprep.subr.bf16.mxu1 %v1125_v2  ;;  %v1129_v5 = vld [vmem:[%s1301_s28 + $0x24] ss:$16 sps:$4 sm:$0xff]   ;;  %v1131_v6 = vld [vmem:[%s1301_s28 + $0x2c] ss:$16 sps:$4 sm:$0xff]  }
  0x1a   : > { %728 = vmatpush1.bf16.msra.mxu0 %v1127_v3  ;;  %769 = vmatpush1.bf16.msra.mxu1 %v1128_v4  ;;  %v1133_v7 = vld [vmem:[%s1301_s28 + $0x20] ss:$16 sps:$4 sm:$0xff]   ;;  %v1134_v8 = vld [vmem:[%s1301_s28 + $0x28] ss:$16 sps:$4 sm:$0xff]   ;;  %v1135_v9 = vld [vmem:[%s1301_s28 + $0x44] ss:$16 sps:$4 sm:$0xff]  }
  0x1b   : > { %729 = vmatprep.subr.bf16.mxu0 %v1129_v5  ;;  %770 = vmatprep.subr.bf16.mxu1 %v1131_v6  ;;  %v1137_v10 = vld [vmem:[%s1301_s28 + $0x4c] ss:$16 sps:$4 sm:$0xff]   ;;  %v1139_v11 = vld [vmem:[%s1301_s28 + $0x40] ss:$16 sps:$4 sm:$0xff]   ;;  %v1140_v12 = vld [vmem:[%s1301_s28 + $0x48] ss:$16 sps:$4 sm:$0xff]  }
  0x1c   : > { %v1141_v13 = vld [vmem:[%s1301_s28 + $0x64] ss:$16 sps:$4 sm:$0xff]   ;;  %v1143_v14 = vld [vmem:[%s1301_s28 + $0x6c] ss:$16 sps:$4 sm:$0xff]   ;;  %v1145_v15 = vld [vmem:[%s1301_s28 + $0x60] ss:$16 sps:$4 sm:$0xff]  }
  0x1d   : > { %v1146_v16 = vld [vmem:[%s1301_s28 + $0x68] ss:$16 sps:$4 sm:$0xff]   ;;  %v1147_v17 = vld [vmem:[%s1301_s28 + $0x84] ss:$16 sps:$4 sm:$0xff]   ;;  %v1149_v18 = vld [vmem:[%s1301_s28 + $0x8c] ss:$16 sps:$4 sm:$0xff]  }
  0x1e   : > { %730 = vmatpush1.bf16.msra.mxu0 %v1133_v7  ;;  %771 = vmatpush1.bf16.msra.mxu1 %v1134_v8  ;;  %v1151_v19 = vld [vmem:[%s1301_s28 + $0x80] ss:$16 sps:$4 sm:$0xff]   ;;  %v1152_v20 = vld [vmem:[%s1301_s28 + $0x88] ss:$16 sps:$4 sm:$0xff]   ;;  %v1153_v21 = vld [vmem:[%s1301_s28 + $0xa4] ss:$16 sps:$4 sm:$0xff]  }
  0x1f   : > { %731 = vmatprep.subr.bf16.mxu0 %v1135_v9  ;;  %772 = vmatprep.subr.bf16.mxu1 %v1137_v10  ;;  %v1155_v22 = vld [vmem:[%s1301_s28 + $0xac] ss:$16 sps:$4 sm:$0xff]   ;;  %v1157_v23 = vld [vmem:[%s1301_s28 + $0xa0] ss:$16 sps:$4 sm:$0xff]   ;;  %v1158_v24 = vld [vmem:[%s1301_s28 + $0xa8] ss:$16 sps:$4 sm:$0xff]  }
  0x20   : > { %v1159_v25 = vld [vmem:[%s1301_s28 + $0xc4] ss:$16 sps:$4 sm:$0xff]   ;;  %v1161_v26 = vld [vmem:[%s1301_s28 + $0xcc] ss:$16 sps:$4 sm:$0xff]   ;;  %v1163_v27 = vld [vmem:[%s1301_s28 + $0xc0] ss:$16 sps:$4 sm:$0xff]  }
  0x21   : > { %v1164_v28 = vld [vmem:[%s1301_s28 + $0xc8] ss:$16 sps:$4 sm:$0xff]   ;;  %v1165_v29 = vld [vmem:[%s1301_s28 + $0xe4] ss:$16 sps:$4 sm:$0xff]   ;;  %v1167_v30 = vld [vmem:[%s1301_s28 + $0xec] ss:$16 sps:$4 sm:$0xff]  }
  0x22   : > { %732 = vmatpush1.bf16.msra.mxu0 %v1139_v11  ;;  %773 = vmatpush1.bf16.msra.mxu1 %v1140_v12  ;;  %v1169_v31 = vld [vmem:[%s1301_s28 + $0xe0] ss:$16 sps:$4 sm:$0xff]   ;;  %v1170_v32 = vld [vmem:[%s1301_s28 + $0xe8] ss:$16 sps:$4 sm:$0xff]   ;;  %v1171_v33 = vld [vmem:[%s1301_s28 + $0x104] ss:$16 sps:$4 sm:$0xff]  }
  0x23   : > { %733 = vmatprep.subr.bf16.mxu0 %v1141_v13  ;;  %774 = vmatprep.subr.bf16.mxu1 %v1143_v14  ;;  %v1173_v34 = vld [vmem:[%s1301_s28 + $0x10c] ss:$16 sps:$4 sm:$0xff]   ;;  %v1175_v35 = vld [vmem:[%s1301_s28 + $0x100] ss:$16 sps:$4 sm:$0xff]   ;;  %v1176_v36 = vld [vmem:[%s1301_s28 + $0x108] ss:$16 sps:$4 sm:$0xff]  }
  0x24   : > { %v1177_v37 = vld [vmem:[%s1301_s28 + $0x124] ss:$16 sps:$4 sm:$0xff]   ;;  %v1179_v38 = vld [vmem:[%s1301_s28 + $0x12c] ss:$16 sps:$4 sm:$0xff]   ;;  %v1181_v39 = vld [vmem:[%s1301_s28 + $0x120] ss:$16 sps:$4 sm:$0xff]  }
  0x25   : > { %v1182_v40 = vld [vmem:[%s1301_s28 + $0x128] ss:$16 sps:$4 sm:$0xff]   ;;  %v1183_v41 = vld [vmem:[%s1301_s28 + $0x144] ss:$16 sps:$4 sm:$0xff]   ;;  %v1185_v42 = vld [vmem:[%s1301_s28 + $0x14c] ss:$16 sps:$4 sm:$0xff]  }
  0x26   : > { %734 = vmatpush1.bf16.msra.mxu0 %v1145_v15  ;;  %775 = vmatpush1.bf16.msra.mxu1 %v1146_v16  ;;  %v1187_v43 = vld [vmem:[%s1301_s28 + $0x140] ss:$16 sps:$4 sm:$0xff]   ;;  %v1188_v44 = vld [vmem:[%s1301_s28 + $0x148] ss:$16 sps:$4 sm:$0xff]   ;;  %v1189_v45 = vld [vmem:[%s1301_s28 + $0x164] ss:$16 sps:$4 sm:$0xff]  }
  0x27   : > { %735 = vmatprep.subr.bf16.mxu0 %v1147_v17  ;;  %776 = vmatprep.subr.bf16.mxu1 %v1149_v18  ;;  %v1191_v46 = vld [vmem:[%s1301_s28 + $0x16c] ss:$16 sps:$4 sm:$0xff]   ;;  %v335_v47 = vld [vmem:[%s1296_s24] sm:$0xff]  ;;  %v1194_v50 = vld [vmem:[%s1301_s28 + $0x168] ss:$16 sps:$4 sm:$0xff]   ;;  %p1092_p7 = scmp.ne.s32.totalorder %s1235_s15, 8 }
  0x28   : > { %v1027_v48 = vcombine.high %v335_v47, %v335_v47  ;;  %v1193_v49 = vld [vmem:[%s1301_s28 + $0x160] ss:$16 sps:$4 sm:$0xff]   ;;  %v1195_v51 = vld [vmem:[%s1301_s28 + $0x184] ss:$16 sps:$4 sm:$0xff]   ;;  %v1197_v52 = vld [vmem:[%s1301_s28 + $0x18c] ss:$16 sps:$4 sm:$0xff]   ;;  %v1026_v3 = vcombine.low %v335_v47, %v335_v47 }
  0x29   : > { %v1199_v53 = vld [vmem:[%s1301_s28 + $0x180] ss:$16 sps:$4 sm:$0xff]   ;;  %v1200_v54 = vld [vmem:[%s1301_s28 + $0x188] ss:$16 sps:$4 sm:$0xff]   ;;  %v1201_v55 = vld [vmem:[%s1301_s28 + $0x1a4] ss:$16 sps:$4 sm:$0xff]  }
  0x2a   : > { %736 = vmatpush1.bf16.msra.mxu0 %v1151_v19  ;;  %777 = vmatpush1.bf16.msra.mxu1 %v1152_v20  ;;  %v1203_v56 = vld [vmem:[%s1301_s28 + $0x1ac] ss:$16 sps:$4 sm:$0xff]   ;;  %v1205_v57 = vld [vmem:[%s1301_s28 + $0x1a0] ss:$16 sps:$4 sm:$0xff]   ;;  %v1206_v58 = vld [vmem:[%s1301_s28 + $0x1a8] ss:$16 sps:$4 sm:$0xff]   ;;  %v827_v20 = vlaneseq (!%p1092_p7) }
  0x2b   : > { %737 = vmatprep.subr.bf16.mxu0 %v1153_v21  ;;  %778 = vmatprep.subr.bf16.mxu1 %v1155_v22  ;;  %v1207_v59 = vld [vmem:[%s1301_s28 + $0x1c4] ss:$16 sps:$4 sm:$0xff]   ;;  %v1209_v60 = vld [vmem:[%s1301_s28 + $0x1cc] ss:$16 sps:$4 sm:$0xff]   ;;  %v1211_v61 = vld [vmem:[%s1301_s28 + $0x1c0] ss:$16 sps:$4 sm:$0xff]  }
  0x2c   : > { %759 = vmatprep.mubr.bf16.mxu0 %v1027_v48  ;;  %800 = vmatprep.mubr.bf16.mxu1 %v1027_v48  ;;  %v1212_v62 = vld [vmem:[%s1301_s28 + $0x1c8] ss:$16 sps:$4 sm:$0xff]   ;;  %v1213_v63 = vld [vmem:[%s1301_s28 + $0x1e4] ss:$16 sps:$4 sm:$0xff]   ;;  %v1215_v0 = vld [vmem:[%s1301_s28 + $0x1ec] ss:$16 sps:$4 sm:$0xff]  }
  0x2d   : > { %v1217_v1 = vld [vmem:[%s1301_s28 + $0x1e0] ss:$16 sps:$4 sm:$0xff]   ;;  %v1218_v2 = vld [vmem:[%s1301_s28 + $0x1e8] ss:$16 sps:$4 sm:$0xff]   ;;  %v828_v21 = vshrl.u32 (!%p1092_p7), %v827_v20, 7 }
  0x2e   : > { %738 = vmatpush1.bf16.msra.mxu0 %v1157_v23  ;;  %779 = vmatpush1.bf16.msra.mxu1 %v1158_v24  ;;  %v331_v4 = vld [vmem:[#allocation2] sm:$0xff]  ;;  %v333_v5 = vld [vmem:[#allocation2 + $0x10] sm:$0xff]  ;;  %v332_v6 = vld [vmem:[#allocation2 + $0x8] sm:$0xff] }
  0x2f   : > { %739 = vmatprep.subr.bf16.mxu0 %v1159_v25  ;;  %780 = vmatprep.subr.bf16.mxu1 %v1161_v26  ;;  %v334_v7 = vld [vmem:[#allocation2 + $0x18] sm:$0xff]  ;;  %v825_v22 = vld [vmem:[%s1399_s2] sm:$0xf] (!%p1092_p7)  ;;  %v829_v24 = vsub.s32 (!%p1092_p7), 0, %v828_v21  ;;  %v833_v25 = vsub.s32 (!%p1092_p7), 1, %v828_v21  ;;  %v837_v26 = vsub.s32 (!%p1092_p7), 2, %v828_v21 }
  0x30   : > { %v851_v23 = vld [vmem:[%s1400_s3] sm:$0xf] (!%p1092_p7) }
  0x32   : > { %740 = vmatpush1.bf16.msra.mxu0 %v1163_v27  ;;  %781 = vmatpush1.bf16.msra.mxu1 %v1164_v28  ;;  %v841_v27 = vsub.s32 (!%p1092_p7), 3, %v828_v21 }
  0x33   : > { %741 = vmatprep.subr.bf16.mxu0 %v1165_v29  ;;  %782 = vmatprep.subr.bf16.mxu1 %v1167_v30  ;;  %v830_v30 = vrot.slane (!%p1092_p7), %v825_v22, %v829_v24 }
  0x36   : > { %742 = vmatpush1.bf16.msra.mxu0 %v1169_v31  ;;  %783 = vmatpush1.bf16.msra.mxu1 %v1170_v32  ;;  %v856_v31 = vrot.slane (!%p1092_p7), %v851_v23, %v829_v24  ;;  %v834_v32 = vrot.slane (!%p1092_p7), %v825_v22, %v833_v25 }
  0x37   : > { %743 = vmatprep.subr.bf16.mxu0 %v1171_v33  ;;  %784 = vmatprep.subr.bf16.mxu1 %v1173_v34  ;;  %v860_v33 = vrot.slane (!%p1092_p7), %v851_v23, %v833_v25 }
  0x3a   : > { %744 = vmatpush1.bf16.msra.mxu0 %v1175_v35  ;;  %785 = vmatpush1.bf16.msra.mxu1 %v1176_v36  ;;  %v838_v36 = vrot.slane (!%p1092_p7), %v825_v22, %v837_v26 }
  0x3b   : > { %745 = vmatprep.subr.bf16.mxu0 %v1177_v37  ;;  %786 = vmatprep.subr.bf16.mxu1 %v1179_v38  ;;  %v864_v37 = vrot.slane (!%p1092_p7), %v851_v23, %v837_v26  ;;  %v842_v38 = vrot.slane (!%p1092_p7), %v825_v22, %v841_v27 }
  0x3e   : > { %746 = vmatpush1.bf16.msra.mxu0 %v1181_v39  ;;  %787 = vmatpush1.bf16.msra.mxu1 %v1182_v40  ;;  %v868_v39 = vrot.slane (!%p1092_p7), %v851_v23, %v841_v27 }
  0x3f   : > { %747 = vmatprep.subr.bf16.mxu0 %v1183_v41  ;;  %788 = vmatprep.subr.bf16.mxu1 %v1185_v42 }
  0x42   : > { %748 = vmatpush1.bf16.msra.mxu0 %v1187_v43  ;;  %789 = vmatpush1.bf16.msra.mxu1 %v1188_v44 }
  0x43   : > { %749 = vmatprep.subr.bf16.mxu0 %v1189_v45  ;;  %790 = vmatprep.subr.bf16.mxu1 %v1191_v46 }
  0x46   : > { %750 = vmatpush1.bf16.msra.mxu0 %v1193_v49  ;;  %791 = vmatpush1.bf16.msra.mxu1 %v1194_v50 }
  0x47   : > { %751 = vmatprep.subr.bf16.mxu0 %v1195_v51  ;;  %792 = vmatprep.subr.bf16.mxu1 %v1197_v52 }
  0x4a   : > { %752 = vmatpush1.bf16.msra.mxu0 %v1199_v53  ;;  %793 = vmatpush1.bf16.msra.mxu1 %v1200_v54 }
  0x4b   : > { %753 = vmatprep.subr.bf16.mxu0 %v1201_v55  ;;  %794 = vmatprep.subr.bf16.mxu1 %v1203_v56 }
  0x4e   : > { %754 = vmatpush1.bf16.msra.mxu0 %v1205_v57  ;;  %795 = vmatpush1.bf16.msra.mxu1 %v1206_v58 }
  0x4f   : > { %755 = vmatprep.subr.bf16.mxu0 %v1207_v59  ;;  %796 = vmatprep.subr.bf16.mxu1 %v1209_v60 }
  0x52   : > { %756 = vmatpush1.bf16.msra.mxu0 %v1211_v61  ;;  %797 = vmatpush1.bf16.msra.mxu1 %v1212_v62 }
  0x53   : > { %757 = vmatprep.subr.bf16.mxu0 %v1213_v63  ;;  %798 = vmatprep.subr.bf16.mxu1 %v1215_v0 }
  0x56   : > { %758 = vmatpush1.bf16.msra.mxu0 %v1217_v1  ;;  %799 = vmatpush1.bf16.msra.mxu1 %v1218_v2 }
  0x59   : > { %760 = vmatmul.mubr.bf16.vlgmr.msra.gmra.mrb[0].mxu0 %v1026_v3  ;;  %801 = vmatmul.mubr.bf16.vlgmr.msra.gmra.mrb[0].mxu1 %v1026_v3 }
 0x12a   : > { %820 = sbr.rel (%p1092_p7) target bundleno = 319 (0x13f), region = 44 }
 0x12c   : > { %v761_v8 = vpop.f32.mrb[0].mxu0  ;;  %v802_v9 = vpop.f32.mrb[0].mxu1 }
 0x12d   : > { %v809_v10 = vadd.f32 %v761_v8, %v331_v4  ;;  %v811_v11 = vadd.f32 %v802_v9, %v333_v5  ;;  %v763_v12 = vpop.f32.mrb[1].mxu0  ;;  %v804_v13 = vpop.f32.mrb[1].mxu1 }
 0x12e   : > { %v810_v14 = vadd.f32 %v763_v12, %v332_v6  ;;  %v812_v15 = vadd.f32 %v804_v13, %v334_v7  ;;  %v765_v16 = vpop.f32.mrb[2].mxu0  ;;  %v806_v17 = vpop.f32.mrb[2].mxu1 }
 0x12f   : > { %813 = vst [vmem:[#allocation2] sm:$0xff] %v809_v10  ;;  %815 = vst [vmem:[#allocation2 + $0x10] sm:$0xff] %v811_v11  ;;  %v766_v18 = vpop.f32.mrb[3].mxu0  ;;  %v807_v19 = vpop.f32.mrb[3].mxu1 }
 0x130   : > { %814 = vst [vmem:[#allocation2 + $0x8] sm:$0xff] %v810_v14  ;;  %816 = vst [vmem:[#allocation2 + $0x18] sm:$0xff] %v812_v15 }
 0x136   : > { %v821_v28 = vld [vmem:[#allocation2] sm:$0xff]  ;;  %v823_v34 = vld [vmem:[#allocation2 + $0x10] sm:$0xff] }
 0x137   : > { %v822_v29 = vld [vmem:[#allocation2 + $0x8] sm:$0xff]  ;;  %v824_v35 = vld [vmem:[#allocation2 + $0x18] sm:$0xff]  ;;  %v847_v40 = vmul.f32 %v830_v30, %v821_v28  ;;  %v849_v42 = vmul.f32 %v838_v36, %v823_v34 }
 0x138   : > { %v848_v41 = vmul.f32 %v834_v32, %v822_v29  ;;  %v850_v43 = vmul.f32 %v842_v38, %v824_v35 }
 0x139   : > { %v873_v44 = vadd.f32 %v856_v31, %v847_v40  ;;  %v875_v46 = vadd.f32 %v864_v37, %v849_v42 }
 0x13a   : > { %v874_v45 = vadd.f32 %v860_v33, %v848_v41  ;;  %v876_v47 = vadd.f32 %v868_v39, %v850_v43 }
 0x13b   : > { %v877_v48 = vmax.f32 %v873_v44, 0.0  ;;  %v879_v50 = vmax.f32 %v875_v46, 0.0 }
 0x13c   : > { %v878_v49 = vmax.f32 %v874_v45, 0.0  ;;  %v880_v51 = vmax.f32 %v876_v47, 0.0 }
 0x13d   : > { %881 = vst [vmem:[%s1401_s4] sm:$0xff] %v877_v48  ;;  %883 = vst [vmem:[%s1401_s4 + $0x10] sm:$0xff] %v879_v50 }
 0x13e   : > { %882 = vst [vmem:[%s1401_s4 + $0x8] sm:$0xff] %v878_v49  ;;  %884 = vst [vmem:[%s1401_s4 + $0x18] sm:$0xff] %v880_v51 }
 0x13f PF: > { %s14_s17 = sadd.s32 1, %s1243_s17   ;;  %s1402_s15 = smov %s1239_s16 }
 0x140   : > { %p11_p8 = scmp.ge.s32.totalorder %s14_s17, 11   ;;  %s1403_s16 = smov %s1405_s18 }
 0x142   :  { %13 = sbr.rel (!%p11_p8) target bundleno = 2 (0x2), region = 83 }

// kernel: resnet18_forward.39
= control target key start
LH: loop header
LB: loop body
LE: loop exit
PB: predicated region body
PF: predicated region fallthrough
CT: control target
= control target key end

     0   :  { %s980_s1 = inlined_call_operand.vmem [shape: bf16[256,512], index: 1, kind: input, shape index: {}]   ;;  %s981_s0 = inlined_call_operand.vmem [shape: bf16[8,256], index: 0, kind: input, shape index: {}]   ;;  %s982_s2 = inlined_call_operand.vmem [shape: f32[1,512], index: 2, kind: input, shape index: {}]   ;;  %s983_s3 = inlined_call_operand.vmem [shape: f32[1,512], index: 3, kind: input, shape index: {}]   ;;  %s984_s4 = inlined_call_operand.vmem [shape: f32[8,512], index: 4, kind: output, shape index: {}]  }
   0x1   :  { %v644_v0 = vld [vmem:[%s980_s1 + $0x4] ss:$16 sps:$4 sm:$0xff]   ;;  %v646_v1 = vld [vmem:[%s980_s1 + $0xc] ss:$16 sps:$4 sm:$0xff]   ;;  %v648_v2 = vld [vmem:[%s980_s1] ss:$16 sps:$4 sm:$0xff]  }
   0x2   :  { %421 = vmatprep.subr.bf16.mxu0 %v644_v0  ;;  %v649_v3 = vld [vmem:[%s980_s1 + $0x8] ss:$16 sps:$4 sm:$0xff]   ;;  %462 = vmatprep.subr.bf16.mxu1 %v646_v1  ;;  %v650_v4 = vld [vmem:[%s980_s1 + $0x24] ss:$16 sps:$4 sm:$0xff]   ;;  %v652_v5 = vld [vmem:[%s980_s1 + $0x2c] ss:$16 sps:$4 sm:$0xff]  }
   0x3   :  { %422 = vmatpush1.bf16.msra.mxu0 %v648_v2  ;;  %463 = vmatpush1.bf16.msra.mxu1 %v649_v3  ;;  %v654_v6 = vld [vmem:[%s980_s1 + $0x20] ss:$16 sps:$4 sm:$0xff]   ;;  %v655_v7 = vld [vmem:[%s980_s1 + $0x28] ss:$16 sps:$4 sm:$0xff]   ;;  %v656_v8 = vld [vmem:[%s980_s1 + $0x44] ss:$16 sps:$4 sm:$0xff]   ;;  %v520_v3 = vlaneseq }
   0x4   :  { %423 = vmatprep.subr.bf16.mxu0 %v650_v4  ;;  %464 = vmatprep.subr.bf16.mxu1 %v652_v5  ;;  %v658_v9 = vld [vmem:[%s980_s1 + $0x4c] ss:$16 sps:$4 sm:$0xff]   ;;  %v660_v10 = vld [vmem:[%s980_s1 + $0x40] ss:$16 sps:$4 sm:$0xff]   ;;  %v661_v11 = vld [vmem:[%s980_s1 + $0x48] ss:$16 sps:$4 sm:$0xff]  }
   0x5   :  { %v662_v12 = vld [vmem:[%s980_s1 + $0x64] ss:$16 sps:$4 sm:$0xff]   ;;  %v664_v13 = vld [vmem:[%s980_s1 + $0x6c] ss:$16 sps:$4 sm:$0xff]   ;;  %v666_v14 = vld [vmem:[%s980_s1 + $0x60] ss:$16 sps:$4 sm:$0xff]  }
   0x6   :  { %v667_v15 = vld [vmem:[%s980_s1 + $0x68] ss:$16 sps:$4 sm:$0xff]   ;;  %v668_v16 = vld [vmem:[%s980_s1 + $0x84] ss:$16 sps:$4 sm:$0xff]   ;;  %v670_v17 = vld [vmem:[%s980_s1 + $0x8c] ss:$16 sps:$4 sm:$0xff]  }
   0x7   :  { %424 = vmatpush1.bf16.msra.mxu0 %v654_v6  ;;  %465 = vmatpush1.bf16.msra.mxu1 %v655_v7  ;;  %v672_v18 = vld [vmem:[%s980_s1 + $0x80] ss:$16 sps:$4 sm:$0xff]   ;;  %v673_v19 = vld [vmem:[%s980_s1 + $0x88] ss:$16 sps:$4 sm:$0xff]   ;;  %v674_v20 = vld [vmem:[%s980_s1 + $0xa4] ss:$16 sps:$4 sm:$0xff]  }
   0x8   :  { %425 = vmatprep.subr.bf16.mxu0 %v656_v8  ;;  %466 = vmatprep.subr.bf16.mxu1 %v658_v9  ;;  %v676_v21 = vld [vmem:[%s980_s1 + $0xac] ss:$16 sps:$4 sm:$0xff]   ;;  %v678_v22 = vld [vmem:[%s980_s1 + $0xa0] ss:$16 sps:$4 sm:$0xff]   ;;  %v679_v23 = vld [vmem:[%s980_s1 + $0xa8] ss:$16 sps:$4 sm:$0xff]  }
   0x9   :  { %v680_v24 = vld [vmem:[%s980_s1 + $0xc4] ss:$16 sps:$4 sm:$0xff]   ;;  %v682_v25 = vld [vmem:[%s980_s1 + $0xcc] ss:$16 sps:$4 sm:$0xff]   ;;  %v684_v26 = vld [vmem:[%s980_s1 + $0xc0] ss:$16 sps:$4 sm:$0xff]  }
   0xa   :  { %v685_v27 = vld [vmem:[%s980_s1 + $0xc8] ss:$16 sps:$4 sm:$0xff]   ;;  %v686_v28 = vld [vmem:[%s980_s1 + $0xe4] ss:$16 sps:$4 sm:$0xff]   ;;  %v688_v29 = vld [vmem:[%s980_s1 + $0xec] ss:$16 sps:$4 sm:$0xff]  }
   0xb   :  { %426 = vmatpush1.bf16.msra.mxu0 %v660_v10  ;;  %467 = vmatpush1.bf16.msra.mxu1 %v661_v11  ;;  %v690_v30 = vld [vmem:[%s980_s1 + $0xe0] ss:$16 sps:$4 sm:$0xff]   ;;  %v691_v31 = vld [vmem:[%s980_s1 + $0xe8] ss:$16 sps:$4 sm:$0xff]   ;;  %v692_v32 = vld [vmem:[%s980_s1 + $0x104] ss:$16 sps:$4 sm:$0xff]  }
   0xc   :  { %427 = vmatprep.subr.bf16.mxu0 %v662_v12  ;;  %468 = vmatprep.subr.bf16.mxu1 %v664_v13  ;;  %v694_v33 = vld [vmem:[%s980_s1 + $0x10c] ss:$16 sps:$4 sm:$0xff]   ;;  %v696_v34 = vld [vmem:[%s980_s1 + $0x100] ss:$16 sps:$4 sm:$0xff]   ;;  %v697_v35 = vld [vmem:[%s980_s1 + $0x108] ss:$16 sps:$4 sm:$0xff]  }
   0xd   :  { %v698_v36 = vld [vmem:[%s980_s1 + $0x124] ss:$16 sps:$4 sm:$0xff]   ;;  %v700_v37 = vld [vmem:[%s980_s1 + $0x12c] ss:$16 sps:$4 sm:$0xff]   ;;  %v702_v38 = vld [vmem:[%s980_s1 + $0x120] ss:$16 sps:$4 sm:$0xff]  }
   0xe   :  { %v703_v39 = vld [vmem:[%s980_s1 + $0x128] ss:$16 sps:$4 sm:$0xff]   ;;  %v704_v40 = vld [vmem:[%s980_s1 + $0x144] ss:$16 sps:$4 sm:$0xff]   ;;  %v706_v41 = vld [vmem:[%s980_s1 + $0x14c] ss:$16 sps:$4 sm:$0xff]  }
   0xf   :  { %428 = vmatpush1.bf16.msra.mxu0 %v666_v14  ;;  %469 = vmatpush1.bf16.msra.mxu1 %v667_v15  ;;  %v708_v42 = vld [vmem:[%s980_s1 + $0x140] ss:$16 sps:$4 sm:$0xff]   ;;  %v709_v43 = vld [vmem:[%s980_s1 + $0x148] ss:$16 sps:$4 sm:$0xff]   ;;  %v710_v44 = vld [vmem:[%s980_s1 + $0x164] ss:$16 sps:$4 sm:$0xff]  }
  0x10   :  { %429 = vmatprep.subr.bf16.mxu0 %v668_v16  ;;  %470 = vmatprep.subr.bf16.mxu1 %v670_v17  ;;  %v712_v45 = vld [vmem:[%s980_s1 + $0x16c] ss:$16 sps:$4 sm:$0xff]   ;;  %v29_v46 = vld [vmem:[%s981_s0] sm:$0xff]  ;;  %v715_v49 = vld [vmem:[%s980_s1 + $0x168] ss:$16 sps:$4 sm:$0xff]   ;;  %v521_v4 = vshrl.u32 %v520_v3, 7 }
  0x11   :  { %v579_v47 = vcombine.high %v29_v46, %v29_v46  ;;  %v714_v48 = vld [vmem:[%s980_s1 + $0x160] ss:$16 sps:$4 sm:$0xff]   ;;  %v716_v50 = vld [vmem:[%s980_s1 + $0x184] ss:$16 sps:$4 sm:$0xff]   ;;  %v718_v51 = vld [vmem:[%s980_s1 + $0x18c] ss:$16 sps:$4 sm:$0xff]   ;;  %v578_v2 = vcombine.low %v29_v46, %v29_v46 }
  0x12   :  { %v720_v52 = vld [vmem:[%s980_s1 + $0x180] ss:$16 sps:$4 sm:$0xff]   ;;  %v721_v53 = vld [vmem:[%s980_s1 + $0x188] ss:$16 sps:$4 sm:$0xff]   ;;  %v722_v54 = vld [vmem:[%s980_s1 + $0x1a4] ss:$16 sps:$4 sm:$0xff]  }
  0x13   :  { %430 = vmatpush1.bf16.msra.mxu0 %v672_v18  ;;  %471 = vmatpush1.bf16.msra.mxu1 %v673_v19  ;;  %v724_v55 = vld [vmem:[%s980_s1 + $0x1ac] ss:$16 sps:$4 sm:$0xff]   ;;  %v726_v56 = vld [vmem:[%s980_s1 + $0x1a0] ss:$16 sps:$4 sm:$0xff]   ;;  %v727_v57 = vld [vmem:[%s980_s1 + $0x1a8] ss:$16 sps:$4 sm:$0xff]  }
  0x14   :  { %431 = vmatprep.subr.bf16.mxu0 %v674_v20  ;;  %472 = vmatprep.subr.bf16.mxu1 %v676_v21  ;;  %v728_v58 = vld [vmem:[%s980_s1 + $0x1c4] ss:$16 sps:$4 sm:$0xff]   ;;  %v730_v59 = vld [vmem:[%s980_s1 + $0x1cc] ss:$16 sps:$4 sm:$0xff]   ;;  %v732_v60 = vld [vmem:[%s980_s1 + $0x1c0] ss:$16 sps:$4 sm:$0xff]  }
  0x15   :  { %453 = vmatprep.mubr.bf16.mxu0 %v579_v47  ;;  %494 = vmatprep.mubr.bf16.mxu1 %v579_v47  ;;  %v733_v61 = vld [vmem:[%s980_s1 + $0x1c8] ss:$16 sps:$4 sm:$0xff]   ;;  %v734_v62 = vld [vmem:[%s980_s1 + $0x1e4] ss:$16 sps:$4 sm:$0xff]   ;;  %v736_v63 = vld [vmem:[%s980_s1 + $0x1ec] ss:$16 sps:$4 sm:$0xff]  }
  0x16   :  { %v738_v0 = vld [vmem:[%s980_s1 + $0x1e0] ss:$16 sps:$4 sm:$0xff]   ;;  %v739_v1 = vld [vmem:[%s980_s1 + $0x1e8] ss:$16 sps:$4 sm:$0xff]   ;;  %v522_v5 = vsub.s32 0, %v521_v4  ;;  %v530_v6 = vsub.s32 2, %v521_v4 }
  0x17   :  { %432 = vmatpush1.bf16.msra.mxu0 %v678_v22  ;;  %473 = vmatpush1.bf16.msra.mxu1 %v679_v23  ;;  %v518_v7 = vld [vmem:[%s982_s2] sm:$0xf]  ;;  %v526_v8 = vsub.s32 1, %v521_v4  ;;  %v534_v9 = vsub.s32 3, %v521_v4 }
  0x18   :  { %433 = vmatprep.subr.bf16.mxu0 %v680_v24  ;;  %474 = vmatprep.subr.bf16.mxu1 %v682_v25  ;;  %v544_v10 = vld [vmem:[%s983_s3] sm:$0xf]  ;;  %v523_v11 = vrot.slane %v518_v7, %v522_v5  ;;  %v531_v12 = vrot.slane %v518_v7, %v530_v6 }
  0x19   :  { %v527_v13 = vrot.slane %v518_v7, %v526_v8  ;;  %v535_v14 = vrot.slane %v518_v7, %v534_v9  ;;  %v549_v15 = vrot.slane %v544_v10, %v522_v5  ;;  %v557_v16 = vrot.slane %v544_v10, %v530_v6 }
  0x1a   :  { %v553_v19 = vrot.slane %v544_v10, %v526_v8  ;;  %v561_v20 = vrot.slane %v544_v10, %v534_v9 }
  0x1b   :  { %434 = vmatpush1.bf16.msra.mxu0 %v684_v26  ;;  %475 = vmatpush1.bf16.msra.mxu1 %v685_v27 }
  0x1c   :  { %435 = vmatprep.subr.bf16.mxu0 %v686_v28  ;;  %476 = vmatprep.subr.bf16.mxu1 %v688_v29 }
  0x1f   :  { %436 = vmatpush1.bf16.msra.mxu0 %v690_v30  ;;  %477 = vmatpush1.bf16.msra.mxu1 %v691_v31 }
  0x20   :  { %437 = vmatprep.subr.bf16.mxu0 %v692_v32  ;;  %478 = vmatprep.subr.bf16.mxu1 %v694_v33 }
  0x23   :  { %438 = vmatpush1.bf16.msra.mxu0 %v696_v34  ;;  %479 = vmatpush1.bf16.msra.mxu1 %v697_v35 }
  0x24   :  { %439 = vmatprep.subr.bf16.mxu0 %v698_v36  ;;  %480 = vmatprep.subr.bf16.mxu1 %v700_v37 }
  0x27   :  { %440 = vmatpush1.bf16.msra.mxu0 %v702_v38  ;;  %481 = vmatpush1.bf16.msra.mxu1 %v703_v39 }
  0x28   :  { %441 = vmatprep.subr.bf16.mxu0 %v704_v40  ;;  %482 = vmatprep.subr.bf16.mxu1 %v706_v41 }
  0x2b   :  { %442 = vmatpush1.bf16.msra.mxu0 %v708_v42  ;;  %483 = vmatpush1.bf16.msra.mxu1 %v709_v43 }
  0x2c   :  { %443 = vmatprep.subr.bf16.mxu0 %v710_v44  ;;  %484 = vmatprep.subr.bf16.mxu1 %v712_v45 }
  0x2f   :  { %444 = vmatpush1.bf16.msra.mxu0 %v714_v48  ;;  %485 = vmatpush1.bf16.msra.mxu1 %v715_v49 }
  0x30   :  { %445 = vmatprep.subr.bf16.mxu0 %v716_v50  ;;  %486 = vmatprep.subr.bf16.mxu1 %v718_v51 }
  0x33   :  { %446 = vmatpush1.bf16.msra.mxu0 %v720_v52  ;;  %487 = vmatpush1.bf16.msra.mxu1 %v721_v53 }
  0x34   :  { %447 = vmatprep.subr.bf16.mxu0 %v722_v54  ;;  %488 = vmatprep.subr.bf16.mxu1 %v724_v55 }
  0x37   :  { %448 = vmatpush1.bf16.msra.mxu0 %v726_v56  ;;  %489 = vmatpush1.bf16.msra.mxu1 %v727_v57 }
  0x38   :  { %449 = vmatprep.subr.bf16.mxu0 %v728_v58  ;;  %490 = vmatprep.subr.bf16.mxu1 %v730_v59 }
  0x3b   :  { %450 = vmatpush1.bf16.msra.mxu0 %v732_v60  ;;  %491 = vmatpush1.bf16.msra.mxu1 %v733_v61 }
  0x3c   :  { %451 = vmatprep.subr.bf16.mxu0 %v734_v62  ;;  %492 = vmatprep.subr.bf16.mxu1 %v736_v63 }
  0x3f   :  { %452 = vmatpush1.bf16.msra.mxu0 %v738_v0  ;;  %493 = vmatpush1.bf16.msra.mxu1 %v739_v1 }
  0x42   :  { %454 = vmatmul.mubr.bf16.vlgmr.msra.gmra.mrb[0].mxu0 %v578_v2  ;;  %495 = vmatmul.mubr.bf16.vlgmr.msra.gmra.mrb[0].mxu1 %v578_v2 }
 0x115   :  { %v455_v17 = vpop.f32.mrb[0].mxu0  ;;  %v496_v18 = vpop.f32.mrb[0].mxu1 }
 0x116   :  { %v540_v21 = vmul.f32 %v523_v11, %v455_v17  ;;  %v542_v22 = vmul.f32 %v531_v12, %v496_v18  ;;  %v457_v23 = vpop.f32.mrb[1].mxu0  ;;  %v498_v24 = vpop.f32.mrb[1].mxu1 }
 0x117   :  { %v541_v25 = vmul.f32 %v527_v13, %v457_v23  ;;  %v543_v26 = vmul.f32 %v535_v14, %v498_v24  ;;  %v459_v27 = vpop.f32.mrb[2].mxu0  ;;  %v500_v28 = vpop.f32.mrb[2].mxu1 }
 0x118   :  { %v566_v29 = vadd.f32 %v549_v15, %v540_v21  ;;  %v568_v30 = vadd.f32 %v557_v16, %v542_v22  ;;  %v460_v31 = vpop.f32.mrb[3].mxu0  ;;  %v501_v32 = vpop.f32.mrb[3].mxu1 }
 0x119   :  { %v567_v33 = vadd.f32 %v553_v19, %v541_v25  ;;  %v569_v34 = vadd.f32 %v561_v20, %v543_v26 }
 0x11a   :  { %570 = vst [vmem:[%s984_s4] sm:$0xff] %v566_v29  ;;  %572 = vst [vmem:[%s984_s4 + $0x10] sm:$0xff] %v568_v30 }
 0x11b   :  { %571 = vst [vmem:[%s984_s4 + $0x8] sm:$0xff] %v567_v33  ;;  %573 = vst [vmem:[%s984_s4 + $0x18] sm:$0xff] %v569_v34 }

// kernel: resnet18_forward.40
= control target key start
LH: loop header
LB: loop body
LE: loop exit
PB: predicated region body
PF: predicated region fallthrough
CT: control target
= control target key end

     0   :  { %s2007_s18 = smov 0   ;;  %s2009_s19 = smov 0   ;;  %s2222_s0 = inlined_call_operand.vmem [shape: bf16[8,4608], index: 0, kind: input, shape index: {}]   ;;  %s2223_s1 = inlined_call_operand.vmem [shape: bf16[4608,512], index: 1, kind: input, shape index: {}]   ;;  %s2224_s2 = inlined_call_operand.vmem [shape: f32[1,512], index: 2, kind: input, shape index: {}]   ;;  %s2225_s3 = inlined_call_operand.vmem [shape: f32[1,512], index: 3, kind: input, shape index: {}]   ;;  %s2226_s4 = inlined_call_operand.vmem [shape: f32[8,512], index: 4, kind: input, shape index: {}]   ;;  %s2227_s5 = inlined_call_operand.vmem [shape: f32[8,512], index: 5, kind: output, shape index: {}]  }
   0x1   :  { %s2011_s20 = smov 0  }
   0x2 LB: > { %s27_s21 = sadd.s32 1, %s1970_s19  ;;  %p1586_p0 = scmp.ge.s32.totalorder %s1974_s20, 1  ;;  %s1974_s20 = sphi %s2011_s20, %s15_s20   ;;  %s1970_s19 = sphi %s2009_s19, %s2229_s19   ;;  %s1966_s18 = sphi %s2007_s18, %s2228_s18  }
   0x3   : > { %p28_p1 = scmp.ge.s32.totalorder %s27_s21, 9  ;;  %p271_p2 = scmp.lt.s32.totalorder %s1974_s20, 10 }
   0x5   : > { %s2231_s21 = smov (%p28_p1, %s27_s21), 0  ;;  %p272_p3 = pnand %p1586_p0, %p271_p2 }
   0x6   : > { %s1587_s22 = sshll.u32 (!%p272_p3), %s1966_s18, 2  ;;  %s1589_s23 = sshll.u32 (!%p272_p3), %s1966_s18, 6 }
   0x7   : > { %275 = sbr.rel (%p272_p3) target bundleno = 388 (0x184), region = 40  ;;  %p337_p4 = scmp.lt.s32.totalorder (!%p272_p3), %s1587_s22, 35 }
   0x8   : > { %p346_p5 = scmp.lt.s32.totalorder (!%p272_p3), %s1589_s23, 575  ;;  %p1592_p6 = scmp.ne.s32.totalorder (!%p272_p3), %s1966_s18, 0 }
   0xe   : > { %s2233_s22 = smov (!%p337_p4, %s1587_s22), 35  ;;  %s2235_s23 = smov (!%p346_p5, %s1589_s23), 575 }
   0xf   : > { %s1588_s24 = sshll.u32 %s2233_s22, 2  ;;  %s1730_s28 = sshll.u32 %s2235_s23, 4  ;;  %v1976_v0 = vmov (!%p1592_p6), 0.0  }
  0x10   : > { %s2032_s27 = scalar_lea.vmem %s2222_s0, %s1588_s24  ;;  %s2037_s6 = scalar_lea.vmem %s2223_s1, %s1730_s28  ;;  %390 = vst [vmem:[#allocation2] sm:$0xff] (!%p1592_p6), %v1976_v0  ;;  %391 = vst [vmem:[#allocation2 + $0x8] sm:$0xff] (!%p1592_p6), %v1976_v0 }
  0x11   : > { %389 = sbr.rel (%p1592_p6) target bundleno = 24 (0x18), region = 44  ;;  %392 = vst [vmem:[#allocation2 + $0x10] sm:$0xff] (!%p1592_p6), %v1976_v0  ;;  %393 = vst [vmem:[#allocation2 + $0x18] sm:$0xff] (!%p1592_p6), %v1976_v0 }
  0x18 PF: > { %v1756_v1 = vld [vmem:[%s2037_s6 + $0x4] ss:$16 sps:$4 sm:$0xff]   ;;  %v1760_v3 = vld [vmem:[%s2037_s6] ss:$16 sps:$4 sm:$0xff]   ;;  %v399_v49 = vld [vmem:[%s2032_s27 + $0x8] sm:$0xff]  ;;  %p1725_p7 = scmp.ne.s32.totalorder %s1966_s18, 8 }
  0x19   : > { %v1758_v2 = vld [vmem:[%s2037_s6 + $0x204] ss:$16 sps:$4 sm:$0xff]   ;;  %1182 = vmatprep.subr.bf16.mxu0 %v1756_v1  ;;  %v1761_v4 = vld [vmem:[%s2037_s6 + $0x200] ss:$16 sps:$4 sm:$0xff]   ;;  %v1596_v52 = vcombine.high %v399_v49, %v399_v49 }
  0x1a   : > { %1223 = vmatprep.subr.bf16.mxu1 %v1758_v2  ;;  %v1762_v5 = vld [vmem:[%s2037_s6 + $0x24] ss:$16 sps:$4 sm:$0xff]   ;;  %1183 = vmatpush1.bf16.msra.mxu0 %v1760_v3  ;;  %v1766_v7 = vld [vmem:[%s2037_s6 + $0x20] ss:$16 sps:$4 sm:$0xff]  }
  0x1b   : > { %1224 = vmatpush1.bf16.msra.mxu1 %v1761_v4  ;;  %v1764_v6 = vld [vmem:[%s2037_s6 + $0x224] ss:$16 sps:$4 sm:$0xff]   ;;  %1184 = vmatprep.subr.bf16.mxu0 %v1762_v5  ;;  %v1767_v8 = vld [vmem:[%s2037_s6 + $0x220] ss:$16 sps:$4 sm:$0xff]   ;;  %v1858_v5 = vld [vmem:[%s2037_s6 + $0xc] ss:$16 sps:$4 sm:$0xff]  }
  0x1c   : > { %1225 = vmatprep.subr.bf16.mxu1 %v1764_v6  ;;  %v1768_v9 = vld [vmem:[%s2037_s6 + $0x44] ss:$16 sps:$4 sm:$0xff]   ;;  %v1772_v11 = vld [vmem:[%s2037_s6 + $0x40] ss:$16 sps:$4 sm:$0xff]   ;;  %1255 = vmatprep.mubr.bf16.mxu1 %v1596_v52  ;;  %v1861_v6 = vld [vmem:[%s2037_s6 + $0x20c] ss:$16 sps:$4 sm:$0xff]  }
  0x1d   : > { %v1770_v10 = vld [vmem:[%s2037_s6 + $0x244] ss:$16 sps:$4 sm:$0xff]   ;;  %v1773_v12 = vld [vmem:[%s2037_s6 + $0x240] ss:$16 sps:$4 sm:$0xff]  }
  0x1e   : > { %1185 = vmatpush1.bf16.msra.mxu0 %v1766_v7  ;;  %v1774_v13 = vld [vmem:[%s2037_s6 + $0x64] ss:$16 sps:$4 sm:$0xff]   ;;  %v1778_v15 = vld [vmem:[%s2037_s6 + $0x60] ss:$16 sps:$4 sm:$0xff]  }
  0x1f   : > { %1226 = vmatpush1.bf16.msra.mxu1 %v1767_v8  ;;  %1186 = vmatprep.subr.bf16.mxu0 %v1768_v9  ;;  %v1776_v14 = vld [vmem:[%s2037_s6 + $0x264] ss:$16 sps:$4 sm:$0xff]   ;;  %v1779_v16 = vld [vmem:[%s2037_s6 + $0x260] ss:$16 sps:$4 sm:$0xff]   ;;  %v2113_v8 = vcombine.low %v399_v49, %v399_v49  ;;  %v1856_v9 = vld [vmem:[%s2037_s6 + $0x8] ss:$16 sps:$4 sm:$0xff]  }
  0x20   : > { %1227 = vmatprep.subr.bf16.mxu1 %v1770_v10  ;;  %v1780_v17 = vld [vmem:[%s2037_s6 + $0x84] ss:$16 sps:$4 sm:$0xff]   ;;  %v1784_v19 = vld [vmem:[%s2037_s6 + $0x80] ss:$16 sps:$4 sm:$0xff]   ;;  %v1859_v10 = vld [vmem:[%s2037_s6 + $0x208] ss:$16 sps:$4 sm:$0xff]  }
  0x21   : > { %v1782_v18 = vld [vmem:[%s2037_s6 + $0x284] ss:$16 sps:$4 sm:$0xff]   ;;  %v1785_v20 = vld [vmem:[%s2037_s6 + $0x280] ss:$16 sps:$4 sm:$0xff]   ;;  %v1916_v49 = vld [vmem:[%s2037_s6 + $0x148] ss:$16 sps:$4 sm:$0xff]  }
  0x22   : > { %1187 = vmatpush1.bf16.msra.mxu0 %v1772_v11  ;;  %v1786_v21 = vld [vmem:[%s2037_s6 + $0xa4] ss:$16 sps:$4 sm:$0xff]   ;;  %v1790_v23 = vld [vmem:[%s2037_s6 + $0xa0] ss:$16 sps:$4 sm:$0xff]   ;;  %v1864_v11 = vld [vmem:[%s2037_s6 + $0x2c] ss:$16 sps:$4 sm:$0xff]  }
  0x23   : > { %1228 = vmatpush1.bf16.msra.mxu1 %v1773_v12  ;;  %1188 = vmatprep.subr.bf16.mxu0 %v1774_v13  ;;  %v1788_v22 = vld [vmem:[%s2037_s6 + $0x2a4] ss:$16 sps:$4 sm:$0xff]   ;;  %v1791_v24 = vld [vmem:[%s2037_s6 + $0x2a0] ss:$16 sps:$4 sm:$0xff]   ;;  %v1867_v12 = vld [vmem:[%s2037_s6 + $0x22c] ss:$16 sps:$4 sm:$0xff]  }
  0x24   : > { %1229 = vmatprep.subr.bf16.mxu1 %v1776_v14  ;;  %v1792_v25 = vld [vmem:[%s2037_s6 + $0xc4] ss:$16 sps:$4 sm:$0xff]   ;;  %v1796_v27 = vld [vmem:[%s2037_s6 + $0xc0] ss:$16 sps:$4 sm:$0xff]   ;;  %v1862_v13 = vld [vmem:[%s2037_s6 + $0x28] ss:$16 sps:$4 sm:$0xff]  }
  0x25   : > { %v1794_v26 = vld [vmem:[%s2037_s6 + $0x2c4] ss:$16 sps:$4 sm:$0xff]   ;;  %v1797_v28 = vld [vmem:[%s2037_s6 + $0x2c0] ss:$16 sps:$4 sm:$0xff]   ;;  %v1865_v14 = vld [vmem:[%s2037_s6 + $0x228] ss:$16 sps:$4 sm:$0xff]  }
  0x26   : > { %1189 = vmatpush1.bf16.msra.mxu0 %v1778_v15  ;;  %v1798_v29 = vld [vmem:[%s2037_s6 + $0xe4] ss:$16 sps:$4 sm:$0xff]   ;;  %v1802_v31 = vld [vmem:[%s2037_s6 + $0xe0] ss:$16 sps:$4 sm:$0xff]   ;;  %v1870_v15 = vld [vmem:[%s2037_s6 + $0x4c] ss:$16 sps:$4 sm:$0xff]  }
  0x27   : > { %1230 = vmatpush1.bf16.msra.mxu1 %v1779_v16  ;;  %1190 = vmatprep.subr.bf16.mxu0 %v1780_v17  ;;  %v1800_v30 = vld [vmem:[%s2037_s6 + $0x2e4] ss:$16 sps:$4 sm:$0xff]   ;;  %v1803_v32 = vld [vmem:[%s2037_s6 + $0x2e0] ss:$16 sps:$4 sm:$0xff]   ;;  %v1873_v16 = vld [vmem:[%s2037_s6 + $0x24c] ss:$16 sps:$4 sm:$0xff]  }
  0x28   : > { %1231 = vmatprep.subr.bf16.mxu1 %v1782_v18  ;;  %v1804_v33 = vld [vmem:[%s2037_s6 + $0x104] ss:$16 sps:$4 sm:$0xff]   ;;  %v1808_v35 = vld [vmem:[%s2037_s6 + $0x100] ss:$16 sps:$4 sm:$0xff]   ;;  %v1868_v17 = vld [vmem:[%s2037_s6 + $0x48] ss:$16 sps:$4 sm:$0xff]  }
  0x29   : > { %v1806_v34 = vld [vmem:[%s2037_s6 + $0x304] ss:$16 sps:$4 sm:$0xff]   ;;  %v1809_v36 = vld [vmem:[%s2037_s6 + $0x300] ss:$16 sps:$4 sm:$0xff]   ;;  %v1871_v18 = vld [vmem:[%s2037_s6 + $0x248] ss:$16 sps:$4 sm:$0xff]  }
  0x2a   : > { %1191 = vmatpush1.bf16.msra.mxu0 %v1784_v19  ;;  %v1810_v37 = vld [vmem:[%s2037_s6 + $0x124] ss:$16 sps:$4 sm:$0xff]   ;;  %v1814_v39 = vld [vmem:[%s2037_s6 + $0x120] ss:$16 sps:$4 sm:$0xff]   ;;  %v1876_v19 = vld [vmem:[%s2037_s6 + $0x6c] ss:$16 sps:$4 sm:$0xff]  }
  0x2b   : > { %1232 = vmatpush1.bf16.msra.mxu1 %v1785_v20  ;;  %1192 = vmatprep.subr.bf16.mxu0 %v1786_v21  ;;  %v1812_v38 = vld [vmem:[%s2037_s6 + $0x324] ss:$16 sps:$4 sm:$0xff]   ;;  %v1815_v40 = vld [vmem:[%s2037_s6 + $0x320] ss:$16 sps:$4 sm:$0xff]   ;;  %v1879_v20 = vld [vmem:[%s2037_s6 + $0x26c] ss:$16 sps:$4 sm:$0xff]  }
  0x2c   : > { %1233 = vmatprep.subr.bf16.mxu1 %v1788_v22  ;;  %v1816_v41 = vld [vmem:[%s2037_s6 + $0x144] ss:$16 sps:$4 sm:$0xff]   ;;  %v1820_v43 = vld [vmem:[%s2037_s6 + $0x140] ss:$16 sps:$4 sm:$0xff]   ;;  %v1874_v21 = vld [vmem:[%s2037_s6 + $0x68] ss:$16 sps:$4 sm:$0xff]  }
  0x2d   : > { %v1818_v42 = vld [vmem:[%s2037_s6 + $0x344] ss:$16 sps:$4 sm:$0xff]   ;;  %v1821_v44 = vld [vmem:[%s2037_s6 + $0x340] ss:$16 sps:$4 sm:$0xff]   ;;  %v1877_v22 = vld [vmem:[%s2037_s6 + $0x268] ss:$16 sps:$4 sm:$0xff]  }
  0x2e   : > { %1193 = vmatpush1.bf16.msra.mxu0 %v1790_v23  ;;  %v1822_v45 = vld [vmem:[%s2037_s6 + $0x164] ss:$16 sps:$4 sm:$0xff]   ;;  %v1826_v50 = vld [vmem:[%s2037_s6 + $0x160] ss:$16 sps:$4 sm:$0xff]   ;;  %v1882_v23 = vld [vmem:[%s2037_s6 + $0x8c] ss:$16 sps:$4 sm:$0xff]  }
  0x2f   : > { %1234 = vmatpush1.bf16.msra.mxu1 %v1791_v24  ;;  %1194 = vmatprep.subr.bf16.mxu0 %v1792_v25  ;;  %v1824_v46 = vld [vmem:[%s2037_s6 + $0x364] ss:$16 sps:$4 sm:$0xff]   ;;  %v1827_v51 = vld [vmem:[%s2037_s6 + $0x360] ss:$16 sps:$4 sm:$0xff]   ;;  %v1885_v24 = vld [vmem:[%s2037_s6 + $0x28c] ss:$16 sps:$4 sm:$0xff]  }
  0x30   : > { %1235 = vmatprep.subr.bf16.mxu1 %v1794_v26  ;;  %v398_v47 = vld [vmem:[%s2032_s27] sm:$0xff]  ;;  %v1880_v25 = vld [vmem:[%s2037_s6 + $0x88] ss:$16 sps:$4 sm:$0xff]  }
  0x31   : > { %v2087_v48 = vcombine.high %v398_v47, %v398_v47  ;;  %v1828_v53 = vld [vmem:[%s2037_s6 + $0x184] ss:$16 sps:$4 sm:$0xff]   ;;  %v1832_v55 = vld [vmem:[%s2037_s6 + $0x180] ss:$16 sps:$4 sm:$0xff]   ;;  %v2111_v7 = vcombine.low %v398_v47, %v398_v47  ;;  %v1883_v26 = vld [vmem:[%s2037_s6 + $0x288] ss:$16 sps:$4 sm:$0xff]  }
  0x32   : > { %1195 = vmatpush1.bf16.msra.mxu0 %v1796_v27  ;;  %v1830_v54 = vld [vmem:[%s2037_s6 + $0x384] ss:$16 sps:$4 sm:$0xff]   ;;  %v1833_v56 = vld [vmem:[%s2037_s6 + $0x380] ss:$16 sps:$4 sm:$0xff]   ;;  %v1888_v27 = vld [vmem:[%s2037_s6 + $0xac] ss:$16 sps:$4 sm:$0xff]  }
  0x33   : > { %1236 = vmatpush1.bf16.msra.mxu1 %v1797_v28  ;;  %1196 = vmatprep.subr.bf16.mxu0 %v1798_v29  ;;  %v1834_v57 = vld [vmem:[%s2037_s6 + $0x1a4] ss:$16 sps:$4 sm:$0xff]   ;;  %v1838_v59 = vld [vmem:[%s2037_s6 + $0x1a0] ss:$16 sps:$4 sm:$0xff]   ;;  %v1891_v28 = vld [vmem:[%s2037_s6 + $0x2ac] ss:$16 sps:$4 sm:$0xff]  }
  0x34   : > { %1237 = vmatprep.subr.bf16.mxu1 %v1800_v30  ;;  %1214 = vmatprep.mubr.bf16.mxu0 %v2087_v48  ;;  %v1836_v58 = vld [vmem:[%s2037_s6 + $0x3a4] ss:$16 sps:$4 sm:$0xff]   ;;  %v1839_v60 = vld [vmem:[%s2037_s6 + $0x3a0] ss:$16 sps:$4 sm:$0xff]   ;;  %v1886_v29 = vld [vmem:[%s2037_s6 + $0xa8] ss:$16 sps:$4 sm:$0xff]  }
  0x35   : > { %v1840_v61 = vld [vmem:[%s2037_s6 + $0x1c4] ss:$16 sps:$4 sm:$0xff]   ;;  %v1844_v63 = vld [vmem:[%s2037_s6 + $0x1c0] ss:$16 sps:$4 sm:$0xff]   ;;  %v1889_v30 = vld [vmem:[%s2037_s6 + $0x2a8] ss:$16 sps:$4 sm:$0xff]  }
  0x36   : > { %1197 = vmatpush1.bf16.msra.mxu0 %v1802_v31  ;;  %v1842_v62 = vld [vmem:[%s2037_s6 + $0x3c4] ss:$16 sps:$4 sm:$0xff]   ;;  %v1845_v0 = vld [vmem:[%s2037_s6 + $0x3c0] ss:$16 sps:$4 sm:$0xff]   ;;  %v1894_v31 = vld [vmem:[%s2037_s6 + $0xcc] ss:$16 sps:$4 sm:$0xff]  }
  0x37   : > { %1238 = vmatpush1.bf16.msra.mxu1 %v1803_v32  ;;  %1198 = vmatprep.subr.bf16.mxu0 %v1804_v33  ;;  %v1846_v1 = vld [vmem:[%s2037_s6 + $0x1e4] ss:$16 sps:$4 sm:$0xff]   ;;  %v1850_v3 = vld [vmem:[%s2037_s6 + $0x1e0] ss:$16 sps:$4 sm:$0xff]   ;;  %v1897_v32 = vld [vmem:[%s2037_s6 + $0x2cc] ss:$16 sps:$4 sm:$0xff]  }
  0x38   : > { %1239 = vmatprep.subr.bf16.mxu1 %v1806_v34  ;;  %v1848_v2 = vld [vmem:[%s2037_s6 + $0x3e4] ss:$16 sps:$4 sm:$0xff]   ;;  %v1851_v4 = vld [vmem:[%s2037_s6 + $0x3e0] ss:$16 sps:$4 sm:$0xff]   ;;  %v1892_v33 = vld [vmem:[%s2037_s6 + $0xc8] ss:$16 sps:$4 sm:$0xff]  }
  0x39   : > { %v1895_v34 = vld [vmem:[%s2037_s6 + $0x2c8] ss:$16 sps:$4 sm:$0xff]   ;;  %v1918_v47 = vld [vmem:[%s2037_s6 + $0x14c] ss:$16 sps:$4 sm:$0xff]  }
  0x3a   : > { %1199 = vmatpush1.bf16.msra.mxu0 %v1808_v35  ;;  %v1900_v35 = vld [vmem:[%s2037_s6 + $0xec] ss:$16 sps:$4 sm:$0xff]  }
  0x3b   : > { %1240 = vmatpush1.bf16.msra.mxu1 %v1809_v36  ;;  %1200 = vmatprep.subr.bf16.mxu0 %v1810_v37  ;;  %v1903_v36 = vld [vmem:[%s2037_s6 + $0x2ec] ss:$16 sps:$4 sm:$0xff]   ;;  %v1898_v37 = vld [vmem:[%s2037_s6 + $0xe8] ss:$16 sps:$4 sm:$0xff]  }
  0x3c   : > { %1241 = vmatprep.subr.bf16.mxu1 %v1812_v38  ;;  %v1901_v38 = vld [vmem:[%s2037_s6 + $0x2e8] ss:$16 sps:$4 sm:$0xff]  }
  0x3e   : > { %1201 = vmatpush1.bf16.msra.mxu0 %v1814_v39  ;;  %v1906_v39 = vld [vmem:[%s2037_s6 + $0x10c] ss:$16 sps:$4 sm:$0xff]  }
  0x3f   : > { %1242 = vmatpush1.bf16.msra.mxu1 %v1815_v40  ;;  %1202 = vmatprep.subr.bf16.mxu0 %v1816_v41  ;;  %v1909_v40 = vld [vmem:[%s2037_s6 + $0x30c] ss:$16 sps:$4 sm:$0xff]   ;;  %v1904_v41 = vld [vmem:[%s2037_s6 + $0x108] ss:$16 sps:$4 sm:$0xff]  }
  0x40   : > { %1243 = vmatprep.subr.bf16.mxu1 %v1818_v42  ;;  %v1907_v42 = vld [vmem:[%s2037_s6 + $0x308] ss:$16 sps:$4 sm:$0xff]  }
  0x42   : > { %1203 = vmatpush1.bf16.msra.mxu0 %v1820_v43  ;;  %v1912_v43 = vld [vmem:[%s2037_s6 + $0x12c] ss:$16 sps:$4 sm:$0xff]  }
  0x43   : > { %1244 = vmatpush1.bf16.msra.mxu1 %v1821_v44  ;;  %1204 = vmatprep.subr.bf16.mxu0 %v1822_v45  ;;  %v1915_v44 = vld [vmem:[%s2037_s6 + $0x32c] ss:$16 sps:$4 sm:$0xff]   ;;  %v1910_v45 = vld [vmem:[%s2037_s6 + $0x128] ss:$16 sps:$4 sm:$0xff]  }
  0x44   : > { %1245 = vmatprep.subr.bf16.mxu1 %v1824_v46  ;;  %v1913_v46 = vld [vmem:[%s2037_s6 + $0x328] ss:$16 sps:$4 sm:$0xff]  }
  0x46   : > { %1205 = vmatpush1.bf16.msra.mxu0 %v1826_v50  ;;  %v1919_v50 = vld [vmem:[%s2037_s6 + $0x348] ss:$16 sps:$4 sm:$0xff]  }
  0x47   : > { %1246 = vmatpush1.bf16.msra.mxu1 %v1827_v51  ;;  %1206 = vmatprep.subr.bf16.mxu0 %v1828_v53  ;;  %v1924_v51 = vld [vmem:[%s2037_s6 + $0x16c] ss:$16 sps:$4 sm:$0xff]   ;;  %v1922_v53 = vld [vmem:[%s2037_s6 + $0x168] ss:$16 sps:$4 sm:$0xff]  }
  0x48   : > { %1247 = vmatprep.subr.bf16.mxu1 %v1830_v54  ;;  %v1925_v54 = vld [vmem:[%s2037_s6 + $0x368] ss:$16 sps:$4 sm:$0xff]  }
  0x4a   : > { %1207 = vmatpush1.bf16.msra.mxu0 %v1832_v55  ;;  %v1930_v55 = vld [vmem:[%s2037_s6 + $0x18c] ss:$16 sps:$4 sm:$0xff]  }
  0x4b   : > { %1248 = vmatpush1.bf16.msra.mxu1 %v1833_v56  ;;  %1208 = vmatprep.subr.bf16.mxu0 %v1834_v57  ;;  %v1933_v56 = vld [vmem:[%s2037_s6 + $0x38c] ss:$16 sps:$4 sm:$0xff]   ;;  %v1928_v57 = vld [vmem:[%s2037_s6 + $0x188] ss:$16 sps:$4 sm:$0xff]  }
  0x4c   : > { %1249 = vmatprep.subr.bf16.mxu1 %v1836_v58  ;;  %v1931_v58 = vld [vmem:[%s2037_s6 + $0x388] ss:$16 sps:$4 sm:$0xff]  }
  0x4e   : > { %1209 = vmatpush1.bf16.msra.mxu0 %v1838_v59  ;;  %v1936_v59 = vld [vmem:[%s2037_s6 + $0x1ac] ss:$16 sps:$4 sm:$0xff]  }
  0x4f   : > { %1250 = vmatpush1.bf16.msra.mxu1 %v1839_v60  ;;  %1210 = vmatprep.subr.bf16.mxu0 %v1840_v61  ;;  %v1939_v60 = vld [vmem:[%s2037_s6 + $0x3ac] ss:$16 sps:$4 sm:$0xff]   ;;  %v1934_v61 = vld [vmem:[%s2037_s6 + $0x1a8] ss:$16 sps:$4 sm:$0xff]  }
  0x50   : > { %1251 = vmatprep.subr.bf16.mxu1 %v1842_v62  ;;  %v1937_v62 = vld [vmem:[%s2037_s6 + $0x3a8] ss:$16 sps:$4 sm:$0xff]  }
  0x52   : > { %1211 = vmatpush1.bf16.msra.mxu0 %v1844_v63  ;;  %v1942_v63 = vld [vmem:[%s2037_s6 + $0x1cc] ss:$16 sps:$4 sm:$0xff]  }
  0x53   : > { %1252 = vmatpush1.bf16.msra.mxu1 %v1845_v0  ;;  %1212 = vmatprep.subr.bf16.mxu0 %v1846_v1  ;;  %v1945_v0 = vld [vmem:[%s2037_s6 + $0x3cc] ss:$16 sps:$4 sm:$0xff]   ;;  %v1940_v1 = vld [vmem:[%s2037_s6 + $0x1c8] ss:$16 sps:$4 sm:$0xff]  }
  0x54   : > { %1253 = vmatprep.subr.bf16.mxu1 %v1848_v2  ;;  %v1943_v2 = vld [vmem:[%s2037_s6 + $0x3c8] ss:$16 sps:$4 sm:$0xff]  }
  0x56   : > { %1213 = vmatpush1.bf16.msra.mxu0 %v1850_v3  ;;  %v1948_v3 = vld [vmem:[%s2037_s6 + $0x1ec] ss:$16 sps:$4 sm:$0xff]  }
  0x57   : > { %1254 = vmatpush1.bf16.msra.mxu1 %v1851_v4  ;;  %1264 = vmatprep.subr.bf16.mxu0 %v1858_v5  ;;  %v1951_v4 = vld [vmem:[%s2037_s6 + $0x3ec] ss:$16 sps:$4 sm:$0xff]   ;;  %v1946_v5 = vld [vmem:[%s2037_s6 + $0x1e8] ss:$16 sps:$4 sm:$0xff]  }
  0x58   : > { %1305 = vmatprep.subr.bf16.mxu1 %v1861_v6  ;;  %v1949_v6 = vld [vmem:[%s2037_s6 + $0x3e8] ss:$16 sps:$4 sm:$0xff]  }
  0x59   : > { %1215 = vmatmul.mubr.bf16.vlgmr.msra.gmra.mrb[0].mxu0 %v2111_v7 }
  0x5a   : > { %1256 = vmatmul.mubr.bf16.vlgmr.msra.gmra.mrb[0].mxu1 %v2113_v8  ;;  %1265 = vmatpush1.bf16.msra.mxu0 %v1856_v9 }
  0x5b   : > { %1306 = vmatpush1.bf16.msra.mxu1 %v1859_v10  ;;  %1266 = vmatprep.subr.bf16.mxu0 %v1864_v11  ;;  %v394_v10 = vld [vmem:[#allocation2] sm:$0xff] }
  0x5c   : > { %1307 = vmatprep.subr.bf16.mxu1 %v1867_v12  ;;  %1296 = vmatprep.mubr.bf16.mxu0 %v2087_v48  ;;  %v1921_v48 = vld [vmem:[%s2037_s6 + $0x34c] ss:$16 sps:$4 sm:$0xff]  }
  0x5d   : > { %1337 = vmatprep.mubr.bf16.mxu1 %v1596_v52  ;;  %v1927_v52 = vld [vmem:[%s2037_s6 + $0x36c] ss:$16 sps:$4 sm:$0xff]  }
  0x5e   : > { %1267 = vmatpush1.bf16.msra.mxu0 %v1862_v13 }
  0x5f   : > { %1308 = vmatpush1.bf16.msra.mxu1 %v1865_v14  ;;  %1268 = vmatprep.subr.bf16.mxu0 %v1870_v15  ;;  %v395_v14 = vld [vmem:[#allocation2 + $0x8] sm:$0xff] }
  0x60   : > { %1309 = vmatprep.subr.bf16.mxu1 %v1873_v16 }
  0x62   : > { %1269 = vmatpush1.bf16.msra.mxu0 %v1868_v17 }
  0x63   : > { %1310 = vmatpush1.bf16.msra.mxu1 %v1871_v18  ;;  %1270 = vmatprep.subr.bf16.mxu0 %v1876_v19 }
  0x64   : > { %1311 = vmatprep.subr.bf16.mxu1 %v1879_v20 }
  0x66   : > { %1271 = vmatpush1.bf16.msra.mxu0 %v1874_v21 }
  0x67   : > { %1312 = vmatpush1.bf16.msra.mxu1 %v1877_v22  ;;  %1272 = vmatprep.subr.bf16.mxu0 %v1882_v23 }
  0x68   : > { %1313 = vmatprep.subr.bf16.mxu1 %v1885_v24 }
  0x6a   : > { %1273 = vmatpush1.bf16.msra.mxu0 %v1880_v25 }
  0x6b   : > { %1314 = vmatpush1.bf16.msra.mxu1 %v1883_v26  ;;  %1274 = vmatprep.subr.bf16.mxu0 %v1888_v27  ;;  %v397_v26 = vld [vmem:[#allocation2 + $0x18] sm:$0xff] }
  0x6c   : > { %1315 = vmatprep.subr.bf16.mxu1 %v1891_v28 }
  0x6e   : > { %1275 = vmatpush1.bf16.msra.mxu0 %v1886_v29 }
  0x6f   : > { %1316 = vmatpush1.bf16.msra.mxu1 %v1889_v30  ;;  %1276 = vmatprep.subr.bf16.mxu0 %v1894_v31 }
  0x70   : > { %1317 = vmatprep.subr.bf16.mxu1 %v1897_v32 }
  0x72   : > { %1277 = vmatpush1.bf16.msra.mxu0 %v1892_v33 }
  0x73   : > { %1318 = vmatpush1.bf16.msra.mxu1 %v1895_v34  ;;  %1278 = vmatprep.subr.bf16.mxu0 %v1900_v35  ;;  %v1364_v35 = vlaneseq (!%p1725_p7) }
  0x74   : > { %1319 = vmatprep.subr.bf16.mxu1 %v1903_v36 }
  0x75   : > { %v1365_v36 = vshrl.u32 (!%p1725_p7), %v1364_v35, 7 }
  0x76   : > { %1279 = vmatpush1.bf16.msra.mxu0 %v1898_v37  ;;  %v1362_v37 = vld [vmem:[%s2224_s2] sm:$0xf] (!%p1725_p7) }
  0x77   : > { %1320 = vmatpush1.bf16.msra.mxu1 %v1901_v38  ;;  %1280 = vmatprep.subr.bf16.mxu0 %v1906_v39  ;;  %v1388_v38 = vld [vmem:[%s2225_s3] sm:$0xf] (!%p1725_p7)  ;;  %v1366_v39 = vsub.s32 (!%p1725_p7), 0, %v1365_v36 }
  0x78   : > { %1321 = vmatprep.subr.bf16.mxu1 %v1909_v40  ;;  %v1370_v40 = vsub.s32 (!%p1725_p7), 1, %v1365_v36 }
  0x7a   : > { %1281 = vmatpush1.bf16.msra.mxu0 %v1904_v41  ;;  %v1374_v41 = vsub.s32 (!%p1725_p7), 2, %v1365_v36 }
  0x7b   : > { %1322 = vmatpush1.bf16.msra.mxu1 %v1907_v42  ;;  %1282 = vmatprep.subr.bf16.mxu0 %v1912_v43  ;;  %v1378_v42 = vsub.s32 (!%p1725_p7), 3, %v1365_v36 }
  0x7c   : > { %1323 = vmatprep.subr.bf16.mxu1 %v1915_v44 }
  0x7e   : > { %1283 = vmatpush1.bf16.msra.mxu0 %v1910_v45  ;;  %v1367_v45 = vrot.slane (!%p1725_p7), %v1362_v37, %v1366_v39 }
  0x7f   : > { %1324 = vmatpush1.bf16.msra.mxu1 %v1913_v46  ;;  %1284 = vmatprep.subr.bf16.mxu0 %v1918_v47  ;;  %v1393_v46 = vrot.slane (!%p1725_p7), %v1388_v38, %v1366_v39  ;;  %v1371_v47 = vrot.slane (!%p1725_p7), %v1362_v37, %v1370_v40 }
  0x80   : > { %1325 = vmatprep.subr.bf16.mxu1 %v1921_v48  ;;  %v1397_v48 = vrot.slane (!%p1725_p7), %v1388_v38, %v1370_v40 }
  0x82   : > { %1285 = vmatpush1.bf16.msra.mxu0 %v1916_v49 }
  0x83   : > { %1326 = vmatpush1.bf16.msra.mxu1 %v1919_v50  ;;  %1286 = vmatprep.subr.bf16.mxu0 %v1924_v51  ;;  %v1375_v51 = vrot.slane (!%p1725_p7), %v1362_v37, %v1374_v41 }
  0x84   : > { %1327 = vmatprep.subr.bf16.mxu1 %v1927_v52  ;;  %v1401_v52 = vrot.slane (!%p1725_p7), %v1388_v38, %v1374_v41 }
  0x86   : > { %1287 = vmatpush1.bf16.msra.mxu0 %v1922_v53  ;;  %v1379_v53 = vrot.slane (!%p1725_p7), %v1362_v37, %v1378_v42 }
  0x87   : > { %1328 = vmatpush1.bf16.msra.mxu1 %v1925_v54  ;;  %1288 = vmatprep.subr.bf16.mxu0 %v1930_v55  ;;  %v1405_v54 = vrot.slane (!%p1725_p7), %v1388_v38, %v1378_v42 }
  0x88   : > { %1329 = vmatprep.subr.bf16.mxu1 %v1933_v56 }
  0x8a   : > { %1289 = vmatpush1.bf16.msra.mxu0 %v1928_v57  ;;  %v1414_v57 = vld [vmem:[%s2226_s4] sm:$0xff] (!%p1725_p7) }
  0x8b   : > { %1330 = vmatpush1.bf16.msra.mxu1 %v1931_v58  ;;  %1290 = vmatprep.subr.bf16.mxu0 %v1936_v59  ;;  %v1415_v58 = vld [vmem:[%s2226_s4 + $0x8] sm:$0xff] (!%p1725_p7) }
  0x8c   : > { %1331 = vmatprep.subr.bf16.mxu1 %v1939_v60 }
  0x8e   : > { %1291 = vmatpush1.bf16.msra.mxu0 %v1934_v61 }
  0x8f   : > { %1332 = vmatpush1.bf16.msra.mxu1 %v1937_v62  ;;  %1292 = vmatprep.subr.bf16.mxu0 %v1942_v63  ;;  %v1416_v63 = vld [vmem:[%s2226_s4 + $0x10] sm:$0xff] (!%p1725_p7) }
  0x90   : > { %1333 = vmatprep.subr.bf16.mxu1 %v1945_v0  ;;  %v1417_v0 = vld [vmem:[%s2226_s4 + $0x18] sm:$0xff] (!%p1725_p7) }
  0x92   : > { %1293 = vmatpush1.bf16.msra.mxu0 %v1940_v1 }
  0x93   : > { %1334 = vmatpush1.bf16.msra.mxu1 %v1943_v2  ;;  %1294 = vmatprep.subr.bf16.mxu0 %v1948_v3 }
  0x94   : > { %1335 = vmatprep.subr.bf16.mxu1 %v1951_v4 }
  0x96   : > { %1295 = vmatpush1.bf16.msra.mxu0 %v1946_v5 }
  0x97   : > { %1336 = vmatpush1.bf16.msra.mxu1 %v1949_v6 }
  0x99   : > { %1297 = vmatmul.mubr.bf16.vlgmr.msra.gmra.mrb[4].mxu0 %v2111_v7  ;;  %v396_v7 = vld [vmem:[#allocation2 + $0x10] sm:$0xff] }
  0x9a   : > { %1338 = vmatmul.mubr.bf16.vlgmr.msra.gmra.mrb[4].mxu1 %v2113_v8 }
 0x12c   : > { %v1216_v9 = vpop.f32.mrb[0].mxu0 }
 0x12d   : > { %v1257_v11 = vpop.f32.mrb[0].mxu1  ;;  %v1218_v13 = vpop.f32.mrb[1].mxu0 }
 0x12e   : > { %v1258_v12 = vadd.f32 %v1257_v11, %v1216_v9  ;;  %v1259_v15 = vpop.f32.mrb[1].mxu1  ;;  %v1220_v17 = vpop.f32.mrb[2].mxu0 }
 0x12f   : > { %v1260_v16 = vadd.f32 %v1259_v15, %v1218_v13  ;;  %v1261_v18 = vpop.f32.mrb[2].mxu1  ;;  %v1221_v20 = vpop.f32.mrb[3].mxu0 }
 0x130   : > { %v1346_v19 = vadd.f32 %v1258_v12, %v394_v10  ;;  %v1262_v21 = vpop.f32.mrb[3].mxu1 }
 0x131   : > { %v1347_v22 = vadd.f32 %v1260_v16, %v395_v14 }
 0x132   : > { %1350 = vst [vmem:[#allocation2] sm:$0xff] %v1346_v19 }
 0x133   : > { %1351 = vst [vmem:[#allocation2 + $0x8] sm:$0xff] %v1347_v22 }
 0x139   : > { %v1358_v43 = vld [vmem:[#allocation2] sm:$0xff] (!%p1725_p7) }
 0x13a   : > { %v1359_v44 = vld [vmem:[#allocation2 + $0x8] sm:$0xff] (!%p1725_p7)  ;;  %v1384_v55 = vmul.f32 (!%p1725_p7), %v1367_v45, %v1358_v43 }
 0x13b   : > { %v1385_v56 = vmul.f32 (!%p1725_p7), %v1371_v47, %v1359_v44 }
 0x13c   : > { %v1410_v61 = vadd.f32 (!%p1725_p7), %v1393_v46, %v1384_v55 }
 0x13d   : > { %v1411_v62 = vadd.f32 (!%p1725_p7), %v1397_v48, %v1385_v56 }
 0x13e   : > { %v1418_v3 = vadd.f32 (!%p1725_p7), %v1414_v57, %v1410_v61 }
 0x13f   : > { %v1419_v4 = vadd.f32 (!%p1725_p7), %v1415_v58, %v1411_v62 }
 0x140   : > { %v1422_v9 = vmax.f32 (!%p1725_p7), %v1418_v3, 0.0 }
 0x141   : > { %v1423_v10 = vmax.f32 (!%p1725_p7), %v1419_v4, 0.0 }
 0x142   : > { %1426 = vst [vmem:[%s2227_s5] sm:$0xff] (!%p1725_p7), %v1422_v9 }
 0x143   : > { %1427 = vst [vmem:[%s2227_s5 + $0x8] sm:$0xff] (!%p1725_p7), %v1423_v10 }
 0x16c   : > { %v1298_v23 = vpop.f32.mrb[4].mxu0 }
 0x16d   : > { %v1339_v24 = vpop.f32.mrb[4].mxu1  ;;  %v1300_v25 = vpop.f32.mrb[5].mxu0  ;;  %1357 = sbr.rel (%p1725_p7) target bundleno = 388 (0x184), region = 48 }
 0x16e   : > { %v1340_v8 = vadd.f32 %v1339_v24, %v1298_v23  ;;  %v1341_v27 = vpop.f32.mrb[5].mxu1  ;;  %v1302_v29 = vpop.f32.mrb[6].mxu0 }
 0x16f   : > { %v1342_v28 = vadd.f32 %v1341_v27, %v1300_v25  ;;  %v1343_v30 = vpop.f32.mrb[6].mxu1  ;;  %v1303_v32 = vpop.f32.mrb[7].mxu0 }
 0x170   : > { %v1348_v31 = vadd.f32 %v1340_v8, %v396_v7  ;;  %v1344_v33 = vpop.f32.mrb[7].mxu1 }
 0x171   : > { %v1349_v34 = vadd.f32 %v1342_v28, %v397_v26 }
 0x172   : > { %1352 = vst [vmem:[#allocation2 + $0x10] sm:$0xff] %v1348_v31 }
 0x173   : > { %1353 = vst [vmem:[#allocation2 + $0x18] sm:$0xff] %v1349_v34 }
 0x179   : > { %v1360_v49 = vld [vmem:[#allocation2 + $0x10] sm:$0xff] }
 0x17a   : > { %v1361_v50 = vld [vmem:[#allocation2 + $0x18] sm:$0xff]  ;;  %v1386_v59 = vmul.f32 %v1375_v51, %v1360_v49 }
 0x17b   : > { %v1387_v60 = vmul.f32 %v1379_v53, %v1361_v50 }
 0x17c   : > { %v1412_v1 = vadd.f32 %v1401_v52, %v1386_v59 }
 0x17d   : > { %v1413_v2 = vadd.f32 %v1405_v54, %v1387_v60 }
 0x17e   : > { %v1420_v5 = vadd.f32 %v1416_v63, %v1412_v1 }
 0x17f   : > { %v1421_v6 = vadd.f32 %v1417_v0, %v1413_v2 }
 0x180   : > { %v1424_v11 = vmax.f32 %v1420_v5, 0.0 }
 0x181   : > { %v1425_v12 = vmax.f32 %v1421_v6, 0.0 }
 0x182   : > { %1428 = vst [vmem:[%s2227_s5 + $0x10] sm:$0xff] %v1424_v11 }
 0x183   : > { %1429 = vst [vmem:[%s2227_s5 + $0x18] sm:$0xff] %v1425_v12 }
 0x184 PF: > { %s15_s20 = sadd.s32 1, %s1974_s20   ;;  %s2228_s18 = smov %s1970_s19 }
 0x185   : > { %p12_p8 = scmp.ge.s32.totalorder %s15_s20, 11   ;;  %s2229_s19 = smov %s2231_s21 }
 0x187   :  { %14 = sbr.rel (!%p12_p8) target bundleno = 2 (0x2), region = 90 }

// kernel: resnet18_forward.41
= control target key start
LH: loop header
LB: loop body
LE: loop exit
PB: predicated region body
PF: predicated region fallthrough
CT: control target
= control target key end

     0   :  { %s1909_s15 = smov 0   ;;  %s1911_s16 = smov 0   ;;  %s2112_s0 = inlined_call_operand.vmem [shape: bf16[8,4608], index: 0, kind: input, shape index: {}]   ;;  %s2113_s1 = inlined_call_operand.vmem [shape: bf16[4608,512], index: 1, kind: input, shape index: {}]   ;;  %s2114_s2 = inlined_call_operand.vmem [shape: f32[1,512], index: 2, kind: input, shape index: {}]   ;;  %s2115_s3 = inlined_call_operand.vmem [shape: f32[1,512], index: 3, kind: input, shape index: {}]   ;;  %s2116_s4 = inlined_call_operand.vmem [shape: f32[8,512], index: 4, kind: output, shape index: {}]  }
   0x1   :  { %s1913_s17 = smov 0  }
   0x2 LB: > { %s26_s18 = sadd.s32 1, %s1877_s16  ;;  %p1493_p0 = scmp.ge.s32.totalorder %s1881_s17, 1  ;;  %s1881_s17 = sphi %s1913_s17, %s14_s17   ;;  %s1877_s16 = sphi %s1911_s16, %s2118_s16   ;;  %s1873_s15 = sphi %s1909_s15, %s2117_s15  }
   0x3   : > { %p27_p1 = scmp.ge.s32.totalorder %s26_s18, 9  ;;  %p229_p2 = scmp.lt.s32.totalorder %s1881_s17, 10 }
   0x5   : > { %s2120_s18 = smov (%p27_p1, %s26_s18), 0  ;;  %p230_p3 = pnand %p1493_p0, %p229_p2 }
   0x6   : > { %s1494_s19 = sshll.u32 (!%p230_p3), %s1873_s15, 2  ;;  %s1496_s20 = sshll.u32 (!%p230_p3), %s1873_s15, 6 }
   0x7   : > { %233 = sbr.rel (%p230_p3) target bundleno = 386 (0x182), region = 36  ;;  %p284_p4 = scmp.lt.s32.totalorder (!%p230_p3), %s1494_s19, 35 }
   0x8   : > { %p293_p5 = scmp.lt.s32.totalorder (!%p230_p3), %s1496_s20, 575  ;;  %p1499_p6 = scmp.ne.s32.totalorder (!%p230_p3), %s1873_s15, 0 }
   0xe   : > { %s2122_s19 = smov (!%p284_p4, %s1494_s19), 35  ;;  %s2124_s20 = smov (!%p293_p5, %s1496_s20), 575 }
   0xf   : > { %s1495_s21 = sshll.u32 %s2122_s19, 2  ;;  %s1637_s25 = sshll.u32 %s2124_s20, 4  ;;  %v1883_v0 = vmov (!%p1499_p6), 0.0  }
  0x10   : > { %s1934_s24 = scalar_lea.vmem %s2112_s0, %s1495_s21  ;;  %s1939_s28 = scalar_lea.vmem %s2113_s1, %s1637_s25  ;;  %327 = vst [vmem:[#allocation2] sm:$0xff] (!%p1499_p6), %v1883_v0  ;;  %328 = vst [vmem:[#allocation2 + $0x8] sm:$0xff] (!%p1499_p6), %v1883_v0 }
  0x11   : > { %326 = sbr.rel (%p1499_p6) target bundleno = 24 (0x18), region = 40  ;;  %329 = vst [vmem:[#allocation2 + $0x10] sm:$0xff] (!%p1499_p6), %v1883_v0  ;;  %330 = vst [vmem:[#allocation2 + $0x18] sm:$0xff] (!%p1499_p6), %v1883_v0 }
  0x18 PF: > { %v1663_v1 = vld [vmem:[%s1939_s28 + $0x4] ss:$16 sps:$4 sm:$0xff]   ;;  %v1667_v3 = vld [vmem:[%s1939_s28] ss:$16 sps:$4 sm:$0xff]   ;;  %v336_v49 = vld [vmem:[%s1934_s24 + $0x8] sm:$0xff]  ;;  %p1632_p7 = scmp.ne.s32.totalorder %s1873_s15, 8 }
  0x19   : > { %v1665_v2 = vld [vmem:[%s1939_s28 + $0x204] ss:$16 sps:$4 sm:$0xff]   ;;  %1119 = vmatprep.subr.bf16.mxu0 %v1663_v1  ;;  %v1668_v4 = vld [vmem:[%s1939_s28 + $0x200] ss:$16 sps:$4 sm:$0xff]   ;;  %v1503_v52 = vcombine.high %v336_v49, %v336_v49 }
  0x1a   : > { %1160 = vmatprep.subr.bf16.mxu1 %v1665_v2  ;;  %v1669_v5 = vld [vmem:[%s1939_s28 + $0x24] ss:$16 sps:$4 sm:$0xff]   ;;  %1120 = vmatpush1.bf16.msra.mxu0 %v1667_v3  ;;  %v1673_v7 = vld [vmem:[%s1939_s28 + $0x20] ss:$16 sps:$4 sm:$0xff]  }
  0x1b   : > { %1161 = vmatpush1.bf16.msra.mxu1 %v1668_v4  ;;  %v1671_v6 = vld [vmem:[%s1939_s28 + $0x224] ss:$16 sps:$4 sm:$0xff]   ;;  %1121 = vmatprep.subr.bf16.mxu0 %v1669_v5  ;;  %v1674_v8 = vld [vmem:[%s1939_s28 + $0x220] ss:$16 sps:$4 sm:$0xff]   ;;  %v1765_v5 = vld [vmem:[%s1939_s28 + $0xc] ss:$16 sps:$4 sm:$0xff]  }
  0x1c   : > { %1162 = vmatprep.subr.bf16.mxu1 %v1671_v6  ;;  %v1675_v9 = vld [vmem:[%s1939_s28 + $0x44] ss:$16 sps:$4 sm:$0xff]   ;;  %v1679_v11 = vld [vmem:[%s1939_s28 + $0x40] ss:$16 sps:$4 sm:$0xff]   ;;  %1192 = vmatprep.mubr.bf16.mxu1 %v1503_v52  ;;  %v1768_v6 = vld [vmem:[%s1939_s28 + $0x20c] ss:$16 sps:$4 sm:$0xff]  }
  0x1d   : > { %v1677_v10 = vld [vmem:[%s1939_s28 + $0x244] ss:$16 sps:$4 sm:$0xff]   ;;  %v1680_v12 = vld [vmem:[%s1939_s28 + $0x240] ss:$16 sps:$4 sm:$0xff]  }
  0x1e   : > { %1122 = vmatpush1.bf16.msra.mxu0 %v1673_v7  ;;  %v1681_v13 = vld [vmem:[%s1939_s28 + $0x64] ss:$16 sps:$4 sm:$0xff]   ;;  %v1685_v15 = vld [vmem:[%s1939_s28 + $0x60] ss:$16 sps:$4 sm:$0xff]  }
  0x1f   : > { %1163 = vmatpush1.bf16.msra.mxu1 %v1674_v8  ;;  %1123 = vmatprep.subr.bf16.mxu0 %v1675_v9  ;;  %v1683_v14 = vld [vmem:[%s1939_s28 + $0x264] ss:$16 sps:$4 sm:$0xff]   ;;  %v1686_v16 = vld [vmem:[%s1939_s28 + $0x260] ss:$16 sps:$4 sm:$0xff]   ;;  %v2015_v8 = vcombine.low %v336_v49, %v336_v49  ;;  %v1763_v9 = vld [vmem:[%s1939_s28 + $0x8] ss:$16 sps:$4 sm:$0xff]  }
  0x20   : > { %1164 = vmatprep.subr.bf16.mxu1 %v1677_v10  ;;  %v1687_v17 = vld [vmem:[%s1939_s28 + $0x84] ss:$16 sps:$4 sm:$0xff]   ;;  %v1691_v19 = vld [vmem:[%s1939_s28 + $0x80] ss:$16 sps:$4 sm:$0xff]   ;;  %v1766_v10 = vld [vmem:[%s1939_s28 + $0x208] ss:$16 sps:$4 sm:$0xff]  }
  0x21   : > { %v1689_v18 = vld [vmem:[%s1939_s28 + $0x284] ss:$16 sps:$4 sm:$0xff]   ;;  %v1692_v20 = vld [vmem:[%s1939_s28 + $0x280] ss:$16 sps:$4 sm:$0xff]   ;;  %v1823_v49 = vld [vmem:[%s1939_s28 + $0x148] ss:$16 sps:$4 sm:$0xff]  }
  0x22   : > { %1124 = vmatpush1.bf16.msra.mxu0 %v1679_v11  ;;  %v1693_v21 = vld [vmem:[%s1939_s28 + $0xa4] ss:$16 sps:$4 sm:$0xff]   ;;  %v1697_v23 = vld [vmem:[%s1939_s28 + $0xa0] ss:$16 sps:$4 sm:$0xff]   ;;  %v1771_v11 = vld [vmem:[%s1939_s28 + $0x2c] ss:$16 sps:$4 sm:$0xff]  }
  0x23   : > { %1165 = vmatpush1.bf16.msra.mxu1 %v1680_v12  ;;  %1125 = vmatprep.subr.bf16.mxu0 %v1681_v13  ;;  %v1695_v22 = vld [vmem:[%s1939_s28 + $0x2a4] ss:$16 sps:$4 sm:$0xff]   ;;  %v1698_v24 = vld [vmem:[%s1939_s28 + $0x2a0] ss:$16 sps:$4 sm:$0xff]   ;;  %v1774_v12 = vld [vmem:[%s1939_s28 + $0x22c] ss:$16 sps:$4 sm:$0xff]  }
  0x24   : > { %1166 = vmatprep.subr.bf16.mxu1 %v1683_v14  ;;  %v1699_v25 = vld [vmem:[%s1939_s28 + $0xc4] ss:$16 sps:$4 sm:$0xff]   ;;  %v1703_v27 = vld [vmem:[%s1939_s28 + $0xc0] ss:$16 sps:$4 sm:$0xff]   ;;  %v1769_v13 = vld [vmem:[%s1939_s28 + $0x28] ss:$16 sps:$4 sm:$0xff]  }
  0x25   : > { %v1701_v26 = vld [vmem:[%s1939_s28 + $0x2c4] ss:$16 sps:$4 sm:$0xff]   ;;  %v1704_v28 = vld [vmem:[%s1939_s28 + $0x2c0] ss:$16 sps:$4 sm:$0xff]   ;;  %v1772_v14 = vld [vmem:[%s1939_s28 + $0x228] ss:$16 sps:$4 sm:$0xff]  }
  0x26   : > { %1126 = vmatpush1.bf16.msra.mxu0 %v1685_v15  ;;  %v1705_v29 = vld [vmem:[%s1939_s28 + $0xe4] ss:$16 sps:$4 sm:$0xff]   ;;  %v1709_v31 = vld [vmem:[%s1939_s28 + $0xe0] ss:$16 sps:$4 sm:$0xff]   ;;  %v1777_v15 = vld [vmem:[%s1939_s28 + $0x4c] ss:$16 sps:$4 sm:$0xff]  }
  0x27   : > { %1167 = vmatpush1.bf16.msra.mxu1 %v1686_v16  ;;  %1127 = vmatprep.subr.bf16.mxu0 %v1687_v17  ;;  %v1707_v30 = vld [vmem:[%s1939_s28 + $0x2e4] ss:$16 sps:$4 sm:$0xff]   ;;  %v1710_v32 = vld [vmem:[%s1939_s28 + $0x2e0] ss:$16 sps:$4 sm:$0xff]   ;;  %v1780_v16 = vld [vmem:[%s1939_s28 + $0x24c] ss:$16 sps:$4 sm:$0xff]  }
  0x28   : > { %1168 = vmatprep.subr.bf16.mxu1 %v1689_v18  ;;  %v1711_v33 = vld [vmem:[%s1939_s28 + $0x104] ss:$16 sps:$4 sm:$0xff]   ;;  %v1715_v35 = vld [vmem:[%s1939_s28 + $0x100] ss:$16 sps:$4 sm:$0xff]   ;;  %v1775_v17 = vld [vmem:[%s1939_s28 + $0x48] ss:$16 sps:$4 sm:$0xff]  }
  0x29   : > { %v1713_v34 = vld [vmem:[%s1939_s28 + $0x304] ss:$16 sps:$4 sm:$0xff]   ;;  %v1716_v36 = vld [vmem:[%s1939_s28 + $0x300] ss:$16 sps:$4 sm:$0xff]   ;;  %v1778_v18 = vld [vmem:[%s1939_s28 + $0x248] ss:$16 sps:$4 sm:$0xff]  }
  0x2a   : > { %1128 = vmatpush1.bf16.msra.mxu0 %v1691_v19  ;;  %v1717_v37 = vld [vmem:[%s1939_s28 + $0x124] ss:$16 sps:$4 sm:$0xff]   ;;  %v1721_v39 = vld [vmem:[%s1939_s28 + $0x120] ss:$16 sps:$4 sm:$0xff]   ;;  %v1783_v19 = vld [vmem:[%s1939_s28 + $0x6c] ss:$16 sps:$4 sm:$0xff]  }
  0x2b   : > { %1169 = vmatpush1.bf16.msra.mxu1 %v1692_v20  ;;  %1129 = vmatprep.subr.bf16.mxu0 %v1693_v21  ;;  %v1719_v38 = vld [vmem:[%s1939_s28 + $0x324] ss:$16 sps:$4 sm:$0xff]   ;;  %v1722_v40 = vld [vmem:[%s1939_s28 + $0x320] ss:$16 sps:$4 sm:$0xff]   ;;  %v1786_v20 = vld [vmem:[%s1939_s28 + $0x26c] ss:$16 sps:$4 sm:$0xff]  }
  0x2c   : > { %1170 = vmatprep.subr.bf16.mxu1 %v1695_v22  ;;  %v1723_v41 = vld [vmem:[%s1939_s28 + $0x144] ss:$16 sps:$4 sm:$0xff]   ;;  %v1727_v43 = vld [vmem:[%s1939_s28 + $0x140] ss:$16 sps:$4 sm:$0xff]   ;;  %v1781_v21 = vld [vmem:[%s1939_s28 + $0x68] ss:$16 sps:$4 sm:$0xff]  }
  0x2d   : > { %v1725_v42 = vld [vmem:[%s1939_s28 + $0x344] ss:$16 sps:$4 sm:$0xff]   ;;  %v1728_v44 = vld [vmem:[%s1939_s28 + $0x340] ss:$16 sps:$4 sm:$0xff]   ;;  %v1784_v22 = vld [vmem:[%s1939_s28 + $0x268] ss:$16 sps:$4 sm:$0xff]  }
  0x2e   : > { %1130 = vmatpush1.bf16.msra.mxu0 %v1697_v23  ;;  %v1729_v45 = vld [vmem:[%s1939_s28 + $0x164] ss:$16 sps:$4 sm:$0xff]   ;;  %v1733_v50 = vld [vmem:[%s1939_s28 + $0x160] ss:$16 sps:$4 sm:$0xff]   ;;  %v1789_v23 = vld [vmem:[%s1939_s28 + $0x8c] ss:$16 sps:$4 sm:$0xff]  }
  0x2f   : > { %1171 = vmatpush1.bf16.msra.mxu1 %v1698_v24  ;;  %1131 = vmatprep.subr.bf16.mxu0 %v1699_v25  ;;  %v1731_v46 = vld [vmem:[%s1939_s28 + $0x364] ss:$16 sps:$4 sm:$0xff]   ;;  %v1734_v51 = vld [vmem:[%s1939_s28 + $0x360] ss:$16 sps:$4 sm:$0xff]   ;;  %v1792_v24 = vld [vmem:[%s1939_s28 + $0x28c] ss:$16 sps:$4 sm:$0xff]  }
  0x30   : > { %1172 = vmatprep.subr.bf16.mxu1 %v1701_v26  ;;  %v335_v47 = vld [vmem:[%s1934_s24] sm:$0xff]  ;;  %v1787_v25 = vld [vmem:[%s1939_s28 + $0x88] ss:$16 sps:$4 sm:$0xff]  }
  0x31   : > { %v1989_v48 = vcombine.high %v335_v47, %v335_v47  ;;  %v1735_v53 = vld [vmem:[%s1939_s28 + $0x184] ss:$16 sps:$4 sm:$0xff]   ;;  %v1739_v55 = vld [vmem:[%s1939_s28 + $0x180] ss:$16 sps:$4 sm:$0xff]   ;;  %v2013_v7 = vcombine.low %v335_v47, %v335_v47  ;;  %v1790_v26 = vld [vmem:[%s1939_s28 + $0x288] ss:$16 sps:$4 sm:$0xff]  }
  0x32   : > { %1132 = vmatpush1.bf16.msra.mxu0 %v1703_v27  ;;  %v1737_v54 = vld [vmem:[%s1939_s28 + $0x384] ss:$16 sps:$4 sm:$0xff]   ;;  %v1740_v56 = vld [vmem:[%s1939_s28 + $0x380] ss:$16 sps:$4 sm:$0xff]   ;;  %v1795_v27 = vld [vmem:[%s1939_s28 + $0xac] ss:$16 sps:$4 sm:$0xff]  }
  0x33   : > { %1173 = vmatpush1.bf16.msra.mxu1 %v1704_v28  ;;  %1133 = vmatprep.subr.bf16.mxu0 %v1705_v29  ;;  %v1741_v57 = vld [vmem:[%s1939_s28 + $0x1a4] ss:$16 sps:$4 sm:$0xff]   ;;  %v1745_v59 = vld [vmem:[%s1939_s28 + $0x1a0] ss:$16 sps:$4 sm:$0xff]   ;;  %v1798_v28 = vld [vmem:[%s1939_s28 + $0x2ac] ss:$16 sps:$4 sm:$0xff]  }
  0x34   : > { %1174 = vmatprep.subr.bf16.mxu1 %v1707_v30  ;;  %1151 = vmatprep.mubr.bf16.mxu0 %v1989_v48  ;;  %v1743_v58 = vld [vmem:[%s1939_s28 + $0x3a4] ss:$16 sps:$4 sm:$0xff]   ;;  %v1746_v60 = vld [vmem:[%s1939_s28 + $0x3a0] ss:$16 sps:$4 sm:$0xff]   ;;  %v1793_v29 = vld [vmem:[%s1939_s28 + $0xa8] ss:$16 sps:$4 sm:$0xff]  }
  0x35   : > { %v1747_v61 = vld [vmem:[%s1939_s28 + $0x1c4] ss:$16 sps:$4 sm:$0xff]   ;;  %v1751_v63 = vld [vmem:[%s1939_s28 + $0x1c0] ss:$16 sps:$4 sm:$0xff]   ;;  %v1796_v30 = vld [vmem:[%s1939_s28 + $0x2a8] ss:$16 sps:$4 sm:$0xff]  }
  0x36   : > { %1134 = vmatpush1.bf16.msra.mxu0 %v1709_v31  ;;  %v1749_v62 = vld [vmem:[%s1939_s28 + $0x3c4] ss:$16 sps:$4 sm:$0xff]   ;;  %v1752_v0 = vld [vmem:[%s1939_s28 + $0x3c0] ss:$16 sps:$4 sm:$0xff]   ;;  %v1801_v31 = vld [vmem:[%s1939_s28 + $0xcc] ss:$16 sps:$4 sm:$0xff]  }
  0x37   : > { %1175 = vmatpush1.bf16.msra.mxu1 %v1710_v32  ;;  %1135 = vmatprep.subr.bf16.mxu0 %v1711_v33  ;;  %v1753_v1 = vld [vmem:[%s1939_s28 + $0x1e4] ss:$16 sps:$4 sm:$0xff]   ;;  %v1757_v3 = vld [vmem:[%s1939_s28 + $0x1e0] ss:$16 sps:$4 sm:$0xff]   ;;  %v1804_v32 = vld [vmem:[%s1939_s28 + $0x2cc] ss:$16 sps:$4 sm:$0xff]  }
  0x38   : > { %1176 = vmatprep.subr.bf16.mxu1 %v1713_v34  ;;  %v1755_v2 = vld [vmem:[%s1939_s28 + $0x3e4] ss:$16 sps:$4 sm:$0xff]   ;;  %v1758_v4 = vld [vmem:[%s1939_s28 + $0x3e0] ss:$16 sps:$4 sm:$0xff]   ;;  %v1799_v33 = vld [vmem:[%s1939_s28 + $0xc8] ss:$16 sps:$4 sm:$0xff]  }
  0x39   : > { %v1802_v34 = vld [vmem:[%s1939_s28 + $0x2c8] ss:$16 sps:$4 sm:$0xff]   ;;  %v1825_v47 = vld [vmem:[%s1939_s28 + $0x14c] ss:$16 sps:$4 sm:$0xff]  }
  0x3a   : > { %1136 = vmatpush1.bf16.msra.mxu0 %v1715_v35  ;;  %v1807_v35 = vld [vmem:[%s1939_s28 + $0xec] ss:$16 sps:$4 sm:$0xff]  }
  0x3b   : > { %1177 = vmatpush1.bf16.msra.mxu1 %v1716_v36  ;;  %1137 = vmatprep.subr.bf16.mxu0 %v1717_v37  ;;  %v1810_v36 = vld [vmem:[%s1939_s28 + $0x2ec] ss:$16 sps:$4 sm:$0xff]   ;;  %v1805_v37 = vld [vmem:[%s1939_s28 + $0xe8] ss:$16 sps:$4 sm:$0xff]  }
  0x3c   : > { %1178 = vmatprep.subr.bf16.mxu1 %v1719_v38  ;;  %v1808_v38 = vld [vmem:[%s1939_s28 + $0x2e8] ss:$16 sps:$4 sm:$0xff]  }
  0x3e   : > { %1138 = vmatpush1.bf16.msra.mxu0 %v1721_v39  ;;  %v1813_v39 = vld [vmem:[%s1939_s28 + $0x10c] ss:$16 sps:$4 sm:$0xff]  }
  0x3f   : > { %1179 = vmatpush1.bf16.msra.mxu1 %v1722_v40  ;;  %1139 = vmatprep.subr.bf16.mxu0 %v1723_v41  ;;  %v1816_v40 = vld [vmem:[%s1939_s28 + $0x30c] ss:$16 sps:$4 sm:$0xff]   ;;  %v1811_v41 = vld [vmem:[%s1939_s28 + $0x108] ss:$16 sps:$4 sm:$0xff]  }
  0x40   : > { %1180 = vmatprep.subr.bf16.mxu1 %v1725_v42  ;;  %v1814_v42 = vld [vmem:[%s1939_s28 + $0x308] ss:$16 sps:$4 sm:$0xff]  }
  0x42   : > { %1140 = vmatpush1.bf16.msra.mxu0 %v1727_v43  ;;  %v1819_v43 = vld [vmem:[%s1939_s28 + $0x12c] ss:$16 sps:$4 sm:$0xff]  }
  0x43   : > { %1181 = vmatpush1.bf16.msra.mxu1 %v1728_v44  ;;  %1141 = vmatprep.subr.bf16.mxu0 %v1729_v45  ;;  %v1822_v44 = vld [vmem:[%s1939_s28 + $0x32c] ss:$16 sps:$4 sm:$0xff]   ;;  %v1817_v45 = vld [vmem:[%s1939_s28 + $0x128] ss:$16 sps:$4 sm:$0xff]  }
  0x44   : > { %1182 = vmatprep.subr.bf16.mxu1 %v1731_v46  ;;  %v1820_v46 = vld [vmem:[%s1939_s28 + $0x328] ss:$16 sps:$4 sm:$0xff]  }
  0x46   : > { %1142 = vmatpush1.bf16.msra.mxu0 %v1733_v50  ;;  %v1826_v50 = vld [vmem:[%s1939_s28 + $0x348] ss:$16 sps:$4 sm:$0xff]  }
  0x47   : > { %1183 = vmatpush1.bf16.msra.mxu1 %v1734_v51  ;;  %1143 = vmatprep.subr.bf16.mxu0 %v1735_v53  ;;  %v1831_v51 = vld [vmem:[%s1939_s28 + $0x16c] ss:$16 sps:$4 sm:$0xff]   ;;  %v1829_v53 = vld [vmem:[%s1939_s28 + $0x168] ss:$16 sps:$4 sm:$0xff]  }
  0x48   : > { %1184 = vmatprep.subr.bf16.mxu1 %v1737_v54  ;;  %v1832_v54 = vld [vmem:[%s1939_s28 + $0x368] ss:$16 sps:$4 sm:$0xff]  }
  0x4a   : > { %1144 = vmatpush1.bf16.msra.mxu0 %v1739_v55  ;;  %v1837_v55 = vld [vmem:[%s1939_s28 + $0x18c] ss:$16 sps:$4 sm:$0xff]  }
  0x4b   : > { %1185 = vmatpush1.bf16.msra.mxu1 %v1740_v56  ;;  %1145 = vmatprep.subr.bf16.mxu0 %v1741_v57  ;;  %v1840_v56 = vld [vmem:[%s1939_s28 + $0x38c] ss:$16 sps:$4 sm:$0xff]   ;;  %v1835_v57 = vld [vmem:[%s1939_s28 + $0x188] ss:$16 sps:$4 sm:$0xff]  }
  0x4c   : > { %1186 = vmatprep.subr.bf16.mxu1 %v1743_v58  ;;  %v1838_v58 = vld [vmem:[%s1939_s28 + $0x388] ss:$16 sps:$4 sm:$0xff]  }
  0x4e   : > { %1146 = vmatpush1.bf16.msra.mxu0 %v1745_v59  ;;  %v1843_v59 = vld [vmem:[%s1939_s28 + $0x1ac] ss:$16 sps:$4 sm:$0xff]  }
  0x4f   : > { %1187 = vmatpush1.bf16.msra.mxu1 %v1746_v60  ;;  %1147 = vmatprep.subr.bf16.mxu0 %v1747_v61  ;;  %v1846_v60 = vld [vmem:[%s1939_s28 + $0x3ac] ss:$16 sps:$4 sm:$0xff]   ;;  %v1841_v61 = vld [vmem:[%s1939_s28 + $0x1a8] ss:$16 sps:$4 sm:$0xff]  }
  0x50   : > { %1188 = vmatprep.subr.bf16.mxu1 %v1749_v62  ;;  %v1844_v62 = vld [vmem:[%s1939_s28 + $0x3a8] ss:$16 sps:$4 sm:$0xff]  }
  0x52   : > { %1148 = vmatpush1.bf16.msra.mxu0 %v1751_v63  ;;  %v1849_v63 = vld [vmem:[%s1939_s28 + $0x1cc] ss:$16 sps:$4 sm:$0xff]  }
  0x53   : > { %1189 = vmatpush1.bf16.msra.mxu1 %v1752_v0  ;;  %1149 = vmatprep.subr.bf16.mxu0 %v1753_v1  ;;  %v1852_v0 = vld [vmem:[%s1939_s28 + $0x3cc] ss:$16 sps:$4 sm:$0xff]   ;;  %v1847_v1 = vld [vmem:[%s1939_s28 + $0x1c8] ss:$16 sps:$4 sm:$0xff]  }
  0x54   : > { %1190 = vmatprep.subr.bf16.mxu1 %v1755_v2  ;;  %v1850_v2 = vld [vmem:[%s1939_s28 + $0x3c8] ss:$16 sps:$4 sm:$0xff]  }
  0x56   : > { %1150 = vmatpush1.bf16.msra.mxu0 %v1757_v3  ;;  %v1855_v3 = vld [vmem:[%s1939_s28 + $0x1ec] ss:$16 sps:$4 sm:$0xff]  }
  0x57   : > { %1191 = vmatpush1.bf16.msra.mxu1 %v1758_v4  ;;  %1201 = vmatprep.subr.bf16.mxu0 %v1765_v5  ;;  %v1858_v4 = vld [vmem:[%s1939_s28 + $0x3ec] ss:$16 sps:$4 sm:$0xff]   ;;  %v1853_v5 = vld [vmem:[%s1939_s28 + $0x1e8] ss:$16 sps:$4 sm:$0xff]  }
  0x58   : > { %1242 = vmatprep.subr.bf16.mxu1 %v1768_v6  ;;  %v1856_v6 = vld [vmem:[%s1939_s28 + $0x3e8] ss:$16 sps:$4 sm:$0xff]  }
  0x59   : > { %1152 = vmatmul.mubr.bf16.vlgmr.msra.gmra.mrb[0].mxu0 %v2013_v7 }
  0x5a   : > { %1193 = vmatmul.mubr.bf16.vlgmr.msra.gmra.mrb[0].mxu1 %v2015_v8  ;;  %1202 = vmatpush1.bf16.msra.mxu0 %v1763_v9 }
  0x5b   : > { %1243 = vmatpush1.bf16.msra.mxu1 %v1766_v10  ;;  %1203 = vmatprep.subr.bf16.mxu0 %v1771_v11  ;;  %v331_v10 = vld [vmem:[#allocation2] sm:$0xff] }
  0x5c   : > { %1244 = vmatprep.subr.bf16.mxu1 %v1774_v12  ;;  %1233 = vmatprep.mubr.bf16.mxu0 %v1989_v48  ;;  %v1828_v48 = vld [vmem:[%s1939_s28 + $0x34c] ss:$16 sps:$4 sm:$0xff]  }
  0x5d   : > { %1274 = vmatprep.mubr.bf16.mxu1 %v1503_v52  ;;  %v1834_v52 = vld [vmem:[%s1939_s28 + $0x36c] ss:$16 sps:$4 sm:$0xff]  }
  0x5e   : > { %1204 = vmatpush1.bf16.msra.mxu0 %v1769_v13 }
  0x5f   : > { %1245 = vmatpush1.bf16.msra.mxu1 %v1772_v14  ;;  %1205 = vmatprep.subr.bf16.mxu0 %v1777_v15  ;;  %v332_v14 = vld [vmem:[#allocation2 + $0x8] sm:$0xff] }
  0x60   : > { %1246 = vmatprep.subr.bf16.mxu1 %v1780_v16 }
  0x62   : > { %1206 = vmatpush1.bf16.msra.mxu0 %v1775_v17 }
  0x63   : > { %1247 = vmatpush1.bf16.msra.mxu1 %v1778_v18  ;;  %1207 = vmatprep.subr.bf16.mxu0 %v1783_v19 }
  0x64   : > { %1248 = vmatprep.subr.bf16.mxu1 %v1786_v20 }
  0x66   : > { %1208 = vmatpush1.bf16.msra.mxu0 %v1781_v21 }
  0x67   : > { %1249 = vmatpush1.bf16.msra.mxu1 %v1784_v22  ;;  %1209 = vmatprep.subr.bf16.mxu0 %v1789_v23 }
  0x68   : > { %1250 = vmatprep.subr.bf16.mxu1 %v1792_v24 }
  0x6a   : > { %1210 = vmatpush1.bf16.msra.mxu0 %v1787_v25 }
  0x6b   : > { %1251 = vmatpush1.bf16.msra.mxu1 %v1790_v26  ;;  %1211 = vmatprep.subr.bf16.mxu0 %v1795_v27  ;;  %v334_v26 = vld [vmem:[#allocation2 + $0x18] sm:$0xff] }
  0x6c   : > { %1252 = vmatprep.subr.bf16.mxu1 %v1798_v28 }
  0x6e   : > { %1212 = vmatpush1.bf16.msra.mxu0 %v1793_v29 }
  0x6f   : > { %1253 = vmatpush1.bf16.msra.mxu1 %v1796_v30  ;;  %1213 = vmatprep.subr.bf16.mxu0 %v1801_v31 }
  0x70   : > { %1254 = vmatprep.subr.bf16.mxu1 %v1804_v32 }
  0x72   : > { %1214 = vmatpush1.bf16.msra.mxu0 %v1799_v33 }
  0x73   : > { %1255 = vmatpush1.bf16.msra.mxu1 %v1802_v34  ;;  %1215 = vmatprep.subr.bf16.mxu0 %v1807_v35  ;;  %v1301_v35 = vlaneseq (!%p1632_p7) }
  0x74   : > { %1256 = vmatprep.subr.bf16.mxu1 %v1810_v36 }
  0x75   : > { %v1302_v36 = vshrl.u32 (!%p1632_p7), %v1301_v35, 7 }
  0x76   : > { %1216 = vmatpush1.bf16.msra.mxu0 %v1805_v37  ;;  %v1299_v37 = vld [vmem:[%s2114_s2] sm:$0xf] (!%p1632_p7) }
  0x77   : > { %1257 = vmatpush1.bf16.msra.mxu1 %v1808_v38  ;;  %1217 = vmatprep.subr.bf16.mxu0 %v1813_v39  ;;  %v1325_v38 = vld [vmem:[%s2115_s3] sm:$0xf] (!%p1632_p7)  ;;  %v1303_v39 = vsub.s32 (!%p1632_p7), 0, %v1302_v36 }
  0x78   : > { %1258 = vmatprep.subr.bf16.mxu1 %v1816_v40  ;;  %v1307_v40 = vsub.s32 (!%p1632_p7), 1, %v1302_v36 }
  0x7a   : > { %1218 = vmatpush1.bf16.msra.mxu0 %v1811_v41  ;;  %v1311_v41 = vsub.s32 (!%p1632_p7), 2, %v1302_v36 }
  0x7b   : > { %1259 = vmatpush1.bf16.msra.mxu1 %v1814_v42  ;;  %1219 = vmatprep.subr.bf16.mxu0 %v1819_v43  ;;  %v1315_v42 = vsub.s32 (!%p1632_p7), 3, %v1302_v36 }
  0x7c   : > { %1260 = vmatprep.subr.bf16.mxu1 %v1822_v44 }
  0x7e   : > { %1220 = vmatpush1.bf16.msra.mxu0 %v1817_v45  ;;  %v1304_v45 = vrot.slane (!%p1632_p7), %v1299_v37, %v1303_v39 }
  0x7f   : > { %1261 = vmatpush1.bf16.msra.mxu1 %v1820_v46  ;;  %1221 = vmatprep.subr.bf16.mxu0 %v1825_v47  ;;  %v1330_v46 = vrot.slane (!%p1632_p7), %v1325_v38, %v1303_v39  ;;  %v1308_v47 = vrot.slane (!%p1632_p7), %v1299_v37, %v1307_v40 }
  0x80   : > { %1262 = vmatprep.subr.bf16.mxu1 %v1828_v48  ;;  %v1334_v48 = vrot.slane (!%p1632_p7), %v1325_v38, %v1307_v40 }
  0x82   : > { %1222 = vmatpush1.bf16.msra.mxu0 %v1823_v49 }
  0x83   : > { %1263 = vmatpush1.bf16.msra.mxu1 %v1826_v50  ;;  %1223 = vmatprep.subr.bf16.mxu0 %v1831_v51  ;;  %v1312_v51 = vrot.slane (!%p1632_p7), %v1299_v37, %v1311_v41 }
  0x84   : > { %1264 = vmatprep.subr.bf16.mxu1 %v1834_v52  ;;  %v1338_v52 = vrot.slane (!%p1632_p7), %v1325_v38, %v1311_v41 }
  0x86   : > { %1224 = vmatpush1.bf16.msra.mxu0 %v1829_v53  ;;  %v1316_v53 = vrot.slane (!%p1632_p7), %v1299_v37, %v1315_v42 }
  0x87   : > { %1265 = vmatpush1.bf16.msra.mxu1 %v1832_v54  ;;  %1225 = vmatprep.subr.bf16.mxu0 %v1837_v55  ;;  %v1342_v54 = vrot.slane (!%p1632_p7), %v1325_v38, %v1315_v42 }
  0x88   : > { %1266 = vmatprep.subr.bf16.mxu1 %v1840_v56 }
  0x8a   : > { %1226 = vmatpush1.bf16.msra.mxu0 %v1835_v57 }
  0x8b   : > { %1267 = vmatpush1.bf16.msra.mxu1 %v1838_v58  ;;  %1227 = vmatprep.subr.bf16.mxu0 %v1843_v59 }
  0x8c   : > { %1268 = vmatprep.subr.bf16.mxu1 %v1846_v60 }
  0x8e   : > { %1228 = vmatpush1.bf16.msra.mxu0 %v1841_v61 }
  0x8f   : > { %1269 = vmatpush1.bf16.msra.mxu1 %v1844_v62  ;;  %1229 = vmatprep.subr.bf16.mxu0 %v1849_v63 }
  0x90   : > { %1270 = vmatprep.subr.bf16.mxu1 %v1852_v0 }
  0x92   : > { %1230 = vmatpush1.bf16.msra.mxu0 %v1847_v1 }
  0x93   : > { %1271 = vmatpush1.bf16.msra.mxu1 %v1850_v2  ;;  %1231 = vmatprep.subr.bf16.mxu0 %v1855_v3 }
  0x94   : > { %1272 = vmatprep.subr.bf16.mxu1 %v1858_v4 }
  0x96   : > { %1232 = vmatpush1.bf16.msra.mxu0 %v1853_v5 }
  0x97   : > { %1273 = vmatpush1.bf16.msra.mxu1 %v1856_v6 }
  0x99   : > { %1234 = vmatmul.mubr.bf16.vlgmr.msra.gmra.mrb[4].mxu0 %v2013_v7  ;;  %v333_v7 = vld [vmem:[#allocation2 + $0x10] sm:$0xff] }
  0x9a   : > { %1275 = vmatmul.mubr.bf16.vlgmr.msra.gmra.mrb[4].mxu1 %v2015_v8 }
 0x12c   : > { %v1153_v9 = vpop.f32.mrb[0].mxu0 }
 0x12d   : > { %v1194_v11 = vpop.f32.mrb[0].mxu1  ;;  %v1155_v13 = vpop.f32.mrb[1].mxu0 }
 0x12e   : > { %v1195_v12 = vadd.f32 %v1194_v11, %v1153_v9  ;;  %v1196_v15 = vpop.f32.mrb[1].mxu1  ;;  %v1157_v17 = vpop.f32.mrb[2].mxu0 }
 0x12f   : > { %v1197_v16 = vadd.f32 %v1196_v15, %v1155_v13  ;;  %v1198_v18 = vpop.f32.mrb[2].mxu1  ;;  %v1158_v20 = vpop.f32.mrb[3].mxu0 }
 0x130   : > { %v1283_v19 = vadd.f32 %v1195_v12, %v331_v10  ;;  %v1199_v21 = vpop.f32.mrb[3].mxu1 }
 0x131   : > { %v1284_v22 = vadd.f32 %v1197_v16, %v332_v14 }
 0x132   : > { %1287 = vst [vmem:[#allocation2] sm:$0xff] %v1283_v19 }
 0x133   : > { %1288 = vst [vmem:[#allocation2 + $0x8] sm:$0xff] %v1284_v22 }
 0x139   : > { %v1295_v43 = vld [vmem:[#allocation2] sm:$0xff] (!%p1632_p7) }
 0x13a   : > { %v1296_v44 = vld [vmem:[#allocation2 + $0x8] sm:$0xff] (!%p1632_p7)  ;;  %v1321_v55 = vmul.f32 (!%p1632_p7), %v1304_v45, %v1295_v43 }
 0x13b   : > { %v1322_v56 = vmul.f32 (!%p1632_p7), %v1308_v47, %v1296_v44 }
 0x13c   : > { %v1347_v59 = vadd.f32 (!%p1632_p7), %v1330_v46, %v1321_v55 }
 0x13d   : > { %v1348_v60 = vadd.f32 (!%p1632_p7), %v1334_v48, %v1322_v56 }
 0x13e   : > { %v1351_v63 = vmax.f32 (!%p1632_p7), %v1347_v59, 0.0 }
 0x13f   : > { %v1352_v0 = vmax.f32 (!%p1632_p7), %v1348_v60, 0.0 }
 0x140   : > { %1355 = vst [vmem:[%s2116_s4] sm:$0xff] (!%p1632_p7), %v1351_v63 }
 0x141   : > { %1356 = vst [vmem:[%s2116_s4 + $0x8] sm:$0xff] (!%p1632_p7), %v1352_v0 }
 0x16c   : > { %v1235_v23 = vpop.f32.mrb[4].mxu0 }
 0x16d   : > { %v1276_v24 = vpop.f32.mrb[4].mxu1  ;;  %v1237_v25 = vpop.f32.mrb[5].mxu0  ;;  %1294 = sbr.rel (%p1632_p7) target bundleno = 386 (0x182), region = 44 }
 0x16e   : > { %v1277_v8 = vadd.f32 %v1276_v24, %v1235_v23  ;;  %v1278_v27 = vpop.f32.mrb[5].mxu1  ;;  %v1239_v29 = vpop.f32.mrb[6].mxu0 }
 0x16f   : > { %v1279_v28 = vadd.f32 %v1278_v27, %v1237_v25  ;;  %v1280_v30 = vpop.f32.mrb[6].mxu1  ;;  %v1240_v32 = vpop.f32.mrb[7].mxu0 }
 0x170   : > { %v1285_v31 = vadd.f32 %v1277_v8, %v333_v7  ;;  %v1281_v33 = vpop.f32.mrb[7].mxu1 }
 0x171   : > { %v1286_v34 = vadd.f32 %v1279_v28, %v334_v26 }
 0x172   : > { %1289 = vst [vmem:[#allocation2 + $0x10] sm:$0xff] %v1285_v31 }
 0x173   : > { %1290 = vst [vmem:[#allocation2 + $0x18] sm:$0xff] %v1286_v34 }
 0x179   : > { %v1297_v49 = vld [vmem:[#allocation2 + $0x10] sm:$0xff] }
 0x17a   : > { %v1298_v50 = vld [vmem:[#allocation2 + $0x18] sm:$0xff]  ;;  %v1323_v57 = vmul.f32 %v1312_v51, %v1297_v49 }
 0x17b   : > { %v1324_v58 = vmul.f32 %v1316_v53, %v1298_v50 }
 0x17c   : > { %v1349_v61 = vadd.f32 %v1338_v52, %v1323_v57 }
 0x17d   : > { %v1350_v62 = vadd.f32 %v1342_v54, %v1324_v58 }
 0x17e   : > { %v1353_v1 = vmax.f32 %v1349_v61, 0.0 }
 0x17f   : > { %v1354_v2 = vmax.f32 %v1350_v62, 0.0 }
 0x180   : > { %1357 = vst [vmem:[%s2116_s4 + $0x10] sm:$0xff] %v1353_v1 }
 0x181   : > { %1358 = vst [vmem:[%s2116_s4 + $0x18] sm:$0xff] %v1354_v2 }
 0x182 PF: > { %s14_s17 = sadd.s32 1, %s1881_s17   ;;  %s2117_s15 = smov %s1877_s16 }
 0x183   : > { %p11_p8 = scmp.ge.s32.totalorder %s14_s17, 11   ;;  %s2118_s16 = smov %s2120_s18 }
 0x185   :  { %13 = sbr.rel (!%p11_p8) target bundleno = 2 (0x2), region = 83 }

// kernel: resnet18_forward.43
= control target key start
LH: loop header
LB: loop body
LE: loop exit
PB: predicated region body
PF: predicated region fallthrough
CT: control target
= control target key end

     0   :  { %s92_s0 = inlined_call_operand.vmem [shape: f32[2,1,512], index: 0, kind: input, shape index: {}]   ;;  %s93_s1 = inlined_call_operand.hbm [shape: f32[2,512], index: 1, kind: output, shape index: {}]  }
   0x1   :  { %v41_v0 = vld [vmem:[%s92_s0] sm:$0xff]  }
   0x2   :  { %6 = vsyncpa [#allocation3], 0  ;;  %s66_s8 = smov [#allocation2]   ;;  %39 = vst.sshfl [vmem:[#allocation2] sm:$0xff pattern:$0x75316420] %v41_v0 }
   0x3   :  { %s31_s9 = sshll.u32 %s66_s8, 4  ;;  %s32_s9 = int_to_ptr.vmem [resolvable:$true] %s31_s9 }
   0x4   :  { %s42_s10 = scalar_lea.vmem %s32_s9, 128  ;;  %p47_p1 = scmp.lt.s32.totalorder %s32_s9, %s32_s9 }
   0x5   :  { %p43_p0 = scmp.ne.s32.totalorder %s32_s9, %s42_s10  ;;  %p48_p2 = scmp.lt.s32.totalorder %s42_s10, %s42_s10 }
   0x7   :  { %p49_p3 = por %p48_p2, %p47_p1 }
   0x9   :  { %p50_p4 = pnand %p49_p3, %p43_p0 }
   0xb   :  { %53 = shalt.err (!%p50_p4)
}
   0xc   :  { %s54_s13 = scalar_lea.hbm %s93_s1, 128 }
   0xd   :  { %p55_p5 = scmp.ne.s32.totalorder %s93_s1, %s54_s13  ;;  %p58_p6 = scmp.lt.u32.totalorder %s54_s13, %s93_s1 }
   0xf   :  { %p60_p7 = pnand %p58_p6, %p55_p5 }
  0x11   :  { %63 = shalt.err (!%p60_p7)
}
  0x12   :  { %34 = dma.vmem_to_hbm [thread:$0]  %s32_s9, 128, %s93_s1, [#allocation3]  }
  0x13   :  { %64 = dma.done.wait [#allocation3], 128  }
  0x14   :  { %65 = vsyncadd [#allocation3], 4294967168 }
  0x15   :  { %38 = vsyncpa [#allocation3], 1 }

</bundles_post_ra>
